<compile_context>
chip_gen: v6e
topology: v6e:2x2x1
jax: 0.10.0
libtpu: 0.0.40
codegen_flags: <defaults>
</compile_context>

<pallas_src>
import jax
import jax.numpy as jnp
from jax.experimental import pallas as pl
from jax.experimental.pallas import tpu as pltpu

THETA_DIM = 85
THETA_PAD = 128       # lane-dense padded theta width


def _round_up(a, b):
    return (a + b - 1) // b * b


# ----------------------------------------------------------------------------
# Fused kernel: pose lifter + mesh regressor for a block of TN frames.
# joint_feats never leaves the chip.
# ----------------------------------------------------------------------------
def pmce_fused_kernel(x_ref, img_ref, mk_ref,
                      w_emb_ref, b_emb_ref, w_img_ref, w_out_ref, b_out_ref,
                      w_m_ref, b_m_ref, w_th_ref, b_th_ref,
                      w_j3d_ref, b_kp_ref,
                      theta_ref, kp_ref):
    TN = x_ref.shape[0]
    J = x_ref.shape[1] // 2         # planar layout: [x0..xJ-1, y0..yJ-1]
    M = mk_ref.shape[1] // 3        # planar layout: [mx.., my.., mz..]
    D = w_emb_ref.shape[1]

    # ------------------------- pose lifter -------------------------
    xs = x_ref[:, :J]                                   # [TN, J]
    ys = x_ref[:, J:]                                   # [TN, J]

    # K=2 joint embedding as VPU FMAs (a K=2 matmul would waste the MXU).
    h = (xs[:, :, None] * w_emb_ref[0]
         + ys[:, :, None] * w_emb_ref[1]
         + b_emb_ref[0])                                # [TN, J, D]

    img_proj = jnp.dot(img_ref[...], w_img_ref[...],
                       preferred_element_type=jnp.float32)   # [TN, D]
    h = jnp.maximum(h + img_proj[:, None, :], 0.0)            # fuse image feat + ReLU

    jf = jnp.dot(h.reshape(TN * J, D), w_out_ref[...],
                 preferred_element_type=jnp.float32) + b_out_ref[0]
    jf = jf.reshape(TN, J, D)                           # joint_feats, kept on-chip

    # ------------------------ mesh regressor -----------------------
    mx = mk_ref[:, :M]
    my = mk_ref[:, M:2 * M]
    mz = mk_ref[:, 2 * M:]
    # K=3 marker embedding as VPU FMAs.
    m_emb = (mx[:, :, None] * w_m_ref[0]
             + my[:, :, None] * w_m_ref[1]
             + mz[:, :, None] * w_m_ref[2]
             + b_m_ref[0])                              # [TN, M, D]
    m_emb = jnp.maximum(m_emb, 0.0)

    # mean-pool over joint + marker tokens without materializing a concat
    pooled = (jnp.sum(jf, axis=1) + jnp.sum(m_emb, axis=1)) * (1.0 / (J + M))

    # theta head: weights pre-padded to 128 lanes -> unmasked dense store
    theta_ref[...] = jnp.dot(pooled, w_th_ref[...],
                             preferred_element_type=jnp.float32) + b_th_ref[0]

    # kp3d head: only 3 output columns -> three VPU mul + lane reductions
    kp_x = jnp.sum(jf * w_j3d_ref[0], axis=2)           # [TN, J]
    kp_y = jnp.sum(jf * w_j3d_ref[1], axis=2)
    kp_z = jnp.sum(jf * w_j3d_ref[2], axis=2)
    kp_ref[...] = jnp.concatenate([kp_x, kp_y, kp_z], axis=1) + b_kp_ref[0]


# ----------------------------------------------------------------------------
# Wrapper: grid over N = B*T frames, double-buffered row blocks.
# ----------------------------------------------------------------------------
def _fused_forward(params_p, x_planar, img_flat, mk_planar, *, block_n=128):
    N, twoJ = x_planar.shape
    J = twoJ // 2
    C = img_flat.shape[1]
    threeM = mk_planar.shape[1]
    M = threeM // 3
    D = params_p["w_emb"].shape[1]

    # Row-block size: multiple of 8 sublanes; sized to fit v7x's smaller VMEM
    # with double buffering (block_n=128 is conservative on all generations).
    TN = block_n if N >= block_n else _round_up(N, 8)
    N_pad = _round_up(N, TN)
    if N_pad != N:
        pad = ((0, N_pad - N), (0, 0))
        x_planar = jnp.pad(x_planar, pad)
        img_flat = jnp.pad(img_flat, pad)
        mk_planar = jnp.pad(mk_planar, pad)

    grid = (N_pad // TN,)

    def row_spec(width):
        return pl.BlockSpec((TN, width), lambda i: (i, 0))

    def full_spec(arr):
        shp = tuple(arr.shape)
        return pl.BlockSpec(shp, lambda i, _z=(0,) * len(shp): _z)

    weights = (params_p["w_emb"], params_p["b_emb"], params_p["w_img"],
               params_p["w_out"], params_p["b_out"],
               params_p["w_m"], params_p["b_m"],
               params_p["w_theta_pad"], params_p["b_theta_pad"],
               params_p["w_j3d_t"], params_p["b_kp"])

    in_specs = ([row_spec(twoJ), row_spec(C), row_spec(threeM)]
                + [full_spec(w) for w in weights])
    out_specs = (row_spec(THETA_PAD), row_spec(3 * J))

    # Advisory cost estimate so XLA can overlap this small call with other HLO.
    flops = int(2 * N_pad * (C * D + J * D * D + D * THETA_PAD
                             + 2 * J * D + 3 * M * D + 3 * J * D))
    w_bytes = int(sum(int(w.size) for w in weights) * 4)
    bytes_accessed = int(4 * N_pad * (twoJ + C + threeM + THETA_PAD + 3 * J)
                         + w_bytes)

    theta_pad, kp_planar = pl.pallas_call(
        pmce_fused_kernel,
        out_shape=(jax.ShapeDtypeStruct((N_pad, THETA_PAD), jnp.float32),
                   jax.ShapeDtypeStruct((N_pad, 3 * J), jnp.float32)),
        grid_spec=pltpu.PrefetchScalarGridSpec(
            num_scalar_prefetch=0,
            grid=grid,
            in_specs=in_specs,
            out_specs=out_specs),
        compiler_params=pltpu.CompilerParams(
            dimension_semantics=("parallel",),
            vmem_limit_bytes=32 * 1024 * 1024),
        cost_estimate=pl.CostEstimate(flops=flops, transcendentals=0,
                                      bytes_accessed=bytes_accessed),
    )(x_planar, img_flat, mk_planar, *weights)

    return theta_pad[:N, :THETA_DIM], kp_planar[:N]


def prepare_params(params, J):
    """Layout plumbing done once on the host side (pad / transpose / tile)."""
    n_theta = params["w_theta"].shape[1]
    w_theta_pad = jnp.pad(params["w_theta"], ((0, 0), (0, THETA_PAD - n_theta)))
    b_theta_pad = jnp.pad(params["b_theta"], ((0, 0), (0, THETA_PAD - n_theta)))
    w_j3d_t = params["w_j3d"].T                               # [3, D]
    b_kp = jnp.repeat(params["b_j3d"].reshape(3, 1), J, axis=1).reshape(1, 3 * J)
    return {
        "w_emb": params["w_emb"], "b_emb": params["b_emb"],
        "w_img": params["w_img"],
        "w_out": params["w_out"], "b_out": params["b_out"],
        "w_m": params["w_m"], "b_m": params["b_m"],
        "w_theta_pad": w_theta_pad, "b_theta_pad": b_theta_pad,
        "w_j3d_t": w_j3d_t, "b_kp": b_kp,
    }


def network_forward(params, x, marker, img_features=None, mask=None,
                    cam_intrinsics=None, bbox=None, res=None, block_n=128):
    """Mirrors Network.forward: pose_lifter -> joint_feats -> mesh_regressor,
    fused into a single Pallas call (joint_feats never round-trips to HBM)."""
    B, T, J, _ = x.shape
    M = marker.shape[2]
    N = B * T

    # Planar coordinate layout so the kernel takes contiguous lane slices.
    x_planar = (x.reshape(N, J, 2).transpose(0, 2, 1)
                .reshape(N, 2 * J).astype(jnp.float32))
    mk_planar = (marker.reshape(N, M, 3).transpose(0, 2, 1)
                 .reshape(N, 3 * M).astype(jnp.float32))
    img_flat = img_features.reshape(N, -1).astype(jnp.float32)

    # TODO(synk): mask / cam_intrinsics / bbox / res plumbing of the original
    # submodules is not reproducible without their source; unused here.
    params_p = prepare_params(params, J)
    theta, kp_planar = _fused_forward(params_p, x_planar, img_flat, mk_planar,
                                      block_n=block_n)

    kp_3d = kp_planar.reshape(N, 3, J).transpose(0, 2, 1)
    return {
        "theta": theta.reshape(B, T, THETA_DIM),
        "kp_3d": kp_3d.reshape(B, T, J, 3),
    }


# ----------------------------------------------------------------------------
# Deterministic parameters + pure-JAX reference for verification
# ----------------------------------------------------------------------------
def make_params(key, in_dim=2, img_dim=32, hidden=32, n_theta=THETA_DIM):
    ks = jax.random.split(key, 11)
    s = 0.05

    def nrm(k, shape):
        return s * jax.random.normal(k, shape, jnp.float32)

    return {
        # pose lifter
        "w_emb": nrm(ks[0], (in_dim, hidden)),
        "b_emb": nrm(ks[1], (1, hidden)),
        "w_img": nrm(ks[2], (img_dim, hidden)),
        "w_out": nrm(ks[3], (hidden, hidden)),
        "b_out": nrm(ks[4], (1, hidden)),
        # mesh regressor
        "w_m": nrm(ks[5], (3, hidden)),
        "b_m": nrm(ks[6], (1, hidden)),
        "w_theta": nrm(ks[7], (hidden, n_theta)),
        "b_theta": nrm(ks[8], (1, n_theta)),
        "w_j3d": nrm(ks[9], (hidden, 3)),
        "b_j3d": nrm(ks[10], (1, 3)),
    }


def reference_forward(params, x, marker, img_features):
    B, T, J, _ = x.shape
    M = marker.shape[2]
    N = B * T
    D = params["w_emb"].shape[1]
    xf = x.reshape(N * J, 2).astype(jnp.float32)
    h = xf @ params["w_emb"] + params["b_emb"]
    img_proj = img_features.reshape(N, -1).astype(jnp.float32) @ params["w_img"]
    h = jnp.maximum(h.reshape(N, J, D) + img_proj[:, None, :], 0.0)
    jf = (h.reshape(N * J, D) @ params["w_out"] + params["b_out"]).reshape(N, J, D)
    m = marker.reshape(N * M, 3).astype(jnp.float32) @ params["w_m"] + params["b_m"]
    m = jnp.maximum(m, 0.0).reshape(N, M, D)
    pooled = (jf.sum(axis=1) + m.sum(axis=1)) / (J + M)
    theta = pooled @ params["w_theta"] + params["b_theta"]
    kp = (jf.reshape(N * J, D) @ params["w_j3d"] + params["b_j3d"]).reshape(N, J, 3)
    return {"theta": theta.reshape(B, T, -1), "kp_3d": kp.reshape(B, T, J, 3)}


if __name__ == "__main__":
    B, T, J, M = 2, 8, 17, 8          # batch, seqlen, joints, markers
    IMG_C, HIDDEN = 32, 32

    key = jax.random.PRNGKey(0)
    k_x, k_m, k_i, k_p = jax.random.split(key, 4)

    x = jax.random.normal(k_x, (B, T, J, 2), jnp.float32)        # 2-D poses
    marker = jax.random.normal(k_m, (B, T, M, 3), jnp.float32)   # 3-D markers
    img_features = jax.random.normal(k_i, (B, T, IMG_C), jnp.float32)

    params = make_params(k_p, in_dim=2, img_dim=IMG_C, hidden=HIDDEN,
                         n_theta=THETA_DIM)

    out = jax.jit(network_forward)(params, x, marker, img_features)
    jax.block_until_ready(out)

    assert out["theta"].shape == (B, T, THETA_DIM)
    assert out["kp_3d"].shape == (B, T, J, 3)

    ref = reference_forward(params, x, marker, img_features)
    assert jnp.allclose(out["theta"], ref["theta"], atol=2e-3, rtol=2e-3)
    assert jnp.allclose(out["kp_3d"], ref["kp_3d"], atol=2e-3, rtol=2e-3)

    print("KERNEL_OK")
</pallas_src>

<mosaic_0001>
module attributes {stable_mosaic.version = 11 : i64} {
  func.func @pmce_fused_kernel(%arg0: i32, %arg1: memref<16x34xf32, #tpu.memory_space<vmem>>, %arg2: memref<16x32xf32, #tpu.memory_space<vmem>>, %arg3: memref<16x24xf32, #tpu.memory_space<vmem>>, %arg4: memref<2x32xf32, #tpu.memory_space<vmem>>, %arg5: memref<1x32xf32, #tpu.memory_space<vmem>>, %arg6: memref<32x32xf32, #tpu.memory_space<vmem>>, %arg7: memref<32x32xf32, #tpu.memory_space<vmem>>, %arg8: memref<1x32xf32, #tpu.memory_space<vmem>>, %arg9: memref<3x32xf32, #tpu.memory_space<vmem>>, %arg10: memref<1x32xf32, #tpu.memory_space<vmem>>, %arg11: memref<32x128xf32, #tpu.memory_space<vmem>>, %arg12: memref<1x128xf32, #tpu.memory_space<vmem>>, %arg13: memref<3x32xf32, #tpu.memory_space<vmem>>, %arg14: memref<1x51xf32, #tpu.memory_space<vmem>>, %arg15: memref<16x128xf32, #tpu.memory_space<vmem>>, %arg16: memref<16x51xf32, #tpu.memory_space<vmem>>) attributes {dimension_semantics = [#tpu.dimension_semantics<parallel>], iteration_bounds = array<i64: 1>, scalar_prefetch = 0 : i64, scratch_operands = 0 : i64, tpu.core_type = #tpu.core_type<tc>, window_params = [{transform_indices = @transform_0, window_bounds = array<i64: 16, 34>}, {transform_indices = @transform_1, window_bounds = array<i64: 16, 32>}, {transform_indices = @transform_2, window_bounds = array<i64: 16, 24>}, {pipeline_mode = #tpu.pipeline_mode<synchronous>, transform_indices = @transform_3, window_bounds = array<i64: 2, 32>}, {pipeline_mode = #tpu.pipeline_mode<synchronous>, transform_indices = @transform_4, window_bounds = array<i64: 1, 32>}, {pipeline_mode = #tpu.pipeline_mode<synchronous>, transform_indices = @transform_5, window_bounds = array<i64: 32, 32>}, {pipeline_mode = #tpu.pipeline_mode<synchronous>, transform_indices = @transform_6, window_bounds = array<i64: 32, 32>}, {pipeline_mode = #tpu.pipeline_mode<synchronous>, transform_indices = @transform_7, window_bounds = array<i64: 1, 32>}, {pipeline_mode = #tpu.pipeline_mode<synchronous>, transform_indices = @transform_8, window_bounds = array<i64: 3, 32>}, {pipeline_mode = #tpu.pipeline_mode<synchronous>, transform_indices = @transform_9, window_bounds = array<i64: 1, 32>}, {pipeline_mode = #tpu.pipeline_mode<synchronous>, transform_indices = @transform_10, window_bounds = array<i64: 32, 128>}, {pipeline_mode = #tpu.pipeline_mode<synchronous>, transform_indices = @transform_11, window_bounds = array<i64: 1, 128>}, {pipeline_mode = #tpu.pipeline_mode<synchronous>, transform_indices = @transform_12, window_bounds = array<i64: 3, 32>}, {pipeline_mode = #tpu.pipeline_mode<synchronous>, transform_indices = @transform_13, window_bounds = array<i64: 1, 51>}, {transform_indices = @transform_14, window_bounds = array<i64: 16, 128>}, {transform_indices = @transform_15, window_bounds = array<i64: 16, 51>}]} {
    %c0 = arith.constant 0 : index
    %c0_0 = arith.constant 0 : index
    %0 = vector.load %arg1[%c0, %c0_0] : memref<16x34xf32, #tpu.memory_space<vmem>>, vector<16x17xf32>
    %c0_1 = arith.constant 0 : index
    %c17 = arith.constant 17 : index
    %1 = vector.load %arg1[%c0_1, %c17] : memref<16x34xf32, #tpu.memory_space<vmem>>, vector<16x17xf32>
    %2 = vector.shape_cast %0 : vector<16x17xf32> to vector<16x17x1xf32>
    %c0_2 = arith.constant 0 : index
    %c0_3 = arith.constant 0 : index
    %3 = vector.load %arg4[%c0_2, %c0_3] : memref<2x32xf32, #tpu.memory_space<vmem>>, vector<1x32xf32>
    %4 = vector.shape_cast %3 : vector<1x32xf32> to vector<32xf32>
    %5 = vector.shape_cast %4 : vector<32xf32> to vector<1x1x32xf32>
    %6 = vector.broadcast %2 : vector<16x17x1xf32> to vector<16x17x32xf32>
    %7 = vector.broadcast %5 : vector<1x1x32xf32> to vector<16x17x32xf32>
    %8 = arith.mulf %6, %7 : vector<16x17x32xf32>
    %9 = vector.shape_cast %1 : vector<16x17xf32> to vector<16x17x1xf32>
    %c1 = arith.constant 1 : index
    %c0_4 = arith.constant 0 : index
    %10 = vector.load %arg4[%c1, %c0_4] : memref<2x32xf32, #tpu.memory_space<vmem>>, vector<1x32xf32>
    %11 = vector.shape_cast %10 : vector<1x32xf32> to vector<32xf32>
    %12 = vector.shape_cast %11 : vector<32xf32> to vector<1x1x32xf32>
    %13 = vector.broadcast %9 : vector<16x17x1xf32> to vector<16x17x32xf32>
    %14 = vector.broadcast %12 : vector<1x1x32xf32> to vector<16x17x32xf32>
    %15 = arith.mulf %13, %14 : vector<16x17x32xf32>
    %16 = arith.addf %8, %15 : vector<16x17x32xf32>
    %c0_5 = arith.constant 0 : index
    %c0_6 = arith.constant 0 : index
    %17 = vector.load %arg5[%c0_5, %c0_6] : memref<1x32xf32, #tpu.memory_space<vmem>>, vector<1x32xf32>
    %18 = vector.shape_cast %17 : vector<1x32xf32> to vector<32xf32>
    %19 = vector.shape_cast %18 : vector<32xf32> to vector<1x1x32xf32>
    %20 = vector.broadcast %19 : vector<1x1x32xf32> to vector<16x17x32xf32>
    %21 = arith.addf %16, %20 : vector<16x17x32xf32>
    %c0_7 = arith.constant 0 : index
    %c0_8 = arith.constant 0 : index
    %22 = vector.load %arg2[%c0_7, %c0_8] : memref<16x32xf32, #tpu.memory_space<vmem>>, vector<16x32xf32>
    %c0_9 = arith.constant 0 : index
    %c0_10 = arith.constant 0 : index
    %23 = vector.load %arg6[%c0_9, %c0_10] : memref<32x32xf32, #tpu.memory_space<vmem>>, vector<32x32xf32>
    %cst = arith.constant dense<0.000000e+00> : vector<16x32xf32>
    %24 = tpu.matmul %22, %23, %cst {dimension_numbers = #tpu.dot_dimension_numbers<[1], [0], [0], [1], [0, 0, 1, 1], [], []>} : vector<16x32xf32>, vector<32x32xf32>, vector<16x32xf32> -> vector<16x32xf32>
    %25 = vector.shape_cast %24 : vector<16x32xf32> to vector<16x1x32xf32>
    %26 = vector.broadcast %25 : vector<16x1x32xf32> to vector<16x17x32xf32>
    %27 = arith.addf %21, %26 : vector<16x17x32xf32>
    %cst_11 = arith.constant 0.000000e+00 : f32
    %28 = vector.broadcast %cst_11 : f32 to vector<16x17x32xf32>
    %29 = arith.maximumf %27, %28 : vector<16x17x32xf32>
    %30 = vector.shape_cast %29 : vector<16x17x32xf32> to vector<272x32xf32>
    %c0_12 = arith.constant 0 : index
    %c0_13 = arith.constant 0 : index
    %31 = vector.load %arg7[%c0_12, %c0_13] : memref<32x32xf32, #tpu.memory_space<vmem>>, vector<32x32xf32>
    %cst_14 = arith.constant dense<0.000000e+00> : vector<272x32xf32>
    %32 = tpu.matmul %30, %31, %cst_14 {dimension_numbers = #tpu.dot_dimension_numbers<[1], [0], [0], [1], [0, 0, 1, 1], [], []>} : vector<272x32xf32>, vector<32x32xf32>, vector<272x32xf32> -> vector<272x32xf32>
    %c0_15 = arith.constant 0 : index
    %c0_16 = arith.constant 0 : index
    %33 = vector.load %arg8[%c0_15, %c0_16] : memref<1x32xf32, #tpu.memory_space<vmem>>, vector<1x32xf32>
    %34 = vector.shape_cast %33 : vector<1x32xf32> to vector<32xf32>
    %35 = vector.shape_cast %34 : vector<32xf32> to vector<1x32xf32>
    %36 = vector.broadcast %35 : vector<1x32xf32> to vector<272x32xf32>
    %37 = arith.addf %32, %36 : vector<272x32xf32>
    %38 = vector.shape_cast %37 : vector<272x32xf32> to vector<16x17x32xf32>
    %c0_17 = arith.constant 0 : index
    %c0_18 = arith.constant 0 : index
    %39 = vector.load %arg3[%c0_17, %c0_18] : memref<16x24xf32, #tpu.memory_space<vmem>>, vector<16x8xf32>
    %c0_19 = arith.constant 0 : index
    %c8 = arith.constant 8 : index
    %40 = vector.load %arg3[%c0_19, %c8] : memref<16x24xf32, #tpu.memory_space<vmem>>, vector<16x8xf32>
    %c0_20 = arith.constant 0 : index
    %c16 = arith.constant 16 : index
    %41 = vector.load %arg3[%c0_20, %c16] : memref<16x24xf32, #tpu.memory_space<vmem>>, vector<16x8xf32>
    %42 = vector.shape_cast %39 : vector<16x8xf32> to vector<16x8x1xf32>
    %c0_21 = arith.constant 0 : index
    %c0_22 = arith.constant 0 : index
    %43 = vector.load %arg9[%c0_21, %c0_22] : memref<3x32xf32, #tpu.memory_space<vmem>>, vector<1x32xf32>
    %44 = vector.shape_cast %43 : vector<1x32xf32> to vector<32xf32>
    %45 = vector.shape_cast %44 : vector<32xf32> to vector<1x1x32xf32>
    %46 = vector.broadcast %42 : vector<16x8x1xf32> to vector<16x8x32xf32>
    %47 = vector.broadcast %45 : vector<1x1x32xf32> to vector<16x8x32xf32>
    %48 = arith.mulf %46, %47 : vector<16x8x32xf32>
    %49 = vector.shape_cast %40 : vector<16x8xf32> to vector<16x8x1xf32>
    %c1_23 = arith.constant 1 : index
    %c0_24 = arith.constant 0 : index
    %50 = vector.load %arg9[%c1_23, %c0_24] : memref<3x32xf32, #tpu.memory_space<vmem>>, vector<1x32xf32>
    %51 = vector.shape_cast %50 : vector<1x32xf32> to vector<32xf32>
    %52 = vector.shape_cast %51 : vector<32xf32> to vector<1x1x32xf32>
    %53 = vector.broadcast %49 : vector<16x8x1xf32> to vector<16x8x32xf32>
    %54 = vector.broadcast %52 : vector<1x1x32xf32> to vector<16x8x32xf32>
    %55 = arith.mulf %53, %54 : vector<16x8x32xf32>
    %56 = arith.addf %48, %55 : vector<16x8x32xf32>
    %57 = vector.shape_cast %41 : vector<16x8xf32> to vector<16x8x1xf32>
    %c2 = arith.constant 2 : index
    %c0_25 = arith.constant 0 : index
    %58 = vector.load %arg9[%c2, %c0_25] : memref<3x32xf32, #tpu.memory_space<vmem>>, vector<1x32xf32>
    %59 = vector.shape_cast %58 : vector<1x32xf32> to vector<32xf32>
    %60 = vector.shape_cast %59 : vector<32xf32> to vector<1x1x32xf32>
    %61 = vector.broadcast %57 : vector<16x8x1xf32> to vector<16x8x32xf32>
    %62 = vector.broadcast %60 : vector<1x1x32xf32> to vector<16x8x32xf32>
    %63 = arith.mulf %61, %62 : vector<16x8x32xf32>
    %64 = arith.addf %56, %63 : vector<16x8x32xf32>
    %c0_26 = arith.constant 0 : index
    %c0_27 = arith.constant 0 : index
    %65 = vector.load %arg10[%c0_26, %c0_27] : memref<1x32xf32, #tpu.memory_space<vmem>>, vector<1x32xf32>
    %66 = vector.shape_cast %65 : vector<1x32xf32> to vector<32xf32>
    %67 = vector.shape_cast %66 : vector<32xf32> to vector<1x1x32xf32>
    %68 = vector.broadcast %67 : vector<1x1x32xf32> to vector<16x8x32xf32>
    %69 = arith.addf %64, %68 : vector<16x8x32xf32>
    %cst_28 = arith.constant 0.000000e+00 : f32
    %70 = vector.broadcast %cst_28 : f32 to vector<16x8x32xf32>
    %71 = arith.maximumf %69, %70 : vector<16x8x32xf32>
    %cst_29 = arith.constant dense<0.000000e+00> : vector<16x32xf32>
    %72 = vector.multi_reduction <add>, %38, %cst_29 [1] : vector<16x17x32xf32> to vector<16x32xf32>
    %cst_30 = arith.constant dense<0.000000e+00> : vector<16x32xf32>
    %73 = vector.multi_reduction <add>, %71, %cst_30 [1] : vector<16x8x32xf32> to vector<16x32xf32>
    %74 = arith.addf %72, %73 : vector<16x32xf32>
    %cst_31 = arith.constant 4.000000e-02 : f32
    %75 = vector.broadcast %cst_31 : f32 to vector<16x32xf32>
    %76 = arith.mulf %74, %75 : vector<16x32xf32>
    %c0_32 = arith.constant 0 : index
    %c0_33 = arith.constant 0 : index
    %77 = vector.load %arg11[%c0_32, %c0_33] : memref<32x128xf32, #tpu.memory_space<vmem>>, vector<32x128xf32>
    %cst_34 = arith.constant dense<0.000000e+00> : vector<16x128xf32>
    %78 = tpu.matmul %76, %77, %cst_34 {dimension_numbers = #tpu.dot_dimension_numbers<[1], [0], [0], [1], [0, 0, 1, 1], [], []>} : vector<16x32xf32>, vector<32x128xf32>, vector<16x128xf32> -> vector<16x128xf32>
    %c0_35 = arith.constant 0 : index
    %c0_36 = arith.constant 0 : index
    %79 = vector.load %arg12[%c0_35, %c0_36] : memref<1x128xf32, #tpu.memory_space<vmem>>, vector<1x128xf32>
    %80 = vector.shape_cast %79 : vector<1x128xf32> to vector<128xf32>
    %81 = vector.shape_cast %80 : vector<128xf32> to vector<1x128xf32>
    %82 = vector.broadcast %81 : vector<1x128xf32> to vector<16x128xf32>
    %83 = arith.addf %78, %82 : vector<16x128xf32>
    %c0_37 = arith.constant 0 : index
    %c0_38 = arith.constant 0 : index
    %84 = vector.load %arg15[%c0_37, %c0_38] : memref<16x128xf32, #tpu.memory_space<vmem>>, vector<16x128xf32>
    tpu.vector_store %arg15[%c0_37, %c0_38], %83 {strides = array<i32>} : memref<16x128xf32, #tpu.memory_space<vmem>>, vector<16x128xf32>,
    %c0_39 = arith.constant 0 : index
    %c0_40 = arith.constant 0 : index
    %85 = vector.load %arg13[%c0_39, %c0_40] : memref<3x32xf32, #tpu.memory_space<vmem>>, vector<1x32xf32>
    %86 = vector.shape_cast %85 : vector<1x32xf32> to vector<32xf32>
    %87 = vector.shape_cast %86 : vector<32xf32> to vector<1x1x32xf32>
    %88 = vector.broadcast %87 : vector<1x1x32xf32> to vector<16x17x32xf32>
    %89 = arith.mulf %38, %88 : vector<16x17x32xf32>
    %cst_41 = arith.constant dense<0.000000e+00> : vector<16x17xf32>
    %90 = vector.multi_reduction <add>, %89, %cst_41 [2] : vector<16x17x32xf32> to vector<16x17xf32>
    %c1_42 = arith.constant 1 : index
    %c0_43 = arith.constant 0 : index
    %91 = vector.load %arg13[%c1_42, %c0_43] : memref<3x32xf32, #tpu.memory_space<vmem>>, vector<1x32xf32>
    %92 = vector.shape_cast %91 : vector<1x32xf32> to vector<32xf32>
    %93 = vector.shape_cast %92 : vector<32xf32> to vector<1x1x32xf32>
    %94 = vector.broadcast %93 : vector<1x1x32xf32> to vector<16x17x32xf32>
    %95 = arith.mulf %38, %94 : vector<16x17x32xf32>
    %cst_44 = arith.constant dense<0.000000e+00> : vector<16x17xf32>
    %96 = vector.multi_reduction <add>, %95, %cst_44 [2] : vector<16x17x32xf32> to vector<16x17xf32>
    %c2_45 = arith.constant 2 : index
    %c0_46 = arith.constant 0 : index
    %97 = vector.load %arg13[%c2_45, %c0_46] : memref<3x32xf32, #tpu.memory_space<vmem>>, vector<1x32xf32>
    %98 = vector.shape_cast %97 : vector<1x32xf32> to vector<32xf32>
    %99 = vector.shape_cast %98 : vector<32xf32> to vector<1x1x32xf32>
    %100 = vector.broadcast %99 : vector<1x1x32xf32> to vector<16x17x32xf32>
    %101 = arith.mulf %38, %100 : vector<16x17x32xf32>
    %cst_47 = arith.constant dense<0.000000e+00> : vector<16x17xf32>
    %102 = vector.multi_reduction <add>, %101, %cst_47 [2] : vector<16x17x32xf32> to vector<16x17xf32>
    %103 = tpu.concatenate %90, %96, %102 in 1 : vector<16x17xf32>, vector<16x17xf32>, vector<16x17xf32> -> vector<16x51xf32>
    %c0_48 = arith.constant 0 : index
    %c0_49 = arith.constant 0 : index
    %104 = vector.load %arg14[%c0_48, %c0_49] : memref<1x51xf32, #tpu.memory_space<vmem>>, vector<1x51xf32>
    %105 = vector.shape_cast %104 : vector<1x51xf32> to vector<51xf32>
    %106 = vector.shape_cast %105 : vector<51xf32> to vector<1x51xf32>
    %107 = vector.broadcast %106 : vector<1x51xf32> to vector<16x51xf32>
    %108 = arith.addf %103, %107 : vector<16x51xf32>
    %c0_50 = arith.constant 0 : index
    %c0_51 = arith.constant 0 : index
    %109 = vector.load %arg16[%c0_50, %c0_51] : memref<16x51xf32, #tpu.memory_space<vmem>>, vector<16x51xf32>
    tpu.vector_store %arg16[%c0_50, %c0_51], %108 {strides = array<i32>} : memref<16x51xf32, #tpu.memory_space<vmem>>, vector<16x51xf32>,
    return
  }
  func.func @transform_0(%arg0: i32) -> (i32, i32) {
    %c0_i32 = arith.constant 0 : i32
    %c0_i32_0 = arith.constant 0 : i32
    return %arg0, %c0_i32 : i32, i32
  }
  func.func @transform_1(%arg0: i32) -> (i32, i32) {
    %c0_i32 = arith.constant 0 : i32
    %c0_i32_0 = arith.constant 0 : i32
    return %arg0, %c0_i32 : i32, i32
  }
  func.func @transform_2(%arg0: i32) -> (i32, i32) {
    %c0_i32 = arith.constant 0 : i32
    %c0_i32_0 = arith.constant 0 : i32
    return %arg0, %c0_i32 : i32, i32
  }
  func.func @transform_3(%arg0: i32) -> (i32, i32) {
    %c0_i32 = arith.constant 0 : i32
    %c0_i32_0 = arith.constant 0 : i32
    %c0_i32_1 = arith.constant 0 : i32
    return %c0_i32, %c0_i32_0 : i32, i32
  }
  func.func @transform_4(%arg0: i32) -> (i32, i32) {
    %c0_i32 = arith.constant 0 : i32
    %c0_i32_0 = arith.constant 0 : i32
    %c0_i32_1 = arith.constant 0 : i32
    return %c0_i32, %c0_i32_0 : i32, i32
  }
  func.func @transform_5(%arg0: i32) -> (i32, i32) {
    %c0_i32 = arith.constant 0 : i32
    %c0_i32_0 = arith.constant 0 : i32
    %c0_i32_1 = arith.constant 0 : i32
    return %c0_i32, %c0_i32_0 : i32, i32
  }
  func.func @transform_6(%arg0: i32) -> (i32, i32) {
    %c0_i32 = arith.constant 0 : i32
    %c0_i32_0 = arith.constant 0 : i32
    %c0_i32_1 = arith.constant 0 : i32
    return %c0_i32, %c0_i32_0 : i32, i32
  }
  func.func @transform_7(%arg0: i32) -> (i32, i32) {
    %c0_i32 = arith.constant 0 : i32
    %c0_i32_0 = arith.constant 0 : i32
    %c0_i32_1 = arith.constant 0 : i32
    return %c0_i32, %c0_i32_0 : i32, i32
  }
  func.func @transform_8(%arg0: i32) -> (i32, i32) {
    %c0_i32 = arith.constant 0 : i32
    %c0_i32_0 = arith.constant 0 : i32
    %c0_i32_1 = arith.constant 0 : i32
    return %c0_i32, %c0_i32_0 : i32, i32
  }
  func.func @transform_9(%arg0: i32) -> (i32, i32) {
    %c0_i32 = arith.constant 0 : i32
    %c0_i32_0 = arith.constant 0 : i32
    %c0_i32_1 = arith.constant 0 : i32
    return %c0_i32, %c0_i32_0 : i32, i32
  }
  func.func @transform_10(%arg0: i32) -> (i32, i32) {
    %c0_i32 = arith.constant 0 : i32
    %c0_i32_0 = arith.constant 0 : i32
    %c0_i32_1 = arith.constant 0 : i32
    return %c0_i32, %c0_i32_0 : i32, i32
  }
  func.func @transform_11(%arg0: i32) -> (i32, i32) {
    %c0_i32 = arith.constant 0 : i32
    %c0_i32_0 = arith.constant 0 : i32
    %c0_i32_1 = arith.constant 0 : i32
    return %c0_i32, %c0_i32_0 : i32, i32
  }
  func.func @transform_12(%arg0: i32) -> (i32, i32) {
    %c0_i32 = arith.constant 0 : i32
    %c0_i32_0 = arith.constant 0 : i32
    %c0_i32_1 = arith.constant 0 : i32
    return %c0_i32, %c0_i32_0 : i32, i32
  }
  func.func @transform_13(%arg0: i32) -> (i32, i32) {
    %c0_i32 = arith.constant 0 : i32
    %c0_i32_0 = arith.constant 0 : i32
    %c0_i32_1 = arith.constant 0 : i32
    return %c0_i32, %c0_i32_0 : i32, i32
  }
  func.func @transform_14(%arg0: i32) -> (i32, i32) {
    %c0_i32 = arith.constant 0 : i32
    %c0_i32_0 = arith.constant 0 : i32
    return %arg0, %c0_i32 : i32, i32
  }
  func.func @transform_15(%arg0: i32) -> (i32, i32) {
    %c0_i32 = arith.constant 0 : i32
    %c0_i32_0 = arith.constant 0 : i32
    return %arg0, %c0_i32 : i32, i32
  }
}

</mosaic_0001>

<bundles_post_ra>
// kernel: network_forward.1
= control target key start
LH: loop header
LB: loop body
LE: loop exit
PB: predicated region body
PF: predicated region fallthrough
CT: control target
= control target key end

     0   :  { %v26229_v0 = vlaneseq  ;;  %vm698_vm0 = vcmask 261120   ;;  %vm9067_vm1 = vcmask 253952   ;;  %vm9412_vm2 = vcmask 1041409   ;;  %s26213_s5 = inlined_call_operand.vmem [shape: f32[32,32], index: 5, kind: input, shape index: {}]   ;;  %s26214_s0 = inlined_call_operand.vmem [shape: f32[16,34], index: 0, kind: input, shape index: {}]   ;;  %s26215_s1 = inlined_call_operand.vmem [shape: f32[16,32], index: 1, kind: input, shape index: {}]   ;;  %s26216_s6 = inlined_call_operand.vmem [shape: f32[32,32], index: 6, kind: input, shape index: {}]   ;;  %s26217_s3 = inlined_call_operand.vmem [shape: f32[2,32], index: 3, kind: input, shape index: {}]   ;;  %s26218_s4 = inlined_call_operand.vmem [shape: f32[1,32], index: 4, kind: input, shape index: {}]   ;;  %s26219_s2 = inlined_call_operand.vmem [shape: f32[16,24], index: 2, kind: input, shape index: {}]   ;;  %s26220_s7 = inlined_call_operand.vmem [shape: f32[1,32], index: 7, kind: input, shape index: {}]   ;;  %s26221_s8 = inlined_call_operand.vmem [shape: f32[3,32], index: 8, kind: input, shape index: {}]   ;;  %s26222_s12 = inlined_call_operand.vmem [shape: f32[3,32], index: 12, kind: input, shape index: {}]   ;;  %s26223_s9 = inlined_call_operand.vmem [shape: f32[1,32], index: 9, kind: input, shape index: {}]   ;;  %s26224_s10 = inlined_call_operand.vmem [shape: f32[32,128], index: 10, kind: input, shape index: {}]   ;;  %s26225_s11 = inlined_call_operand.vmem [shape: f32[1,128], index: 11, kind: input, shape index: {}]   ;;  %s26226_s14 = inlined_call_operand.vmem [shape: f32[16,128], index: 14, kind: output, shape index: {0}]   ;;  %s26227_s13 = inlined_call_operand.vmem [shape: f32[1,51], index: 13, kind: input, shape index: {}]   ;;  %s26228_s15 = inlined_call_operand.vmem [shape: f32[16,51], index: 15, kind: output, shape index: {1}]  }
   0x1   :  { %v697_v1 = vld [vmem:[%s26213_s5 + $0x18] sm:$0xff]  ;;  %v696_v2 = vld [vmem:[%s26213_s5 + $0x10] sm:$0xff]  ;;  %v692_v4 = vld [vmem:[%s26215_s1] sm:$0xff]  ;;  %vm9414_vm3 = vcmask 1042434   ;;  %vm9416_vm4 = vcmask 1043459   ;;  %vm9418_vm5 = vcmask 1044484  }
   0x2   :  { %18358 = vmatprep.subr.mxu0 %v697_v1  ;;  %v18548_v3 = vshrl.u32 %v26229_v0, 7  ;;  %v695_v5 = vld [vmem:[%s26213_s5 + $0x8] sm:$0xff]  ;;  %v18559_v6 = vld [vmem:[%s26214_s0] sm:$0xff]  ;;  %18366 = vmatprep.mubr.msk.f32.mxu0 %vm698_vm0, %v692_v4  ;;  %v2899_v37 = vld [vmem:[%s26216_s6 + $0x18] sm:$0xff]  ;;  %vm9420_vm6 = vcmask 1045509   ;;  %vm9422_vm7 = vcmask 1046534  }
   0x3   :  { %18359 = vmatpush3.msra.mxu0 %v697_v1  ;;  %v694_v9 = vld [vmem:[%s26213_s5] sm:$0xff]  ;;  %v693_v11 = vld [vmem:[%s26215_s1 + $0x8] sm:$0xff]  ;;  %v2898_v38 = vld [vmem:[%s26216_s6 + $0x10] sm:$0xff]  ;;  %18439 = vmatprep.subr.mxu1 %v2899_v37  ;;  %vm9424_vm8 = vcmask 1047559   ;;  %vm17932_vm9 = vcmask 408912   ;;  %vm17939_vm10 = vcmask 474512  }
   0x4   :  { %27019 = vst [vmem:[#allocation2_spill] sm:$0xff] %v18548_v3  ;;  %18360 = vmatprep.subr.mxu0 %v696_v2  ;;  %v18563_v7 = vsub.s32 0, %v18548_v3  ;;  %v18566_v8 = vsub.s32 1, %v18548_v3  ;;  %v18587_v13 = vsub.s32 2, %v18548_v3  ;;  %v18596_v15 = vsub.s32 3, %v18548_v3  ;;  %v18636_v23 = vld [vmem:[%s26214_s0 + $0x8] sm:$0xff]  ;;  %18443 = vmatpush3.msra.mxu1 %v2899_v37 }
   0x5   :  { %18361 = vmatpush3.msra.mxu0 %v696_v2  ;;  %v18607_v17 = vsub.s32 4, %v18548_v3  ;;  %v18616_v19 = vsub.s32 7, %v18548_v3  ;;  %v18623_v21 = vsub.s32 6, %v18548_v3  ;;  %v18664_v31 = vsub.s32 5, %v18548_v3  ;;  %v2897_v41 = vld [vmem:[%s26216_s6 + $0x8] sm:$0xff]  ;;  %v2896_v42 = vld [vmem:[%s26216_s6] sm:$0xff]  ;;  %18440 = vmatprep.subr.mxu1 %v2898_v38 }
   0x6   :  { %27020 = vst [vmem:[#allocation3_spill] sm:$0xff] %v18563_v7  ;;  %27021 = vst [vmem:[#allocation4_spill] sm:$0xff] %v18566_v8  ;;  %18362 = vmatprep.subr.mxu0 %v695_v5  ;;  %v18573_v10 = vrot.slane %v18559_v6, %v18563_v7  ;;  %v18581_v12 = vrot.slane %v18559_v6, %v18566_v8  ;;  %v18593_v14 = vrot.slane %v18559_v6, %v18587_v13  ;;  %vm17639_vm11 = vcmask 269512  }
   0x7   :  { %18363 = vmatpush3.msra.mxu0 %v695_v5  ;;  %27022 = vst [vmem:[#allocation5_spill] sm:$0xff] %v18587_v13  ;;  %27023 = vst [vmem:[#allocation6_spill] sm:$0xff] %v18596_v15  ;;  %v18602_v16 = vrot.slane %v18559_v6, %v18596_v15  ;;  %v18613_v18 = vrot.slane %v18559_v6, %v18607_v17  ;;  %v159_v20 = vrot.slane %v18559_v6, %v18616_v19  ;;  %vm17346_vm12 = vcmask 130112  }
   0x8   :  { %18364 = vmatprep.subr.mxu0 %v694_v9  ;;  %64 = vbcast.lane.b32.xlu1 %v18573_v10, 272  ;;  %27024 = vst [vmem:[#allocation7_spill] sm:$0xff] %v18607_v17  ;;  %27025 = vst [vmem:[#allocation8_spill] sm:$0xff] %v18616_v19  ;;  %v18628_v22 = vrot.slane %v18559_v6, %v18623_v21  ;;  %v174_v24 = vrot.slane %v18636_v23, %v18563_v7  ;;  %vm17646_vm13 = vcmask 335112   ;;  %vm17353_vm14 = vcmask 195712  }
   0x9   :  { %56 = vbcast.lane.b32.xlu0 %v18573_v10, 256  ;;  %18365 = vmatpush3.msra.mxu0 %v694_v9  ;;  %27026 = vst [vmem:[#allocation9_spill] sm:$0xff] %v18623_v21  ;;  %v189_v25 = vrot.slane %v18636_v23, %v18566_v8  ;;  %v204_v26 = vrot.slane %v18636_v23, %v18587_v13  ;;  %27027 = vst [vmem:[#allocation10_spill] sm:$0xff] %v18664_v31  ;;  %vm18167_vm15 = vcmask 138240  }
   0xa   :  { %18367 = vmatmul.mubr.msk.f32.vlgmr.msra.gmra.mxu0 %vm698_vm0, %v693_v11  ;;  %v219_v27 = vrot.slane %v18636_v23, %v18596_v15  ;;  %v234_v28 = vrot.slane %v18636_v23, %v18607_v17  ;;  %v249_v34 = vrot.slane %v18636_v23, %v18664_v31  ;;  %18369 = vmatprep.subr.mxu0 %v2899_v37 }
   0xb   :  { %18370 = vmatpush3.msra.mxu0 %v2899_v37  ;;  %18444 = vmatpush3.msra.mxu1 %v2898_v38  ;;  %v18704_v47 = vrot.slane %v18559_v6, %v18664_v31  ;;  %v264_v52 = vrot.slane %v18636_v23, %v18623_v21  ;;  %v18722_v61 = vrot.slane %v18636_v23, %v18616_v19  ;;  %v18460_v6 = vmov 1966171168  }
   0xc   :  { %71 = vbcast.lane.b32.xlu1 %v18581_v12, 256  ;;  %18371 = vmatprep.subr.mxu0 %v2898_v38  ;;  %v784_v9 = vunpack.c.l.s4 %v18460_v6 }
   0xd   :  { %60 = vbcast.lane.b32.xlu0 %v18573_v10, 264  ;;  %18372 = vmatpush3.msra.mxu0 %v2898_v38 }
   0xe   :  { %18373 = vmatprep.subr.mxu0 %v2897_v41  ;;  %18441 = vmatprep.subr.mxu1 %v2897_v41 }
   0xf   :  { %18374 = vmatpush3.msra.mxu0 %v2897_v41  ;;  %18445 = vmatpush3.msra.mxu1 %v2897_v41 }
  0x10   :  { %79 = vbcast.lane.b32.xlu1 %v18581_v12, 272  ;;  %18375 = vmatprep.subr.mxu0 %v2896_v42 }
  0x11   :  { %75 = vbcast.lane.b32.xlu0 %v18581_v12, 264  ;;  %18376 = vmatpush3.msra.mxu0 %v2896_v42 }
  0x12   :  { %18442 = vmatprep.subr.mxu1 %v2896_v42 }
  0x13   :  { %18446 = vmatpush3.msra.mxu1 %v2896_v42 }
  0x14   :  { %90 = vbcast.lane.b32.xlu1 %v18593_v14, 264 }
  0x15   :  { %86 = vbcast.lane.b32.xlu0 %v18593_v14, 256 }
  0x18   :  { %101 = vbcast.lane.b32.xlu1 %v18602_v16, 256 }
  0x19   :  { %94 = vbcast.lane.b32.xlu0 %v18593_v14, 272 }
  0x1c   :  { %109 = vbcast.lane.b32.xlu1 %v18602_v16, 272 }
  0x1d   :  { %105 = vbcast.lane.b32.xlu0 %v18602_v16, 264 }
  0x20   :  { %120 = vbcast.lane.b32.xlu1 %v18613_v18, 264 }
  0x21   :  { %116 = vbcast.lane.b32.xlu0 %v18613_v18, 256 }
  0x24   :  { %161 = vbcast.lane.b32.xlu1 %v159_v20, 256 }
  0x25   :  { %124 = vbcast.lane.b32.xlu0 %v18613_v18, 272 }
  0x28   :  { %150 = vbcast.lane.b32.xlu1 %v18628_v22, 264 }
  0x29   :  { %430 = vbcast.lane.b32.xlu0 %v159_v20, 273 }
  0x2c   :  { %165 = vbcast.lane.b32.xlu1 %v159_v20, 264 }
  0x2d   :  { %422 = vbcast.lane.b32.xlu0 %v18628_v22, 281 }
  0x30   :  { %154 = vbcast.lane.b32.xlu1 %v18628_v22, 272 }
  0x31   :  { %434 = vbcast.lane.b32.xlu0 %v159_v20, 281 }
  0x34   :  { %176 = vbcast.lane.b32.xlu1 %v174_v24, 256 }
  0x35   :  { %426 = vbcast.lane.b32.xlu0 %v18628_v22, 289 }
  0x38   :  { %169 = vbcast.lane.b32.xlu1 %v159_v20, 272 }
  0x39   :  { %442 = vbcast.lane.b32.xlu0 %v174_v24, 273 }
  0x3c   :  { %438 = vbcast.lane.b32.xlu1 %v159_v20, 289 }
  0x3d   :  { %180 = vbcast.lane.b32.xlu0 %v174_v24, 264 }
  0x40   :  { %191 = vbcast.lane.b32.xlu1 %v189_v25, 256 }
  0x41   :  { %446 = vbcast.lane.b32.xlu0 %v174_v24, 281 }
  0x44   :  { %195 = vbcast.lane.b32.xlu1 %v189_v25, 264 }
  0x45   :  { %454 = vbcast.lane.b32.xlu0 %v189_v25, 273 }
  0x48   :  { %458 = vbcast.lane.b32.xlu1 %v189_v25, 281 }
  0x49   :  { %346 = vbcast.lane.b32.xlu0 %v18573_v10, 273 }
  0x4c   :  { %184 = vbcast.lane.b32.xlu1 %v174_v24, 272 }
  0x4d   :  { %350 = vbcast.lane.b32.xlu0 %v18573_v10, 281 }
  0x50   :  { %450 = vbcast.lane.b32.xlu1 %v174_v24, 289 }
  0x51   :  { %206 = vbcast.lane.b32.xlu0 %v204_v26, 256 }
  0x54   :  { %358 = vbcast.lane.b32.xlu1 %v18581_v12, 273 }
  0x55   :  { %466 = vbcast.lane.b32.xlu0 %v204_v26, 273 }
  0x58   :  { %362 = vbcast.lane.b32.xlu1 %v18581_v12, 281 }
  0x59   :  { %210 = vbcast.lane.b32.xlu0 %v204_v26, 264 }
  0x5c   :  { %199 = vbcast.lane.b32.xlu1 %v189_v25, 272 }
  0x5d   :  { %470 = vbcast.lane.b32.xlu0 %v204_v26, 281 }
  0x60   :  { %462 = vbcast.lane.b32.xlu1 %v189_v25, 289 }
  0x61   :  { %221 = vbcast.lane.b32.xlu0 %v219_v27, 256 }
  0x64   :  { %225 = vbcast.lane.b32.xlu1 %v219_v27, 264 }
  0x65   :  { %478 = vbcast.lane.b32.xlu0 %v219_v27, 273 }
  0x68   :  { %370 = vbcast.lane.b32.xlu1 %v18593_v14, 273 }
  0x69   :  { %354 = vbcast.lane.b32.xlu0 %v18573_v10, 289 }
  0x6c   :  { %374 = vbcast.lane.b32.xlu1 %v18593_v14, 281 }
  0x6d   :  { %482 = vbcast.lane.b32.xlu0 %v219_v27, 281 }
  0x70   :  { %474 = vbcast.lane.b32.xlu1 %v204_v26, 289 }
  0x71   :  { %214 = vbcast.lane.b32.xlu0 %v204_v26, 272 }
  0x74   :  { %236 = vbcast.lane.b32.xlu1 %v234_v28, 256 }
  0x75   :  { %382 = vbcast.lane.b32.xlu0 %v18602_v16, 273 }
  0x78   :  { %490 = vbcast.lane.b32.xlu1 %v234_v28, 273 }
  0x79   :  { %366 = vbcast.lane.b32.xlu0 %v18581_v12, 289  ;;  %v785_v12 = vunpack.c.0.s8 %v784_v9 }
  0x7a   :  { %v18659_v29 = vpop.permute.xlu1 %64 }
  0x7b   :  { %v18661_v30 = vpop.permute.xlu0 %56  ;;  %v18751_v25 = vsub.s32 %v785_v12, %v18548_v3 }
  0x7c   :  { %229 = vbcast.lane.b32.xlu1 %v219_v27, 272 }
  0x7d   :  { %386 = vbcast.lane.b32.xlu0 %v18602_v16, 281 }
  0x7e   :  { %v18667_v32 = vpop.permute.xlu1 %71 }
  0x7f   :  { %v18669_v33 = vpop.permute.xlu0 %60 }
  0x80   :  { %486 = vbcast.lane.b32.xlu1 %v219_v27, 289 }
  0x81   :  { %240 = vbcast.lane.b32.xlu0 %v234_v28, 264 }
  0x82   :  { %v18673_v35 = vpop.permute.xlu1 %79 }
  0x83   :  { %v18675_v36 = vpop.permute.xlu0 %75 }
  0x84   :  { %251 = vbcast.lane.b32.xlu1 %v249_v34, 256 }
  0x85   :  { %494 = vbcast.lane.b32.xlu0 %v234_v28, 281 }
  0x86   :  { %v18683_v39 = vpop.permute.xlu1 %90 }
  0x87   :  { %v18685_v40 = vpop.permute.xlu0 %86 }
  0x88   :  { %255 = vbcast.lane.b32.xlu1 %v249_v34, 264 }
  0x89   :  { %502 = vbcast.lane.b32.xlu0 %v249_v34, 273 }
  0x8a   :  { %v18693_v43 = vpop.permute.xlu1 %101 }
  0x8b   :  { %v18695_v44 = vpop.permute.xlu0 %94 }
  0x8c   :  { %506 = vbcast.lane.b32.xlu1 %v249_v34, 281 }
  0x8d   :  { %378 = vbcast.lane.b32.xlu0 %v18593_v14, 289  ;;  %v18735_v14 = vld [vmem:[%s26217_s3] ss:$0 sm:$0xff] }
  0x8e   :  { %v18698_v45 = vpop.permute.xlu1 %109  ;;  %v296_v23 = vmul.f32 %v18735_v14, %v18661_v30  ;;  %v18755_v26 = vmul.f32 %v18735_v14, %v18667_v32  ;;  %v297_v27 = vmul.f32 %v18735_v14, %v18669_v33  ;;  %v18767_v30 = vmul.f32 %v18735_v14, %v18675_v36 }
  0x8f   :  { %v18700_v46 = vpop.permute.xlu0 %105  ;;  %v18771_v32 = vmul.f32 %v18735_v14, %v18683_v39  ;;  %v18775_v33 = vmul.f32 %v18735_v14, %v18685_v40  ;;  %v18787_v36 = vmul.f32 %v18735_v14, %v18698_v45 }
  0x90   :  { %244 = vbcast.lane.b32.xlu1 %v234_v28, 272  ;;  %v18791_v37 = vmul.f32 %v18735_v14, %v18700_v46 }
  0x91   :  { %394 = vbcast.lane.b32.xlu0 %v18613_v18, 273  ;;  %27029 = vst [vmem:[#allocation12_spill] sm:$0xff] %v18787_v36 }
  0x92   :  { %v18707_v48 = vpop.permute.xlu1 %120 }
  0x93   :  { %v18709_v49 = vpop.permute.xlu0 %116  ;;  %v18795_v39 = vmul.f32 %v18735_v14, %v18707_v48 }
  0x94   :  { %131 = vbcast.lane.b32.xlu1 %v18704_v47, 256  ;;  %v18799_v40 = vmul.f32 %v18735_v14, %v18709_v49 }
  0x95   :  { %498 = vbcast.lane.b32.xlu0 %v234_v28, 289  ;;  %27030 = vst [vmem:[#allocation13_spill] sm:$0xff] %v18795_v39 }
  0x96   :  { %v162_v50 = vpop.permute.xlu1 %161  ;;  %27031 = vst [vmem:[#allocation14_spill] sm:$0xff] %v18799_v40 }
  0x97   :  { %v18712_v51 = vpop.permute.xlu0 %124 }
  0x98   :  { %406 = vbcast.lane.b32.xlu1 %v18704_v47, 273 }
  0x99   :  { %398 = vbcast.lane.b32.xlu0 %v18613_v18, 281 }
  0x9a   :  { %v151_v53 = vpop.permute.xlu1 %150 }
  0x9b   :  { %v431_v54 = vpop.permute.xlu0 %430  ;;  %v315_v41 = vmul.f32 %v18735_v14, %v151_v53 }
  0x9c   :  { %390 = vbcast.lane.b32.xlu1 %v18602_v16, 289  ;;  %v18741_v16 = vld [vmem:[%s26217_s3 + $0x1] ss:$0 sm:$0xff] }
  0x9d   :  { %266 = vbcast.lane.b32.xlu0 %v264_v52, 256  ;;  %v562_v28 = vmul.f32 %v18741_v16, %v431_v54 }
  0x9e   :  { %v166_v55 = vpop.permute.xlu1 %165 }
  0x9f   :  { %v423_v56 = vpop.permute.xlu0 %422  ;;  %v318_v45 = vmul.f32 %v18735_v14, %v166_v55 }
  0xa0   :  { %135 = vbcast.lane.b32.xlu1 %v18704_v47, 264  ;;  %v560_v42 = vmul.f32 %v18741_v16, %v423_v56 }
  0xa1   :  { %514 = vbcast.lane.b32.xlu0 %v264_v52, 273 }
  0xa2   :  { %v155_v57 = vpop.permute.xlu1 %154 }
  0xa3   :  { %v435_v58 = vpop.permute.xlu0 %434  ;;  %v316_v46 = vmul.f32 %v18735_v14, %v155_v57 }
  0xa4   :  { %270 = vbcast.lane.b32.xlu1 %v264_v52, 264 }
  0xa5   :  { %259 = vbcast.lane.b32.xlu0 %v249_v34, 272 }
  0xa6   :  { %v177_v59 = vpop.permute.xlu1 %176 }
  0xa7   :  { %v427_v60 = vpop.permute.xlu0 %426  ;;  %v320_v48 = vmul.f32 %v18735_v14, %v177_v59  ;;  %v18819_v59 = vld [vmem:[%s26218_s4] ss:$0 sm:$0xff] }
  0xa8   :  { %510 = vbcast.lane.b32.xlu1 %v249_v34, 289  ;;  %v18779_v34 = vmul.f32 %v18735_v14, %v18693_v43 }
  0xa9   :  { %410 = vbcast.lane.b32.xlu0 %v18704_v47, 281 }
  0xaa   :  { %v170_v62 = vpop.permute.xlu1 %169 }
  0xab   :  { %v443_v63 = vpop.permute.xlu0 %442  ;;  %v319_v49 = vmul.f32 %v18735_v14, %v170_v62 }
  0xac   :  { %281 = vbcast.lane.b32.xlu1 %v18722_v61, 256  ;;  %v565_v53 = vmul.f32 %v18741_v16, %v443_v63 }
  0xad   :  { %518 = vbcast.lane.b32.xlu0 %v264_v52, 281 }
  0xae   :  { %v439_v1 = vpop.permute.xlu1 %438 }
  0xaf   :  { %v18726_v2 = vpop.permute.xlu0 %180  ;;  %v564_v54 = vmul.f32 %v18741_v16, %v439_v1 }
  0xb0   :  { %285 = vbcast.lane.b32.xlu1 %v18722_v61, 264 }
  0xb1   :  { %526 = vbcast.lane.b32.xlu0 %v18722_v61, 273 }
  0xb2   :  { %v192_v4 = vpop.permute.xlu1 %191 }
  0xb3   :  { %v447_v5 = vpop.permute.xlu0 %446  ;;  %v323_v55 = vmul.f32 %v18735_v14, %v192_v4  ;;  %v321_v4 = vmul.f32 %v18735_v14, %v18726_v2  ;;  %v612_v2 = vadd.f32 %v564_v54, %v319_v49 }
  0xb4   :  { %530 = vbcast.lane.b32.xlu1 %v18722_v61, 281  ;;  %v566_v56 = vmul.f32 %v18741_v16, %v447_v5 }
  0xb5   :  { %402 = vbcast.lane.b32.xlu0 %v18613_v18, 289  ;;  %v18746_v18 = vmul.f32 %v18735_v14, %v18659_v29  ;;  %v18763_v29 = vmul.f32 %v18735_v14, %v18673_v35  ;;  %v18783_v35 = vmul.f32 %v18735_v14, %v18695_v44 }
  0xb6   :  { %v196_v10 = vpop.permute.xlu1 %195 }
  0xb7   :  { %v455_v11 = vpop.permute.xlu0 %454  ;;  %27028 = vst [vmem:[#allocation11_spill] sm:$0xff] %v18783_v35  ;;  %v324_v62 = vmul.f32 %v18735_v14, %v196_v10 }
  0xb8   :  { %418 = vbcast.lane.b32.xlu1 %v18628_v22, 273  ;;  %v568_v57 = vmul.f32 %v18741_v16, %v455_v11  ;;  %v18832_v11 = vmul.f32 %v18735_v14, %v18712_v51 }
  0xb9   :  { %146 = vbcast.lane.b32.xlu0 %v18628_v22, 256  ;;  %v317_v22 = vmul.f32 %v18735_v14, %v162_v50  ;;  %v563_v50 = vmul.f32 %v18741_v16, %v435_v58 }
  0xba   :  { %v459_v20 = vpop.permute.xlu1 %458  ;;  %27032 = vst [vmem:[#allocation15_spill] sm:$0xff] %v18832_v11 }
  0xbb   :  { %v347_v24 = vpop.permute.xlu0 %346  ;;  %v610_v44 = vadd.f32 %v562_v28, %v317_v22  ;;  %v569_v63 = vmul.f32 %v18741_v16, %v459_v20  ;;  %v611_v10 = vadd.f32 %v563_v50, %v318_v45  ;;  %v613_v20 = vadd.f32 %v565_v53, %v320_v48 }
  0xbc   :  { %522 = vbcast.lane.b32.xlu1 %v264_v52, 289  ;;  %v614_v22 = vadd.f32 %v566_v56, %v321_v4  ;;  %v616_v28 = vadd.f32 %v568_v57, %v323_v55 }
  0xbd   :  { %274 = vbcast.lane.b32.xlu0 %v264_v52, 272  ;;  %v561_v52 = vmul.f32 %v18741_v16, %v427_v60  ;;  %v608_v60 = vadd.f32 %v560_v42, %v315_v41  ;;  %v617_v42 = vadd.f32 %v569_v63, %v324_v62 }
  0xbe   :  { %v185_v38 = vpop.permute.xlu1 %184  ;;  %v671_v53 = vadd.f32 %v18819_v59, %v616_v28 }
  0xbf   :  { %v351_v43 = vpop.permute.xlu0 %350  ;;  %v322_v5 = vmul.f32 %v18735_v14, %v185_v38  ;;  %v609_v12 = vadd.f32 %v561_v52, %v316_v46  ;;  %v18839_v41 = vadd.f32 %v18819_v59, %v608_v60  ;;  %v668_v52 = vadd.f32 %v18819_v59, %v613_v20 }
  0xc0   :  { %414 = vbcast.lane.b32.xlu1 %v18704_v47, 289  ;;  %v542_v6 = vmul.f32 %v18741_v16, %v351_v43  ;;  %v672_v57 = vadd.f32 %v18819_v59, %v617_v42 }
  0xc1   :  { %139 = vbcast.lane.b32.xlu0 %v18704_v47, 272  ;;  %v541_v47 = vmul.f32 %v18741_v16, %v347_v24  ;;  %v18836_v24 = vadd.f32 %v18819_v59, %v610_v44  ;;  %v18845_v44 = vadd.f32 %v18819_v59, %v611_v10  ;;  %v18848_v48 = vadd.f32 %v18819_v59, %v609_v12 }
  0xc2   :  { %v451_v58 = vpop.permute.xlu1 %450  ;;  %v590_v45 = vadd.f32 %v542_v6, %v297_v27  ;;  %v669_v27 = vadd.f32 %v18819_v59, %v614_v22 }
  0xc3   :  { %v207_v1 = vpop.permute.xlu0 %206  ;;  %v567_v9 = vmul.f32 %v18741_v16, %v451_v58  ;;  %v589_v43 = vadd.f32 %v541_v47, %v296_v23  ;;  %v18853_v23 = vadd.f32 %v18819_v59, %v612_v2 }
  0xc4   :  { %534 = vbcast.lane.b32.xlu1 %v18722_v61, 289  ;;  %v326_v50 = vmul.f32 %v18735_v14, %v207_v1  ;;  %v18864_v1 = vadd.f32 %v18819_v59, %v590_v45 }
  0xc5   :  { %289 = vbcast.lane.b32.xlu0 %v18722_v61, 272  ;;  %v615_v46 = vadd.f32 %v567_v9, %v322_v5 }
  0xc6   :  { %v359_v38 = vpop.permute.xlu1 %358 }
  0xc7   :  { %v544_v51 = vmul.f32 %v18741_v16, %v359_v38  ;;  %v467_v58 = vpop.permute.xlu0 %466  ;;  %v670_v4 = vadd.f32 %v18819_v59, %v615_v46 }
  0xc8   :  { %v571_v61 = vmul.f32 %v18741_v16, %v467_v58 }
  0xc9   :  { %v592_v49 = vadd.f32 %v544_v51, %v18755_v26  ;;  %v18861_v26 = vadd.f32 %v18819_v59, %v589_v43 }
  0xca   :  { %v619_v54 = vadd.f32 %v571_v61, %v326_v50  ;;  %v18368_v55 = vpop.f32.mrf.mxu0  ;;  %v363_v56 = vpop.permute.xlu1 %362 }
  0xcb   :  { %v831_v60 = vcombine.high %v18368_v55, %v18368_v55  ;;  %v838_v62 = vrot.slane %v18368_v55, %v18751_v25  ;;  %v545_v63 = vmul.f32 %v18741_v16, %v363_v56  ;;  %v211_v47 = vpop.permute.xlu0 %210  ;;  %v18868_v5 = vadd.f32 %v18819_v59, %v592_v49 }
  0xcc   :  { %v771_v6 = vpop.f32.mrf.mxu0  ;;  %v674_v2 = vadd.f32 %v18819_v59, %v619_v54  ;;  %v18875_v22 = vmul.f32 %v18735_v14, %v211_v47 }
  0xcd   :  { %v845_v9 = vrot.slane %v831_v60, %v18751_v25  ;;  %v846_v10 = vcombine.high %v838_v62, %v838_v62  ;;  %v854_v12 = vrot.slane %v838_v62, %v18751_v25  ;;  %v593_v20 = vadd.f32 %v545_v63, %v18767_v30 }
  0xce   :  { %v782_v28 = vcombine.high %v771_v6, %v771_v6  ;;  %v18878_v38 = vrot.slane %v771_v6, %v18751_v25 }
  0xcf   :  { %v847_v42 = vcombine.high %v845_v9, %v845_v9  ;;  %v861_v43 = vrot.slane %v845_v9, %v18751_v25  ;;  %v868_v51 = vrot.slane %v846_v10, %v18751_v25  ;;  %v876_v58 = vcombine.high %v854_v12, %v854_v12 }
  0xd0   :  { %v915_v45 = vrot.slane %v854_v12, %v18563_v7  ;;  %v18884_v46 = vadd.f32 %v18819_v59, %v593_v20  ;;  %v18887_v30 = vrot.slane %v782_v28, %v18751_v25  ;;  %v797_v50 = vcombine.high %v18878_v38, %v18878_v38 }
  0xd1   :  { %v875_v61 = vrot.slane %v847_v42, %v18751_v25  ;;  %v877_v49 = vcombine.high %v861_v43, %v861_v43  ;;  %v878_v54 = vcombine.high %v868_v51, %v868_v51  ;;  %v18893_v55 = vrot.slane %v868_v51, %v18563_v7 }
  0xd2   :  { %v18896_v56 = vrot.slane %v876_v58, %v18563_v7  ;;  %v18899_v60 = vrot.slane %v861_v43, %v18563_v7  ;;  %v984_v62 = vadd.f32 %v915_v45, %v668_v52  ;;  %v985_v63 = vadd.f32 %v915_v45, %v669_v27  ;;  %v18913_v43 = vpop.permute.xlu1 %199 }
  0xd3   :  { %v879_v47 = vcombine.high %v875_v61, %v875_v61  ;;  %v18902_v6 = vrot.slane %v878_v54, %v18563_v7  ;;  %v18905_v9 = vrot.slane %v875_v61, %v18563_v7  ;;  %v18908_v10 = vrot.slane %v877_v49, %v18563_v7 }
  0xd4   :  { %v986_v12 = vadd.f32 %v915_v45, %v670_v4  ;;  %v987_v20 = vadd.f32 %v18893_v55, %v671_v53  ;;  %v988_v28 = vadd.f32 %v18893_v55, %v672_v57  ;;  %v990_v42 = vadd.f32 %v18896_v56, %v674_v2  ;;  %v18920_v45 = vpop.permute.xlu0 %470 }
  0xd5   :  { %27033 = vst [vmem:[#allocation16_spill] sm:$0xff] %v18905_v9  ;;  %27034 = vst [vmem:[#allocation17_spill] sm:$0xff] %v18908_v10  ;;  %v18916_v52 = vrot.slane %v879_v47, %v18563_v7  ;;  %v1032_v27 = vmax.f32 %v984_v62, 0.0  ;;  %v1033_v51 = vmax.f32 %v985_v63, 0.0  ;;  %v798_v58 = vcombine.high %v18887_v30, %v18887_v30 }
  0xd6   :  { %v1034_v61 = vmax.f32 %v986_v12, 0.0  ;;  %v1035_v49 = vmax.f32 %v987_v20, 0.0  ;;  %v1036_v54 = vmax.f32 %v988_v28, 0.0  ;;  %v1038_v4 = vmax.f32 %v990_v42, 0.0 }
  0xd7   :  { %27035 = vst [vmem:[#allocation18_spill] sm:$0xff] %v18916_v52  ;;  %v2000_v53 = vcombine.high %v1032_v27, %v1032_v27  ;;  %v2007_v57 = vrot.slane %v1032_v27, %v18751_v25  ;;  %v2049_v2 = vcombine.high %v1033_v51, %v1033_v51  ;;  %v2056_v0 = vrot.slane %v1033_v51, %v18751_v25  ;;  %v18947_v52 = vpop.permute.xlu1 %462 }
  0xd8   :  { %v18925_v47 = vrot.slane %v1034_v61, %v18751_v25  ;;  %v2112_v62 = vcombine.high %v1035_v49, %v1035_v49  ;;  %v18928_v63 = vrot.slane %v1035_v49, %v18751_v25  ;;  %v2161_v3 = vcombine.high %v1036_v54, %v1036_v54  ;;  %v18971_v10 = vpop.permute.xlu0 %221 }
  0xd9   :  { %v18931_v12 = vrot.slane %v2000_v53, %v18751_v25  ;;  %v2015_v20 = vcombine.high %v2007_v57, %v2007_v57  ;;  %v18934_v28 = vrot.slane %v2007_v57, %v18751_v25  ;;  %v18937_v42 = vrot.slane %v2049_v2, %v18751_v25 }
  0xda   :  { %27036 = vst [vmem:[#allocation19_spill] sm:$0xff] %v18925_v47  ;;  %27037 = vst [vmem:[#allocation20_spill] sm:$0xff] %v18928_v63  ;;  %v2064_v27 = vcombine.high %v2056_v0, %v2056_v0  ;;  %v18940_v51 = vrot.slane %v2056_v0, %v18751_v25  ;;  %v18945_v49 = vrot.slane %v2112_v62, %v18751_v25 }
  0xdb   :  { %27038 = vst [vmem:[#allocation21_spill] sm:$0xff] %v18934_v28  ;;  %27039 = vst [vmem:[#allocation22_spill] sm:$0xff] %v18937_v42  ;;  %v18953_v57 = vrot.slane %v18931_v12, %v18751_v25  ;;  %v18956_v2 = vrot.slane %v2015_v20, %v18751_v25  ;;  %v18962_v61 = vrot.slane %v18937_v42, %v18751_v25  ;;  %v19009_v36 = vpop.permute.xlu1 %225 }
  0xdc   :  { %27040 = vst [vmem:[#allocation23_spill] sm:$0xff] %v18940_v51  ;;  %27041 = vst [vmem:[#allocation24_spill] sm:$0xff] %v18945_v49  ;;  %v18965_v62 = vrot.slane %v2064_v27, %v18751_v25  ;;  %v18975_v20 = vrot.slane %v18928_v63, %v18751_v25  ;;  %v18978_v0 = vrot.slane %v1036_v54, %v18751_v25  ;;  %v19025_v40 = vpop.permute.xlu0 %478 }
  0xdd   :  { %27042 = vst [vmem:[#allocation25_spill] sm:$0xff] %v18953_v57  ;;  %27043 = vst [vmem:[#allocation26_spill] sm:$0xff] %v18956_v2  ;;  %v18981_v21 = vrot.slane %v2161_v3, %v18751_v25  ;;  %v2224_v27 = vcombine.high %v1038_v4, %v1038_v4  ;;  %v18984_v19 = vrot.slane %v1038_v4, %v18751_v25 }
  0xde   :  { %27044 = vst [vmem:[#allocation27_spill] sm:$0xff] %v18962_v61  ;;  %27045 = vst [vmem:[#allocation28_spill] sm:$0xff] %v18965_v62  ;;  %v805_v53 = vrot.slane %v18878_v38, %v18751_v25  ;;  %v812_v11 = vrot.slane %v18887_v30, %v18751_v25  ;;  %v819_v17 = vrot.slane %v797_v50, %v18751_v25 }
  0xdf   :  { %27046 = vst [vmem:[#allocation29_spill] sm:$0xff] %v18975_v20  ;;  %27047 = vst [vmem:[#allocation30_spill] sm:$0xff] %v18978_v0  ;;  %v18997_v3 = vrot.slane %v18978_v0, %v18751_v25  ;;  %v19000_v4 = vrot.slane %v2224_v27, %v18751_v25  ;;  %v19006_v30 = vrot.slane %v18984_v19, %v18751_v25 }
  0xe0   :  { %27048 = vst [vmem:[#allocation31_spill] sm:$0xff] %v18981_v21  ;;  %27049 = vst [vmem:[#allocation32_spill] sm:$0xff] %v18984_v19  ;;  %v826_v50 = vrot.slane %v798_v58, %v18751_v25  ;;  %v827_v31 = vcombine.high %v805_v53, %v805_v53  ;;  %v828_v13 = vcombine.high %v812_v11, %v812_v11 }
  0xe1   :  { %27050 = vst [vmem:[#allocation33_spill] sm:$0xff] %v18997_v3  ;;  %27051 = vst [vmem:[#allocation34_spill] sm:$0xff] %v19000_v4  ;;  %v829_v15 = vcombine.high %v819_v17, %v819_v17  ;;  %v19014_v27 = vrot.slane %v805_v53, %v18563_v7  ;;  %v19017_v38 = vrot.slane %v819_v17, %v18563_v7  ;;  %v355_v4 = vpop.permute.xlu0 %354 }
  0xe2   :  { %27052 = vst [vmem:[#allocation35_spill] sm:$0xff] %v19006_v30  ;;  %v830_v39 = vcombine.high %v826_v50, %v826_v50  ;;  %v19020_v8 = vrot.slane %v827_v31, %v18563_v7  ;;  %v19023_v58 = vrot.slane %v812_v11, %v18563_v7  ;;  %v19031_v54 = vrot.slane %v826_v50, %v18563_v7 }
  0xe3   :  { %v19028_v35 = vrot.slane %v829_v15, %v18563_v7  ;;  %v19034_v53 = vrot.slane %v828_v13, %v18563_v7  ;;  %v960_v17 = vadd.f32 %v19014_v27, %v18861_v26  ;;  %v961_v11 = vadd.f32 %v19014_v27, %v18864_v1 }
  0xe4   :  { %27053 = vst [vmem:[#allocation36_spill] sm:$0xff] %v19023_v58  ;;  %27054 = vst [vmem:[#allocation37_spill] sm:$0xff] %v19031_v54  ;;  %v19039_v31 = vrot.slane %v830_v39, %v18563_v7  ;;  %v963_v58 = vadd.f32 %v19017_v38, %v18868_v5  ;;  %v964_v15 = vadd.f32 %v19017_v38, %v18884_v46  ;;  %v371_v46 = vpop.permute.xlu1 %370 }
  0xe5   :  { %27055 = vst [vmem:[#allocation38_spill] sm:$0xff] %v19034_v53  ;;  %v979_v50 = vadd.f32 %v19034_v53, %v18839_v41  ;;  %v19051_v13 = vadd.f32 %v19034_v53, %v18848_v48  ;;  %v1008_v26 = vmax.f32 %v960_v17, 0.0  ;;  %v325_v39 = vmul.f32 %v18735_v14, %v18913_v43  ;;  %v483_v47 = vpop.permute.xlu0 %482 }
  0xe6   :  { %v982_v1 = vadd.f32 %v19039_v31, %v18845_v44  ;;  %v983_v5 = vadd.f32 %v19039_v31, %v18853_v23  ;;  %v1009_v54 = vmax.f32 %v961_v11, 0.0  ;;  %v1011_v7 = vmax.f32 %v963_v58, 0.0 }
  0xe7   :  { %v1012_v9 = vmax.f32 %v964_v15, 0.0  ;;  %v19059_v30 = vmax.f32 %v979_v50, 0.0  ;;  %v1104_v48 = vcombine.high %v1008_v26, %v1008_v26  ;;  %v1111_v43 = vrot.slane %v1008_v26, %v18751_v25 }
  0xe8   :  { %v19062_v53 = vmax.f32 %v982_v1, 0.0  ;;  %v1031_v17 = vmax.f32 %v983_v5, 0.0  ;;  %v1153_v19 = vcombine.high %v1009_v54, %v1009_v54  ;;  %v1160_v23 = vrot.slane %v1009_v54, %v18751_v25  ;;  %v375_v0 = vpop.permute.xlu1 %374 }
  0xe9   :  { %v19066_v44 = vrot.slane %v1104_v48, %v18751_v25  ;;  %v1216_v58 = vcombine.high %v1011_v7, %v1011_v7  ;;  %v19070_v11 = vrot.slane %v1011_v7, %v18751_v25  ;;  %v1119_v15 = vcombine.high %v1111_v43, %v1111_v43  ;;  %v215_v57 = vpop.permute.xlu0 %214 }
  0xea   :  { %v19073_v50 = vrot.slane %v1111_v43, %v18751_v25  ;;  %v1167_v1 = vrot.slane %v1153_v19, %v18751_v25  ;;  %v1265_v5 = vcombine.high %v1012_v9, %v1012_v9  ;;  %v1168_v41 = vcombine.high %v1160_v23, %v1160_v23 }
  0xeb   :  { %v19080_v48 = vrot.slane %v19066_v44, %v18751_v25  ;;  %v19083_v54 = vrot.slane %v1160_v23, %v18751_v25  ;;  %v19086_v7 = vrot.slane %v1119_v15, %v18751_v25  ;;  %v19092_v19 = vrot.slane %v1216_v58, %v18751_v25 }
  0xec   :  { %v1169_v3 = vcombine.high %v1167_v1, %v1167_v1  ;;  %v19089_v43 = vrot.slane %v1167_v1, %v18751_v25  ;;  %v19095_v26 = vrot.slane %v1168_v41, %v18751_v25  ;;  %v19100_v23 = vrot.slane %v1012_v9, %v18751_v25 }
  0xed   :  { %v19103_v15 = vrot.slane %v1265_v5, %v18751_v25  ;;  %v19114_v41 = vrot.slane %v19062_v53, %v18751_v25  ;;  %v19125_v58 = vrot.slane %v1031_v17, %v18751_v25  ;;  %v572_v5 = vmul.f32 %v18741_v16, %v18920_v45 }
  0xee   :  { %v19106_v20 = vrot.slane %v1169_v3, %v18751_v25  ;;  %v19122_v3 = vrot.slane %v19100_v23, %v18751_v25  ;;  %v27056_v17 = vcombine.high %v18981_v21, %v18981_v21  ;;  %v570_v1 = vmul.f32 %v18741_v16, %v18947_v52 }
  0xef   :  { %v329_v63 = vmul.f32 %v18735_v14, %v18971_v10  ;;  %v330_v49 = vmul.f32 %v18735_v14, %v19009_v36  ;;  %v574_v9 = vmul.f32 %v18741_v16, %v19025_v40  ;;  %v547_v45 = vmul.f32 %v18741_v16, %v371_v46 }
  0xf0   :  { %v19141_v61 = vrot.slane %v27056_v17, %v18751_v25  ;;  %v19154_v51 = vrot.slane %v19070_v11, %v18751_v25  ;;  %v475_v17 = vpop.permute.xlu1 %474  ;;  %v620_v21 = vadd.f32 %v572_v5, %v18875_v22  ;;  %v618_v62 = vadd.f32 %v570_v1, %v325_v39 }
  0xf1   :  { %v543_v10 = vmul.f32 %v18741_v16, %v355_v4  ;;  %v622_v42 = vadd.f32 %v574_v9, %v329_v63  ;;  %v595_v36 = vadd.f32 %v547_v45, %v18775_v33  ;;  %v548_v40 = vmul.f32 %v18741_v16, %v375_v0 }
  0xf2   :  { %v2209_v52 = vcombine.high %v19141_v61, %v19141_v61  ;;  %v575_v46 = vmul.f32 %v18741_v16, %v483_v47  ;;  %v675_v28 = vadd.f32 %v18819_v59, %v620_v21  ;;  %v673_v2 = vadd.f32 %v18819_v59, %v618_v62 }
  0xf3   :  { %v591_v22 = vadd.f32 %v543_v10, %v18746_v18  ;;  %v573_v5 = vmul.f32 %v18741_v16, %v475_v17  ;;  %v677_v39 = vadd.f32 %v18819_v59, %v622_v42  ;;  %v650_v4 = vadd.f32 %v18819_v59, %v595_v36 }
  0xf4   :  { %v596_v63 = vadd.f32 %v548_v40, %v18771_v32  ;;  %v623_v33 = vadd.f32 %v575_v46, %v330_v49  ;;  %v991_v0 = vadd.f32 %v18896_v56, %v675_v28  ;;  %v989_v47 = vadd.f32 %v18893_v55, %v673_v2 }
  0xf5   :  { %v646_v1 = vadd.f32 %v18819_v59, %v591_v22  ;;  %v328_v21 = vmul.f32 %v18735_v14, %v215_v57  ;;  %v993_v62 = vadd.f32 %v18902_v6, %v677_v39  ;;  %v966_v18 = vadd.f32 %v19020_v8, %v650_v4 }
  0xf6   :  { %v651_v9 = vadd.f32 %v18819_v59, %v596_v63  ;;  %v678_v42 = vadd.f32 %v18819_v59, %v623_v33  ;;  %v1039_v45 = vmax.f32 %v991_v0, 0.0  ;;  %v1037_v17 = vmax.f32 %v989_v47, 0.0 }
  0xf7   :  { %v962_v32 = vadd.f32 %v19014_v27, %v646_v1  ;;  %v621_v49 = vadd.f32 %v573_v5, %v328_v21  ;;  %v1041_v28 = vmax.f32 %v993_v62, 0.0  ;;  %v1014_v10 = vmax.f32 %v966_v18, 0.0 }
  0xf8   :  { %v967_v55 = vadd.f32 %v19020_v8, %v651_v9  ;;  %v994_v2 = vadd.f32 %v18902_v6, %v678_v42  ;;  %v2273_v57 = vcombine.high %v1039_v45, %v1039_v45  ;;  %v2280_v36 = vrot.slane %v1039_v45, %v18751_v25 }
  0xf9   :  { %v2216_v40 = vrot.slane %v1037_v17, %v18751_v25  ;;  %v1010_v46 = vmax.f32 %v962_v32, 0.0  ;;  %v2336_v22 = vcombine.high %v1041_v28, %v1041_v28  ;;  %v2343_v39 = vrot.slane %v1041_v28, %v18751_v25 }
  0xfa   :  { %v1328_v4 = vcombine.high %v1014_v10, %v1014_v10  ;;  %v1335_v63 = vrot.slane %v1014_v10, %v18751_v25  ;;  %v2287_v27 = vrot.slane %v2273_v57, %v18751_v25  ;;  %v2288_v5 = vcombine.high %v2280_v36, %v2280_v36  ;;  %v383_v10 = vpop.permute.xlu0 %382 }
  0xfb   :  { %v19187_v33 = vrot.slane %v2280_v36, %v18751_v25  ;;  %v2223_v0 = vrot.slane %v2216_v40, %v18751_v25  ;;  %v2350_v47 = vrot.slane %v2336_v22, %v18751_v25  ;;  %v2351_v1 = vcombine.high %v2343_v39, %v2343_v39 }
  0xfc   :  { %v19192_v21 = vrot.slane %v2343_v39, %v18751_v25  ;;  %v1342_v62 = vrot.slane %v1328_v4, %v18751_v25  ;;  %v2289_v18 = vcombine.high %v2287_v27, %v2287_v27  ;;  %v19196_v9 = vrot.slane %v2287_v27, %v18751_v25 }
  0xfd   :  { %v19199_v42 = vrot.slane %v2288_v5, %v18751_v25  ;;  %v19201_v45 = vcombine.low %v2209_v52, %v2223_v0  ;;  %v2352_v17 = vcombine.high %v2350_v47, %v2350_v47  ;;  %v19204_v32 = vrot.slane %v2350_v47, %v18751_v25 }
  0xfe   :  { %v19207_v28 = vrot.slane %v2351_v1, %v18751_v25  ;;  %v19212_v57 = vrot.slane %v2289_v18, %v18751_v25  ;;  %v1343_v40 = vcombine.high %v1335_v63, %v1335_v63  ;;  %v1344_v27 = vcombine.high %v1342_v62, %v1342_v62 }
  0xff   :  { %v19219_v22 = vrot.slane %v2352_v17, %v18751_v25  ;;  %v19226_v5 = vrot.slane %v1335_v63, %v18751_v25  ;;  %v19229_v0 = vrot.slane %v1342_v62, %v18751_v25  ;;  %v1208_v1 = vrot.slane %v1010_v46, %v18751_v25  ;;  %v237_v46 = vpop.permute.xlu1 %236 }
 0x100   :  { %v19232_v47 = vrot.slane %v1343_v40, %v18751_v25  ;;  %v19236_v18 = vrot.slane %v1344_v27, %v18751_v25  ;;  %v1015_v17 = vmax.f32 %v967_v55, 0.0  ;;  %v1042_v4 = vmax.f32 %v994_v2, 0.0 }
 0x101   :  { %27057 = vst [vmem:[#allocation39_spill] sm:$0xff] %v19219_v22  ;;  %27058 = vst [vmem:[#allocation40_spill] sm:$0xff] %v19226_v5  ;;  %v2384_v39 = vcombine.high %v19219_v22, %v19219_v22  ;;  %v1215_v40 = vrot.slane %v1208_v1, %v18751_v25  ;;  %v676_v52 = vadd.f32 %v18819_v59, %v621_v49 }
 0x102   :  { %27059 = vst [vmem:[#allocation41_spill] sm:$0xff] %v19229_v0  ;;  %27060 = vst [vmem:[#allocation42_spill] sm:$0xff] %v19232_v47  ;;  %v1377_v36 = vcombine.high %v1015_v17, %v1015_v17  ;;  %v1384_v27 = vrot.slane %v1015_v17, %v18751_v25  ;;  %v2385_v55 = vcombine.high %v1042_v4, %v1042_v4 }
 0x103   :  { %27061 = vst [vmem:[#allocation43_spill] sm:$0xff] %v19236_v18  ;;  %v2392_v0 = vrot.slane %v1042_v4, %v18751_v25  ;;  %v19249_v2 = vcombine.low %v1215_v40, %v19154_v51  ;;  %v992_v18 = vadd.f32 %v18896_v56, %v676_v52  ;;  %v332_v63 = vmul.f32 %v18735_v14, %v237_v46 }
 0x104   :  { %v550_v62 = vmul.f32 %v18741_v16, %v383_v10  ;;  %v1391_v1 = vrot.slane %v1377_v36, %v18751_v25  ;;  %v1392_v47 = vcombine.high %v1384_v27, %v1384_v27  ;;  %v19256_v49 = vrot.slane %v1384_v27, %v18751_v25 }
 0x105   :  { %v2399_v17 = vrot.slane %v2385_v55, %v18751_v25  ;;  %v2400_v5 = vcombine.high %v2392_v0, %v2392_v0  ;;  %v19260_v4 = vrot.slane %v2392_v0, %v18751_v25  ;;  %v1040_v40 = vmax.f32 %v992_v18, 0.0 }
 0x106   :  { %27062 = vst [vmem:[#allocation44_spill] sm:$0xff] %v19256_v49  ;;  %v598_v22 = vadd.f32 %v550_v62, %v18779_v34  ;;  %v1393_v56 = vcombine.high %v1391_v1, %v1391_v1  ;;  %v19264_v52 = vrot.slane %v1391_v1, %v18751_v25  ;;  %v19267_v10 = vrot.slane %v1392_v47, %v18751_v25  ;;  %v491_v34 = vpop.permute.xlu1 %490 }
 0x107   :  { %v2401_v36 = vcombine.high %v2399_v17, %v2399_v17  ;;  %v19270_v46 = vrot.slane %v2399_v17, %v18751_v25  ;;  %v19273_v27 = vrot.slane %v2400_v5, %v18751_v25  ;;  %v19278_v18 = vcombine.low %v2384_v39, %v19260_v4 }
 0x108   :  { %27063 = vst [vmem:[#allocation45_spill] sm:$0xff] %v19264_v52  ;;  %27064 = vst [vmem:[#allocation46_spill] sm:$0xff] %v19267_v10  ;;  %v19281_v62 = vrot.slane %v1393_v56, %v18751_v25  ;;  %v2328_v17 = vrot.slane %v1040_v40, %v18751_v25  ;;  %v653_v56 = vadd.f32 %v18819_v59, %v598_v22 }
 0x109   :  { %v19288_v1 = vrot.slane %v2401_v36, %v18751_v25  ;;  %v27066_v47 = vcombine.high %v19066_v44, %v19066_v44  ;;  %v2907_v55 = vcombine.low %v19073_v50, %v19086_v7  ;;  %v18199_v36 = vcombine.high %v19073_v50, %v19086_v7 }
 0x10a   :  { %27065 = vst [vmem:[#allocation47_spill] sm:$0xff] %v19281_v62  ;;  %v577_v5 = vmul.f32 %v18741_v16, %v491_v34  ;;  %v2335_v10 = vrot.slane %v2328_v17, %v18751_v25  ;;  %v969_v39 = vadd.f32 %v19028_v35, %v653_v56  ;;  %v27067_v22 = vcombine.low %v19083_v54, %v19095_v26 }
 0x10b   :  { %v1148_v0 = vrot.slane %v27066_v47, %v18751_v25  ;;  %v27068_v44 = vcombine.high %v19083_v54, %v19095_v26  ;;  %v2917_v7 = vrot.slane %v2907_v55, %v18751_v25  ;;  %v2924_v34 = vrot.slane %v18199_v36, %v18751_v25 }
 0x10c   :  { %v2966_v40 = vrot.slane %v27067_v22, %v18751_v25  ;;  %v19320_v17 = vcombine.low %v2335_v10, %v19192_v21  ;;  %v1017_v56 = vmax.f32 %v969_v39, 0.0  ;;  %v625_v52 = vadd.f32 %v577_v5, %v332_v63 }
 0x10d   :  { %v2973_v47 = vrot.slane %v27068_v44, %v18751_v25  ;;  %v2909_v49 = vcombine.low %v19080_v48, %v1148_v0  ;;  %v18200_v50 = vcombine.high %v19080_v48, %v1148_v0  ;;  %v27069_v22 = vcombine.low %v19089_v43, %v19106_v20 }
 0x10e   :  { %v2939_v44 = vcombine.low %v2917_v7, %v2924_v34  ;;  %v27070_v48 = vcombine.high %v19089_v43, %v19106_v20  ;;  %v1440_v55 = vcombine.high %v1017_v56, %v1017_v56  ;;  %v1447_v10 = vrot.slane %v1017_v56, %v18751_v25 }
 0x10f   :  { %v2980_v62 = vrot.slane %v27069_v22, %v18751_v25  ;;  %v2931_v26 = vrot.slane %v2909_v49, %v18751_v25  ;;  %v2938_v54 = vrot.slane %v18200_v50, %v18751_v25  ;;  %v680_v63 = vadd.f32 %v18819_v59, %v625_v52  ;;  %v367_v52 = vpop.permute.xlu0 %366 }
 0x110   :  { %v2987_v0 = vrot.slane %v27070_v48, %v18751_v25  ;;  %v2988_v5 = vcombine.low %v2966_v40, %v2973_v47  ;;  %v2947_v36 = vrot.slane %v2939_v44, %v18751_v25  ;;  %v27071_v49 = vcombine.high %v19103_v15, %v19103_v15 }
 0x111   :  { %v2940_v39 = vcombine.low %v2931_v26, %v2938_v54  ;;  %v1454_v7 = vrot.slane %v1440_v55, %v18751_v25  ;;  %v1455_v20 = vcombine.high %v1447_v10, %v1447_v10  ;;  %v19343_v43 = vrot.slane %v1447_v10, %v18751_v25 }
 0x112   :  { %v2989_v22 = vcombine.low %v2980_v62, %v2987_v0  ;;  %v19339_v50 = vrot.slane %v27071_v49, %v18751_v25  ;;  %v996_v34 = vadd.f32 %v18899_v60, %v680_v63  ;;  %v2996_v47 = vrot.slane %v2988_v5, %v18751_v25 }
 0x113   :  { %v2954_v40 = vrot.slane %v2940_v39, %v18751_v25  ;;  %v1456_v26 = vcombine.high %v1454_v7, %v1454_v7  ;;  %v19352_v54 = vrot.slane %v1454_v7, %v18751_v25  ;;  %v19355_v44 = vrot.slane %v1455_v20, %v18751_v25 }
 0x114   :  { %v3003_v62 = vrot.slane %v2989_v22, %v18751_v25  ;;  %v1044_v55 = vmax.f32 %v996_v34, 0.0  ;;  %v546_v63 = vmul.f32 %v18741_v16, %v367_v52  ;;  %v981_v49 = vadd.f32 %v19039_v31, %v18836_v24  ;;  %v230_v52 = vpop.permute.xlu1 %229 }
 0x115   :  { %27072 = vst [vmem:[#allocation48_spill] sm:$0xff] %v19352_v54  ;;  %27073 = vst [vmem:[#allocation49_spill] sm:$0xff] %v19355_v44  ;;  %v2955_v0 = vcombine.low %v2947_v36, %v2954_v40  ;;  %v19361_v5 = vrot.slane %v1456_v26, %v18751_v25  ;;  %v1825_v34 = vcombine.high %v19059_v30, %v19059_v30  ;;  %v27075_v24 = vmax.f32 %v19051_v13, 0.0 }
 0x116   :  { %v3004_v10 = vcombine.low %v2996_v47, %v3003_v62  ;;  %v2448_v7 = vcombine.high %v1044_v55, %v1044_v55  ;;  %v2455_v36 = vrot.slane %v1044_v55, %v18751_v25  ;;  %v594_v20 = vadd.f32 %v546_v63, %v18763_v29 }
 0x117   :  { %27074 = vst [vmem:[#allocation50_spill] sm:$0xff] %v19361_v5  ;;  %18377 = vmatprep.mubr.msk.f32.mxu0 %vm698_vm0, %v2955_v0  ;;  %v1029_v40 = vmax.f32 %v981_v49, 0.0  ;;  %v1832_v47 = vrot.slane %v19059_v30, %v18751_v25  ;;  %v1880_v31 = vrot.slane %v27075_v24, %v18751_v25  ;;  %v19381_v62 = vmul.f32 %v18735_v14, %v230_v52 }
 0x118   :  { %18378 = vmatmul.mubr.msk.f32.vlgmr.msra.gmra.mxu0 %vm698_vm0, %v3004_v10  ;;  %v2462_v26 = vrot.slane %v2448_v7, %v18751_v25  ;;  %v2463_v29 = vcombine.high %v2455_v36, %v2455_v36  ;;  %v19385_v0 = vrot.slane %v2455_v36, %v18751_v25  ;;  %v649_v55 = vadd.f32 %v18819_v59, %v594_v20 }
 0x119   :  { %v1839_v10 = vrot.slane %v1825_v34, %v18751_v25  ;;  %v1840_v63 = vcombine.high %v1832_v47, %v1832_v47  ;;  %v19390_v30 = vrot.slane %v1832_v47, %v18751_v25  ;;  %v1887_v13 = vrot.slane %v1880_v31, %v18751_v25  ;;  %v387_v47 = vpop.permute.xlu0 %386 }
 0x11a   :  { %v2464_v49 = vcombine.high %v2462_v26, %v2462_v26  ;;  %v19394_v14 = vrot.slane %v2462_v26, %v18751_v25  ;;  %v19397_v7 = vrot.slane %v2463_v29, %v18751_v25  ;;  %v965_v36 = vadd.f32 %v19017_v38, %v649_v55 }
 0x11b   :  { %27076 = vst [vmem:[#allocation51_spill] sm:$0xff] %v19390_v30  ;;  %v1841_v52 = vcombine.high %v1839_v10, %v1839_v10  ;;  %v1855_v20 = vrot.slane %v1839_v10, %v18751_v25  ;;  %v19402_v34 = vrot.slane %v1840_v63, %v18751_v25  ;;  %v1888_v24 = vcombine.high %v1029_v40, %v1029_v40 }
 0x11c   :  { %27077 = vst [vmem:[#allocation52_spill] sm:$0xff] %v19394_v14  ;;  %27078 = vst [vmem:[#allocation53_spill] sm:$0xff] %v19397_v7  ;;  %v19405_v39 = vrot.slane %v2464_v49, %v18751_v25  ;;  %v1013_v29 = vmax.f32 %v965_v36, 0.0  ;;  %v1895_v55 = vrot.slane %v1029_v40, %v18751_v25  ;;  %v1488_v22 = vcombine.high %v19361_v5, %v19361_v5 }
 0x11d   :  { %27079 = vst [vmem:[#allocation54_spill] sm:$0xff] %v19402_v34  ;;  %v1869_v38 = vrot.slane %v1841_v52, %v18751_v25  ;;  %v18213_v63 = vcombine.high %v19390_v30, %v19402_v34  ;;  %v551_v48 = vmul.f32 %v18741_v16, %v387_v47  ;;  %v1902_v26 = vrot.slane %v1888_v24, %v18751_v25 }
 0x11e   :  { %27080 = vst [vmem:[#allocation55_spill] sm:$0xff] %v19405_v39  ;;  %v1320_v49 = vrot.slane %v1013_v29, %v18751_v25  ;;  %v1903_v36 = vcombine.high %v1895_v55, %v1895_v55  ;;  %v1911_v52 = vrot.slane %v1895_v55, %v18751_v25  ;;  %v27081_v24 = vcombine.high %v19339_v50, %v19339_v50 }
 0x11f   :  { %v3594_v31 = vcombine.low %v1855_v20, %v1869_v38  ;;  %v18214_v40 = vcombine.high %v1855_v20, %v1869_v38  ;;  %v3603_v10 = vrot.slane %v18213_v63, %v18751_v25  ;;  %v599_v34 = vadd.f32 %v551_v48, %v18791_v37  ;;  %v487_v63 = vpop.permute.xlu1 %486 }
 0x120   :  { %v1327_v56 = vrot.slane %v1320_v49, %v18751_v25  ;;  %v1904_v30 = vcombine.high %v1902_v26, %v1902_v26  ;;  %v1933_v29 = vcombine.high %v1911_v52, %v1911_v52  ;;  %v3596_v54 = vcombine.low %v1887_v13, %v1911_v52 }
 0x121   :  { %v3610_v5 = vrot.slane %v3594_v31, %v18751_v25  ;;  %v3617_v47 = vrot.slane %v18214_v40, %v18751_v25  ;;  %v654_v20 = vadd.f32 %v18819_v59, %v599_v34  ;;  %v1918_v38 = vrot.slane %v1902_v26, %v18751_v25 }
 0x122   :  { %v19431_v44 = vcombine.low %v27081_v24, %v1327_v56  ;;  %v1925_v55 = vrot.slane %v1903_v36, %v18751_v25  ;;  %v3624_v37 = vrot.slane %v3596_v54, %v18751_v25  ;;  %v1932_v13 = vrot.slane %v1904_v30, %v18751_v25 }
 0x123   :  { %v3625_v48 = vcombine.low %v3603_v10, %v3610_v5  ;;  %v1960_v31 = vrot.slane %v19114_v41, %v18751_v25  ;;  %v970_v49 = vadd.f32 %v19028_v35, %v654_v20  ;;  %v1934_v52 = vcombine.high %v1918_v38, %v1918_v38 }
 0x124   :  { %v1935_v56 = vcombine.high %v1925_v55, %v1925_v55  ;;  %v3642_v40 = vcombine.low %v1925_v55, %v1933_v29  ;;  %v3626_v24 = vcombine.low %v3617_v47, %v3624_v37  ;;  %v1936_v26 = vcombine.high %v1932_v13, %v1932_v13 }
 0x125   :  { %v3633_v34 = vrot.slane %v3625_v48, %v18751_v25  ;;  %v576_v36 = vmul.f32 %v18741_v16, %v487_v63  ;;  %v1018_v14 = vmax.f32 %v970_v49, 0.0  ;;  %v3644_v54 = vcombine.low %v1932_v13, %v1934_v52 }
 0x126   :  { %v3643_v39 = vcombine.low %v1935_v56, %v1918_v38  ;;  %v3652_v5 = vrot.slane %v3642_v40, %v18751_v25  ;;  %v3640_v30 = vrot.slane %v3626_v24, %v18751_v25  ;;  %v3645_v10 = vcombine.low %v1936_v26, %v1960_v31 }
 0x127   :  { %v624_v7 = vadd.f32 %v576_v36, %v19381_v62  ;;  %v2433_v20 = vcombine.high %v19288_v1, %v19288_v1  ;;  %v1489_v29 = vcombine.high %v1018_v14, %v1018_v14  ;;  %v1496_v47 = vrot.slane %v1018_v14, %v18751_v25 }
 0x128   :  { %v3659_v55 = vrot.slane %v3643_v39, %v18751_v25  ;;  %v3666_v16 = vrot.slane %v3644_v54, %v18751_v25  ;;  %v3641_v63 = vcombine.low %v3633_v34, %v3640_v30  ;;  %v3673_v38 = vrot.slane %v3645_v10, %v18751_v25 }
 0x129   :  { %v679_v37 = vadd.f32 %v18819_v59, %v624_v7  ;;  %v27082_v48 = vcombine.high %v19062_v53, %v19062_v53  ;;  %v1503_v13 = vrot.slane %v1489_v29, %v18751_v25  ;;  %v1504_v49 = vcombine.high %v1496_v47, %v1496_v47 }
 0x12a   :  { %v19459_v52 = vrot.slane %v1496_v47, %v18751_v25  ;;  %v3674_v14 = vcombine.low %v3652_v5, %v3659_v55  ;;  %18398 = vmatprep.mubr.msk.f32.mxu1 %vm698_vm0, %v3641_v63  ;;  %v3675_v39 = vcombine.low %v3666_v16, %v3673_v38  ;;  %v1952_v59 = vcombine.high %v19114_v41, %v19114_v41  ;;  %v241_v16 = vpop.permute.xlu0 %240 }
 0x12b   :  { %v1951_v62 = vrot.slane %v27082_v48, %v18751_v25  ;;  %v995_v56 = vadd.f32 %v18902_v6, %v679_v37  ;;  %v1505_v40 = vcombine.high %v1503_v13, %v1503_v13  ;;  %v19466_v53 = vrot.slane %v1503_v13, %v18751_v25  ;;  %v19494_v48 = vld [vmem:[%s26217_s3] ss:$0 sm:$0xff] }
 0x12c   :  { %v19469_v24 = vrot.slane %v1504_v49, %v18751_v25  ;;  %v19474_v26 = vcombine.low %v1488_v22, %v19459_v52  ;;  %v3682_v36 = vrot.slane %v3674_v14, %v18751_v25  ;;  %v3689_v6 = vrot.slane %v3675_v39, %v18751_v25 }
 0x12d   :  { %v1953_v7 = vcombine.high %v1951_v62, %v1951_v62  ;;  %v1043_v54 = vmax.f32 %v995_v56, 0.0  ;;  %v19479_v41 = vrot.slane %v1505_v40, %v18751_v25  ;;  %v1967_v10 = vrot.slane %v1951_v62, %v18751_v25 }
 0x12e   :  { %v3690_v29 = vcombine.low %v3682_v36, %v3689_v6  ;;  %v1974_v47 = vrot.slane %v1952_v59, %v18751_v25  ;;  %v1982_v63 = vcombine.high %v1960_v31, %v1960_v31  ;;  %v1999_v37 = vrot.slane %v19125_v58, %v18751_v25 }
 0x12f   :  { %v2440_v22 = vrot.slane %v1043_v54, %v18751_v25  ;;  %v1981_v55 = vrot.slane %v1953_v7, %v18751_v25  ;;  %v1983_v38 = vcombine.high %v1967_v10, %v1967_v10  ;;  %v19497_v62 = vmul.f32 %v19494_v48, %v241_v16 }
 0x130   :  { %18399 = vmatmul.mubr.msk.f32.vlgmr.msra.gmra.mxu1 %vm698_vm0, %v3690_v29  ;;  %v1984_v49 = vcombine.high %v1974_v47, %v1974_v47  ;;  %v1246_v31 = vrot.slane %v19092_v19, %v18751_v25  ;;  %v3691_v39 = vcombine.low %v1974_v47, %v1982_v63  ;;  %v27083_v58 = vcombine.high %v19070_v11, %v19070_v11 }
 0x131   :  { %v2447_v13 = vrot.slane %v2440_v22, %v18751_v25  ;;  %v1985_v14 = vcombine.high %v1981_v55, %v1981_v55  ;;  %v3693_v56 = vcombine.low %v1981_v55, %v1983_v38  ;;  %v27084_v7 = vcombine.high %v19092_v19, %v19092_v19 }
 0x132   :  { %v1253_v59 = vrot.slane %v27083_v58, %v18751_v25  ;;  %v3692_v6 = vcombine.low %v1984_v49, %v1967_v10  ;;  %v1261_v29 = vcombine.high %v19154_v51, %v19154_v51  ;;  %v3701_v22 = vrot.slane %v3691_v39, %v18751_v25 }
 0x133   :  { %v1260_v40 = vrot.slane %v27084_v7, %v18751_v25  ;;  %v19511_v36 = vcombine.low %v2433_v20, %v2447_v13  ;;  %v3694_v54 = vcombine.low %v1985_v14, %v1999_v37  ;;  %v3715_v47 = vrot.slane %v3693_v56, %v18751_v25 }
 0x134   :  { %v1262_v55 = vcombine.high %v1246_v31, %v1246_v31  ;;  %v1263_v16 = vcombine.high %v1253_v59, %v1253_v59  ;;  %v3708_v11 = vrot.slane %v3692_v6, %v18751_v25  ;;  %v3006_v38 = vcombine.low %v1253_v59, %v1261_v29 }
 0x135   :  { %v3722_v63 = vrot.slane %v3694_v54, %v18751_v25  ;;  %v3015_v19 = vrot.slane %v19249_v2, %v18751_v25  ;;  %v1264_v37 = vcombine.high %v1260_v40, %v1260_v40  ;;  %v1295_v51 = vrot.slane %v19103_v15, %v18751_v25 }
 0x136   :  { %v3007_v20 = vcombine.low %v1263_v16, %v1246_v31  ;;  %v3008_v10 = vcombine.low %v1260_v40, %v1262_v55  ;;  %v3723_v13 = vcombine.low %v3701_v22, %v3708_v11  ;;  %v3022_v14 = vrot.slane %v3006_v38, %v18751_v25 }
 0x137   :  { %v3724_v49 = vcombine.low %v3715_v47, %v3722_v63  ;;  %v27085_v39 = vcombine.high %v19100_v23, %v19100_v23  ;;  %v1310_v2 = vcombine.high %v19122_v3, %v19122_v3  ;;  %v1311_v31 = vcombine.high %v1295_v51, %v1295_v51 }
 0x138   :  { %v3029_v58 = vrot.slane %v3007_v20, %v18751_v25  ;;  %v3036_v59 = vrot.slane %v3008_v10, %v18751_v25  ;;  %v3731_v7 = vrot.slane %v3723_v13, %v18751_v25  ;;  %v3037_v40 = vcombine.low %v3015_v19, %v3022_v14  ;;  %v27087_v10 = vld [vmem:[#allocation26_spill] sm:$0xff]  ;;  %v252_v14 = vpop.permute.xlu1 %251 }
 0x139   :  { %v1302_v56 = vrot.slane %v27085_v39, %v18751_v25  ;;  %v3738_v15 = vrot.slane %v3724_v49, %v18751_v25  ;;  %v3054_v29 = vcombine.low %v1264_v37, %v19122_v3  ;;  %v3057_v23 = vcombine.low %v19339_v50, %v1311_v31  ;;  %v27088_v37 = vld [vmem:[#allocation21_spill] sm:$0xff] }
 0x13a   :  { %v3038_v54 = vcombine.low %v3029_v58, %v3036_v59  ;;  %v3045_v55 = vrot.slane %v3037_v40, %v18751_v25  ;;  %v27086_v11 = vcombine.high %v18931_v12, %v18931_v12  ;;  %v18215_v13 = vcombine.high %v27088_v37, %v27087_v10  ;;  %v27089_v12 = vld [vmem:[#allocation25_spill] sm:$0xff] }
 0x13b   :  { %v1312_v6 = vcombine.high %v1302_v56, %v1302_v56  ;;  %v3055_v22 = vcombine.low %v1302_v56, %v1310_v2  ;;  %v3739_v47 = vcombine.low %v3731_v7, %v3738_v15  ;;  %v3064_v19 = vrot.slane %v3054_v29, %v18751_v25  ;;  %v495_v2 = vpop.permute.xlu0 %494  ;;  %v27090_v29 = vld [vmem:[#allocation22_spill] sm:$0xff] }
 0x13c   :  { %v2044_v63 = vrot.slane %v27086_v11, %v18751_v25  ;;  %v3052_v38 = vrot.slane %v3038_v54, %v18751_v25  ;;  %v3085_v3 = vrot.slane %v3057_v23, %v18751_v25  ;;  %v19554_v59 = vmul.f32 %v19494_v48, %v252_v14 }
 0x13d   :  { %v3056_v16 = vcombine.low %v1312_v6, %v1295_v51  ;;  %v3071_v20 = vrot.slane %v3055_v22, %v18751_v25  ;;  %18401 = vmatprep.mubr.msk.f32.mxu1 %vm698_vm0, %v3739_v47  ;;  %v3740_v51 = vcombine.low %v27088_v37, %v27087_v10  ;;  %v3757_v15 = vrot.slane %v18215_v13, %v18751_v25  ;;  %v27092_v47 = vld [vmem:[#allocation28_spill] sm:$0xff] }
 0x13e   :  { %v3742_v49 = vcombine.low %v27089_v12, %v2044_v63  ;;  %v3053_v39 = vcombine.low %v3045_v55, %v3052_v38  ;;  %v18216_v58 = vcombine.high %v27089_v12, %v2044_v63  ;;  %v27091_v22 = vcombine.high %v27090_v29, %v27090_v29  ;;  %v27093_v55 = vld [vmem:[#allocation23_spill] sm:$0xff] }
 0x13f   :  { %v3078_v50 = vrot.slane %v3056_v16, %v18751_v25  ;;  %v3086_v56 = vcombine.low %v3064_v19, %v3071_v20  ;;  %v3750_v7 = vrot.slane %v3740_v51, %v18751_v25  ;;  %v3789_v16 = vcombine.low %v27093_v55, %v27092_v47  ;;  %v19574_v19 = vld [vmem:[%s26217_s3 + $0x1] ss:$0 sm:$0xff] }
 0x140   :  { %v3764_v40 = vrot.slane %v3742_v49, %v18751_v25  ;;  %18380 = vmatprep.mubr.msk.f32.mxu0 %vm698_vm0, %v3053_v39  ;;  %v3771_v54 = vrot.slane %v18216_v58, %v18751_v25  ;;  %v2093_v23 = vrot.slane %v27091_v22, %v18751_v25  ;;  %v18217_v38 = vcombine.high %v27093_v55, %v27092_v47  ;;  %v27099_v55 = vld [vmem:[#allocation29_spill] sm:$0xff] }
 0x141   :  { %v3087_v31 = vcombine.low %v3078_v50, %v3085_v3  ;;  %v3094_v6 = vrot.slane %v3086_v56, %v18751_v25  ;;  %v3772_v63 = vcombine.low %v3750_v7, %v3757_v15  ;;  %v578_v20 = vmul.f32 %v19574_v19, %v495_v2  ;;  %v27094_v50 = vld [vmem:[#allocation27_spill] sm:$0xff]  ;;  %v27095_v2 = vld [vmem:[#allocation24_spill] sm:$0xff]  ;;  %v19592_v15 = vld [vmem:[%s26218_s4] ss:$0 sm:$0xff] }
 0x142   :  { %v3773_v3 = vcombine.low %v3764_v40, %v3771_v54  ;;  %v3791_v10 = vcombine.low %v27094_v50, %v2093_v23  ;;  %v18218_v37 = vcombine.high %v27094_v50, %v2093_v23  ;;  %v3799_v51 = vrot.slane %v3789_v16, %v18751_v25 }
 0x143   :  { %v3101_v11 = vrot.slane %v3087_v31, %v18751_v25  ;;  %v3780_v12 = vrot.slane %v3772_v63, %v18751_v25  ;;  %v3806_v49 = vrot.slane %v18217_v38, %v18751_v25  ;;  %v626_v14 = vadd.f32 %v578_v20, %v19497_v62  ;;  %v27096_v62 = vld [vmem:[#allocation20_spill] sm:$0xff] }
 0x144   :  { %v3787_v39 = vrot.slane %v3773_v3, %v18751_v25  ;;  %v3813_v56 = vrot.slane %v3791_v10, %v18751_v25  ;;  %v3820_v58 = vrot.slane %v18218_v37, %v18751_v25  ;;  %v2142_v31 = vrot.slane %v27095_v2, %v18751_v25  ;;  %v27100_v3 = vld [vmem:[#allocation19_spill] sm:$0xff]  ;;  %v256_v37 = vpop.permute.xlu1 %255 }
 0x145   :  { %v3102_v13 = vcombine.low %v3094_v6, %v3101_v11  ;;  %v3821_v7 = vcombine.low %v3799_v51, %v3806_v49  ;;  %v681_v40 = vadd.f32 %v19592_v15, %v626_v14  ;;  %v27097_v6 = vcombine.high %v27096_v62, %v27096_v62  ;;  %v27102_v62 = vld [vmem:[#allocation31_spill] sm:$0xff] }
 0x146   :  { %v27098_v29 = vcombine.high %v27095_v2, %v27095_v2  ;;  %v3788_v23 = vcombine.low %v3780_v12, %v3787_v39  ;;  %v3822_v47 = vcombine.low %v3813_v56, %v3820_v58  ;;  %v2157_v16 = vcombine.high %v27099_v55, %v27099_v55 }
 0x147   :  { %18381 = vmatmul.mubr.msk.f32.gmra.mxu0 %vm698_vm0, %v3102_v13  ;;  %v2149_v54 = vrot.slane %v27097_v6, %v18751_v25  ;;  %v2158_v11 = vcombine.high %v2142_v31, %v2142_v31  ;;  %v3829_v63 = vrot.slane %v3821_v7, %v18751_v25  ;;  %v997_v38 = vadd.f32 %v18899_v60, %v681_v40 }
 0x148   :  { %v2156_v22 = vrot.slane %v27098_v29, %v18751_v25  ;;  %v27101_v50 = vrot.slane %v27100_v3, %v18751_v25  ;;  %18402 = vmatmul.mubr.msk.f32.gmra.mxu1 %vm698_vm0, %v3788_v23  ;;  %v3836_v51 = vrot.slane %v3822_v47, %v18751_v25  ;;  %v336_v49 = vmul.f32 %v19494_v48, %v256_v37  ;;  %v27103_v47 = vld [vmem:[#allocation30_spill] sm:$0xff] }
 0x149   :  { %v2159_v20 = vcombine.high %v2149_v54, %v2149_v54  ;;  %v3839_v13 = vcombine.low %v2149_v54, %v2157_v16  ;;  %v1045_v14 = vmax.f32 %v997_v38, 0.0  ;;  %v2191_v6 = vrot.slane %v27102_v62, %v18751_v25  ;;  %v27105_v16 = vld [vmem:[#allocation33_spill] sm:$0xff] }
 0x14a   :  { %v3838_v10 = vcombine.low %v27101_v50, %v27099_v55  ;;  %v3841_v12 = vcombine.low %v2156_v22, %v2158_v11  ;;  %v2160_v58 = vcombine.high %v2156_v22, %v2156_v22  ;;  %v3837_v2 = vcombine.low %v3829_v63, %v3836_v51 }
 0x14b   :  { %v3840_v39 = vcombine.low %v2159_v20, %v2142_v31  ;;  %v3855_v7 = vrot.slane %v3839_v13, %v18751_v25  ;;  %v2497_v29 = vcombine.high %v1045_v14, %v1045_v14  ;;  %v2504_v23 = vrot.slane %v1045_v14, %v18751_v25 }
 0x14c   :  { %v3848_v56 = vrot.slane %v3838_v10, %v18751_v25  ;;  %v3869_v40 = vrot.slane %v3841_v12, %v18751_v25  ;;  %v27104_v31 = vcombine.high %v27103_v47, %v27103_v47  ;;  %18404 = vmatprep.mubr.msk.f32.mxu1 %vm698_vm0, %v3837_v2  ;;  %v2206_v11 = vcombine.high %v27105_v16, %v27105_v16  ;;  %v503_v2 = vpop.permute.xlu0 %502 }
 0x14d   :  { %v3862_v54 = vrot.slane %v3840_v39, %v18751_v25  ;;  %v2207_v63 = vcombine.high %v2191_v6, %v2191_v6  ;;  %v3887_v38 = vcombine.low %v2160_v58, %v27105_v16  ;;  %v2511_v20 = vrot.slane %v2497_v29, %v18751_v25  ;;  %v27106_v16 = vld [vmem:[#allocation34_spill] sm:$0xff] }
 0x14e   :  { %v2198_v55 = vrot.slane %v27104_v31, %v18751_v25  ;;  %v3870_v22 = vcombine.low %v3848_v56, %v3855_v7  ;;  %v2512_v3 = vcombine.high %v2504_v23, %v2504_v23  ;;  %v19631_v50 = vrot.slane %v2504_v23, %v18751_v25  ;;  %v507_v23 = vpop.permute.xlu1 %506 }
 0x14f   :  { %v3871_v10 = vcombine.low %v3862_v54, %v3869_v40  ;;  %v3890_v12 = vcombine.low %v19141_v61, %v2207_v63  ;;  %v2513_v14 = vcombine.high %v2511_v20, %v2511_v20  ;;  %v19636_v39 = vrot.slane %v2511_v20, %v18751_v25  ;;  %v27107_v63 = vld [vmem:[#allocation32_spill] sm:$0xff] }
 0x150   :  { %v3878_v37 = vrot.slane %v3870_v22, %v18751_v25  ;;  %v2208_v51 = vcombine.high %v2198_v55, %v2198_v55  ;;  %v3888_v13 = vcombine.low %v2198_v55, %v2206_v11  ;;  %v19639_v56 = vrot.slane %v2512_v3, %v18751_v25 }
 0x151   :  { %v3885_v58 = vrot.slane %v3871_v10, %v18751_v25  ;;  %v3897_v62 = vrot.slane %v3887_v38, %v18751_v25  ;;  %v3918_v29 = vrot.slane %v3890_v12, %v18751_v25  ;;  %v19646_v61 = vrot.slane %v2513_v14, %v18751_v25 }
 0x152   :  { %v3889_v7 = vcombine.low %v2208_v51, %v2191_v6  ;;  %v3904_v40 = vrot.slane %v3888_v13, %v18751_v25  ;;  %v580_v22 = vmul.f32 %v19574_v19, %v503_v2  ;;  %v2254_v11 = vrot.slane %v27106_v16, %v18751_v25  ;;  %v27110_v2 = vld [vmem:[#allocation35_spill] sm:$0xff] }
 0x153   :  { %v3886_v31 = vcombine.low %v3878_v37, %v3885_v58  ;;  %v27108_v38 = vcombine.high %v27107_v63, %v27107_v63  ;;  %v27109_v3 = vcombine.high %v27106_v16, %v27106_v16  ;;  %v3946_v37 = vrot.slane %v19201_v45, %v18751_v25 }
 0x154   :  { %v3911_v55 = vrot.slane %v3889_v7, %v18751_v25  ;;  %v3919_v6 = vcombine.low %v3897_v62, %v3904_v40  ;;  %v581_v51 = vmul.f32 %v19574_v19, %v507_v23  ;;  %v628_v14 = vadd.f32 %v580_v22, %v19554_v59 }
 0x155   :  { %18405 = vmatmul.mubr.msk.f32.gmra.mxu1 %vm698_vm0, %v3886_v31  ;;  %v2261_v20 = vrot.slane %v27108_v38, %v18751_v25  ;;  %v2268_v10 = vrot.slane %v27109_v3, %v18751_v25  ;;  %v3988_v58 = vcombine.low %v19196_v9, %v19212_v57  ;;  %v379_v38 = vpop.permute.xlu0 %378 }
 0x156   :  { %v3920_v13 = vcombine.low %v3911_v55, %v3918_v29  ;;  %v3927_v12 = vrot.slane %v3919_v6, %v18751_v25  ;;  %v629_v31 = vadd.f32 %v581_v51, %v336_v49  ;;  %v683_v45 = vadd.f32 %v19592_v15, %v628_v14 }
 0x157   :  { %v3937_v7 = vcombine.low %v27110_v2, %v2261_v20  ;;  %v18219_v62 = vcombine.high %v27110_v2, %v2261_v20  ;;  %v3939_v40 = vcombine.low %v2254_v11, %v2268_v10  ;;  %v18220_v63 = vcombine.high %v2254_v11, %v2268_v10  ;;  %v27112_v20 = vld [vmem:[#allocation16_spill] sm:$0xff] }
 0x158   :  { %v3934_v16 = vrot.slane %v3920_v13, %v18751_v25  ;;  %v27111_v29 = vcombine.low %v19187_v33, %v19199_v42  ;;  %v684_v22 = vadd.f32 %v19592_v15, %v629_v31  ;;  %v999_v3 = vadd.f32 %v27112_v20, %v683_v45 }
 0x159   :  { %v3953_v59 = vrot.slane %v3937_v7, %v18751_v25  ;;  %v3960_v55 = vrot.slane %v18219_v62, %v18751_v25  ;;  %v3967_v6 = vrot.slane %v3939_v40, %v18751_v25  ;;  %v3995_v51 = vrot.slane %v18220_v63, %v18751_v25 }
 0x15a   :  { %v4002_v23 = vrot.slane %v27111_v29, %v18751_v25  ;;  %v3935_v49 = vcombine.low %v3927_v12, %v3934_v16  ;;  %v27113_v11 = vcombine.high %v19187_v33, %v19199_v42  ;;  %v1000_v2 = vadd.f32 %v27112_v20, %v684_v22  ;;  %v27114_v29 = vld [vmem:[#allocation11_spill] sm:$0xff] }
 0x15b   :  { %v3968_v13 = vcombine.low %v3946_v37, %v3953_v59  ;;  %v3969_v14 = vcombine.low %v3960_v55, %v3967_v6  ;;  %v4016_v7 = vrot.slane %v3988_v58, %v18751_v25  ;;  %v1047_v62 = vmax.f32 %v999_v3, 0.0 }
 0x15c   :  { %v4009_v10 = vrot.slane %v27113_v11, %v18751_v25  ;;  %18407 = vmatprep.mubr.msk.f32.mxu1 %vm698_vm0, %v3935_v49  ;;  %v4017_v40 = vcombine.low %v3995_v51, %v4002_v23  ;;  %v549_v12 = vmul.f32 %v19574_v19, %v379_v38  ;;  %v18222_v31 = vcombine.high %v19196_v9, %v19212_v57 }
 0x15d   :  { %v3976_v16 = vrot.slane %v3968_v13, %v18751_v25  ;;  %v3983_v33 = vrot.slane %v3969_v14, %v18751_v25  ;;  %v1048_v42 = vmax.f32 %v1000_v2, 0.0  ;;  %v2560_v45 = vcombine.high %v1047_v62, %v1047_v62 }
 0x15e   :  { %v4018_v37 = vcombine.low %v4009_v10, %v4016_v7  ;;  %v2567_v63 = vrot.slane %v1047_v62, %v18751_v25  ;;  %v4025_v58 = vrot.slane %v4017_v40, %v18751_v25  ;;  %v597_v59 = vadd.f32 %v549_v12, %v27114_v29 }
 0x15f   :  { %v3984_v55 = vcombine.low %v3976_v16, %v3983_v33  ;;  %v2609_v23 = vcombine.high %v1048_v42, %v1048_v42  ;;  %v2616_v6 = vrot.slane %v1048_v42, %v18751_v25  ;;  %v2574_v9 = vrot.slane %v2560_v45, %v18751_v25  ;;  %v27130_v16 = vld [vmem:[#allocation45_spill] sm:$0xff]  ;;  %v27131_v42 = vld [vmem:[#allocation44_spill] sm:$0xff] }
 0x160   :  { %v4032_v22 = vrot.slane %v4018_v37, %v18751_v25  ;;  %v2575_v57 = vcombine.high %v2567_v63, %v2567_v63  ;;  %v19705_v38 = vrot.slane %v2567_v63, %v18751_v25  ;;  %v652_v49 = vadd.f32 %v19592_v15, %v597_v59  ;;  %v245_v63 = vpop.permute.xlu1 %244  ;;  %v27132_v37 = vld [vmem:[#allocation46_spill] sm:$0xff] }
 0x161   :  { %18408 = vmatmul.mubr.msk.f32.gmra.mxu1 %vm698_vm0, %v3984_v55  ;;  %v2623_v3 = vrot.slane %v2609_v23, %v18751_v25  ;;  %v2624_v51 = vcombine.high %v2616_v6, %v2616_v6  ;;  %v19711_v11 = vrot.slane %v2616_v6, %v18751_v25  ;;  %v2576_v13 = vcombine.high %v2574_v9, %v2574_v9 }
 0x162   :  { %v4033_v10 = vcombine.low %v4025_v58, %v4032_v22  ;;  %v19714_v14 = vrot.slane %v2574_v9, %v18751_v25  ;;  %v19717_v2 = vrot.slane %v2575_v57, %v18751_v25  ;;  %v968_v45 = vadd.f32 %v19020_v8, %v652_v49 }
 0x163   :  { %v2625_v62 = vcombine.high %v2623_v3, %v2623_v3  ;;  %v19722_v40 = vrot.slane %v2623_v3, %v18751_v25  ;;  %v19725_v12 = vrot.slane %v2624_v51, %v18751_v25  ;;  %v19731_v33 = vrot.slane %v2576_v13, %v18751_v25 }
 0x164   :  { %18410 = vmatprep.mubr.msk.f32.mxu1 %vm698_vm0, %v4033_v10  ;;  %v27116_v55 = vcombine.high %v19192_v21, %v19192_v21  ;;  %v1016_v22 = vmax.f32 %v968_v45, 0.0  ;;  %v27117_v8 = vcombine.high %v19207_v28, %v19207_v28  ;;  %v4044_v57 = vrot.slane %v18222_v31, %v18751_v25  ;;  %v27119_v10 = vld [vmem:[#allocation39_spill] sm:$0xff] }
 0x165   :  { %27115 = vst [vmem:[#allocation26_spill] sm:$0xff] %v19722_v40  ;;  %v19739_v58 = vrot.slane %v2625_v62, %v18751_v25  ;;  %v2608_v6 = vcombine.high %v19731_v33, %v19731_v33  ;;  %v4051_v49 = vrot.slane %v19320_v17, %v18751_v25  ;;  %v19760_v21 = vmul.f32 %v19494_v48, %v245_v63  ;;  %v395_v62 = vpop.permute.xlu0 %394 }
 0x166   :  { %v4036_v23 = vcombine.low %v19207_v28, %v27116_v55  ;;  %v4037_v9 = vcombine.low %v27117_v8, %v19204_v32  ;;  %v27118_v51 = vcombine.high %v19204_v32, %v19204_v32  ;;  %v1432_v28 = vrot.slane %v1016_v22, %v18751_v25 }
 0x167   :  { %v19767_v45 = vcombine.low %v2608_v6, %v19711_v11  ;;  %v27120_v17 = vcombine.high %v19260_v4, %v19260_v4  ;;  %v4066_v63 = vcombine.low %v4044_v57, %v4051_v49  ;;  %v27121_v32 = vcombine.high %v19273_v27, %v19273_v27 }
 0x168   :  { %v4058_v3 = vrot.slane %v4036_v23, %v18751_v25  ;;  %v4083_v13 = vcombine.low %v27119_v10, %v27118_v51  ;;  %v4065_v31 = vrot.slane %v4037_v9, %v18751_v25  ;;  %v4100_v6 = vrot.slane %v19278_v18, %v18751_v25  ;;  %v132_v10 = vpop.permute.xlu1 %131 }
 0x169   :  { %v4085_v55 = vcombine.low %v19273_v27, %v27120_v17  ;;  %v4086_v23 = vcombine.low %v27121_v32, %v19270_v46  ;;  %v1439_v22 = vrot.slane %v1432_v28, %v18751_v25  ;;  %v553_v4 = vmul.f32 %v19574_v19, %v395_v62  ;;  %v27122_v27 = vld [vmem:[#allocation43_spill] sm:$0xff]  ;;  %v27123_v32 = vld [vmem:[#allocation41_spill] sm:$0xff]  ;;  %v27124_v28 = vld [vmem:[#allocation14_spill] sm:$0xff]  ;;  %v499_v5 = vpop.permute.xlu0 %498 }
 0x16a   :  { %v4093_v8 = vrot.slane %v4083_v13, %v18751_v25  ;;  %v4067_v51 = vcombine.low %v4058_v3, %v4065_v31  ;;  %v4074_v57 = vrot.slane %v4066_v63, %v18751_v25  ;;  %v3106_v29 = vcombine.low %v27123_v32, %v27122_v27  ;;  %v27125_v63 = vld [vmem:[#allocation40_spill] sm:$0xff] }
 0x16b   :  { %v4107_v9 = vrot.slane %v4085_v55, %v18751_v25  ;;  %v4114_v49 = vrot.slane %v4086_v23, %v18751_v25  ;;  %v19790_v13 = vcombine.low %v1439_v22, %v19343_v43  ;;  %v601_v3 = vadd.f32 %v553_v4, %v27124_v28  ;;  %v27126_v23 = vld [vmem:[#allocation42_spill] sm:$0xff] }
 0x16c   :  { %v4115_v17 = vcombine.low %v4093_v8, %v4100_v6  ;;  %v4081_v18 = vrot.slane %v4067_v51, %v18751_v25  ;;  %v3113_v31 = vrot.slane %v19431_v44, %v18751_v25  ;;  %v27127_v8 = vcombine.low %v27125_v63, %v27126_v23 }
 0x16d   :  { %v4116_v62 = vcombine.low %v4107_v9, %v4114_v49  ;;  %v27128_v22 = vcombine.high %v27125_v63, %v27126_v23  ;;  %v656_v4 = vadd.f32 %v19592_v15, %v601_v3  ;;  %v3134_v28 = vrot.slane %v3106_v29, %v18751_v25 }
 0x16e   :  { %v4123_v55 = vrot.slane %v4115_v17, %v18751_v25  ;;  %v3120_v6 = vrot.slane %v27127_v8, %v18751_v25  ;;  %v4082_v51 = vcombine.low %v4074_v57, %v4081_v18  ;;  %v18204_v44 = vcombine.high %v27123_v32, %v27122_v27  ;;  %v27129_v17 = vld [vmem:[#allocation47_spill] sm:$0xff]  ;;  %v27134_v57 = vld [vmem:[#allocation36_spill] sm:$0xff] }
 0x16f   :  { %v3127_v59 = vrot.slane %v27128_v22, %v18751_v25  ;;  %v4130_v9 = vrot.slane %v4116_v62, %v18751_v25  ;;  %v3155_v8 = vcombine.low %v27130_v16, %v27129_v17  ;;  %v27133_v63 = vcombine.low %v27131_v42, %v27132_v37  ;;  %v407_v62 = vpop.permute.xlu1 %406 }
 0x170   :  { %v3135_v49 = vcombine.low %v3113_v31, %v3120_v6  ;;  %18411 = vmatmul.mubr.msk.f32.gmra.mxu1 %vm698_vm0, %v4082_v51  ;;  %v972_v18 = vadd.f32 %v27134_v57, %v656_v4  ;;  %v3162_v29 = vrot.slane %v18204_v44, %v18751_v25  ;;  %v27135_v27 = vcombine.high %v27131_v42, %v27132_v37  ;;  %v19826_v31 = vld [vmem:[%s26219_s2] sm:$0xff] }
 0x171   :  { %v3169_v23 = vrot.slane %v27133_v63, %v18751_v25  ;;  %v3136_v3 = vcombine.low %v3127_v59, %v3134_v28  ;;  %v4131_v6 = vcombine.low %v4123_v55, %v4130_v9  ;;  %v3183_v51 = vrot.slane %v3155_v8, %v18751_v25  ;;  %v27136_v63 = vld [vmem:[#allocation4_spill] sm:$0xff]  ;;  %v27138_v55 = vld [vmem:[#allocation3_spill] sm:$0xff] }
 0x172   :  { %v3176_v32 = vrot.slane %v27135_v27, %v18751_v25  ;;  %v3143_v22 = vrot.slane %v3135_v49, %v18751_v25  ;;  %v311_v59 = vmul.f32 %v19494_v48, %v132_v10  ;;  %v1020_v4 = vmax.f32 %v972_v18, 0.0  ;;  %v399_v10 = vpop.permute.xlu0 %398 }
 0x173   :  { %v3150_v28 = vrot.slane %v3136_v3, %v18751_v25  ;;  %v3184_v44 = vcombine.low %v3162_v29, %v3169_v23  ;;  %v579_v42 = vmul.f32 %v19574_v19, %v499_v5  ;;  %18413 = vmatprep.mubr.msk.f32.mxu1 %vm698_vm0, %v4131_v6  ;;  %v19836_v27 = vrot.slane %v19826_v31, %v27136_v63 }
 0x174   :  { %v3185_v37 = vcombine.low %v3176_v32, %v3183_v51  ;;  %v19840_v9 = vrot.slane %v19826_v31, %v27138_v55  ;;  %v556_v49 = vmul.f32 %v19574_v19, %v407_v62  ;;  %v1552_v8 = vcombine.high %v1020_v4, %v1020_v4 }
 0x175   :  { %27137 = vst [vmem:[#allocation21_spill] sm:$0xff] %v19836_v27  ;;  %v1559_v18 = vrot.slane %v1020_v4, %v18751_v25  ;;  %v3151_v23 = vcombine.low %v3143_v22, %v3150_v28  ;;  %v3192_v5 = vrot.slane %v3184_v44, %v18751_v25  ;;  %v627_v29 = vadd.f32 %v579_v42, %v19760_v21 }
 0x176   :  { %27139 = vst [vmem:[#allocation25_spill] sm:$0xff] %v19840_v9  ;;  %v3199_v3 = vrot.slane %v3185_v37, %v18751_v25  ;;  %6862 = vbcast.lane.b32.xlu1 %v19836_v27, 256  ;;  %6855 = vbcast.lane.b32.xlu0 %v19840_v9, 256  ;;  %v604_v32 = vadd.f32 %v556_v49, %v311_v59 }
 0x177   :  { %v1566_v6 = vrot.slane %v1552_v8, %v18751_v25  ;;  %v1567_v51 = vcombine.high %v1559_v18, %v1559_v18  ;;  %v19851_v62 = vrot.slane %v1559_v18, %v18751_v25  ;;  %18383 = vmatprep.mubr.msk.f32.mxu0 %vm698_vm0, %v3151_v23  ;;  %v554_v22 = vmul.f32 %v19574_v19, %v399_v10  ;;  %v27141_v8 = vld [vmem:[#allocation13_spill] sm:$0xff] }
 0x178   :  { %v3200_v4 = vcombine.low %v3192_v5, %v3199_v3  ;;  %v682_v28 = vadd.f32 %v19592_v15, %v627_v29  ;;  %v659_v21 = vadd.f32 %v19592_v15, %v604_v32  ;;  %v27140_v44 = vcombine.high %v19270_v46, %v19270_v46  ;;  %v27142_v23 = vld [vmem:[#allocation37_spill] sm:$0xff] }
 0x179   :  { %v1568_v42 = vcombine.high %v1566_v6, %v1566_v6  ;;  %v19862_v37 = vrot.slane %v1566_v6, %v18751_v25  ;;  %v19865_v49 = vrot.slane %v1567_v51, %v18751_v25  ;;  %v602_v18 = vadd.f32 %v554_v22, %v27141_v8  ;;  %v27143_v22 = vld [vmem:[#allocation53_spill] sm:$0xff]  ;;  %v27146_v8 = vld [vmem:[#allocation6_spill] sm:$0xff] }
 0x17a   :  { %v4132_v59 = vcombine.low %v19288_v1, %v27140_v44  ;;  %18384 = vmatmul.mubr.msk.f32.gmra.mxu0 %vm698_vm0, %v3200_v4  ;;  %v998_v10 = vadd.f32 %v18899_v60, %v682_v28  ;;  %v975_v5 = vadd.f32 %v27142_v23, %v659_v21  ;;  %v4149_v46 = vrot.slane %v19511_v36, %v18751_v25  ;;  %v391_v44 = vpop.permute.xlu1 %390 }
 0x17b   :  { %v19875_v1 = vrot.slane %v1568_v42, %v18751_v25  ;;  %v657_v6 = vadd.f32 %v19592_v15, %v602_v18  ;;  %v27144_v4 = vcombine.low %v19385_v0, %v27143_v22  ;;  %v27145_v36 = vcombine.high %v19385_v0, %v27143_v22  ;;  %v27148_v18 = vld [vmem:[#allocation5_spill] sm:$0xff]  ;;  %v267_v0 = vpop.permute.xlu0 %266 }
 0x17c   :  { %v4142_v3 = vrot.slane %v4132_v59, %v18751_v25  ;;  %v1046_v51 = vmax.f32 %v998_v10, 0.0  ;;  %v1023_v60 = vmax.f32 %v975_v5, 0.0  ;;  %v19893_v32 = vrot.slane %v19826_v31, %v27146_v8 }
 0x17d   :  { %v4156_v28 = vrot.slane %v27144_v4, %v18751_v25  ;;  %v4163_v21 = vrot.slane %v27145_v36, %v18751_v25  ;;  %v973_v59 = vadd.f32 %v27134_v57, %v657_v6  ;;  %v19897_v10 = vrot.slane %v19826_v31, %v27148_v18 }
 0x17e   :  { %v4164_v42 = vcombine.low %v4142_v3, %v4149_v46  ;;  %27147 = vst [vmem:[#allocation22_spill] sm:$0xff] %v19893_v32  ;;  %v2552_v5 = vrot.slane %v1046_v51, %v18751_v25  ;;  %v1664_v4 = vcombine.high %v1023_v60, %v1023_v60  ;;  %v1671_v29 = vrot.slane %v1023_v60, %v18751_v25 }
 0x17f   :  { %27149 = vst [vmem:[#allocation28_spill] sm:$0xff] %v19897_v10  ;;  %v4165_v7 = vcombine.low %v4156_v28, %v4163_v21  ;;  %v1021_v22 = vmax.f32 %v973_v59, 0.0  ;;  %6876 = vbcast.lane.b32.xlu1 %v19893_v32, 256  ;;  %6869 = vbcast.lane.b32.xlu0 %v19897_v10, 256  ;;  %v552_v3 = vmul.f32 %v19574_v19, %v391_v44  ;;  %v515_v54 = vpop.permute.xlu0 %514  ;;  %v27166_v10 = vld [vmem:[#allocation9_spill] sm:$0xff] }
 0x180   :  { %v4172_v36 = vrot.slane %v4164_v42, %v18751_v25  ;;  %v2559_v6 = vrot.slane %v2552_v5, %v18751_v25  ;;  %v1678_v51 = vrot.slane %v1664_v4, %v18751_v25  ;;  %v1679_v30 = vcombine.high %v1671_v29, %v1671_v29  ;;  %v27151_v42 = vld [vmem:[#allocation12_spill] sm:$0xff] }
 0x181   :  { %v19910_v60 = vrot.slane %v1671_v29, %v18751_v25  ;;  %v1601_v28 = vcombine.high %v1021_v22, %v1021_v22  ;;  %v1608_v21 = vrot.slane %v1021_v22, %v18751_v25  ;;  %v4179_v59 = vrot.slane %v4165_v7, %v18751_v25 }
 0x182   :  { %v600_v34 = vadd.f32 %v552_v3, %v27151_v42  ;;  %v19916_v44 = vcombine.low %v2559_v6, %v19705_v38  ;;  %v1680_v47 = vcombine.high %v1678_v51, %v1678_v51  ;;  %v19919_v46 = vrot.slane %v1678_v51, %v18751_v25  ;;  %v136_v3 = vpop.permute.xlu1 %135 }
 0x183   :  { %27150 = vst [vmem:[#allocation23_spill] sm:$0xff] %v19910_v60  ;;  %v19922_v5 = vrot.slane %v1679_v30, %v18751_v25  ;;  %v1615_v4 = vrot.slane %v1601_v28, %v18751_v25  ;;  %v1616_v22 = vcombine.high %v1608_v21, %v1608_v21  ;;  %v19928_v7 = vrot.slane %v1608_v21, %v18751_v25  ;;  %v27155_v60 = vld [vmem:[#allocation10_spill] sm:$0xff]  ;;  %v27157_v30 = vld [vmem:[#allocation7_spill] sm:$0xff] }
 0x184   :  { %27152 = vst [vmem:[#allocation27_spill] sm:$0xff] %v19919_v46  ;;  %v19931_v6 = vrot.slane %v1680_v47, %v18751_v25  ;;  %v4180_v42 = vcombine.low %v4172_v36, %v4179_v59  ;;  %v655_v21 = vadd.f32 %v19592_v15, %v600_v34  ;;  %v338_v47 = vmul.f32 %v19494_v48, %v267_v0  ;;  %v27159_v59 = vld [vmem:[#allocation55_spill] sm:$0xff] }
 0x185   :  { %27153 = vst [vmem:[#allocation24_spill] sm:$0xff] %v19922_v5  ;;  %v1617_v40 = vcombine.high %v1615_v4, %v1615_v4  ;;  %v19938_v29 = vrot.slane %v1615_v4, %v18751_v25  ;;  %v19941_v28 = vrot.slane %v1616_v22, %v18751_v25  ;;  %v19948_v51 = vrot.slane %v19826_v31, %v27155_v60  ;;  %v27160_v4 = vld [vmem:[#allocation52_spill] sm:$0xff] }
 0x186   :  { %18414 = vmatmul.mubr.msk.f32.gmra.mxu1 %vm698_vm0, %v4180_v42  ;;  %v19952_v36 = vrot.slane %v19826_v31, %v27157_v30  ;;  %v4181_v46 = vcombine.low %v27160_v4, %v27159_v59  ;;  %v971_v42 = vadd.f32 %v19028_v35, %v655_v21  ;;  %v18224_v5 = vcombine.high %v27160_v4, %v27159_v59 }
 0x187   :  { %27154 = vst [vmem:[#allocation20_spill] sm:$0xff] %v19938_v29  ;;  %27156 = vst [vmem:[#allocation29_spill] sm:$0xff] %v19948_v51  ;;  %v19957_v22 = vrot.slane %v1617_v40, %v18751_v25  ;;  %6890 = vbcast.lane.b32.xlu1 %v19948_v51, 256  ;;  %v27162_v40 = vcombine.low %v19631_v50, %v19639_v56  ;;  %v27163_v0 = vcombine.high %v19631_v50, %v19639_v56  ;;  %v271_v51 = vpop.permute.xlu1 %270  ;;  %v260_v50 = vpop.permute.xlu0 %259 }
 0x188   :  { %27158 = vst [vmem:[#allocation19_spill] sm:$0xff] %v19952_v36  ;;  %6883 = vbcast.lane.b32.xlu0 %v19952_v36, 256  ;;  %v4191_v29 = vrot.slane %v4181_v46, %v18751_v25  ;;  %v1019_v34 = vmax.f32 %v971_v42, 0.0  ;;  %v19978_v21 = vmul.f32 %v19494_v48, %v136_v3  ;;  %v583_v36 = vmul.f32 %v19574_v19, %v515_v54  ;;  %v27164_v46 = vld [vmem:[#allocation8_spill] sm:$0xff] }
 0x189   :  { %27161 = vst [vmem:[#allocation31_spill] sm:$0xff] %v19957_v22  ;;  %v4205_v22 = vrot.slane %v27162_v40, %v18751_v25  ;;  %v4212_v35 = vrot.slane %v27163_v0, %v18751_v25  ;;  %v4198_v59 = vrot.slane %v18224_v5, %v18751_v25  ;;  %v19984_v4 = vrot.slane %v19826_v31, %v27164_v46 }
 0x18a   :  { %v19988_v42 = vrot.slane %v19826_v31, %v27166_v10  ;;  %v19991_v40 = vmul.f32 %v19494_v48, %v271_v51  ;;  %v1544_v56 = vrot.slane %v1019_v34, %v18751_v25  ;;  %v631_v0 = vadd.f32 %v583_v36, %v338_v47  ;;  %v27169_v51 = vld [vmem:[#allocation49_spill] sm:$0xff]  ;;  %v27170_v36 = vld [vmem:[#allocation48_spill] sm:$0xff] }
 0x18b   :  { %27165 = vst [vmem:[#allocation30_spill] sm:$0xff] %v19984_v4  ;;  %v4214_v3 = vcombine.low %v4205_v22, %v4212_v35  ;;  %v337_v54 = vmul.f32 %v19494_v48, %v260_v50  ;;  %v4213_v32 = vcombine.low %v4191_v29, %v4198_v59  ;;  %6904 = vbcast.lane.b32.xlu1 %v19984_v4, 256 }
 0x18c   :  { %27167 = vst [vmem:[#allocation33_spill] sm:$0xff] %v19988_v42  ;;  %6897 = vbcast.lane.b32.xlu0 %v19988_v42, 256  ;;  %v18206_v5 = vcombine.high %v27130_v16, %v27129_v17  ;;  %v27168_v31 = vcombine.high %v19343_v43, %v19343_v43  ;;  %v1551_v27 = vrot.slane %v1544_v56, %v18751_v25  ;;  %v27173_v56 = vld [vmem:[#allocation17_spill] sm:$0xff]  ;;  %v511_v42 = vpop.permute.xlu1 %510 }
 0x18d   :  { %v4228_v22 = vrot.slane %v4214_v3, %v18751_v25  ;;  %v686_v47 = vadd.f32 %v19592_v15, %v631_v0  ;;  %v27171_v29 = vcombine.high %v27169_v51, %v27169_v51  ;;  %v4221_v35 = vrot.slane %v4213_v32, %v18751_v25  ;;  %v27175_v32 = vld [vmem:[#allocation50_spill] sm:$0xff] }
 0x18e   :  { %v3203_v9 = vcombine.low %v27169_v51, %v27168_v31  ;;  %v3211_v16 = vrot.slane %v18206_v5, %v18751_v25  ;;  %v3218_v43 = vrot.slane %v19790_v13, %v18751_v25  ;;  %v27172_v59 = vcombine.high %v19479_v41, %v19479_v41  ;;  %v20029_v13 = vld [vmem:[%s26219_s2 + $0x8] sm:$0xff] }
 0x18f   :  { %v3204_v34 = vcombine.low %v27171_v29, %v27170_v36  ;;  %v1002_v3 = vadd.f32 %v27173_v56, %v686_v47  ;;  %v27174_v31 = vcombine.high %v27170_v36, %v27170_v36  ;;  %v27177_v47 = vcombine.high %v19469_v24, %v19469_v24 }
 0x190   :  { %v3225_v17 = vrot.slane %v3203_v9, %v18751_v25  ;;  %v20018_v50 = vcombine.low %v27172_v59, %v1551_v27  ;;  %v4229_v9 = vcombine.low %v4221_v35, %v4228_v22  ;;  %v3233_v5 = vcombine.low %v3211_v16, %v3218_v43  ;;  %v411_v22 = vpop.permute.xlu0 %410 }
 0x191   :  { %v3232_v0 = vrot.slane %v3204_v34, %v18751_v25  ;;  %v3250_v51 = vcombine.low %v27175_v32, %v27174_v31  ;;  %v27176_v27 = vcombine.high %v19459_v52, %v19459_v52  ;;  %v3253_v34 = vcombine.low %v27177_v47, %v19466_v53 }
 0x192   :  { %v1050_v36 = vmax.f32 %v1002_v3, 0.0  ;;  %v3267_v32 = vrot.slane %v19474_v26, %v18751_v25  ;;  %18416 = vmatprep.mubr.msk.f32.mxu1 %vm698_vm0, %v4229_v9  ;;  %v3241_v52 = vrot.slane %v3233_v5, %v18751_v25  ;;  %v2657_v9 = vcombine.high %v19739_v58, %v19739_v58 }
 0x193   :  { %v3252_v29 = vcombine.low %v19469_v24, %v27176_v27  ;;  %v3234_v59 = vcombine.low %v3225_v17, %v3232_v0  ;;  %v3260_v31 = vrot.slane %v3250_v51, %v18751_v25  ;;  %v3281_v16 = vrot.slane %v3253_v34, %v18751_v25 }
 0x194   :  { %v20048_v24 = vrot.slane %v20029_v13, %v27136_v63  ;;  %v2672_v43 = vcombine.high %v1050_v36, %v1050_v36  ;;  %v2679_v17 = vrot.slane %v1050_v36, %v18751_v25  ;;  %v20055_v51 = vrot.slane %v20029_v13, %v27138_v55 }
 0x195   :  { %v3274_v35 = vrot.slane %v3252_v29, %v18751_v25  ;;  %v3248_v3 = vrot.slane %v3234_v59, %v18751_v25  ;;  %v3282_v26 = vcombine.low %v3260_v31, %v3267_v32  ;;  %v582_v5 = vmul.f32 %v19574_v19, %v511_v42 }
 0x196   :  { %6918 = vbcast.lane.b32.xlu1 %v20048_v24, 256  ;;  %v2686_v63 = vrot.slane %v2672_v43, %v18751_v25  ;;  %v2687_v27 = vcombine.high %v2679_v17, %v2679_v17  ;;  %v20062_v29 = vrot.slane %v2679_v17, %v18751_v25  ;;  %6911 = vbcast.lane.b32.xlu0 %v20055_v51, 256 }
 0x197   :  { %v3283_v0 = vcombine.low %v3274_v35, %v3281_v16  ;;  %v3249_v47 = vcombine.low %v3241_v52, %v3248_v3  ;;  %v3290_v34 = vrot.slane %v3282_v26, %v18751_v25  ;;  %v630_v55 = vadd.f32 %v582_v5, %v337_v54  ;;  %v519_v35 = vpop.permute.xlu0 %518  ;;  %v282_v5 = vpop.permute.xlu1 %281 }
 0x198   :  { %v1712_v59 = vcombine.high %v19931_v6, %v19931_v6  ;;  %v2688_v31 = vcombine.high %v2686_v63, %v2686_v63  ;;  %v20070_v42 = vrot.slane %v2686_v63, %v18751_v25  ;;  %v20073_v32 = vrot.slane %v2687_v27, %v18751_v25 }
 0x199   :  { %v3297_v36 = vrot.slane %v3283_v0, %v18751_v25  ;;  %18386 = vmatprep.mubr.msk.f32.mxu0 %vm698_vm0, %v3249_v47  ;;  %v557_v52 = vmul.f32 %v19574_v19, %v411_v22  ;;  %v685_v43 = vadd.f32 %v19592_v15, %v630_v55  ;;  %v20080_v54 = vrot.slane %v20029_v13, %v27146_v8 }
 0x19a   :  { %v20084_v17 = vrot.slane %v20029_v13, %v27148_v18  ;;  %v20087_v3 = vrot.slane %v2688_v31, %v18751_v25  ;;  %v20098_v18 = vmul.f32 %v19494_v48, %v282_v5  ;;  %v584_v63 = vmul.f32 %v19574_v19, %v519_v35 }
 0x19b   :  { %v3298_v16 = vcombine.low %v3290_v34, %v3297_v36  ;;  %v605_v0 = vadd.f32 %v557_v52, %v19978_v21  ;;  %v1001_v8 = vadd.f32 %v27112_v20, %v685_v43  ;;  %6932 = vbcast.lane.b32.xlu1 %v20080_v54, 256  ;;  %v4230_v47 = vcombine.low %v19636_v39, %v19646_v61 }
 0x19c   :  { %6925 = vbcast.lane.b32.xlu0 %v20084_v17, 256  ;;  %v18226_v21 = vcombine.high %v19636_v39, %v19646_v61  ;;  %v27178_v20 = vcombine.high %v19705_v38, %v19705_v38  ;;  %v632_v48 = vadd.f32 %v584_v63, %v19991_v40  ;;  %v4254_v55 = vrot.slane %v19916_v44, %v18751_v25 }
 0x19d   :  { %18387 = vmatmul.mubr.msk.f32.gmra.mxu0 %vm698_vm0, %v3298_v16  ;;  %v660_v27 = vadd.f32 %v19592_v15, %v605_v0  ;;  %v1049_v36 = vmax.f32 %v1001_v8, 0.0  ;;  %v27179_v31 = vcombine.high %v19717_v2, %v19717_v2  ;;  %v4240_v39 = vrot.slane %v4230_v47, %v18751_v25 }
 0x19e   :  { %v4233_v34 = vcombine.low %v19717_v2, %v27178_v20  ;;  %v4247_v61 = vrot.slane %v18226_v21, %v18751_v25  ;;  %v687_v40 = vadd.f32 %v19592_v15, %v632_v48  ;;  %v27180_v44 = vcombine.high %v19714_v14, %v19714_v14  ;;  %v286_v48 = vpop.permute.xlu1 %285 }
 0x19f   :  { %v4279_v52 = vcombine.low %v27179_v31, %v19714_v14  ;;  %v976_v35 = vadd.f32 %v27142_v23, %v660_v27  ;;  %v2664_v16 = vrot.slane %v1049_v36, %v18751_v25  ;;  %v27181_v2 = vcombine.high %v19711_v11, %v19711_v11 }
 0x1a0   :  { %v4261_v38 = vrot.slane %v4233_v34, %v18751_v25  ;;  %v4280_v43 = vcombine.low %v19731_v33, %v27180_v44  ;;  %v4262_v8 = vcombine.low %v4240_v39, %v4247_v61  ;;  %v1003_v21 = vadd.f32 %v27173_v56, %v687_v40 }
 0x1a1   :  { %v4282_v0 = vcombine.low %v19725_v12, %v27181_v2  ;;  %v1024_v5 = vmax.f32 %v976_v35, 0.0  ;;  %v4289_v27 = vrot.slane %v4279_v52, %v18751_v25  ;;  %v2671_v47 = vrot.slane %v2664_v16, %v18751_v25  ;;  %v527_v16 = vpop.permute.xlu0 %526 }
 0x1a2   :  { %v4263_v63 = vcombine.low %v4254_v55, %v4261_v38  ;;  %v4296_v20 = vrot.slane %v4280_v43, %v18751_v25  ;;  %v4303_v14 = vrot.slane %v19767_v45, %v18751_v25  ;;  %v4270_v11 = vrot.slane %v4262_v8, %v18751_v25 }
 0x1a3   :  { %v1713_v33 = vcombine.high %v1024_v5, %v1024_v5  ;;  %v1720_v34 = vrot.slane %v1024_v5, %v18751_v25  ;;  %v20141_v55 = vcombine.low %v2657_v9, %v2671_v47  ;;  %v1051_v31 = vmax.f32 %v1003_v21, 0.0 }
 0x1a4   :  { %v4277_v36 = vrot.slane %v4263_v63, %v18751_v25  ;;  %v4310_v52 = vrot.slane %v4282_v0, %v18751_v25  ;;  %v4311_v35 = vcombine.low %v4289_v27, %v4296_v20 }
 0x1a5   :  { %v1727_v39 = vrot.slane %v1713_v33, %v18751_v25  ;;  %v1728_v61 = vcombine.high %v1720_v34, %v1720_v34  ;;  %v20146_v38 = vrot.slane %v1720_v34, %v18751_v25  ;;  %v2721_v40 = vcombine.high %v1051_v31, %v1051_v31 }
 0x1a6   :  { %v4278_v45 = vcombine.low %v4270_v11, %v4277_v36  ;;  %v2728_v44 = vrot.slane %v1051_v31, %v18751_v25  ;;  %v4312_v43 = vcombine.low %v4303_v14, %v4310_v52  ;;  %v4319_v2 = vrot.slane %v4311_v35, %v18751_v25  ;;  %v531_v11 = vpop.permute.xlu1 %530 }
 0x1a7   :  { %v1729_v9 = vcombine.high %v1727_v39, %v1727_v39  ;;  %v20151_v5 = vrot.slane %v1727_v39, %v18751_v25  ;;  %v20154_v0 = vrot.slane %v1728_v61, %v18751_v25  ;;  %v20163_v63 = vcombine.low %v1712_v59, %v20146_v38  ;;  %v20194_v61 = vld [vmem:[%s26217_s3] ss:$0 sm:$0xff] }
 0x1a8   :  { %18417 = vmatmul.mubr.msk.f32.gmra.mxu1 %vm698_vm0, %v4278_v45  ;;  %v2735_v27 = vrot.slane %v2721_v40, %v18751_v25  ;;  %v2736_v47 = vcombine.high %v2728_v44, %v2728_v44  ;;  %v20167_v21 = vrot.slane %v2728_v44, %v18751_v25  ;;  %v4326_v34 = vrot.slane %v4312_v43, %v18751_v25  ;;  %v403_v44 = vpop.permute.xlu0 %402 }
 0x1a9   :  { %v20170_v20 = vrot.slane %v1729_v9, %v18751_v25  ;;  %v20185_v52 = vrot.slane %v20029_v13, %v27155_v60  ;;  %v20189_v39 = vrot.slane %v20029_v13, %v27157_v30  ;;  %v342_v45 = vmul.f32 %v20194_v61, %v286_v48  ;;  %v27198_v60 = vld [vmem:[#allocation19_spill] sm:$0xff] }
 0x1aa   :  { %v2737_v59 = vcombine.high %v2735_v27, %v2735_v27  ;;  %v20178_v36 = vrot.slane %v2735_v27, %v18751_v25  ;;  %v20181_v31 = vrot.slane %v2736_v47, %v18751_v25  ;;  %v4327_v35 = vcombine.low %v4319_v2, %v4326_v34 }
 0x1ab   :  { %v586_v40 = vmul.f32 %v19574_v19, %v527_v16  ;;  %6946 = vbcast.lane.b32.xlu1 %v20185_v52, 256  ;;  %v20208_v2 = vrot.slane %v20029_v13, %v27164_v46  ;;  %6939 = vbcast.lane.b32.xlu0 %v20189_v39, 256  ;;  %v20215_v16 = vrot.slane %v20029_v13, %v27166_v10 }
 0x1ac   :  { %v20199_v43 = vrot.slane %v2737_v59, %v18751_v25  ;;  %18419 = vmatprep.mubr.msk.f32.mxu1 %vm698_vm0, %v4327_v35  ;;  %v587_v9 = vmul.f32 %v19574_v19, %v531_v11  ;;  %v555_v27 = vmul.f32 %v19574_v19, %v403_v44  ;;  %v27182_v47 = vcombine.high %v19466_v53, %v19466_v53 }
 0x1ad   :  { %v634_v48 = vadd.f32 %v586_v40, %v20098_v18  ;;  %v3316_v34 = vrot.slane %v20018_v50, %v18751_v25  ;;  %v27183_v18 = vcombine.low %v19851_v62, %v19865_v49  ;;  %v27184_v11 = vcombine.high %v19851_v62, %v19865_v49  ;;  %v27185_v50 = vld [vmem:[#allocation15_spill] sm:$0xff]  ;;  %v27187_v62 = vld [vmem:[#allocation18_spill] sm:$0xff] }
 0x1ae   :  { %v3299_v46 = vcombine.low %v19479_v41, %v27182_v47  ;;  %v635_v13 = vadd.f32 %v587_v9, %v342_v45  ;;  %v3348_v53 = vcombine.low %v19862_v37, %v19875_v1  ;;  %v419_v41 = vpop.permute.xlu1 %418  ;;  %v603_v40 = vadd.f32 %v555_v27, %v27185_v50  ;;  %v147_v27 = vpop.permute.xlu0 %146 }
 0x1af   :  { %v3323_v59 = vrot.slane %v27183_v18, %v18751_v25  ;;  %v689_v10 = vadd.f32 %v19592_v15, %v634_v48  ;;  %v3330_v35 = vrot.slane %v27184_v11, %v18751_v25  ;;  %6960 = vbcast.lane.b32.xlu1 %v20208_v2, 256  ;;  %v18208_v47 = vcombine.high %v19862_v37, %v19875_v1 }
 0x1b0   :  { %v3309_v44 = vrot.slane %v3299_v46, %v18751_v25  ;;  %v27186_v45 = vcombine.low %v19928_v7, %v19941_v28  ;;  %6953 = vbcast.lane.b32.xlu0 %v20215_v16, 256  ;;  %v690_v9 = vadd.f32 %v19592_v15, %v635_v13  ;;  %v3358_v11 = vrot.slane %v3348_v53, %v18751_v25  ;;  %v27189_v53 = vld [vmem:[#allocation21_spill] sm:$0xff] }
 0x1b1   :  { %v1005_v49 = vadd.f32 %v27187_v62, %v689_v10  ;;  %v3332_v18 = vcombine.low %v3323_v59, %v3330_v35  ;;  %v658_v46 = vadd.f32 %v19592_v15, %v603_v40  ;;  %v3365_v37 = vrot.slane %v18208_v47, %v18751_v25 }
 0x1b2   :  { %v3372_v48 = vrot.slane %v27186_v45, %v18751_v25  ;;  %v3331_v50 = vcombine.low %v3309_v44, %v3316_v34  ;;  %v27188_v1 = vcombine.high %v19928_v7, %v19941_v28  ;;  %v1006_v10 = vadd.f32 %v27187_v62, %v690_v9  ;;  %v27190_v28 = vld [vmem:[#allocation25_spill] sm:$0xff] }
 0x1b3   :  { %v1053_v14 = vmax.f32 %v1005_v49, 0.0  ;;  %v3346_v33 = vrot.slane %v3332_v18, %v18751_v25  ;;  %v559_v59 = vmul.f32 %v19574_v19, %v419_v41  ;;  %v974_v13 = vadd.f32 %v27134_v57, %v658_v46  ;;  %6989 = vbcast.lane.b32.xlu1 %v27189_v53, 264  ;;  %v523_v49 = vpop.permute.xlu1 %522 }
 0x1b4   :  { %v3379_v45 = vrot.slane %v27188_v1, %v18751_v25  ;;  %v3339_v35 = vrot.slane %v3331_v50, %v18751_v25  ;;  %v3380_v15 = vcombine.low %v3358_v11, %v3365_v37  ;;  %v1054_v7 = vmax.f32 %v1006_v10, 0.0  ;;  %6985 = vbcast.lane.b32.xlu0 %v27190_v28, 264 }
 0x1b5   :  { %v2784_v40 = vcombine.high %v1053_v14, %v1053_v14  ;;  %v2791_v44 = vrot.slane %v1053_v14, %v18751_v25  ;;  %v314_v47 = vmul.f32 %v20194_v61, %v147_v27  ;;  %v1022_v9 = vmax.f32 %v974_v13, 0.0  ;;  %v275_v14 = vpop.permute.xlu0 %274  ;;  %v27197_v13 = vld [vmem:[#allocation29_spill] sm:$0xff] }
 0x1b6   :  { %v3381_v34 = vcombine.low %v3372_v48, %v3379_v45  ;;  %v3347_v18 = vcombine.low %v3339_v35, %v3346_v33  ;;  %v3388_v19 = vrot.slane %v3380_v15, %v18751_v25  ;;  %v2833_v46 = vcombine.high %v1054_v7, %v1054_v7  ;;  %v27191_v35 = vld [vmem:[#allocation22_spill] sm:$0xff] }
 0x1b7   :  { %v2798_v41 = vrot.slane %v2784_v40, %v18751_v25  ;;  %v2799_v48 = vcombine.high %v2791_v44, %v2791_v44  ;;  %v20268_v11 = vrot.slane %v2791_v44, %v18751_v25  ;;  %v2840_v50 = vrot.slane %v1054_v7, %v18751_v25  ;;  %6997 = vbcast.lane.b32.xlu1 %v27191_v35, 264 }
 0x1b8   :  { %v3395_v57 = vrot.slane %v3381_v34, %v18751_v25  ;;  %v1656_v37 = vrot.slane %v1022_v9, %v18751_v25  ;;  %18389 = vmatprep.mubr.msk.f32.mxu0 %vm698_vm0, %v3347_v18  ;;  %v607_v33 = vadd.f32 %v559_v59, %v314_v47  ;;  %v2847_v15 = vrot.slane %v2833_v46, %v18751_v25  ;;  %v20298_v9 = vld [vmem:[%s26218_s4] ss:$0 sm:$0xff]  ;;  %v18453_v47 = vld [vmem:[%s26217_s3 + $0x1] ss:$0 sm:$0xff] }
 0x1b9   :  { %v2800_v1 = vcombine.high %v2798_v41, %v2798_v41  ;;  %v20274_v45 = vrot.slane %v2798_v41, %v18751_v25  ;;  %v20277_v10 = vrot.slane %v2799_v48, %v18751_v25  ;;  %v2848_v34 = vcombine.high %v2840_v50, %v2840_v50 }
 0x1ba   :  { %v3396_v27 = vcombine.low %v3388_v19, %v3395_v57  ;;  %v20284_v40 = vrot.slane %v2840_v50, %v18751_v25  ;;  %v1663_v59 = vrot.slane %v1656_v37, %v18751_v25  ;;  %v662_v18 = vadd.f32 %v20298_v9, %v607_v33  ;;  %v27192_v19 = vld [vmem:[#allocation28_spill] sm:$0xff]  ;;  %v415_v57 = vpop.permute.xlu1 %414  ;;  %v27196_v33 = vld [vmem:[#allocation38_spill] sm:$0xff] }
 0x1bb   :  { %v20289_v44 = vrot.slane %v2800_v1, %v18751_v25  ;;  %6993 = vbcast.lane.b32.xlu0 %v27192_v19, 264  ;;  %v2849_v41 = vcombine.high %v2847_v15, %v2847_v15  ;;  %v20303_v48 = vrot.slane %v2847_v15, %v18751_v25  ;;  %v20306_v46 = vrot.slane %v2848_v34, %v18751_v25  ;;  %v140_v34 = vpop.permute.xlu0 %139 }
 0x1bc   :  { %18390 = vmatmul.mubr.msk.f32.gmra.mxu0 %vm698_vm0, %v3396_v27  ;;  %v27195_v27 = vld [vmem:[#allocation23_spill] sm:$0xff]  ;;  %v978_v7 = vadd.f32 %v27196_v33, %v662_v18  ;;  %v585_v15 = vmul.f32 %v18453_v47, %v523_v49  ;;  %7005 = vbcast.lane.b32.xlu1 %v27197_v13, 264  ;;  %v340_v8 = vmul.f32 %v20194_v61, %v275_v14  ;;  %v27199_v13 = vld [vmem:[#allocation26_spill] sm:$0xff] }
 0x1bd   :  { %27193 = vst [vmem:[#allocation34_spill] sm:$0xff] %v20303_v48  ;;  %27194 = vst [vmem:[#allocation32_spill] sm:$0xff] %v20306_v46  ;;  %v2832_v37 = vcombine.high %v20289_v44, %v20289_v44  ;;  %v20313_v1 = vcombine.low %v1663_v59, %v27195_v27  ;;  %v20321_v30 = vrot.slane %v2849_v41, %v18751_v25  ;;  %v27203_v48 = vld [vmem:[#allocation33_spill] sm:$0xff] }
 0x1be   :  { %v1026_v33 = vmax.f32 %v978_v7, 0.0  ;;  %v558_v49 = vmul.f32 %v18453_v47, %v415_v57  ;;  %v633_v41 = vadd.f32 %v585_v15, %v340_v8  ;;  %v313_v26 = vmul.f32 %v20194_v61, %v140_v34 }
 0x1bf   :  { %v20329_v18 = vcombine.low %v2832_v37, %v20284_v40  ;;  %7001 = vbcast.lane.b32.xlu0 %v27198_v60, 264  ;;  %v27200_v50 = vcombine.high %v19725_v12, %v19725_v12  ;;  %v27201_v14 = vcombine.high %v27199_v13, %v27199_v13  ;;  %v4352_v57 = vrot.slane %v20141_v55, %v18751_v25  ;;  %v535_v12 = vpop.permute.xlu1 %534 }
 0x1c0   :  { %v1776_v7 = vcombine.high %v1026_v33, %v1026_v33  ;;  %v1783_v60 = vrot.slane %v1026_v33, %v18751_v25  ;;  %v27202_v8 = vcombine.low %v20062_v29, %v20073_v32  ;;  %7013 = vbcast.lane.b32.xlu1 %v19984_v4, 264  ;;  %v606_v34 = vadd.f32 %v558_v49, %v313_v26  ;;  %v290_v26 = vpop.permute.xlu0 %289 }
 0x1c1   :  { %v4328_v59 = vcombine.low %v27200_v50, %v27199_v13  ;;  %v4329_v37 = vcombine.low %v19739_v58, %v27201_v14  ;;  %v688_v50 = vadd.f32 %v20298_v9, %v633_v41  ;;  %v588_v41 = vmul.f32 %v18453_v47, %v535_v12 }
 0x1c2   :  { %v4359_v15 = vrot.slane %v27202_v8, %v18751_v25  ;;  %v1790_v33 = vrot.slane %v1776_v7, %v18751_v25  ;;  %v1791_v14 = vcombine.high %v1783_v60, %v1783_v60  ;;  %v20356_v55 = vrot.slane %v1783_v60, %v18751_v25 }
 0x1c3   :  { %v4338_v13 = vrot.slane %v4328_v59, %v18751_v25  ;;  %v4345_v58 = vrot.slane %v4329_v37, %v18751_v25  ;;  %7009 = vbcast.lane.b32.xlu0 %v27203_v48, 264  ;;  %v1004_v8 = vadd.f32 %v27173_v56, %v688_v50  ;;  %v661_v4 = vadd.f32 %v20298_v9, %v606_v34 }
 0x1c4   :  { %v4361_v22 = vcombine.low %v4352_v57, %v4359_v15  ;;  %v1792_v49 = vcombine.high %v1790_v33, %v1790_v33  ;;  %v20362_v59 = vrot.slane %v1790_v33, %v18751_v25  ;;  %v20365_v37 = vrot.slane %v1791_v14, %v18751_v25  ;;  %7021 = vbcast.lane.b32.xlu1 %v20048_v24, 264 }
 0x1c5   :  { %v4360_v46 = vcombine.low %v4338_v13, %v4345_v58  ;;  %v1052_v7 = vmax.f32 %v1004_v8, 0.0  ;;  %v977_v57 = vadd.f32 %v27142_v23, %v661_v4  ;;  %v2881_v47 = vcombine.high %v20321_v30, %v20321_v30 }
 0x1c6   :  { %v4375_v60 = vrot.slane %v4361_v22, %v18751_v25  ;;  %v20374_v15 = vrot.slane %v1792_v49, %v18751_v25  ;;  %v3498_v12 = vcombine.low %v20356_v55, %v20365_v37  ;;  %v18211_v50 = vcombine.high %v20356_v55, %v20365_v37 }
 0x1c7   :  { %v4368_v56 = vrot.slane %v4360_v46, %v18751_v25  ;;  %v343_v22 = vmul.f32 %v20194_v61, %v290_v26  ;;  %7017 = vbcast.lane.b32.xlu0 %v20055_v51, 264  ;;  %v2776_v23 = vrot.slane %v1052_v7, %v18751_v25  ;;  %v1025_v4 = vmax.f32 %v977_v57, 0.0 }
 0x1c8   :  { %v4378_v34 = vcombine.low %v20070_v42, %v20087_v3  ;;  %v18228_v58 = vcombine.high %v20070_v42, %v20087_v3  ;;  %v27204_v33 = vcombine.high %v20062_v29, %v20073_v32  ;;  %v27205_v61 = vcombine.low %v20167_v21, %v20181_v31  ;;  %7029 = vbcast.lane.b32.xlu1 %v20080_v54, 264  ;;  %v27206_v3 = vld [vmem:[#allocation31_spill] sm:$0xff] }
 0x1c9   :  { %v4376_v46 = vcombine.low %v4368_v56, %v4375_v60  ;;  %v636_v13 = vadd.f32 %v588_v41, %v343_v22  ;;  %v2783_v26 = vrot.slane %v2776_v23, %v18751_v25  ;;  %v1768_v49 = vrot.slane %v1025_v4, %v18751_v25  ;;  %v27207_v41 = vld [vmem:[#allocation20_spill] sm:$0xff] }
 0x1ca   :  { %v4387_v14 = vrot.slane %v27204_v33, %v18751_v25  ;;  %v4408_v8 = vrot.slane %v27205_v61, %v18751_v25  ;;  %v4394_v42 = vrot.slane %v4378_v34, %v18751_v25  ;;  %v3397_v60 = vcombine.low %v27207_v41, %v27206_v3  ;;  %v27209_v56 = vld [vmem:[#allocation24_spill] sm:$0xff] }
 0x1cb   :  { %18420 = vmatmul.mubr.msk.f32.gmra.mxu1 %vm698_vm0, %v4376_v46  ;;  %v691_v29 = vadd.f32 %v20298_v9, %v636_v13  ;;  %v4401_v32 = vrot.slane %v18228_v58, %v18751_v25  ;;  %7025 = vbcast.lane.b32.xlu0 %v20084_v17, 264  ;;  %v18210_v7 = vcombine.high %v27207_v41, %v27206_v3 }
 0x1cc   :  { %v27208_v57 = vcombine.high %v27195_v27, %v27195_v27  ;;  %v4429_v23 = vcombine.low %v2783_v26, %v20268_v11  ;;  %v1775_v4 = vrot.slane %v1768_v49, %v18751_v25  ;;  %v4409_v46 = vcombine.low %v4387_v14, %v4394_v42  ;;  %7037 = vbcast.lane.b32.xlu1 %v20185_v52, 264  ;;  %v27211_v49 = vld [vmem:[#allocation27_spill] sm:$0xff] }
 0x1cd   :  { %v3407_v34 = vrot.slane %v3397_v60, %v18751_v25  ;;  %v1007_v9 = vadd.f32 %v27187_v62, %v691_v29  ;;  %v4410_v13 = vcombine.low %v4401_v32, %v4408_v8  ;;  %v3414_v58 = vrot.slane %v18210_v7, %v18751_v25 }
 0x1ce   :  { %v3400_v22 = vcombine.low %v27209_v56, %v27208_v57  ;;  %v3421_v33 = vrot.slane %v20313_v1, %v18751_v25  ;;  %v27210_v27 = vcombine.high %v20170_v20, %v20170_v20  ;;  %v4417_v26 = vrot.slane %v4409_v46, %v18751_v25 }
 0x1cf   :  { %v27212_v62 = vcombine.high %v27209_v56, %v27209_v56  ;;  %v1055_v42 = vmax.f32 %v1007_v9, 0.0  ;;  %v4424_v3 = vrot.slane %v4410_v13, %v18751_v25  ;;  %v3429_v1 = vcombine.low %v3407_v34, %v3414_v58  ;;  %7033 = vbcast.lane.b32.xlu0 %v20189_v39, 264 }
 0x1d0   :  { %v20422_v61 = vcombine.low %v27210_v27, %v1775_v4  ;;  %v3428_v14 = vrot.slane %v3400_v22, %v18751_v25  ;;  %v27213_v41 = vcombine.high %v27211_v49, %v27211_v49  ;;  %v27214_v32 = vcombine.high %v20146_v38, %v20146_v38  ;;  %7045 = vbcast.lane.b32.xlu1 %v20208_v2, 264 }
 0x1d1   :  { %v3446_v8 = vcombine.low %v27212_v62, %v27211_v49  ;;  %v3470_v56 = vrot.slane %v20163_v63, %v18751_v25  ;;  %v2888_v22 = vrot.slane %v1055_v42, %v18751_v25  ;;  %v4425_v4 = vcombine.low %v4417_v26, %v4424_v3 }
 0x1d2   :  { %v3447_v60 = vcombine.low %v19931_v6, %v27213_v41  ;;  %v3430_v29 = vcombine.low %v3421_v33, %v3428_v14  ;;  %v3449_v7 = vcombine.low %v20154_v0, %v27214_v32  ;;  %v3437_v46 = vrot.slane %v3429_v1, %v18751_v25 }
 0x1d3   :  { %v3456_v57 = vrot.slane %v3446_v8, %v18751_v25  ;;  %v4427_v9 = vcombine.low %v20178_v36, %v20199_v43  ;;  %v18230_v13 = vcombine.high %v20178_v36, %v20199_v43  ;;  %v2895_v63 = vrot.slane %v2888_v22, %v18751_v25  ;;  %18422 = vmatprep.mubr.msk.f32.mxu1 %vm698_vm0, %v4425_v4 }
 0x1d4   :  { %v3463_v6 = vrot.slane %v3447_v60, %v18751_v25  ;;  %v3444_v34 = vrot.slane %v3430_v29, %v18751_v25  ;;  %v3477_v38 = vrot.slane %v3449_v7, %v18751_v25  ;;  %7041 = vbcast.lane.b32.xlu0 %v20215_v16, 264  ;;  %v27215_v33 = vcombine.high %v20167_v21, %v20181_v31 }
 0x1d5   :  { %v4443_v49 = vrot.slane %v4427_v9, %v18751_v25  ;;  %v4450_v62 = vrot.slane %v18230_v13, %v18751_v25  ;;  %v20465_v36 = vcombine.low %v2881_v47, %v2895_v63  ;;  %v4457_v8 = vrot.slane %v4429_v23, %v18751_v25  ;;  %7090 = vbcast.lane.b32.xlu1 %v27189_v53, 272 }
 0x1d6   :  { %v3478_v58 = vcombine.low %v3456_v57, %v3463_v6  ;;  %v4436_v27 = vrot.slane %v27215_v33, %v18751_v25  ;;  %v3445_v26 = vcombine.low %v3437_v46, %v3444_v34  ;;  %v3479_v14 = vcombine.low %v3470_v56, %v3477_v38 }
 0x1d7   :  { %v27216_v42 = vcombine.high %v20268_v11, %v20268_v11  ;;  %v27217_v47 = vcombine.high %v20277_v10, %v20277_v10  ;;  %v27218_v23 = vcombine.high %v20274_v45, %v20274_v45  ;;  %v4459_v11 = vcombine.low %v4450_v62, %v4457_v8  ;;  %v27226_v62 = vld [vmem:[#allocation34_spill] sm:$0xff] }
 0x1d8   :  { %v3486_v43 = vrot.slane %v3478_v58, %v18751_v25  ;;  %18392 = vmatprep.mubr.msk.f32.mxu0 %vm698_vm0, %v3445_v26  ;;  %v3493_v31 = vrot.slane %v3479_v14, %v18751_v25  ;;  %v4458_v3 = vcombine.low %v4436_v27, %v4443_v49  ;;  %v4506_v53 = vrot.slane %v20329_v18, %v18751_v25  ;;  %v18379_v13 = vpop.f32.mrf.mxu0  ;;  %v27222_v58 = vld [vmem:[#allocation54_spill] sm:$0xff] }
 0x1d9   :  { %v4475_v21 = vcombine.low %v20277_v10, %v27216_v42  ;;  %v4476_v1 = vcombine.low %v27217_v47, %v20274_v45  ;;  %v4477_v41 = vcombine.low %v20289_v44, %v27218_v23  ;;  %7086 = vbcast.lane.b32.xlu0 %v27190_v28, 272  ;;  %v27219_v29 = vcombine.high %v20154_v0, %v20154_v0  ;;  %v20535_v27 = vld [vmem:[%s26220_s7] ss:$0 sm:$0xff]  ;;  %v27228_v42 = vld [vmem:[#allocation29_spill] sm:$0xff]  ;;  %v27230_v23 = vld [vmem:[#allocation19_spill] sm:$0xff] }
 0x1da   :  { %v3494_v10 = vcombine.low %v3486_v43, %v3493_v31  ;;  %v4466_v7 = vrot.slane %v4458_v3, %v18751_v25  ;;  %v4473_v57 = vrot.slane %v4459_v11, %v18751_v25  ;;  %v27220_v56 = vcombine.high %v20151_v5, %v20151_v5  ;;  %7098 = vbcast.lane.b32.xlu1 %v27191_v35, 272 }
 0x1db   :  { %v4485_v60 = vrot.slane %v4475_v21, %v18751_v25  ;;  %v3495_v32 = vcombine.low %v27219_v29, %v20151_v5  ;;  %v4492_v45 = vrot.slane %v4476_v1, %v18751_v25  ;;  %v4499_v44 = vrot.slane %v4477_v41, %v18751_v25  ;;  %v4707_v21 = vpop.f32.mrf.mxu0 }
 0x1dc   :  { %v3496_v18 = vcombine.low %v20170_v20, %v27220_v56  ;;  %v3519_v0 = vrot.slane %v20422_v61, %v18751_v25  ;;  %18393 = vmatmul.mubr.msk.f32.gmra.mxu0 %vm698_vm0, %v3494_v10  ;;  %v3526_v46 = vrot.slane %v3498_v12, %v18751_v25  ;;  %v3545_v5 = vcombine.low %v20362_v59, %v20374_v15 }
 0x1dd   :  { %v3505_v28 = vrot.slane %v3495_v32, %v18751_v25  ;;  %v4507_v22 = vcombine.low %v4485_v60, %v4492_v45  ;;  %v4508_v4 = vcombine.low %v4499_v44, %v4506_v53  ;;  %v4474_v20 = vcombine.low %v4466_v7, %v4473_v57  ;;  %7094 = vbcast.lane.b32.xlu0 %v27192_v19, 272  ;;  %v27231_v45 = vld [vmem:[#allocation30_spill] sm:$0xff] }
 0x1de   :  { %v3512_v6 = vrot.slane %v3496_v18, %v18751_v25  ;;  %v18212_v61 = vcombine.high %v20362_v59, %v20374_v15  ;;  %v3554_v35 = vrot.slane %v18211_v50, %v18751_v25  ;;  %v3528_v38 = vcombine.low %v3519_v0, %v3526_v46  ;;  %v27221_v15 = vld [vmem:[#allocation51_spill] sm:$0xff]  ;;  %v27225_v50 = vld [vmem:[#allocation32_spill] sm:$0xff]  ;;  %7106 = vbcast.lane.b32.xlu1 %v27228_v42, 272 }
 0x1df   :  { %v4515_v34 = vrot.slane %v4507_v22, %v18751_v25  ;;  %v4522_v12 = vrot.slane %v4508_v4, %v18751_v25  ;;  %v3561_v9 = vrot.slane %v3545_v5, %v18751_v25  ;;  %18423 = vmatmul.mubr.msk.f32.gmra.mxu1 %vm698_vm0, %v4474_v20  ;;  %v27223_v55 = vcombine.low %v27221_v15, %v27222_v58 }
 0x1e0   :  { %v3527_v63 = vcombine.low %v3505_v28, %v3512_v6  ;;  %v3568_v59 = vrot.slane %v18212_v61, %v18751_v25  ;;  %v27224_v19 = vcombine.high %v20284_v40, %v20284_v40  ;;  %v3542_v14 = vrot.slane %v3528_v38, %v18751_v25 }
 0x1e1   :  { %v3575_v37 = vrot.slane %v27223_v55, %v18751_v25  ;;  %v4523_v26 = vcombine.low %v4515_v34, %v4522_v12  ;;  %v3576_v49 = vcombine.low %v3554_v35, %v3561_v9  ;;  %v27227_v43 = vcombine.high %v27225_v50, %v27225_v50  ;;  %7102 = vbcast.lane.b32.xlu0 %v27230_v23, 272 }
 0x1e2   :  { %v4524_v33 = vcombine.low %v27225_v50, %v27224_v19  ;;  %v3535_v40 = vrot.slane %v3527_v63, %v18751_v25  ;;  %v27229_v3 = vcombine.high %v27226_v62, %v27226_v62  ;;  %v4555_v60 = vrot.slane %v20465_v36, %v18751_v25  ;;  %7114 = vbcast.lane.b32.xlu1 %v27231_v45, 272 }
 0x1e3   :  { %v4525_v8 = vcombine.low %v27227_v43, %v27226_v62  ;;  %v3577_v31 = vcombine.low %v3568_v59, %v3575_v37  ;;  %18425 = vmatprep.mubr.msk.f32.mxu1 %vm698_vm0, %v4523_v26  ;;  %v3584_v41 = vrot.slane %v3576_v49, %v18751_v25  ;;  %v4713_v53 = vadd.f32 %v18379_v13, %v20535_v27 }
 0x1e4   :  { %v4526_v47 = vcombine.low %v20321_v30, %v27229_v3  ;;  %v4534_v1 = vrot.slane %v4524_v33, %v18751_v25  ;;  %v3543_v29 = vcombine.low %v3535_v40, %v3542_v14  ;;  %v4708_v10 = vadd.f32 %v20535_v27, %v4707_v21 }
 0x1e5   :  { %v4541_v11 = vrot.slane %v4525_v8, %v18751_v25  ;;  %v3591_v32 = vrot.slane %v3577_v31, %v18751_v25  ;;  %v4959_v44 = vcombine.high %v4713_v53, %v4713_v53  ;;  %7110 = vbcast.lane.b32.xlu0 %v27203_v48, 272  ;;  %v4966_v18 = vrot.slane %v4713_v53, %v18751_v25 }
 0x1e6   :  { %v4548_v30 = vrot.slane %v4526_v47, %v18751_v25  ;;  %18395 = vmatprep.mubr.msk.f32.mxu0 %vm698_vm0, %v3543_v29  ;;  %v4910_v36 = vcombine.high %v4708_v10, %v4708_v10  ;;  %v4917_v4 = vrot.slane %v4708_v10, %v18751_v25  ;;  %7122 = vbcast.lane.b32.xlu1 %v20048_v24, 272  ;;  %v20636_v10 = vld [vmem:[%s26221_s8] ss:$0 sm:$0xff] }
 0x1e7   :  { %v4556_v7 = vcombine.low %v4534_v1, %v4541_v11  ;;  %v3592_v57 = vcombine.low %v3584_v41, %v3591_v32  ;;  %v4973_v28 = vrot.slane %v4959_v44, %v18751_v25  ;;  %v4974_v61 = vcombine.high %v4966_v18, %v4966_v18 }
 0x1e8   :  { %v4557_v56 = vcombine.low %v4548_v30, %v4555_v60  ;;  %v4924_v46 = vrot.slane %v4910_v36, %v18751_v25  ;;  %v4925_v48 = vcombine.high %v4917_v4, %v4917_v4  ;;  %v20593_v9 = vrot.slane %v4917_v4, %v18751_v25  ;;  %v6863_v37 = vpop.permute.xlu1 %6862 }
 0x1e9   :  { %18396 = vmatmul.mubr.msk.f32.gmra.mxu0 %vm698_vm0, %v3592_v57  ;;  %v4564_v0 = vrot.slane %v4556_v7, %v18751_v25  ;;  %v4975_v5 = vcombine.high %v4973_v28, %v4973_v28  ;;  %7118 = vbcast.lane.b32.xlu0 %v20055_v51, 272  ;;  %v20587_v12 = vrot.slane %v4973_v28, %v18751_v25  ;;  %v18305_v57 = vld [vmem:[%s26222_s12 + $0x1] ss:$0 sm:$0xff] }
 0x1ea   :  { %v4571_v22 = vrot.slane %v4557_v56, %v18751_v25  ;;  %v4926_v6 = vcombine.high %v4924_v46, %v4924_v46  ;;  %7130 = vbcast.lane.b32.xlu1 %v20080_v54, 272  ;;  %v20581_v24 = vrot.slane %v4924_v46, %v18751_v25  ;;  %v20584_v51 = vrot.slane %v4925_v48, %v18751_v25  ;;  %v18304_v56 = vld [vmem:[%s26222_s12] ss:$0 sm:$0xff] }
 0x1eb   :  { %v20577_v34 = vrot.slane %v4975_v5, %v18751_v25  ;;  %27236 = vst [vmem:[#allocation43_spill] sm:$0xff] %v20587_v12  ;;  %v20590_v38 = vrot.slane %v4974_v61, %v18751_v25  ;;  %27238 = vst [vmem:[#allocation14_spill] sm:$0xff] %v20593_v9  ;;  %v20601_v13 = vrot.slane %v4966_v18, %v18751_v25 }
 0x1ec   :  { %v4572_v20 = vcombine.low %v4564_v0, %v4571_v22  ;;  %v20573_v35 = vrot.slane %v4926_v6, %v18751_v25  ;;  %27234 = vst [vmem:[#allocation11_spill] sm:$0xff] %v20581_v24  ;;  %27235 = vst [vmem:[#allocation39_spill] sm:$0xff] %v20584_v51  ;;  %v7224_v15 = vcombine.low %v20593_v9, %v20584_v51 }
 0x1ed   :  { %27233 = vst [vmem:[#allocation16_spill] sm:$0xff] %v20577_v34  ;;  %7126 = vbcast.lane.b32.xlu0 %v20084_v17, 272  ;;  %27237 = vst [vmem:[#allocation41_spill] sm:$0xff] %v20590_v38  ;;  %v7275_v63 = vcombine.low %v20587_v12, %v20577_v34  ;;  %v18272_v59 = vcombine.high %v20587_v12, %v20577_v34  ;;  %v18269_v58 = vcombine.high %v20593_v9, %v20584_v51 }
 0x1ee   :  { %18426 = vmatmul.mubr.msk.f32.gmra.mxu1 %vm698_vm0, %v4572_v20  ;;  %27232 = vst [vmem:[#allocation35_spill] sm:$0xff] %v20573_v35  ;;  %v7226_v54 = vcombine.low %v20581_v24, %v20573_v35  ;;  %v18270_v17 = vcombine.high %v20581_v24, %v20573_v35  ;;  %7138 = vbcast.lane.b32.xlu1 %v20185_v52, 272  ;;  %27239 = vst [vmem:[#allocation40_spill] sm:$0xff] %v20601_v13 }
 0x1ef   :  { %v7273_v52 = vcombine.low %v20601_v13, %v20590_v38  ;;  %v18271_v55 = vcombine.high %v20601_v13, %v20590_v38  ;;  %v7297_v33 = vrot.slane %v7275_v63, %v18751_v25  ;;  %v7304_v26 = vrot.slane %v18272_v59, %v18751_v25 }
 0x1f0   :  { %v7248_v19 = vrot.slane %v7226_v54, %v18751_v25  ;;  %v7255_v50 = vrot.slane %v18270_v17, %v18751_v25  ;;  %v7234_v14 = vrot.slane %v7224_v15, %v18751_v25  ;;  %v7241_v49 = vrot.slane %v18269_v58, %v18751_v25  ;;  %v18400_v21 = vpop.f32.mrf.mxu1 }
 0x1f1   :  { %7134 = vbcast.lane.b32.xlu0 %v20189_v39, 272  ;;  %v6856_v39 = vpop.permute.xlu0 %6855  ;;  %v7283_v62 = vrot.slane %v7273_v52, %v18751_v25  ;;  %v7290_v43 = vrot.slane %v18271_v55, %v18751_v25  ;;  %v7306_v42 = vcombine.low %v7297_v33, %v7304_v26  ;;  %v6877_v40 = vpop.permute.xlu1 %6876  ;;  %v4783_v31 = vadd.f32 %v18400_v21, %v20535_v27 }
 0x1f2   :  { %7146 = vbcast.lane.b32.xlu1 %v20208_v2, 272  ;;  %v7257_v8 = vcombine.low %v7248_v19, %v7255_v50  ;;  %v7256_v2 = vcombine.low %v7234_v14, %v7241_v49  ;;  %v4777_v1 = vpop.f32.mrf.mxu1  ;;  %v20650_v36 = vmul.f32 %v20636_v10, %v6863_v37  ;;  %v20667_v54 = vrot.slane %v18305_v57, %v18751_v25 }
 0x1f3   :  { %v7305_v47 = vcombine.low %v7283_v62, %v7290_v43  ;;  %v5645_v23 = vcombine.high %v4783_v31, %v4783_v31  ;;  %v4778_v41 = vadd.f32 %v20535_v27, %v4777_v1  ;;  %v7320_v60 = vrot.slane %v7306_v42, %v18751_v25 }
 0x1f4   :  { %v7271_v11 = vrot.slane %v7257_v8, %v18751_v25  ;;  %v7264_v53 = vrot.slane %v7256_v2, %v18751_v25  ;;  %27245 = vst [vmem:[#allocation36_spill] sm:$0xff] %v20667_v54  ;;  %v9527_v17 = vrot.slane %v18304_v56, %v18751_v25  ;;  %v20671_v63 = vmul.f32 %v20636_v10, %v6856_v39 }
 0x1f5   :  { %7142 = vbcast.lane.b32.xlu0 %v20215_v16, 272  ;;  %v6870_v3 = vpop.permute.xlu0 %6869  ;;  %v5652_v16 = vrot.slane %v4783_v31, %v18751_v25  ;;  %v5659_v29 = vrot.slane %v5645_v23, %v18751_v25  ;;  %v5596_v30 = vcombine.high %v4778_v41, %v4778_v41  ;;  %v7313_v7 = vrot.slane %v7305_v47, %v18751_v25 }
 0x1f6   :  { %v5603_v44 = vrot.slane %v4778_v41, %v18751_v25  ;;  %v7272_v0 = vcombine.low %v7264_v53, %v7271_v11  ;;  %v20682_v52 = vmul.f32 %v20636_v10, %v6877_v40  ;;  %v20685_v55 = vmul.f32 %v20636_v10, %v6870_v3 }
 0x1f7   :  { %v5660_v32 = vcombine.high %v5652_v16, %v5652_v16  ;;  %v20640_v45 = vrot.slane %v5652_v16, %v18751_v25  ;;  %v5661_v18 = vcombine.high %v5659_v29, %v5659_v29  ;;  %v20653_v28 = vrot.slane %v5659_v29, %v18751_v25 }
 0x1f8   :  { %v5610_v5 = vrot.slane %v5596_v30, %v18751_v25  ;;  %v5611_v20 = vcombine.high %v5603_v44, %v5603_v44  ;;  %v7321_v48 = vcombine.low %v7313_v7, %v7320_v60  ;;  %v20688_v37 = vrot.slane %v5603_v44, %v18751_v25 }
 0x1f9   :  { %27240 = vst [vmem:[#allocation42_spill] sm:$0xff] %v20640_v45  ;;  %27241 = vst [vmem:[#allocation47_spill] sm:$0xff] %v20653_v28  ;;  %v6891_v22 = vpop.permute.xlu1 %6890  ;;  %v20656_v46 = vrot.slane %v5660_v32, %v18751_v25  ;;  %v20660_v6 = vrot.slane %v5661_v18, %v18751_v25  ;;  %v20664_v61 = vcombine.high %v20653_v28, %v20653_v28  ;;  %v9064_v19 = vsel %vm698_vm0, %v7272_v0, 0.0 }
 0x1fa   :  { %v6884_v4 = vpop.permute.xlu0 %6883  ;;  %v20675_v59 = vcombine.high %v20640_v45, %v20640_v45  ;;  %v5612_v58 = vcombine.high %v5610_v5, %v5610_v5  ;;  %27248 = vst [vmem:[#allocation13_spill] sm:$0xff] %v20688_v37  ;;  %v20696_v33 = vrot.slane %v5611_v20, %v18751_v25  ;;  %v20702_v14 = vrot.slane %v5610_v5, %v18751_v25 }
 0x1fb   :  { %27242 = vst [vmem:[#allocation45_spill] sm:$0xff] %v20656_v46  ;;  %27243 = vst [vmem:[#allocation44_spill] sm:$0xff] %v20660_v6  ;;  %v20679_v15 = vcombine.high %v20656_v46, %v20656_v46  ;;  %v8011_v39 = vcombine.low %v20660_v6, %v20664_v61  ;;  %v9065_v49 = vsel %vm698_vm0, %v7321_v48, 0.0  ;;  %v20707_v62 = vrot.slane %v20667_v54, %v18751_v25 }
 0x1fc   :  { %27244 = vst [vmem:[#allocation46_spill] sm:$0xff] %v20664_v61  ;;  %27246 = vst [vmem:[#allocation4_spill] sm:$0xff] %v20675_v59  ;;  %v20699_v26 = vrot.slane %v5612_v58, %v18751_v25  ;;  %v20710_v43 = vrot.slane %v9527_v17, %v18751_v25  ;;  %v20713_v8 = vmul.f32 %v20636_v10, %v6891_v22 }
 0x1fd   :  { %27247 = vst [vmem:[#allocation3_spill] sm:$0xff] %v20679_v15  ;;  %v8010_v50 = vcombine.low %v20679_v15, %v20653_v28  ;;  %27249 = vst [vmem:[#allocation37_spill] sm:$0xff] %v20696_v33  ;;  %v6905_v42 = vpop.permute.xlu1 %6904  ;;  %v8009_v40 = vcombine.low %v20656_v46, %v20675_v59  ;;  %v18284_v2 = vcombine.high %v20688_v37, %v20696_v33 }
 0x1fe   :  { %27250 = vst [vmem:[#allocation53_spill] sm:$0xff] %v20699_v26  ;;  %27251 = vst [vmem:[#allocation6_spill] sm:$0xff] %v20702_v14  ;;  %v6898_v21 = vpop.permute.xlu0 %6897  ;;  %v20719_v31 = vadd.f32 %v9065_v49, %v9064_v19  ;;  %v20722_v3 = vmul.f32 %v20636_v10, %v6884_v4  ;;  %v20725_v47 = vmul.f32 %v20636_v10, %v6905_v42 }
 0x1ff   :  { %v20728_v1 = vmul.f32 %v20636_v10, %v6898_v21  ;;  %v7948_v23 = vcombine.low %v20702_v14, %v20699_v26  ;;  %v20733_v16 = vrot.slane %v8010_v50, %v18751_v25  ;;  %v20736_v41 = vrot.slane %v8011_v39, %v18751_v25 }
 0x200   :  { %v20740_v11 = vcombine.high %v20699_v26, %v20699_v26  ;;  %v7946_v60 = vcombine.low %v20688_v37, %v20696_v33  ;;  %v20746_v53 = vcombine.high %v20660_v6, %v20660_v6  ;;  %v9520_v32 = vcombine.high %v18304_v56, %v18304_v56 }
 0x201   :  { %27252 = vst [vmem:[#allocation5_spill] sm:$0xff] %v20733_v16  ;;  %27253 = vst [vmem:[#allocation12_spill] sm:$0xff] %v20736_v41  ;;  %v7976_v29 = vrot.slane %v7948_v23, %v18751_v25  ;;  %v9535_v30 = vcombine.high %v9527_v17, %v9527_v17  ;;  %v20750_v7 = vrot.slane %v8009_v40, %v18751_v25 }
 0x202   :  { %27254 = vst [vmem:[#allocation10_spill] sm:$0xff] %v20740_v11  ;;  %27255 = vst [vmem:[#allocation7_spill] sm:$0xff] %v20746_v53  ;;  %v7969_v44 = vrot.slane %v18284_v2, %v18751_v25  ;;  %v20755_v57 = vcombine.high %v20601_v13, %v20601_v13  ;;  %v20759_v18 = vcombine.high %v20710_v43, %v20710_v43 }
 0x203   :  { %27256 = vst [vmem:[#allocation55_spill] sm:$0xff] %v20750_v7  ;;  %v20763_v0 = vcombine.high %v20587_v12, %v20587_v12  ;;  %v20767_v56 = vcombine.high %v20590_v38, %v20590_v38  ;;  %v9534_v22 = vrot.slane %v9520_v32, %v18751_v25  ;;  %v20771_v4 = vrot.slane %v9535_v30, %v18751_v25 }
 0x204   :  { %27257 = vst [vmem:[#allocation52_spill] sm:$0xff] %v20755_v57  ;;  %27258 = vst [vmem:[#allocation8_spill] sm:$0xff] %v20759_v18  ;;  %v20776_v20 = vrot.slane %v7946_v60, %v18751_v25  ;;  %v7978_v48 = vcombine.low %v7969_v44, %v7976_v29  ;;  %v20783_v39 = vcombine.high %v20577_v34, %v20577_v34 }
 0x205   :  { %27259 = vst [vmem:[#allocation9_spill] sm:$0xff] %v20763_v0  ;;  %27260 = vst [vmem:[#allocation49_spill] sm:$0xff] %v20767_v56  ;;  %v9536_v49 = vcombine.high %v9534_v22, %v9534_v22  ;;  %v20787_v42 = vmul.f32 %v20710_v43, %v20601_v13  ;;  %v20793_v23 = vrot.slane %v9534_v22, %v18751_v25 }
 0x206   :  { %27261 = vst [vmem:[#allocation48_spill] sm:$0xff] %v20771_v4  ;;  %27262 = vst [vmem:[#allocation17_spill] sm:$0xff] %v20776_v20  ;;  %v20797_v60 = vcombine.high %v20771_v4, %v20771_v4  ;;  %v20801_v29 = vmul.f32 %v20759_v18, %v20755_v57  ;;  %v20809_v22 = vrot.slane %v7978_v48, %v18751_v25 }
 0x207   :  { %v18382_v58 = vpop.f32.mrf.mxu0  ;;  %27263 = vst [vmem:[#allocation50_spill] sm:$0xff] %v20783_v39  ;;  %27264 = vst [vmem:[#allocation15_spill] sm:$0xff] %v20793_v23  ;;  %v20813_v17 = vrot.slane %v9536_v49, %v18751_v25  ;;  %v20817_v26 = vmul.f32 %v20771_v4, %v20590_v38  ;;  %v20846_v20 = vmul.f32 %v20793_v23, %v20587_v12 }
 0x208   :  { %v6919_v19 = vpop.permute.xlu1 %6918  ;;  %v4723_v50 = vadd.f32 %v18382_v58, %v20535_v27  ;;  %v6912_v40 = vpop.permute.xlu0 %6911  ;;  %27265 = vst [vmem:[#allocation18_spill] sm:$0xff] %v20797_v60  ;;  %27266 = vst [vmem:[#allocation21_spill] sm:$0xff] %v20809_v22  ;;  %v20830_v49 = vmul.f32 %v20797_v60, %v20767_v56 }
 0x209   :  { %v20790_v21 = vmul.f32 %v20636_v10, %v6919_v19  ;;  %v4717_v2 = vpop.f32.mrf.mxu0  ;;  %v20804_v32 = vmul.f32 %v20636_v10, %v6912_v40  ;;  %v18403_v58 = vpop.f32.mrf.mxu1 }
 0x20a   :  { %v5057_v30 = vcombine.high %v4723_v50, %v4723_v50  ;;  %v5064_v44 = vrot.slane %v4723_v50, %v18751_v25  ;;  %v4718_v19 = vadd.f32 %v20535_v27, %v4717_v2  ;;  %v4793_v5 = vadd.f32 %v18403_v58, %v20535_v27 }
 0x20b   :  { %v20825_v2 = vcombine.high %v20793_v23, %v20793_v23  ;;  %v4787_v23 = vpop.f32.mrf.mxu1 }
 0x20c   :  { %v5071_v40 = vrot.slane %v5057_v30, %v18751_v25  ;;  %v5072_v33 = vcombine.high %v5064_v44, %v5064_v44  ;;  %v20821_v50 = vrot.slane %v5064_v44, %v18751_v25  ;;  %v5743_v48 = vcombine.high %v4793_v5, %v4793_v5 }
 0x20d   :  { %v5750_v58 = vrot.slane %v4793_v5, %v18751_v25  ;;  %v5008_v37 = vcombine.high %v4718_v19, %v4718_v19  ;;  %v5015_v5 = vrot.slane %v4718_v19, %v18751_v25  ;;  %v6933_v6 = vpop.permute.xlu1 %6932  ;;  %v4788_v56 = vadd.f32 %v20535_v27, %v4787_v23 }
 0x20e   :  { %27267 = vst [vmem:[#allocation25_spill] sm:$0xff] %v20821_v50  ;;  %v5073_v22 = vcombine.high %v5071_v40, %v5071_v40  ;;  %v20833_v7 = vrot.slane %v5071_v40, %v18751_v25  ;;  %v20836_v30 = vrot.slane %v5072_v33, %v18751_v25  ;;  %v20840_v44 = vcombine.high %v20821_v50, %v20821_v50 }
 0x20f   :  { %v5757_v41 = vrot.slane %v5743_v48, %v18751_v25  ;;  %v5758_v16 = vcombine.high %v5750_v58, %v5750_v58  ;;  %v20862_v28 = vrot.slane %v5750_v58, %v18751_v25  ;;  %v20869_v59 = vmul.f32 %v20636_v10, %v6933_v6 }
 0x210   :  { %27268 = vst [vmem:[#allocation22_spill] sm:$0xff] %v20833_v7  ;;  %27269 = vst [vmem:[#allocation28_spill] sm:$0xff] %v20836_v30  ;;  %v20849_v61 = vrot.slane %v5073_v22, %v18751_v25  ;;  %v20853_v33 = vcombine.high %v20833_v7, %v20833_v7  ;;  %v20857_v40 = vcombine.high %v20836_v30, %v20836_v30 }
 0x211   :  { %27270 = vst [vmem:[#allocation23_spill] sm:$0xff] %v20840_v44  ;;  %v7385_v48 = vcombine.low %v20836_v30, %v20840_v44  ;;  %v5759_v19 = vcombine.high %v5757_v41, %v5757_v41  ;;  %27274 = vst [vmem:[#allocation31_spill] sm:$0xff] %v20862_v28  ;;  %v20865_v15 = vrot.slane %v5758_v16, %v18751_v25 }
 0x212   :  { %27271 = vst [vmem:[#allocation38_spill] sm:$0xff] %v20849_v61  ;;  %27272 = vst [vmem:[#allocation26_spill] sm:$0xff] %v20853_v33  ;;  %v5022_v22 = vrot.slane %v5008_v37, %v18751_v25  ;;  %v7386_v46 = vcombine.low %v20857_v40, %v20833_v7  ;;  %v7387_v45 = vcombine.low %v20849_v61, %v20853_v33 }
 0x213   :  { %27273 = vst [vmem:[#allocation33_spill] sm:$0xff] %v20857_v40  ;;  %27275 = vst [vmem:[#allocation20_spill] sm:$0xff] %v20865_v15  ;;  %v20876_v11 = vrot.slane %v5757_v41, %v18751_v25  ;;  %v20879_v58 = vrot.slane %v5759_v19, %v18751_v25  ;;  %v8120_v16 = vcombine.low %v20862_v28, %v20865_v15  ;;  %v6926_v41 = vpop.permute.xlu0 %6925 }
 0x214   :  { %v18285_v6 = vcombine.high %v20862_v28, %v20865_v15  ;;  %v5023_v37 = vcombine.high %v5015_v5, %v5015_v5  ;;  %v7395_v60 = vrot.slane %v7385_v48, %v18751_v25  ;;  %v7402_v7 = vrot.slane %v7386_v46, %v18751_v25 }
 0x215   :  { %27276 = vst [vmem:[#allocation24_spill] sm:$0xff] %v20876_v11  ;;  %27277 = vst [vmem:[#allocation27_spill] sm:$0xff] %v20879_v58  ;;  %v5024_v18 = vcombine.high %v5022_v22, %v5022_v22  ;;  %v20888_v33 = vrot.slane %v5015_v5, %v18751_v25  ;;  %v8122_v19 = vcombine.low %v20876_v11, %v20879_v58  ;;  %v18406_v44 = vpop.f32.mrf.mxu1 }
 0x216   :  { %v18286_v40 = vcombine.high %v20876_v11, %v20879_v58  ;;  %v8130_v4 = vrot.slane %v8120_v16, %v18751_v25  ;;  %v8137_v15 = vrot.slane %v18285_v6, %v18751_v25  ;;  %v20897_v48 = vmul.f32 %v20636_v10, %v6926_v41 }
 0x217   :  { %27278 = vst [vmem:[#allocation51_spill] sm:$0xff] %v20888_v33  ;;  %v20900_v46 = vrot.slane %v5022_v22, %v18751_v25  ;;  %v20903_v5 = vrot.slane %v5023_v37, %v18751_v25  ;;  %v20906_v28 = vrot.slane %v5024_v18, %v18751_v25  ;;  %v7417_v30 = vcombine.low %v7395_v60, %v7402_v7 }
 0x218   :  { %v20909_v58 = vrot.slane %v8122_v19, %v18751_v25  ;;  %v20912_v16 = vrot.slane %v18286_v40, %v18751_v25  ;;  %v20916_v6 = vcombine.high %v20888_v33, %v20888_v33  ;;  %v20920_v22 = vcombine.high %v20849_v61, %v20849_v61 }
 0x219   :  { %27279 = vst [vmem:[#allocation54_spill] sm:$0xff] %v20900_v46  ;;  %27280 = vst [vmem:[#allocation32_spill] sm:$0xff] %v20903_v5  ;;  %v20924_v18 = vcombine.high %v20900_v46, %v20900_v46  ;;  %v20928_v7 = vcombine.high %v20903_v5, %v20903_v5  ;;  %v20932_v60 = vcombine.high %v20906_v28, %v20906_v28 }
 0x21a   :  { %27281 = vst [vmem:[#allocation34_spill] sm:$0xff] %v20906_v28  ;;  %27282 = vst [vmem:[#allocation29_spill] sm:$0xff] %v20912_v16  ;;  %v20935_v40 = vrot.slane %v7387_v45, %v18751_v25  ;;  %v8152_v37 = vcombine.low %v8130_v4, %v8137_v15  ;;  %v7328_v41 = vrot.slane %v20888_v33, %v18751_v25  ;;  %v4797_v45 = vpop.f32.mrf.mxu1 }
 0x21b   :  { %27283 = vst [vmem:[#allocation19_spill] sm:$0xff] %v20916_v6  ;;  %27284 = vst [vmem:[#allocation30_spill] sm:$0xff] %v20920_v22  ;;  %v7336_v19 = vcombine.low %v20903_v5, %v20916_v6  ;;  %v7337_v11 = vcombine.low %v20928_v7, %v20900_v46  ;;  %v7338_v61 = vcombine.low %v20906_v28, %v20924_v18 }
 0x21c   :  { %27285 = vst [vmem:[#allocation56_spill] sm:$0xff] %v20924_v18  ;;  %27286 = vst [vmem:[#allocation57_spill] sm:$0xff] %v20928_v7  ;;  %v7339_v12 = vcombine.low %v20932_v60, %v20821_v50  ;;  %v20949_v15 = vrot.slane %v7417_v30, %v18751_v25  ;;  %v7335_v6 = vrot.slane %v7328_v41, %v18751_v25 }
 0x21d   :  { %27287 = vst [vmem:[#allocation58_spill] sm:$0xff] %v20932_v60  ;;  %v6947_v57 = vpop.permute.xlu1 %6946  ;;  %v4803_v46 = vadd.f32 %v18406_v44, %v20535_v27  ;;  %v6940_v7 = vpop.permute.xlu0 %6939  ;;  %v7346_v18 = vrot.slane %v7336_v19, %v18751_v25  ;;  %v7353_v28 = vrot.slane %v7337_v11, %v18751_v25  ;;  %v7360_v50 = vrot.slane %v7338_v61, %v18751_v25 }
 0x21e   :  { %v7367_v23 = vrot.slane %v7339_v12, %v18751_v25  ;;  %v20960_v60 = vrot.slane %v8152_v37, %v18751_v25  ;;  %v5694_v30 = vcombine.high %v4788_v56, %v4788_v56  ;;  %v5701_v5 = vrot.slane %v4788_v56, %v18751_v25 }
 0x21f   :  { %v20964_v4 = vadd.f32 %v20535_v27, %v4797_v45  ;;  %v20967_v44 = vmul.f32 %v20636_v10, %v6947_v57  ;;  %v7368_v41 = vcombine.low %v7346_v18, %v7353_v28  ;;  %v5841_v38 = vcombine.high %v4803_v46, %v4803_v46 }
 0x220   :  { %27288 = vst [vmem:[#allocation59_spill] sm:$0xff] %v20960_v60  ;;  %v7369_v19 = vcombine.low %v7360_v50, %v7367_v23  ;;  %v5708_v61 = vrot.slane %v5694_v30, %v18751_v25  ;;  %v5709_v13 = vcombine.high %v5701_v5, %v5701_v5  ;;  %v20971_v12 = vrot.slane %v5701_v5, %v18751_v25 }
 0x221   :  { %v6961_v11 = vpop.permute.xlu1 %6960  ;;  %v5848_v37 = vrot.slane %v4803_v46, %v18751_v25  ;;  %v20975_v56 = vmul.f32 %v20636_v10, %v6940_v7  ;;  %v9068_v57 = vsel %vm9067_vm1, %v7335_v6, 0.0  ;;  %v5855_v28 = vrot.slane %v5841_v38, %v18751_v25  ;;  %v20992_v46 = vld [vmem:[%s26221_s8 + $0x1] ss:$0 sm:$0xff] }
 0x222   :  { %27289 = vst [vmem:[#allocation60_spill] sm:$0xff] %v20971_v12  ;;  %v6954_v45 = vpop.permute.xlu0 %6953  ;;  %v7383_v54 = vrot.slane %v7369_v19, %v18751_v25  ;;  %v20981_v50 = vadd.f32 %v9068_v57, %v20719_v31  ;;  %v5710_v18 = vcombine.high %v5708_v61, %v5708_v61  ;;  %v20984_v23 = vrot.slane %v5708_v61, %v18751_v25 }
 0x223   :  { %v20987_v5 = vrot.slane %v5709_v13, %v18751_v25  ;;  %v7376_v7 = vrot.slane %v7368_v41, %v18751_v25  ;;  %v20997_v38 = vcombine.high %v20971_v12, %v20971_v12  ;;  %v8057_v31 = vcombine.low %v20746_v53, %v20971_v12 }
 0x224   :  { %27290 = vst [vmem:[#allocation61_spill] sm:$0xff] %v20984_v23  ;;  %v5856_v6 = vcombine.high %v5848_v37, %v5848_v37  ;;  %v21002_v19 = vrot.slane %v5710_v18, %v18751_v25  ;;  %v21006_v13 = vcombine.high %v20984_v23, %v20984_v23  ;;  %v5857_v41 = vcombine.high %v5855_v28, %v5855_v28 }
 0x225   :  { %27291 = vst [vmem:[#allocation62_spill] sm:$0xff] %v20987_v5  ;;  %27292 = vst [vmem:[#allocation63_spill] sm:$0xff] %v20997_v38  ;;  %v6990_v30 = vpop.permute.xlu1 %6989  ;;  %v21010_v61 = vcombine.high %v20987_v5, %v20987_v5  ;;  %v21013_v57 = vmul.f32 %v20636_v10, %v6961_v11  ;;  %v7384_v53 = vcombine.low %v7376_v7, %v7383_v54 }
 0x226   :  { %27293 = vst [vmem:[#allocation64_spill] sm:$0xff] %v21002_v19  ;;  %27294 = vst [vmem:[#allocation65_spill] sm:$0xff] %v21006_v13  ;;  %v7053_v35 = vmul.f32 %v20992_v46, %v6990_v30  ;;  %v6986_v12 = vpop.permute.xlu0 %6985  ;;  %v8058_v18 = vcombine.low %v20987_v5, %v20997_v38  ;;  %v8060_v9 = vcombine.low %v21002_v19, %v21006_v13 }
 0x227   :  { %27295 = vst [vmem:[#allocation66_spill] sm:$0xff] %v21010_v61  ;;  %v7052_v51 = vmul.f32 %v20992_v46, %v6986_v12  ;;  %v8059_v24 = vcombine.low %v21010_v61, %v20984_v23  ;;  %v21024_v14 = vrot.slane %v5848_v37, %v18751_v25  ;;  %v21027_v11 = vmul.f32 %v20636_v10, %v6954_v45 }
 0x228   :  { %v8074_v30 = vrot.slane %v8058_v18, %v18751_v25  ;;  %v21031_v54 = vrot.slane %v5855_v28, %v18751_v25  ;;  %v21034_v7 = vrot.slane %v5856_v6, %v18751_v25  ;;  %v8067_v12 = vrot.slane %v8057_v31, %v18751_v25 }
 0x229   :  { %27296 = vst [vmem:[#allocation67_spill] sm:$0xff] %v21024_v14  ;;  %v21038_v23 = vrot.slane %v8059_v24, %v18751_v25  ;;  %v21041_v13 = vrot.slane %v8060_v9, %v18751_v25  ;;  %v21044_v37 = vrot.slane %v5857_v41, %v18751_v25  ;;  %v21047_v10 = vadd.f32 %v7053_v35, %v20650_v36  ;;  %v6998_v45 = vpop.permute.xlu1 %6997 }
 0x22a   :  { %27297 = vst [vmem:[#allocation68_spill] sm:$0xff] %v21031_v54  ;;  %27298 = vst [vmem:[#allocation69_spill] sm:$0xff] %v21034_v7  ;;  %v21050_v28 = vsel %vm698_vm0, %v7384_v53, 0.0  ;;  %v21054_v6 = vcombine.high %v21024_v14, %v21024_v14  ;;  %v21058_v24 = vcombine.high %v21034_v7, %v21034_v7  ;;  %v21061_v9 = vadd.f32 %v7052_v51, %v20671_v63 }
 0x22b   :  { %27299 = vst [vmem:[#allocation70_spill] sm:$0xff] %v21038_v23  ;;  %27300 = vst [vmem:[#allocation71_spill] sm:$0xff] %v21041_v13  ;;  %v8089_v31 = vcombine.low %v8067_v12, %v8074_v30  ;;  %v21065_v35 = vcombine.high %v21031_v54, %v21031_v54  ;;  %v8224_v36 = vrot.slane %v21024_v14, %v18751_v25 }
 0x22c   :  { %27301 = vst [vmem:[#allocation72_spill] sm:$0xff] %v21044_v37  ;;  %27302 = vst [vmem:[#allocation73_spill] sm:$0xff] %v21054_v6  ;;  %v7055_v53 = vmul.f32 %v20992_v46, %v6998_v45  ;;  %v8232_v61 = vcombine.low %v21034_v7, %v21054_v6  ;;  %v8233_v51 = vcombine.low %v21058_v24, %v21031_v54  ;;  %v9070_v54 = vrot.slane %v20981_v50, 4  ;;  %v18409_v7 = vpop.f32.mrf.mxu1 }
 0x22d   :  { %27303 = vst [vmem:[#allocation74_spill] sm:$0xff] %v21058_v24  ;;  %27304 = vst [vmem:[#allocation75_spill] sm:$0xff] %v21065_v35  ;;  %v6994_v41 = vpop.permute.xlu0 %6993  ;;  %v21079_v30 = vcombine.high %v21044_v37, %v21044_v37  ;;  %v8231_v12 = vrot.slane %v8224_v36, %v18751_v25  ;;  %v5792_v45 = vcombine.high %v20964_v4, %v20964_v4 }
 0x22e   :  { %v7054_v63 = vmul.f32 %v20992_v46, %v6994_v41  ;;  %v7006_v38 = vpop.permute.xlu1 %7005  ;;  %v8242_v18 = vrot.slane %v8232_v61, %v18751_v25  ;;  %v8249_v13 = vrot.slane %v8233_v51, %v18751_v25  ;;  %v5799_v23 = vrot.slane %v20964_v4, %v18751_v25 }
 0x22f   :  { %27305 = vst [vmem:[#allocation76_spill] sm:$0xff] %v21079_v30  ;;  %v7057_v41 = vmul.f32 %v20992_v46, %v7006_v38  ;;  %v21091_v24 = vrot.slane %v8089_v31, %v18751_v25  ;;  %v5806_v6 = vrot.slane %v5792_v45, %v18751_v25  ;;  %v21097_v61 = vadd.f32 %v7055_v53, %v20682_v52 }
 0x230   :  { %v8264_v5 = vcombine.low %v8242_v18, %v8249_v13  ;;  %v5807_v19 = vcombine.high %v5799_v23, %v5799_v23  ;;  %v9071_v4 = vadd.f32 %v9070_v54, %v20981_v50  ;;  %v21101_v14 = vadd.f32 %v7054_v63, %v20685_v55 }
 0x231   :  { %27306 = vst [vmem:[#allocation77_spill] sm:$0xff] %v21091_v24  ;;  %v7002_v51 = vpop.permute.xlu0 %7001  ;;  %v21104_v38 = vsel %vm9067_vm1, %v8231_v12, 0.0  ;;  %v5808_v31 = vcombine.high %v5806_v6, %v5806_v6  ;;  %v21107_v36 = vrot.slane %v5799_v23, %v18751_v25  ;;  %v21110_v45 = vadd.f32 %v7057_v41, %v20713_v8  ;;  %v4807_v41 = vpop.f32.mrf.mxu1 }
 0x232   :  { %27307 = vst [vmem:[#allocation78_spill] sm:$0xff] %v21104_v38  ;;  %v7014_v52 = vpop.permute.xlu1 %7013  ;;  %v21113_v53 = vrot.slane %v5807_v19, %v18751_v25  ;;  %v9072_v13 = vrot.slane %v9071_v4, 2  ;;  %v4813_v50 = vadd.f32 %v18409_v7, %v20535_v27  ;;  %v7056_v55 = vmul.f32 %v20992_v46, %v7002_v51 }
 0x233   :  { %27308 = vst [vmem:[#allocation79_spill] sm:$0xff] %v21107_v36  ;;  %v21118_v54 = vrot.slane %v8264_v5, %v18751_v25  ;;  %v21121_v18 = vrot.slane %v5806_v6, %v18751_v25  ;;  %v21124_v23 = vrot.slane %v5808_v31, %v18751_v25  ;;  %v7059_v51 = vmul.f32 %v20992_v46, %v7014_v52 }
 0x234   :  { %27309 = vst [vmem:[#allocation80_spill] sm:$0xff] %v21113_v53  ;;  %v8169_v63 = vcombine.low %v21107_v36, %v21113_v53  ;;  %v18287_v19 = vcombine.high %v21107_v36, %v21113_v53  ;;  %v9073_v12 = vadd.f32 %v9072_v13, %v9071_v4  ;;  %v5939_v7 = vcombine.high %v4813_v50, %v4813_v50 }
 0x235   :  { %27310 = vst [vmem:[#allocation81_spill] sm:$0xff] %v21121_v18  ;;  %27311 = vst [vmem:[#allocation82_spill] sm:$0xff] %v21124_v23  ;;  %v7010_v8 = vpop.permute.xlu0 %7009  ;;  %v8171_v6 = vcombine.low %v21121_v18, %v21124_v23  ;;  %v18288_v31 = vcombine.high %v21121_v18, %v21124_v23  ;;  %v5946_v4 = vrot.slane %v4813_v50, %v18751_v25 }
 0x236   :  { %v7058_v5 = vmul.f32 %v20992_v46, %v7010_v8  ;;  %v7022_v24 = vpop.permute.xlu1 %7021  ;;  %v8179_v38 = vrot.slane %v8169_v63, %v18751_v25  ;;  %v8186_v60 = vrot.slane %v18287_v19, %v18751_v25  ;;  %v9074_v16 = vrot.slane %v9073_v12, 1 }
 0x237   :  { %v7061_v13 = vmul.f32 %v20992_v46, %v7022_v24  ;;  %v21141_v52 = vrot.slane %v8171_v6, %v18751_v25  ;;  %v21144_v8 = vrot.slane %v18288_v31, %v18751_v25  ;;  %v4808_v53 = vadd.f32 %v20535_v27, %v4807_v41 }
 0x238   :  { %v21148_v23 = vadd.f32 %v7056_v55, %v20722_v3  ;;  %v8201_v63 = vcombine.low %v8179_v38, %v8186_v60  ;;  %v5953_v19 = vrot.slane %v5939_v7, %v18751_v25  ;;  %v5954_v36 = vcombine.high %v5946_v4, %v5946_v4 }
 0x239   :  { %v7018_v18 = vpop.permute.xlu0 %7017  ;;  %v21152_v50 = vadd.f32 %v7059_v51, %v20725_v47  ;;  %v21155_v24 = vadd.f32 %v7058_v5, %v20728_v1  ;;  %v21158_v31 = vadd.f32 %v9074_v16, %v9073_v12  ;;  %v21161_v41 = vadd.f32 %v7061_v13, %v20790_v21 }
 0x23a   :  { %v7060_v6 = vmul.f32 %v20992_v46, %v7018_v18  ;;  %v7030_v3 = vpop.permute.xlu1 %7029  ;;  %v5955_v55 = vcombine.high %v5953_v19, %v5953_v19  ;;  %v21164_v60 = vrot.slane %v5946_v4, %v18751_v25  ;;  %v21167_v38 = vrot.slane %v5954_v36, %v18751_v25 }
 0x23b   :  { %27312 = vst [vmem:[#allocation83_spill] sm:$0xff] %v21161_v41  ;;  %v21172_v1 = vrot.slane %v8201_v63, %v18751_v25  ;;  %v5890_v18 = vcombine.high %v4808_v53, %v4808_v53  ;;  %v5897_v16 = vrot.slane %v4808_v53, %v18751_v25  ;;  %v21179_v7 = vrot.slane %v5953_v19, %v18751_v25 }
 0x23c   :  { %27313 = vst [vmem:[#allocation84_spill] sm:$0xff] %v21164_v60  ;;  %27314 = vst [vmem:[#allocation85_spill] sm:$0xff] %v21167_v38  ;;  %v21176_v21 = vadd.f32 %v7060_v6, %v20804_v32  ;;  %v21182_v51 = vrot.slane %v5955_v55, %v18751_v25  ;;  %v18289_v36 = vcombine.high %v21164_v60, %v21167_v38 }
 0x23d   :  { %v7026_v12 = vpop.permute.xlu0 %7025  ;;  %27316 = vst [vmem:[#allocation87_spill] sm:$0xff] %v21179_v7  ;;  %v7063_v5 = vmul.f32 %v20992_v46, %v7030_v3  ;;  %v5904_v53 = vrot.slane %v5890_v18, %v18751_v25  ;;  %v5905_v13 = vcombine.high %v5897_v16, %v5897_v16  ;;  %v21194_v6 = vrot.slane %v5897_v16, %v18751_v25 }
 0x23e   :  { %27315 = vst [vmem:[#allocation86_spill] sm:$0xff] %v21176_v21  ;;  %27317 = vst [vmem:[#allocation88_spill] sm:$0xff] %v21182_v51  ;;  %v7062_v32 = vmul.f32 %v20992_v46, %v7026_v12  ;;  %v7038_v63 = vpop.permute.xlu1 %7037  ;;  %v8345_v19 = vcombine.low %v21179_v7, %v21182_v51  ;;  %v27319_v55 = vcombine.low %v21044_v37, %v21065_v35  ;;  %v18412_v35 = vpop.f32.mrf.mxu1 }
 0x23f   :  { %27318 = vst [vmem:[#allocation89_spill] sm:$0xff] %v21194_v6  ;;  %v18290_v4 = vcombine.high %v21179_v7, %v21182_v51  ;;  %v8354_v18 = vrot.slane %v18289_v36, %v18751_v25  ;;  %v5906_v47 = vcombine.high %v5904_v53, %v5904_v53  ;;  %v21204_v12 = vrot.slane %v5904_v53, %v18751_v25 }
 0x240   :  { %v8256_v3 = vrot.slane %v27319_v55, %v18751_v25  ;;  %v7065_v38 = vmul.f32 %v20992_v46, %v7038_v63  ;;  %v8361_v16 = vrot.slane %v8345_v19, %v18751_v25  ;;  %v21209_v21 = vrot.slane %v5905_v13, %v18751_v25 }
 0x241   :  { %27320 = vst [vmem:[#allocation90_spill] sm:$0xff] %v21204_v12  ;;  %v7034_v41 = vpop.permute.xlu0 %7033  ;;  %v21213_v55 = vcombine.high %v21194_v6, %v21194_v6  ;;  %v21216_v51 = vadd.f32 %v7063_v5, %v20869_v59  ;;  %v21220_v53 = vrot.slane %v5906_v47, %v18751_v25  ;;  %v21224_v63 = vcombine.high %v21204_v12, %v21204_v12 }
 0x242   :  { %27321 = vst [vmem:[#allocation91_spill] sm:$0xff] %v21209_v21  ;;  %v7064_v36 = vmul.f32 %v20992_v46, %v7034_v41  ;;  %v7046_v19 = vpop.permute.xlu1 %7045  ;;  %v8376_v13 = vcombine.low %v8354_v18, %v8361_v16  ;;  %v21228_v7 = vcombine.high %v21209_v21, %v21209_v21  ;;  %v8235_v37 = vcombine.low %v21079_v30, %v21194_v6 }
 0x243   :  { %27322 = vst [vmem:[#allocation92_spill] sm:$0xff] %v21213_v55  ;;  %27323 = vst [vmem:[#allocation93_spill] sm:$0xff] %v21216_v51  ;;  %v8281_v59 = vcombine.low %v21209_v21, %v21213_v55  ;;  %v21235_v41 = vadd.f32 %v7062_v32, %v20897_v48  ;;  %v21238_v47 = vrot.slane %v18290_v4, %v18751_v25  ;;  %v4817_v4 = vpop.f32.mrf.mxu1 }
 0x244   :  { %27324 = vst [vmem:[#allocation94_spill] sm:$0xff] %v21220_v53  ;;  %27325 = vst [vmem:[#allocation95_spill] sm:$0xff] %v21224_v63  ;;  %v21242_v5 = vcombine.high %v21220_v53, %v21220_v53  ;;  %v8283_v18 = vcombine.low %v21220_v53, %v21224_v63  ;;  %v21247_v16 = vadd.f32 %v7065_v38, %v20967_v44  ;;  %v21265_v38 = vld [vmem:[%s26221_s8 + $0x2] ss:$0 sm:$0xff] }
 0x245   :  { %27326 = vst [vmem:[#allocation96_spill] sm:$0xff] %v21228_v7  ;;  %27327 = vst [vmem:[#allocation97_spill] sm:$0xff] %v21235_v41  ;;  %v7067_v6 = vmul.f32 %v20992_v46, %v7046_v19  ;;  %v8263_v55 = vrot.slane %v8235_v37, %v18751_v25  ;;  %v8282_v48 = vcombine.low %v21228_v7, %v21204_v12 }
 0x246   :  { %27328 = vst [vmem:[#allocation98_spill] sm:$0xff] %v21242_v5  ;;  %27329 = vst [vmem:[#allocation99_spill] sm:$0xff] %v21247_v16  ;;  %v7042_v30 = vpop.permute.xlu0 %7041  ;;  %v21254_v32 = vadd.f32 %v7064_v36, %v20975_v56  ;;  %v21258_v51 = vrot.slane %v8376_v13, %v18751_v25  ;;  %v8284_v44 = vcombine.low %v21242_v5, %v21164_v60 }
 0x247   :  { %v7066_v21 = vmul.f32 %v20992_v46, %v7042_v30  ;;  %v7091_v37 = vpop.permute.xlu1 %7090  ;;  %v8265_v19 = vcombine.low %v8256_v3, %v8263_v55  ;;  %v8291_v63 = vrot.slane %v8281_v59, %v18751_v25  ;;  %v8298_v56 = vrot.slane %v8282_v48, %v18751_v25 }
 0x248   :  { %27330 = vst [vmem:[#allocation100_spill] sm:$0xff] %v21254_v32  ;;  %27331 = vst [vmem:[#allocation101_spill] sm:$0xff] %v21258_v51  ;;  %v4823_v36 = vadd.f32 %v18412_v35, %v20535_v27  ;;  %v7154_v46 = vmul.f32 %v21265_v38, %v7091_v37  ;;  %v8305_v30 = vrot.slane %v8283_v18, %v18751_v25 }
 0x249   :  { %v8312_v13 = vrot.slane %v8284_v44, %v18751_v25  ;;  %v4818_v60 = vadd.f32 %v20535_v27, %v4817_v4  ;;  %v21275_v5 = vadd.f32 %v7067_v6, %v21013_v57  ;;  %v21278_v53 = vadd.f32 %v7066_v21, %v21027_v11  ;;  %v21290_v27 = vld [vmem:[%s26223_s9] ss:$0 sm:$0xff] }
 0x24a   :  { %v6037_v55 = vcombine.high %v4823_v36, %v4823_v36  ;;  %v6044_v59 = vrot.slane %v4823_v36, %v18751_v25  ;;  %v7170_v35 = vadd.f32 %v7154_v46, %v21047_v10  ;;  %v21285_v18 = vmul.f32 %v20707_v62, %v20888_v33 }
 0x24b   :  { %27332 = vst [vmem:[#allocation102_spill] sm:$0xff] %v21275_v5  ;;  %27333 = vst [vmem:[#allocation103_spill] sm:$0xff] %v21278_v53  ;;  %v7087_v3 = vpop.permute.xlu0 %7086  ;;  %v8314_v37 = vcombine.low %v8305_v30, %v8312_v13  ;;  %v21293_v11 = vrot.slane %v8265_v19, %v18751_v25  ;;  %v8313_v21 = vcombine.low %v8291_v63, %v8298_v56 }
 0x24c   :  { %v7153_v48 = vmul.f32 %v21265_v38, %v7087_v3  ;;  %v7099_v57 = vpop.permute.xlu1 %7098  ;;  %v6051_v6 = vrot.slane %v6037_v55, %v18751_v25  ;;  %v6052_v10 = vcombine.high %v6044_v59, %v6044_v59  ;;  %v7193_v4 = vadd.f32 %v21290_v27, %v7170_v35 }
 0x24d   :  { %v7156_v36 = vmul.f32 %v21265_v38, %v7099_v57  ;;  %v5988_v46 = vcombine.high %v4818_v60, %v4818_v60  ;;  %v21300_v30 = vrot.slane %v8314_v37, %v18751_v25  ;;  %v5995_v16 = vrot.slane %v4818_v60, %v18751_v25 }
 0x24e   :  { %v7169_v44 = vadd.f32 %v7153_v48, %v21061_v9  ;;  %v6053_v13 = vcombine.high %v6051_v6, %v6051_v6  ;;  %v21303_v3 = vrot.slane %v6051_v6, %v18751_v25  ;;  %v21306_v19 = vrot.slane %v6052_v10, %v18751_v25 }
 0x24f   :  { %v7209_v63 = vmax.f32 %v7193_v4, 0.0  ;;  %v7172_v55 = vadd.f32 %v7156_v36, %v21097_v61  ;;  %v7095_v35 = vpop.permute.xlu0 %7094  ;;  %v21311_v9 = vrot.slane %v6044_v59, %v18751_v25  ;;  %v21314_v48 = vrot.slane %v8313_v21, %v18751_v25 }
 0x250   :  { %27334 = vst [vmem:[#allocation104_spill] sm:$0xff] %v21303_v3  ;;  %27335 = vst [vmem:[#allocation105_spill] sm:$0xff] %v21306_v19  ;;  %v7192_v56 = vadd.f32 %v21290_v27, %v7169_v44  ;;  %v7155_v37 = vmul.f32 %v21265_v38, %v7095_v35  ;;  %v21318_v57 = vrot.slane %v6053_v13, %v18751_v25  ;;  %v7107_v36 = vpop.permute.xlu1 %7106 }
 0x251   :  { %27336 = vst [vmem:[#allocation106_spill] sm:$0xff] %v21311_v9  ;;  %v21322_v6 = vcombine.high %v21303_v3, %v21303_v3  ;;  %v9248_v10 = vsel %vm698_vm0, %v7209_v63, 0.0  ;;  %v7195_v61 = vadd.f32 %v21290_v27, %v7172_v55  ;;  %v21328_v59 = vcombine.high %v21306_v19, %v21306_v19 }
 0x252   :  { %27337 = vst [vmem:[#allocation107_spill] sm:$0xff] %v21318_v57  ;;  %v7208_v4 = vmax.f32 %v7192_v56, 0.0  ;;  %v9249_v21 = vrot.slane %v9248_v10, 4  ;;  %v7171_v13 = vadd.f32 %v7155_v37, %v21101_v14  ;;  %v21338_v63 = vcombine.high %v21311_v9, %v21311_v9 }
 0x253   :  { %27338 = vst [vmem:[#allocation108_spill] sm:$0xff] %v21322_v6  ;;  %27339 = vst [vmem:[#allocation109_spill] sm:$0xff] %v21328_v59  ;;  %v7211_v12 = vmax.f32 %v7195_v61, 0.0  ;;  %v8456_v56 = vcombine.low %v21328_v59, %v21303_v3  ;;  %v21345_v44 = vcombine.high %v21318_v57, %v21318_v57  ;;  %v8457_v37 = vcombine.low %v21318_v57, %v21322_v6 }
 0x254   :  { %v9241_v35 = vsel %vm698_vm0, %v7208_v4, 0.0  ;;  %27340 = vst [vmem:[#allocation110_spill] sm:$0xff] %v21338_v63  ;;  %v9250_v55 = vadd.f32 %v9249_v21, %v9248_v10  ;;  %v7194_v5 = vadd.f32 %v21290_v27, %v7171_v13  ;;  %v7158_v61 = vmul.f32 %v21265_v38, %v7107_v36 }
 0x255   :  { %v9242_v7 = vrot.slane %v9241_v35, 4  ;;  %27341 = vst [vmem:[#allocation111_spill] sm:$0xff] %v21345_v44  ;;  %v9262_v14 = vsel %vm698_vm0, %v7211_v12, 0.0  ;;  %v8466_v4 = vrot.slane %v8456_v56, %v18751_v25  ;;  %v8473_v13 = vrot.slane %v8457_v37, %v18751_v25 }
 0x256   :  { %v9251_v53 = vrot.slane %v9250_v55, 2  ;;  %v9263_v10 = vrot.slane %v9262_v14, 4  ;;  %v7210_v21 = vmax.f32 %v7194_v5, 0.0  ;;  %v7174_v59 = vadd.f32 %v7158_v61, %v21110_v45 }
 0x257   :  { %v9243_v3 = vadd.f32 %v9242_v7, %v9241_v35  ;;  %v6002_v32 = vrot.slane %v5988_v46, %v18751_v25  ;;  %v8396_v36 = vcombine.low %v21311_v9, %v21306_v19  ;;  %v6003_v5 = vcombine.high %v5995_v16, %v5995_v16 }
 0x258   :  { %v9252_v12 = vadd.f32 %v9251_v53, %v9250_v55  ;;  %v9264_v51 = vadd.f32 %v9263_v10, %v9262_v14  ;;  %v9255_v6 = vsel %vm698_vm0, %v7210_v21, 0.0  ;;  %v7197_v7 = vadd.f32 %v21290_v27, %v7174_v59 }
 0x259   :  { %v9244_v41 = vrot.slane %v9243_v3, 2  ;;  %v9256_v56 = vrot.slane %v9255_v6, 4  ;;  %v6004_v60 = vcombine.high %v6002_v32, %v6002_v32  ;;  %v8488_v53 = vcombine.low %v8466_v4, %v8473_v13 }
 0x25a   :  { %v9265_v37 = vrot.slane %v9264_v51, 2  ;;  %v9253_v61 = vrot.slane %v9252_v12, 1  ;;  %v7213_v55 = vmax.f32 %v7197_v7, 0.0  ;;  %v21363_v21 = vrot.slane %v5995_v16, %v18751_v25 }
 0x25b   :  { %v9245_v35 = vadd.f32 %v9244_v41, %v9243_v3  ;;  %v9257_v46 = vadd.f32 %v9256_v56, %v9255_v6  ;;  %v21366_v57 = vrot.slane %v6002_v32, %v18751_v25  ;;  %v21370_v3 = vrot.slane %v6003_v5, %v18751_v25  ;;  %v7103_v6 = vpop.permute.xlu0 %7102 }
 0x25c   :  { %v9266_v10 = vadd.f32 %v9265_v37, %v9264_v51  ;;  %27342 = vst [vmem:[#allocation112_spill] sm:$0xff] %v21363_v21  ;;  %v9276_v41 = vsel %vm698_vm0, %v7213_v55, 0.0  ;;  %v21373_v45 = vrot.slane %v6004_v60, %v18751_v25  ;;  %v7157_v51 = vmul.f32 %v21265_v38, %v7103_v6  ;;  %v18385_v37 = vpop.f32.mrf.mxu0 }
 0x25d   :  { %v9246_v14 = vrot.slane %v9245_v35, 1  ;;  %27343 = vst [vmem:[#allocation113_spill] sm:$0xff] %v21366_v57  ;;  %v9258_v59 = vrot.slane %v9257_v46, 2  ;;  %27344 = vst [vmem:[#allocation114_spill] sm:$0xff] %v21370_v3  ;;  %v9277_v56 = vrot.slane %v9276_v41, 4  ;;  %v8347_v32 = vcombine.low %v21363_v21, %v21370_v3 }
 0x25e   :  { %27345 = vst [vmem:[#allocation115_spill] sm:$0xff] %v21373_v45  ;;  %v9267_v13 = vrot.slane %v9266_v10, 1  ;;  %v18291_v7 = vcombine.high %v21363_v21, %v21370_v3  ;;  %v8394_v5 = vcombine.low %v21366_v57, %v21373_v45  ;;  %v21384_v55 = vrot.slane %v8396_v36, %v18751_v25 }
 0x25f   :  { %v9247_v4 = vadd.f32 %v9246_v14, %v9245_v35  ;;  %v9259_v16 = vadd.f32 %v9258_v59, %v9257_v46  ;;  %v9278_v35 = vadd.f32 %v9277_v56, %v9276_v41  ;;  %v18292_v14 = vcombine.high %v21366_v57, %v21373_v45 }
 0x260   :  { %v21389_v59 = vrot.slane %v8488_v53, %v18751_v25  ;;  %v8375_v6 = vrot.slane %v8347_v32, %v18751_v25  ;;  %v8410_v19 = vrot.slane %v8394_v5, %v18751_v25  ;;  %v21393_v9 = vadd.f32 %v9253_v61, %v9252_v12  ;;  %v4727_v32 = vpop.f32.mrf.mxu0 }
 0x261   :  { %v9353_v60 = vadd.f32 %v9247_v4, %v21158_v31  ;;  %v9260_v46 = vrot.slane %v9259_v16, 1  ;;  %v9279_v3 = vrot.slane %v9278_v35, 2  ;;  %v21396_v31 = vrot.slane %v18292_v14, %v18751_v25 }
 0x262   :  { %27346 = vst [vmem:[#allocation116_spill] sm:$0xff] %v21393_v9  ;;  %v7173_v36 = vadd.f32 %v7157_v51, %v21148_v23  ;;  %v21401_v4 = vadd.f32 %v9267_v13, %v9266_v10  ;;  %v8403_v56 = vrot.slane %v18291_v7, %v18751_v25  ;;  %v12816_v53 = vrot.slane %v21285_v18, %v18751_v25  ;;  %v7115_v23 = vpop.permute.xlu1 %7114  ;;  %v21416_v13 = vld [vmem:[%s26220_s7] ss:$0 sm:$0xff]  ;;  %v7111_v9 = vpop.permute.xlu0 %7110 }
 0x263   :  { %v21399_v41 = vmul.f32 0.04, %v9353_v60  ;;  %v21406_v45 = vadd.f32 %v9260_v46, %v9259_v16  ;;  %v8377_v12 = vcombine.low %v21238_v47, %v8375_v6  ;;  %v9593_v5 = vmul.f32 %v20710_v43, %v20888_v33 }
 0x264   :  { %27348 = vst [vmem:[#allocation118_spill] sm:$0xff] %v21401_v4  ;;  %v7196_v61 = vadd.f32 %v21290_v27, %v7173_v36  ;;  %v9280_v51 = vadd.f32 %v9279_v3, %v9278_v35  ;;  %v8425_v60 = vcombine.low %v8403_v56, %v8410_v19  ;;  %v12823_v10 = vrot.slane %v12816_v53, %v18751_v25 }
 0x265   :  { %27347 = vst [vmem:[#allocation117_spill] sm:$0xff] %v21399_v41  ;;  %27349 = vst [vmem:[#allocation119_spill] sm:$0xff] %v21406_v45  ;;  %v4733_v18 = vadd.f32 %v21416_v13, %v18385_v37  ;;  %v10225_v7 = vrot.slane %v9593_v5, %v18751_v25  ;;  %v4728_v14 = vadd.f32 %v21416_v13, %v4727_v32 }
 0x266   :  { %v7212_v16 = vmax.f32 %v7196_v61, 0.0  ;;  %v14558_v3 = vsel %vm9067_vm1, %v12823_v10, 0.0  ;;  %v7160_v46 = vmul.f32 %v21265_v38, %v7115_v23  ;;  %v21427_v6 = vrot.slane %v8377_v12, %v18751_v25 }
 0x267   :  { %v5155_v19 = vcombine.high %v4733_v18, %v4733_v18  ;;  %v5162_v35 = vrot.slane %v4733_v18, %v18751_v25  ;;  %14559 = vadd.xlane.f32.xlu1 %v14558_v3  ;;  %v10232_v36 = vrot.slane %v10225_v7, %v18751_v25  ;;  %v5106_v56 = vcombine.high %v4728_v14, %v4728_v14 }
 0x268   :  { %v9269_v37 = vsel %vm698_vm0, %v7212_v16, 0.0  ;;  %v9281_v53 = vrot.slane %v9280_v51, 1  ;;  %v5113_v18 = vrot.slane %v4728_v14, %v18751_v25  ;;  %v7176_v12 = vadd.f32 %v7160_v46, %v21152_v50 }
 0x269   :  { %v9270_v61 = vrot.slane %v9269_v37, 4  ;;  %v5169_v32 = vrot.slane %v5155_v19, %v18751_v25  ;;  %v5170_v5 = vcombine.high %v5162_v35, %v5162_v35  ;;  %v11967_v10 = vsel %vm9067_vm1, %v10232_v36, 0.0 }
 0x26a   :  { %v5120_v23 = vrot.slane %v5106_v56, %v18751_v25  ;;  %11968 = vadd.xlane.f32.xlu0 %v11967_v10  ;;  %v21437_v3 = vrot.slane %v5162_v35, %v18751_v25  ;;  %v5121_v33 = vcombine.high %v5113_v18, %v5113_v18  ;;  %v21446_v14 = vrot.slane %v5113_v18, %v18751_v25 }
 0x26b   :  { %v9271_v47 = vadd.f32 %v9270_v61, %v9269_v37  ;;  %v5171_v16 = vcombine.high %v5169_v32, %v5169_v32  ;;  %v21440_v7 = vrot.slane %v5170_v5, %v18751_v25  ;;  %v21443_v19 = vrot.slane %v5169_v32, %v18751_v25 }
 0x26c   :  { %27350 = vst [vmem:[#allocation120_spill] sm:$0xff] %v21437_v3  ;;  %v5122_v36 = vcombine.high %v5120_v23, %v5120_v23  ;;  %27353 = vst [vmem:[#allocation123_spill] sm:$0xff] %v21446_v14  ;;  %v21456_v37 = vrot.slane %v5121_v33, %v18751_v25  ;;  %v7388_v32 = vcombine.low %v20920_v22, %v21446_v14 }
 0x26d   :  { %27351 = vst [vmem:[#allocation121_spill] sm:$0xff] %v21440_v7  ;;  %27352 = vst [vmem:[#allocation122_spill] sm:$0xff] %v21443_v19  ;;  %v9272_v56 = vrot.slane %v9271_v47, 2  ;;  %v21449_v50 = vrot.slane %v5171_v16, %v18751_v25  ;;  %v7451_v46 = vcombine.low %v21437_v3, %v21440_v7  ;;  %v18275_v35 = vcombine.high %v21437_v3, %v21440_v7 }
 0x26e   :  { %27355 = vst [vmem:[#allocation125_spill] sm:$0xff] %v21456_v37  ;;  %v21459_v61 = vrot.slane %v5122_v36, %v18751_v25  ;;  %v7199_v5 = vadd.f32 %v21290_v27, %v7176_v12  ;;  %v21465_v10 = vrot.slane %v8425_v60, %v18751_v25  ;;  %v21470_v57 = vrot.slane %v5120_v23, %v18751_v25 }
 0x26f   :  { %27354 = vst [vmem:[#allocation124_spill] sm:$0xff] %v21449_v50  ;;  %v9273_v18 = vadd.f32 %v9272_v56, %v9271_v47  ;;  %v7498_v16 = vcombine.low %v21443_v19, %v21449_v50  ;;  %v21472_v33 = vadd.f32 %v9281_v53, %v9280_v51  ;;  %v7416_v36 = vrot.slane %v7388_v32, %v18751_v25 }
 0x270   :  { %27356 = vst [vmem:[#allocation126_spill] sm:$0xff] %v21459_v61  ;;  %27357 = vst [vmem:[#allocation127_spill] sm:$0xff] %v21470_v57  ;;  %v7440_v4 = vrot.slane %v21456_v37, %v18751_v25  ;;  %v18273_v12 = vcombine.high %v21446_v14, %v21456_v37  ;;  %v7479_v60 = vrot.slane %v7451_v46, %v18751_v25 }
 0x271   :  { %27358 = vst [vmem:[#allocation128_spill] sm:$0xff] %v21472_v33  ;;  %v7449_v56 = vcombine.low %v21470_v57, %v21459_v61  ;;  %v18274_v51 = vcombine.high %v21470_v57, %v21459_v61  ;;  %v9274_v53 = vrot.slane %v9273_v18, 1  ;;  %v21487_v23 = vrot.slane %v18275_v35, %v18751_v25 }
 0x272   :  { %v7418_v32 = vcombine.low %v20935_v40, %v7416_v36  ;;  %v7215_v33 = vmax.f32 %v7199_v5, 0.0  ;;  %v21491_v41 = vrot.slane %v7498_v16, %v18751_v25  ;;  %v7458_v46 = vrot.slane %v18273_v12, %v18751_v25 }
 0x273   :  { %v7465_v47 = vrot.slane %v7449_v56, %v18751_v25  ;;  %v7472_v45 = vrot.slane %v18274_v51, %v18751_v25  ;;  %v7447_v7 = vrot.slane %v7440_v4, %v18751_v25  ;;  %v7159_v3 = vmul.f32 %v21265_v38, %v7111_v9 }
 0x274   :  { %v7432_v21 = vrot.slane %v7418_v32, %v18751_v25  ;;  %v9290_v35 = vsel %vm698_vm0, %v7215_v33, 0.0  ;;  %v21502_v16 = vcombine.high %v20813_v17, %v20813_v17  ;;  %v21504_v12 = vadd.f32 %v9274_v53, %v9273_v18 }
 0x275   :  { %v7480_v40 = vcombine.low %v7458_v46, %v7465_v47  ;;  %v7481_v5 = vcombine.low %v7472_v45, %v7479_v60  ;;  %v9291_v36 = vrot.slane %v9290_v35, 4  ;;  %v7175_v51 = vadd.f32 %v7159_v3, %v21155_v24  ;;  %v18415_v3 = vpop.f32.mrf.mxu1  ;;  %v7119_v47 = vpop.permute.xlu0 %7118 }
 0x276   :  { %27359 = vst [vmem:[#allocation129_spill] sm:$0xff] %v21504_v12  ;;  %v7433_v56 = vcombine.low %v20949_v15, %v7432_v21  ;;  %v9590_v4 = vmul.f32 %v20813_v17, %v20577_v34  ;;  %v9591_v45 = vmul.f32 %v20825_v2, %v20763_v0  ;;  %v9592_v18 = vmul.f32 %v21502_v16, %v20783_v39 }
 0x277   :  { %v21511_v33 = vrot.slane %v7480_v40, %v18751_v25  ;;  %v21514_v9 = vrot.slane %v7481_v5, %v18751_v25  ;;  %v7198_v15 = vadd.f32 %v21290_v27, %v7175_v51  ;;  %v10170_v24 = vcombine.low %v20787_v42, %v20817_v26 }
 0x278   :  { %v9077_v60 = vsel %vm698_vm0, %v7433_v56, 0.0  ;;  %v10171_v21 = vcombine.low %v20801_v29, %v20830_v49  ;;  %v9079_v53 = vsel %vm9067_vm1, %v7447_v7, 0.0  ;;  %v9292_v32 = vadd.f32 %v9291_v36, %v9290_v35  ;;  %v27360_v36 = vld [vmem:[#allocation29_spill] sm:$0xff] }
 0x279   :  { %v10172_v46 = vcombine.low %v20846_v20, %v9590_v4  ;;  %v7214_v40 = vmax.f32 %v7198_v15, 0.0  ;;  %v10173_v5 = vcombine.low %v9591_v45, %v9592_v18  ;;  %v10180_v56 = vrot.slane %v10170_v24, %v18751_v25 }
 0x27a   :  { %v10187_v51 = vrot.slane %v10171_v21, %v18751_v25  ;;  %v9078_v42 = vadd.f32 %v9077_v60, %v21050_v28  ;;  %v4833_v49 = vadd.f32 %v21416_v13, %v18415_v3  ;;  %v27361_v4 = vcombine.low %v20909_v58, %v27360_v36 }
 0x27b   :  { %v10194_v29 = vrot.slane %v10172_v46, %v18751_v25  ;;  %v9283_v7 = vsel %vm698_vm0, %v7214_v40, 0.0  ;;  %v10201_v20 = vrot.slane %v10173_v5, %v18751_v25  ;;  %v27362_v28 = vcombine.low %v21141_v52, %v21144_v8  ;;  %v27363_v46 = vld [vmem:[#allocation59_spill] sm:$0xff]  ;;  %v27365_v8 = vld [vmem:[#allocation86_spill] sm:$0xff] }
 0x27c   :  { %v10202_v35 = vcombine.low %v10180_v56, %v10187_v51  ;;  %v8167_v45 = vrot.slane %v27361_v4, %v18751_v25  ;;  %v9284_v18 = vrot.slane %v9283_v7, 4  ;;  %v6135_v15 = vcombine.high %v4833_v49, %v4833_v49 }
 0x27d   :  { %v6142_v24 = vrot.slane %v4833_v49, %v18751_v25  ;;  %v8216_v60 = vrot.slane %v27362_v28, %v18751_v25  ;;  %v9293_v21 = vrot.slane %v9292_v32, 2  ;;  %v10203_v3 = vcombine.low %v10194_v29, %v10201_v20 }
 0x27e   :  { %v8168_v40 = vcombine.low %v27363_v46, %v8167_v45  ;;  %v7161_v5 = vmul.f32 %v21265_v38, %v7119_v47  ;;  %v9285_v56 = vadd.f32 %v9284_v18, %v9283_v7  ;;  %v6149_v51 = vrot.slane %v6135_v15, %v18751_v25 }
 0x27f   :  { %v6150_v58 = vcombine.high %v6142_v24, %v6142_v24  ;;  %v21552_v36 = vrot.slane %v6142_v24, %v18751_v25  ;;  %v10210_v49 = vrot.slane %v10202_v35, %v18751_v25  ;;  %v10217_v4 = vrot.slane %v10203_v3, %v18751_v25 }
 0x280   :  { %v8217_v52 = vcombine.low %v21172_v1, %v8216_v60  ;;  %v7177_v28 = vadd.f32 %v7161_v5, %v27365_v8  ;;  %v9286_v29 = vrot.slane %v9285_v56, 2  ;;  %v6151_v20 = vcombine.high %v6149_v51, %v6149_v51  ;;  %v27376_v8 = vld [vmem:[#allocation78_spill] sm:$0xff] }
 0x281   :  { %27364 = vst [vmem:[#allocation29_spill] sm:$0xff] %v21552_v36  ;;  %v21559_v45 = vrot.slane %v6150_v58, %v18751_v25  ;;  %v9153_v47 = vsel %vm698_vm0, %v8168_v40, 0.0  ;;  %v10218_v7 = vcombine.low %v10210_v49, %v10217_v4  ;;  %v21564_v18 = vcombine.high %v21552_v36, %v21552_v36  ;;  %v27372_v58 = vld [vmem:[#allocation6_spill] sm:$0xff]  ;;  %v4827_v4 = vpop.f32.mrf.mxu1 }
 0x282   :  { %v9154_v35 = vsel %vm698_vm0, %v8217_v52, 0.0  ;;  %v7200_v15 = vadd.f32 %v21290_v27, %v7177_v28  ;;  %v21568_v24 = vadd.f32 %v9079_v53, %v9078_v42  ;;  %v21571_v1 = vrot.slane %v6149_v51, %v18751_v25 }
 0x283   :  { %27366 = vst [vmem:[#allocation59_spill] sm:$0xff] %v21559_v45  ;;  %27367 = vst [vmem:[#allocation86_spill] sm:$0xff] %v21564_v18  ;;  %v21574_v60 = vrot.slane %v6151_v20, %v18751_v25  ;;  %v9155_v3 = vadd.f32 %v9154_v35, %v9153_v47  ;;  %v21576_v46 = vadd.f32 %v9286_v29, %v9285_v56  ;;  %v11964_v40 = vsel %vm698_vm0, %v10218_v7, 0.0 }
 0x284   :  { %27368 = vst [vmem:[#allocation130_spill] sm:$0xff] %v21568_v24  ;;  %27369 = vst [vmem:[#allocation131_spill] sm:$0xff] %v21571_v1  ;;  %v7216_v5 = vmax.f32 %v7200_v15, 0.0  ;;  %v21581_v49 = vcombine.high %v27372_v58, %v27372_v58  ;;  %v21583_v52 = vadd.f32 %v9293_v21, %v9292_v32  ;;  %11965 = vadd.xlane.f32.xlu1 %v11964_v40 }
 0x285   :  { %27370 = vst [vmem:[#allocation132_spill] sm:$0xff] %v21574_v60  ;;  %27371 = vst [vmem:[#allocation133_spill] sm:$0xff] %v21576_v46  ;;  %v21587_v53 = vcombine.high %v21559_v45, %v21559_v45  ;;  %v8568_v42 = vcombine.low %v21571_v1, %v21574_v60  ;;  %v18293_v56 = vcombine.high %v21571_v1, %v21574_v60 }
 0x286   :  { %27373 = vst [vmem:[#allocation134_spill] sm:$0xff] %v21581_v49  ;;  %27374 = vst [vmem:[#allocation135_spill] sm:$0xff] %v21583_v52  ;;  %v9157_v28 = vadd.f32 %v27376_v8, %v9155_v3  ;;  %v9297_v29 = vsel %vm698_vm0, %v7216_v5, 0.0  ;;  %v9695_v32 = vmul.f32 %v20710_v43, %v21581_v49  ;;  %v4828_v7 = vadd.f32 %v21416_v13, %v4827_v4  ;;  %v7123_v5 = vpop.permute.xlu1 %7122 }
 0x287   :  { %27375 = vst [vmem:[#allocation136_spill] sm:$0xff] %v21587_v53  ;;  %v21600_v21 = vrot.slane %v8568_v42, %v18751_v25  ;;  %v21603_v20 = vrot.slane %v18293_v56, %v18751_v25  ;;  %v9298_v47 = vrot.slane %v9297_v29, 4  ;;  %v12286_v3 = vmul.f32 %v20707_v62, %v21581_v49 }
 0x288   :  { %v9158_v15 = vrot.slane %v9157_v28, 4  ;;  %v10897_v40 = vrot.slane %v9695_v32, %v18751_v25  ;;  %v6086_v26 = vcombine.high %v4828_v7, %v4828_v7  ;;  %v6093_v56 = vrot.slane %v4828_v7, %v18751_v25 }
 0x289   :  { %v9299_v42 = vadd.f32 %v9298_v47, %v9297_v29  ;;  %v8600_v51 = vcombine.low %v21600_v21, %v21603_v20  ;;  %v13488_v60 = vrot.slane %v12286_v3, %v18751_v25  ;;  %v7162_v12 = vmul.f32 %v21265_v38, %v7123_v5 }
 0x28a   :  { %v9159_v4 = vadd.f32 %v9158_v15, %v9157_v28  ;;  %v10904_v35 = vrot.slane %v10897_v40, %v18751_v25  ;;  %v6100_v1 = vrot.slane %v6086_v26, %v18751_v25  ;;  %v6101_v58 = vcombine.high %v6093_v56, %v6093_v56 }
 0x28b   :  { %v9300_v32 = vrot.slane %v9299_v42, 2  ;;  %v21621_v47 = vrot.slane %v6093_v56, %v18751_v25  ;;  %v13495_v7 = vrot.slane %v13488_v60, %v18751_v25 }
 0x28c   :  { %v9160_v52 = vrot.slane %v9159_v4, 2  ;;  %v12021_v29 = vsel %vm9067_vm1, %v10904_v35, 0.0  ;;  %v6102_v28 = vcombine.high %v6100_v1, %v6100_v1  ;;  %v21625_v20 = vrot.slane %v6100_v1, %v18751_v25 }
 0x28d   :  { %27377 = vst [vmem:[#allocation78_spill] sm:$0xff] %v21621_v47  ;;  %v9301_v21 = vadd.f32 %v9300_v32, %v9299_v42  ;;  %12022 = vadd.xlane.f32.xlu1 %v12021_v29  ;;  %v21628_v15 = vrot.slane %v6101_v58, %v18751_v25  ;;  %v21632_v40 = vcombine.high %v21621_v47, %v21621_v47  ;;  %v14612_v3 = vsel %vm9067_vm1, %v13495_v7, 0.0 }
 0x28e   :  { %27378 = vst [vmem:[#allocation137_spill] sm:$0xff] %v21625_v20  ;;  %v9161_v26 = vadd.f32 %v9160_v52, %v9159_v4  ;;  %v8458_v35 = vcombine.low %v21345_v44, %v21621_v47  ;;  %v21638_v5 = vrot.slane %v6102_v28, %v18751_v25  ;;  %v21642_v1 = vcombine.high %v21625_v20, %v21625_v20  ;;  %v27384_v4 = vld [vmem:[#allocation83_spill] sm:$0xff] }
 0x28f   :  { %27379 = vst [vmem:[#allocation138_spill] sm:$0xff] %v21628_v15  ;;  %27380 = vst [vmem:[#allocation139_spill] sm:$0xff] %v21632_v40  ;;  %v9302_v60 = vrot.slane %v9301_v21, 1  ;;  %v21646_v58 = vcombine.high %v21628_v15, %v21628_v15  ;;  %v8459_v42 = vcombine.low %v21628_v15, %v21632_v40  ;;  %v7178_v32 = vadd.f32 %v7162_v12, %v27384_v4 }
 0x290   :  { %27381 = vst [vmem:[#allocation140_spill] sm:$0xff] %v21638_v5  ;;  %27382 = vst [vmem:[#allocation141_spill] sm:$0xff] %v21642_v1  ;;  %v9162_v52 = vrot.slane %v9161_v26, 1  ;;  %v8480_v56 = vrot.slane %v8458_v35, %v18751_v25  ;;  %v21654_v7 = vcombine.high %v21638_v5, %v21638_v5  ;;  %v8506_v8 = vcombine.low %v21638_v5, %v21642_v1  ;;  %v27386_v35 = vld [vmem:[#allocation85_spill] sm:$0xff] }
 0x291   :  { %27383 = vst [vmem:[#allocation142_spill] sm:$0xff] %v21646_v58  ;;  %v9303_v29 = vadd.f32 %v9302_v60, %v9301_v21  ;;  %v8505_v28 = vcombine.low %v21646_v58, %v21625_v20  ;;  %14613 = vadd.xlane.f32.xlu1 %v14612_v3  ;;  %v8487_v44 = vrot.slane %v8459_v42, %v18751_v25 }
 0x292   :  { %27385 = vst [vmem:[#allocation83_spill] sm:$0xff] %v21654_v7  ;;  %v9163_v47 = vadd.f32 %v9162_v52, %v9161_v26  ;;  %v7201_v40 = vadd.f32 %v21290_v27, %v7178_v32  ;;  %v27387_v12 = vrot.slane %v27386_v35, %v18751_v25  ;;  %v8507_v60 = vcombine.low %v21654_v7, %v21552_v36 }
 0x293   :  { %v8515_v4 = vrot.slane %v8505_v28, %v18751_v25  ;;  %v8522_v15 = vrot.slane %v8506_v8, %v18751_v25  ;;  %v27388_v3 = vcombine.low %v21118_v54, %v21293_v11  ;;  %v8489_v42 = vcombine.low %v8480_v56, %v8487_v44 }
 0x294   :  { %v8343_v21 = vrot.slane %v27387_v12, %v18751_v25  ;;  %v9361_v52 = vadd.f32 %v9303_v29, %v9163_v47  ;;  %v7217_v32 = vmax.f32 %v7201_v40, 0.0  ;;  %v27389_v1 = vcombine.low %v21314_v48, %v21300_v30  ;;  %v27391_v48 = vld [vmem:[#allocation101_spill] sm:$0xff] }
 0x295   :  { %v9164_v26 = vsel %vm698_vm0, %v27388_v3, 0.0  ;;  %v27390_v36 = vcombine.low %v21559_v45, %v21564_v18  ;;  %v21685_v8 = vrot.slane %v8507_v60, %v18751_v25  ;;  %v8537_v54 = vcombine.low %v8515_v4, %v8522_v15 }
 0x296   :  { %v9165_v12 = vsel %vm698_vm0, %v27389_v1, 0.0  ;;  %v21688_v47 = vrot.slane %v8489_v42, %v18751_v25  ;;  %v9167_v44 = vsel %vm9067_vm1, %v8343_v21, 0.0  ;;  %v9304_v30 = vsel %vm698_vm0, %v7217_v32, 0.0  ;;  %v7127_v1 = vpop.permute.xlu0 %7126 }
 0x297   :  { %v21682_v28 = vrot.slane %v27390_v36, %v18751_v25  ;;  %v9166_v11 = vadd.f32 %v9165_v12, %v9164_v26  ;;  %v8392_v40 = vcombine.low %v27391_v48, %v21427_v6  ;;  %v21695_v56 = vrot.slane %v8600_v51, %v18751_v25  ;;  %v27404_v26 = vld [vmem:[#allocation36_spill] sm:$0xff] }
 0x298   :  { %v21697_v36 = vmul.f32 0.04, %v9361_v52  ;;  %v9305_v60 = vrot.slane %v9304_v30, 4  ;;  %v21702_v4 = vrot.slane %v8537_v54, %v18751_v25  ;;  %v27393_v21 = vcombine.low %v21396_v31, %v21384_v55  ;;  %v27395_v55 = vld [vmem:[#allocation14_spill] sm:$0xff] }
 0x299   :  { %27392 = vst [vmem:[#allocation101_spill] sm:$0xff] %v21695_v56  ;;  %v9168_v29 = vadd.f32 %v9167_v44, %v9166_v11  ;;  %v8538_v15 = vcombine.low %v21685_v8, %v21682_v28  ;;  %v27394_v6 = vrot.slane %v21338_v63, %v18751_v25  ;;  %v7163_v32 = vmul.f32 %v21265_v38, %v7127_v1  ;;  %v27397_v44 = vld [vmem:[#allocation97_spill] sm:$0xff]  ;;  %v27400_v1 = vld [vmem:[#allocation39_spill] sm:$0xff] }
 0x29a   :  { %v8440_v3 = vrot.slane %v27393_v21, %v18751_v25  ;;  %v9306_v42 = vadd.f32 %v9305_v60, %v9304_v30  ;;  %v9175_v28 = vsel %vm698_vm0, %v8392_v40, 0.0  ;;  %v21720_v31 = vcombine.high %v27395_v55, %v27395_v55  ;;  %v27398_v21 = vld [vmem:[#allocation11_spill] sm:$0xff] }
 0x29b   :  { %v8455_v51 = vrot.slane %v27394_v6, %v18751_v25  ;;  %v9169_v52 = vrot.slane %v9168_v29, 4  ;;  %v7179_v48 = vadd.f32 %v7163_v32, %v27397_v44  ;;  %v21725_v6 = vcombine.high %v27398_v21, %v27398_v21  ;;  %v27402_v40 = vld [vmem:[#allocation35_spill] sm:$0xff] }
 0x29c   :  { %v8441_v12 = vcombine.low %v21465_v10, %v8440_v3  ;;  %27396 = vst [vmem:[#allocation143_spill] sm:$0xff] %v21720_v31  ;;  %v9307_v11 = vrot.slane %v9306_v42, 2  ;;  %v21730_v10 = vcombine.high %v27400_v1, %v27400_v1  ;;  %v21734_v60 = vcombine.high %v27402_v40, %v27402_v40 }
 0x29d   :  { %v9178_v8 = vsel %vm9067_vm1, %v8455_v51, 0.0  ;;  %v9170_v54 = vadd.f32 %v9169_v52, %v9168_v29  ;;  %27399 = vst [vmem:[#allocation97_spill] sm:$0xff] %v21725_v6  ;;  %v18455_v29 = vld [vmem:[%s26222_s12 + $0x1] ss:$0 sm:$0xff]  ;;  %v7202_v44 = vadd.f32 %v21290_v27, %v7179_v48  ;;  %v12126_v18 = vcombine.high %v27404_v26, %v27404_v26 }
 0x29e   :  { %v9176_v30 = vsel %vm698_vm0, %v8441_v12, 0.0  ;;  %27401 = vst [vmem:[#allocation144_spill] sm:$0xff] %v21730_v10  ;;  %27403 = vst [vmem:[#allocation145_spill] sm:$0xff] %v21734_v60  ;;  %v12111_v3 = vcombine.high %v18455_v29, %v18455_v29  ;;  %v9308_v52 = vadd.f32 %v9307_v11, %v9306_v42  ;;  %v21745_v45 = vcombine.high %v20707_v62, %v20707_v62 }
 0x29f   :  { %v9171_v51 = vrot.slane %v9170_v54, 2  ;;  %v9177_v32 = vadd.f32 %v9176_v30, %v9175_v28  ;;  %v12168_v7 = vmul.f32 %v20707_v62, %v27395_v55  ;;  %v7218_v58 = vmax.f32 %v7202_v44, 0.0 }
 0x2a0   :  { %v12125_v12 = vrot.slane %v12111_v3, %v18751_v25  ;;  %v9309_v20 = vrot.slane %v9308_v52, 1  ;;  %v21753_v11 = vrot.slane %v12126_v18, %v18751_v25  ;;  %v12170_v26 = vmul.f32 %v21745_v45, %v21720_v31 }
 0x2a1   :  { %v9172_v5 = vadd.f32 %v9171_v51, %v9170_v54  ;;  %v9179_v29 = vadd.f32 %v9178_v8, %v9177_v32  ;;  %v9311_v46 = vsel %vm698_vm0, %v7218_v58, 0.0  ;;  %v21786_v35 = vrot.slane %v8538_v15, %v18751_v25 }
 0x2a2   :  { %v12127_v42 = vcombine.high %v12125_v12, %v12125_v12  ;;  %v21750_v28 = vrot.slane %v12125_v12, %v18751_v25  ;;  %v9310_v30 = vadd.f32 %v9309_v20, %v9308_v52  ;;  %v9312_v54 = vrot.slane %v9311_v46, 4 }
 0x2a3   :  { %v9173_v48 = vrot.slane %v9172_v5, 1  ;;  %v9180_v3 = vrot.slane %v9179_v29, 4  ;;  %v21767_v18 = vcombine.high %v21753_v11, %v21753_v11  ;;  %v12169_v20 = vmul.f32 %v21753_v11, %v27400_v1 }
 0x2a4   :  { %v21759_v8 = vrot.slane %v12127_v42, %v18751_v25  ;;  %v21763_v51 = vcombine.high %v21750_v28, %v21750_v28  ;;  %v12172_v58 = vmul.f32 %v21750_v28, %v27398_v21  ;;  %v9313_v52 = vadd.f32 %v9312_v54, %v9311_v46 }
 0x2a5   :  { %v9174_v32 = vadd.f32 %v9173_v48, %v9172_v5  ;;  %v9181_v44 = vadd.f32 %v9180_v3, %v9179_v29  ;;  %v12171_v42 = vmul.f32 %v21767_v18, %v21730_v10  ;;  %v12712_v48 = vcombine.low %v12168_v7, %v12169_v20 }
 0x2a6   :  { %v21775_v12 = vcombine.high %v21759_v8, %v21759_v8  ;;  %v12173_v24 = vmul.f32 %v21759_v8, %v27402_v40  ;;  %v12174_v29 = vmul.f32 %v21763_v51, %v21725_v6  ;;  %v9314_v3 = vrot.slane %v9313_v52, 2 }
 0x2a7   :  { %v9362_v49 = vadd.f32 %v9310_v30, %v9174_v32  ;;  %v9182_v5 = vrot.slane %v9181_v44, 2  ;;  %v12713_v54 = vcombine.low %v12170_v26, %v12171_v42  ;;  %v9610_v56 = vmul.f32 %v20710_v43, %v21456_v37  ;;  %v18388_v30 = vpop.f32.mrf.mxu0  ;;  %v27405_v26 = vld [vmem:[#allocation67_spill] sm:$0xff] }
 0x2a8   :  { %v12175_v46 = vmul.f32 %v21775_v12, %v21734_v60  ;;  %v12714_v63 = vcombine.low %v12172_v58, %v12173_v24  ;;  %v9315_v32 = vadd.f32 %v9314_v3, %v9313_v52  ;;  %v12722_v6 = vrot.slane %v12712_v48, %v18751_v25 }
 0x2a9   :  { %v9378_v61 = vmul.f32 0.04, %v9362_v49  ;;  %v9183_v57 = vadd.f32 %v9182_v5, %v9181_v44  ;;  %v12729_v7 = vrot.slane %v12713_v54, %v18751_v25  ;;  %v10337_v24 = vrot.slane %v9610_v56, %v18751_v25 }
 0x2aa   :  { %v12715_v40 = vcombine.low %v12174_v29, %v12175_v46  ;;  %v12736_v60 = vrot.slane %v12714_v63, %v18751_v25  ;;  %v9729_v15 = vmul.f32 %v20710_v43, %v27405_v26  ;;  %v9316_v49 = vrot.slane %v9315_v32, 1 }
 0x2ab   :  { %v9184_v20 = vrot.slane %v9183_v57, 1  ;;  %v12744_v58 = vcombine.low %v12722_v6, %v12729_v7  ;;  %v4743_v42 = vadd.f32 %v21416_v13, %v18388_v30  ;;  %v10344_v29 = vrot.slane %v10337_v24, %v18751_v25  ;;  %v27407_v30 = vld [vmem:[#allocation40_spill] sm:$0xff] }
 0x2ac   :  { %v12743_v44 = vrot.slane %v12715_v40, %v18751_v25  ;;  %v11121_v48 = vrot.slane %v9729_v15, %v18751_v25  ;;  %v21804_v63 = vsel %vm9412_vm2, %v9378_v61, %v21697_v36  ;;  %v9317_v56 = vadd.f32 %v9316_v49, %v9315_v32  ;;  %v27408_v36 = vld [vmem:[#allocation41_spill] sm:$0xff]  ;;  %v27410_v49 = vld [vmem:[#allocation52_spill] sm:$0xff] }
 0x2ad   :  { %v9185_v5 = vadd.f32 %v9184_v20, %v9183_v57  ;;  %27406 = vst [vmem:[#allocation36_spill] sm:$0xff] %v21804_v63  ;;  %v5253_v46 = vcombine.high %v4743_v42, %v4743_v42  ;;  %v12752_v40 = vrot.slane %v12744_v58, %v18751_v25  ;;  %v11976_v6 = vsel %vm9067_vm1, %v10344_v29, 0.0 }
 0x2ae   :  { %v12745_v3 = vcombine.low %v12736_v60, %v12743_v44  ;;  %v5260_v54 = vrot.slane %v4743_v42, %v18751_v25  ;;  %v12176_v57 = vmul.f32 %v20707_v62, %v27407_v30  ;;  %11977 = vadd.xlane.f32.xlu0 %v11976_v6  ;;  %v11128_v20 = vrot.slane %v11121_v48, %v18751_v25 }
 0x2af   :  { %v5267_v61 = vrot.slane %v5253_v46, %v18751_v25  ;;  %v12177_v60 = vmul.f32 %v21753_v11, %v27408_v36  ;;  %v9363_v32 = vadd.f32 %v9317_v56, %v9185_v5  ;;  %v12178_v44 = vmul.f32 %v21745_v45, %v27410_v49  ;;  %v27415_v56 = vld [vmem:[#allocation43_spill] sm:$0xff] }
 0x2b0   :  { %v12759_v7 = vrot.slane %v12745_v3, %v18751_v25  ;;  %v5268_v24 = vcombine.high %v5260_v54, %v5260_v54  ;;  %v21817_v15 = vrot.slane %v5260_v54, %v18751_v25  ;;  %v27412_v3 = vld [vmem:[#allocation49_spill] sm:$0xff]  ;;  %v12180_v6 = vmul.f32 %v21750_v28, %v27415_v56  ;;  %v4737_v56 = vpop.f32.mrf.mxu0 }
 0x2b1   :  { %v5269_v42 = vcombine.high %v5267_v61, %v5267_v61  ;;  %v21822_v29 = vrot.slane %v5267_v61, %v18751_v25  ;;  %v12179_v48 = vmul.f32 %v21767_v18, %v27412_v3  ;;  %v12039_v3 = vsel %vm9067_vm1, %v11128_v20, 0.0 }
 0x2b2   :  { %27409 = vst [vmem:[#allocation146_spill] sm:$0xff] %v21817_v15  ;;  %v12760_v58 = vcombine.low %v12752_v40, %v12759_v7  ;;  %v21827_v46 = vrot.slane %v5268_v24, %v18751_v25  ;;  %v21831_v5 = vcombine.high %v21817_v15, %v21817_v15  ;;  %v12181_v40 = vmul.f32 %v21759_v8, %v20577_v34 }
 0x2b3   :  { %27411 = vst [vmem:[#allocation147_spill] sm:$0xff] %v21822_v29  ;;  %v21839_v7 = vrot.slane %v5269_v42, %v18751_v25  ;;  %v21843_v61 = vcombine.high %v21822_v29, %v21822_v29  ;;  %v12182_v24 = vmul.f32 %v21763_v51, %v20763_v0  ;;  %v12761_v42 = vcombine.low %v12176_v57, %v12177_v60 }
 0x2b4   :  { %27413 = vst [vmem:[#allocation148_spill] sm:$0xff] %v21827_v46  ;;  %27414 = vst [vmem:[#allocation149_spill] sm:$0xff] %v21831_v5  ;;  %v14552_v54 = vsel %vm698_vm0, %v12760_v58, 0.0  ;;  %v21849_v52 = vcombine.high %v21827_v46, %v21827_v46  ;;  %v7563_v34 = vcombine.low %v21827_v46, %v21831_v5  ;;  %v12183_v58 = vmul.f32 %v21775_v12, %v20783_v39 }
 0x2b5   :  { %27416 = vst [vmem:[#allocation150_spill] sm:$0xff] %v21839_v7  ;;  %27417 = vst [vmem:[#allocation151_spill] sm:$0xff] %v21843_v61  ;;  %14553 = vadd.xlane.f32.xlu1 %v14552_v54  ;;  %v7610_v49 = vcombine.low %v21839_v7, %v21843_v61  ;;  %v12762_v36 = vcombine.low %v12178_v44, %v12179_v48  ;;  %v12763_v0 = vcombine.low %v12180_v6, %v12181_v40  ;;  %v7131_v48 = vpop.permute.xlu1 %7130 }
 0x2b6   :  { %27418 = vst [vmem:[#allocation152_spill] sm:$0xff] %v21849_v52  ;;  %v21858_v54 = vmul.f32 0.04, %v9363_v32  ;;  %v21862_v30 = vcombine.high %v21839_v7, %v21839_v7  ;;  %v7609_v63 = vcombine.low %v21849_v52, %v21822_v29  ;;  %v12764_v5 = vcombine.low %v12182_v24, %v12183_v58 }
 0x2b7   :  { %v21867_v57 = vrot.slane %v7563_v34, %v18751_v25  ;;  %v12771_v20 = vrot.slane %v12761_v42, %v18751_v25  ;;  %v12778_v60 = vrot.slane %v12762_v36, %v18751_v25  ;;  %v4738_v44 = vadd.f32 %v21416_v13, %v4737_v56 }
 0x2b8   :  { %27419 = vst [vmem:[#allocation153_spill] sm:$0xff] %v21858_v54  ;;  %27420 = vst [vmem:[#allocation154_spill] sm:$0xff] %v21862_v30  ;;  %v21873_v32 = vrot.slane %v7609_v63, %v18751_v25  ;;  %v21876_v6 = vrot.slane %v7610_v49, %v18751_v25  ;;  %v12785_v40 = vrot.slane %v12763_v0, %v18751_v25 }
 0x2b9   :  { %12040 = vadd.xlane.f32.xlu1 %v12039_v3  ;;  %v12792_v24 = vrot.slane %v12764_v5, %v18751_v25  ;;  %v12793_v34 = vcombine.low %v12771_v20, %v12778_v60  ;;  %v5204_v58 = vcombine.high %v4738_v44, %v4738_v44  ;;  %v5211_v42 = vrot.slane %v4738_v44, %v18751_v25 }
 0x2ba   :  { %v27421_v36 = vcombine.high %v21443_v19, %v21449_v50  ;;  %v27422_v63 = vcombine.low %v21487_v23, %v21491_v41  ;;  %v7164_v0 = vmul.f32 %v21265_v38, %v7131_v48  ;;  %v27423_v5 = vrot.slane %v21587_v53, %v18751_v25  ;;  %v27426_v23 = vld [vmem:[#allocation93_spill] sm:$0xff] }
 0x2bb   :  { %v12794_v3 = vcombine.low %v12785_v40, %v12792_v24  ;;  %v12801_v60 = vrot.slane %v12793_v34, %v18751_v25  ;;  %v5218_v44 = vrot.slane %v5204_v58, %v18751_v25  ;;  %v5219_v39 = vcombine.high %v5211_v42, %v5211_v42 }
 0x2bc   :  { %v7521_v56 = vrot.slane %v27421_v36, %v18751_v25  ;;  %v21889_v49 = vrot.slane %v27422_v63, %v18751_v25  ;;  %v8567_v20 = vrot.slane %v27423_v5, %v18751_v25  ;;  %v27424_v40 = vcombine.low %v21511_v33, %v21514_v9 }
 0x2bd   :  { %v12808_v41 = vrot.slane %v12794_v3, %v18751_v25  ;;  %v21906_v38 = vrot.slane %v5211_v42, %v18751_v25  ;;  %v7180_v48 = vadd.f32 %v7164_v0, %v27426_v23  ;;  %v27427_v36 = vcombine.low %v21389_v59, %v21688_v47 }
 0x2be   :  { %v21902_v24 = vsel %vm698_vm0, %v27424_v40, 0.0  ;;  %v5220_v58 = vcombine.high %v5218_v44, %v5218_v44  ;;  %v21914_v63 = vrot.slane %v5218_v44, %v18751_v25  ;;  %v21917_v33 = vrot.slane %v5219_v39, %v18751_v25 }
 0x2bf   :  { %27425 = vst [vmem:[#allocation155_spill] sm:$0xff] %v21906_v38  ;;  %v9186_v34 = vsel %vm698_vm0, %v27427_v36, 0.0  ;;  %v27430_v9 = vcombine.low %v21702_v4, %v21786_v35  ;;  %v12809_v3 = vcombine.low %v12801_v60, %v12808_v41  ;;  %v7203_v0 = vadd.f32 %v21290_v27, %v7180_v48  ;;  %v7135_v4 = vpop.permute.xlu0 %7134 }
 0x2c0   :  { %27428 = vst [vmem:[#allocation93_spill] sm:$0xff] %v21914_v63  ;;  %27429 = vst [vmem:[#allocation156_spill] sm:$0xff] %v21917_v33  ;;  %v9189_v59 = vsel %vm9067_vm1, %v8567_v20, 0.0  ;;  %v21926_v47 = vrot.slane %v5220_v58, %v18751_v25  ;;  %v21930_v44 = vcombine.high %v21914_v63, %v21914_v63  ;;  %v21934_v39 = vcombine.high %v21917_v33, %v21917_v33 }
 0x2c1   :  { %v9187_v42 = vsel %vm698_vm0, %v27430_v9, 0.0  ;;  %v7500_v35 = vcombine.low %v21906_v38, %v21917_v33  ;;  %v14555_v27 = vsel %vm698_vm0, %v12809_v3, 0.0  ;;  %v7219_v60 = vmax.f32 %v7203_v0, 0.0 }
 0x2c2   :  { %v9188_v5 = vadd.f32 %v9187_v42, %v9186_v34  ;;  %27431 = vst [vmem:[#allocation157_spill] sm:$0xff] %v21926_v47  ;;  %27432 = vst [vmem:[#allocation158_spill] sm:$0xff] %v21930_v44  ;;  %v12320_v20 = vmul.f32 %v20707_v62, %v27405_v26  ;;  %14556 = vadd.xlane.f32.xlu0 %v14555_v27  ;;  %v21943_v41 = vcombine.high %v21926_v47, %v21926_v47  ;;  %v21955_v42 = vld [vmem:[%s26221_s8 + $0x2] ss:$0 sm:$0xff] }
 0x2c3   :  { %27433 = vst [vmem:[#allocation159_spill] sm:$0xff] %v21934_v39  ;;  %v7528_v23 = vrot.slane %v7500_v35, %v18751_v25  ;;  %v7560_v48 = vcombine.low %v21934_v39, %v21914_v63  ;;  %v7561_v36 = vcombine.low %v21926_v47, %v21930_v44  ;;  %v9318_v58 = vsel %vm698_vm0, %v7219_v60, 0.0  ;;  %v27456_v44 = vld [vmem:[#allocation26_spill] sm:$0xff] }
 0x2c4   :  { %v9190_v40 = vadd.f32 %v9189_v59, %v9188_v5  ;;  %27434 = vst [vmem:[#allocation160_spill] sm:$0xff] %v21943_v41  ;;  %v13712_v9 = vrot.slane %v12320_v20, %v18751_v25  ;;  %v7165_v3 = vmul.f32 %v21955_v42, %v7135_v4  ;;  %v7562_v5 = vcombine.low %v21943_v41, %v21817_v15  ;;  %v27435_v20 = vld [vmem:[#allocation100_spill] sm:$0xff]  ;;  %v7143_v41 = vpop.permute.xlu0 %7142 }
 0x2c5   :  { %v7530_v0 = vcombine.low %v7521_v56, %v7528_v23  ;;  %v7570_v59 = vrot.slane %v7560_v48, %v18751_v25  ;;  %v7577_v35 = vrot.slane %v7561_v36, %v18751_v25  ;;  %v9319_v26 = vrot.slane %v9318_v58, 4  ;;  %v18418_v23 = vpop.f32.mrf.mxu1  ;;  %v21974_v36 = vld [vmem:[%s26223_s9] ss:$0 sm:$0xff] }
 0x2c6   :  { %v9191_v34 = vrot.slane %v9190_v40, 4  ;;  %v13719_v60 = vrot.slane %v13712_v9, %v18751_v25  ;;  %v7181_v54 = vadd.f32 %v7165_v3, %v27435_v20  ;;  %v7641_v53 = vcombine.low %v21873_v32, %v21876_v6  ;;  %v7139_v32 = vpop.permute.xlu1 %7138 }
 0x2c7   :  { %v7544_v61 = vrot.slane %v7530_v0, %v18751_v25  ;;  %v7584_v56 = vrot.slane %v7562_v5, %v18751_v25  ;;  %v12201_v4 = vmul.f32 %v20707_v62, %v21456_v37  ;;  %v9320_v7 = vadd.f32 %v9319_v26, %v9318_v58  ;;  %v4837_v15 = vpop.f32.mrf.mxu1 }
 0x2c8   :  { %v9192_v27 = vadd.f32 %v9191_v34, %v9190_v40  ;;  %v14630_v40 = vsel %vm9067_vm1, %v13719_v60, 0.0  ;;  %v7204_v34 = vadd.f32 %v21974_v36, %v7181_v54  ;;  %v7592_v9 = vcombine.low %v7570_v59, %v7577_v35 }
 0x2c9   :  { %v7545_v6 = vcombine.low %v21889_v49, %v7544_v61  ;;  %v7593_v3 = vcombine.low %v7584_v56, %v21867_v57  ;;  %14631 = vadd.xlane.f32.xlu1 %v14630_v40  ;;  %v12928_v0 = vrot.slane %v12201_v4, %v18751_v25  ;;  %v9321_v26 = vrot.slane %v9320_v7, 2 }
 0x2ca   :  { %v9193_v48 = vrot.slane %v9192_v27, 2  ;;  %v7220_v58 = vmax.f32 %v7204_v34, 0.0  ;;  %v4843_v60 = vadd.f32 %v21416_v13, %v18418_v23  ;;  %v21982_v20 = vrot.slane %v7641_v53, %v18751_v25  ;;  %v27438_v34 = vld [vmem:[#allocation99_spill] sm:$0xff] }
 0x2cb   :  { %v21985_v29 = vrot.slane %v7593_v3, %v18751_v25  ;;  %v12935_v54 = vrot.slane %v12928_v0, %v18751_v25  ;;  %v7166_v61 = vmul.f32 %v21955_v42, %v7139_v32  ;;  %v9088_v57 = vsel %vm698_vm0, %v7545_v6, 0.0 }
 0x2cc   :  { %v9194_v5 = vadd.f32 %v9193_v48, %v9192_v27  ;;  %v9322_v59 = vadd.f32 %v9321_v26, %v9320_v7  ;;  %v9325_v35 = vsel %vm698_vm0, %v7220_v58, 0.0  ;;  %v21992_v27 = vrot.slane %v7592_v9, %v18751_v25 }
 0x2cd   :  { %27436 = vst [vmem:[#allocation100_spill] sm:$0xff] %v21985_v29  ;;  %v9326_v56 = vrot.slane %v9325_v35, 4  ;;  %v14567_v53 = vsel %vm9067_vm1, %v12935_v54, 0.0  ;;  %v6233_v4 = vcombine.high %v4843_v60, %v4843_v60  ;;  %v6240_v40 = vrot.slane %v4843_v60, %v18751_v25  ;;  %v27452_v29 = vld [vmem:[#allocation22_spill] sm:$0xff] }
 0x2ce   :  { %v9195_v49 = vrot.slane %v9194_v5, 1  ;;  %27437 = vst [vmem:[#allocation161_spill] sm:$0xff] %v21992_v27  ;;  %v9323_v48 = vrot.slane %v9322_v59, 1  ;;  %14568 = vadd.xlane.f32.xlu0 %v14567_v53  ;;  %v7182_v32 = vadd.f32 %v7166_v61, %v27438_v34  ;;  %v22000_v7 = vadd.f32 %v9088_v57, %v21902_v24  ;;  %v27442_v53 = vld [vmem:[#allocation23_spill] sm:$0xff]  ;;  %v27443_v34 = vld [vmem:[#allocation48_spill] sm:$0xff]  ;;  %v27453_v27 = vld [vmem:[#allocation18_spill] sm:$0xff] }
 0x2cf   :  { %v9327_v3 = vadd.f32 %v9326_v56, %v9325_v35  ;;  %v6247_v9 = vrot.slane %v6233_v4, %v18751_v25  ;;  %v6248_v26 = vcombine.high %v6240_v40, %v6240_v40  ;;  %v9603_v6 = vmul.f32 %v27443_v34, %v27442_v53 }
 0x2d0   :  { %v9196_v23 = vadd.f32 %v9195_v49, %v9194_v5  ;;  %27439 = vst [vmem:[#allocation99_spill] sm:$0xff] %v22000_v7  ;;  %v9324_v0 = vadd.f32 %v9323_v48, %v9322_v59  ;;  %v7205_v58 = vadd.f32 %v21974_v36, %v7182_v32  ;;  %v27440_v5 = vld [vmem:[#allocation28_spill] sm:$0xff]  ;;  %v22012_v57 = vrot.slane %v6240_v40, %v18751_v25 }
 0x2d1   :  { %v9602_v54 = vmul.f32 %v20710_v43, %v27440_v5  ;;  %v9328_v49 = vrot.slane %v9327_v3, 2  ;;  %v6249_v60 = vcombine.high %v6247_v9, %v6247_v9  ;;  %v22007_v61 = vrot.slane %v6247_v9, %v18751_v25 }
 0x2d2   :  { %v9364_v24 = vadd.f32 %v9324_v0, %v9196_v23  ;;  %27444 = vst [vmem:[#allocation48_spill] sm:$0xff] %v22012_v57  ;;  %v22015_v59 = vrot.slane %v6248_v26, %v18751_v25  ;;  %v7221_v35 = vmax.f32 %v7205_v58, 0.0  ;;  %v27448_v0 = vld [vmem:[#allocation33_spill] sm:$0xff]  ;;  %v9605_v7 = vmul.f32 %v27453_v27, %v27452_v29 }
 0x2d3   :  { %27441 = vst [vmem:[#allocation162_spill] sm:$0xff] %v22007_v61  ;;  %v9329_v56 = vadd.f32 %v9328_v49, %v9327_v3  ;;  %v22018_v4 = vrot.slane %v6249_v60, %v18751_v25  ;;  %v22022_v48 = vcombine.high %v22007_v61, %v22007_v61  ;;  %v8672_v32 = vrot.slane %v22007_v61, %v18751_v25  ;;  %v27449_v3 = vld [vmem:[#allocation8_spill] sm:$0xff] }
 0x2d4   :  { %27445 = vst [vmem:[#allocation163_spill] sm:$0xff] %v22015_v59  ;;  %v8619_v23 = vcombine.low %v22012_v57, %v22015_v59  ;;  %v18296_v40 = vcombine.high %v22012_v57, %v22015_v59  ;;  %v9332_v9 = vsel %vm698_vm0, %v7221_v35, 0.0  ;;  %v9604_v26 = vmul.f32 %v27449_v3, %v27448_v0  ;;  %v27454_v57 = vld [vmem:[#allocation38_spill] sm:$0xff]  ;;  %v27455_v35 = vld [vmem:[#allocation15_spill] sm:$0xff] }
 0x2d5   :  { %27446 = vst [vmem:[#allocation164_spill] sm:$0xff] %v22018_v4  ;;  %27447 = vst [vmem:[#allocation165_spill] sm:$0xff] %v22022_v48  ;;  %v22033_v58 = vmul.f32 0.04, %v9364_v24  ;;  %v9330_v49 = vrot.slane %v9329_v56, 1  ;;  %v22037_v60 = vcombine.high %v22018_v4, %v22018_v4  ;;  %v9333_v59 = vrot.slane %v9332_v9, 4 }
 0x2d6   :  { %v8641_v61 = vrot.slane %v8619_v23, %v18751_v25  ;;  %v8648_v52 = vrot.slane %v18296_v40, %v18751_v25  ;;  %v9606_v46 = vmul.f32 %v27455_v35, %v27454_v57  ;;  %v22046_v24 = vrot.slane %v8672_v32, %v18751_v25 }
 0x2d7   :  { %27450 = vst [vmem:[#allocation8_spill] sm:$0xff] %v22033_v58  ;;  %27451 = vst [vmem:[#allocation166_spill] sm:$0xff] %v22037_v60  ;;  %v9607_v47 = vmul.f32 %v20813_v17, %v27456_v44  ;;  %v9608_v23 = vmul.f32 %v20825_v2, %v20920_v22  ;;  %v9334_v40 = vadd.f32 %v9333_v59, %v9332_v9 }
 0x2d8   :  { %v8650_v63 = vcombine.low %v8641_v61, %v8648_v52  ;;  %v9609_v39 = vmul.f32 %v21502_v16, %v21446_v14  ;;  %v10282_v33 = vcombine.low %v9602_v54, %v9603_v6  ;;  %v10283_v50 = vcombine.low %v9604_v26, %v9605_v7 }
 0x2d9   :  { %v10284_v19 = vcombine.low %v9606_v46, %v9607_v47  ;;  %v4838_v32 = vadd.f32 %v21416_v13, %v4837_v15  ;;  %v7167_v37 = vmul.f32 %v21955_v42, %v7143_v41  ;;  %v22058_v60 = vadd.f32 %v9330_v49, %v9329_v56  ;;  %v27459_v15 = vld [vmem:[#allocation103_spill] sm:$0xff] }
 0x2da   :  { %v22061_v58 = vrot.slane %v8650_v63, %v18751_v25  ;;  %v9335_v48 = vrot.slane %v9334_v40, 2  ;;  %v10285_v4 = vcombine.low %v9608_v23, %v9609_v39  ;;  %v10292_v52 = vrot.slane %v10282_v33, %v18751_v25 }
 0x2db   :  { %27457 = vst [vmem:[#allocation18_spill] sm:$0xff] %v22058_v60  ;;  %v10299_v61 = vrot.slane %v10283_v50, %v18751_v25  ;;  %v6184_v59 = vcombine.high %v4838_v32, %v4838_v32  ;;  %v6191_v6 = vrot.slane %v4838_v32, %v18751_v25  ;;  %v10306_v46 = vrot.slane %v10284_v19, %v18751_v25 }
 0x2dc   :  { %27458 = vst [vmem:[#allocation15_spill] sm:$0xff] %v22061_v58  ;;  %v9336_v7 = vadd.f32 %v9335_v48, %v9334_v40  ;;  %v10313_v13 = vrot.slane %v10285_v4, %v18751_v25  ;;  %v7183_v47 = vadd.f32 %v7167_v37, %v27459_v15  ;;  %v9577_v39 = vmul.f32 %v20710_v43, %v27395_v55  ;;  %v27464_v15 = vld [vmem:[#allocation35_spill] sm:$0xff] }
 0x2dd   :  { %v10314_v41 = vcombine.low %v10292_v52, %v10299_v61  ;;  %v6198_v63 = vrot.slane %v6184_v59, %v18751_v25  ;;  %v6199_v54 = vcombine.high %v6191_v6, %v6191_v6  ;;  %v22073_v50 = vrot.slane %v6191_v6, %v18751_v25 }
 0x2de   :  { %v9337_v33 = vrot.slane %v9336_v7, 1  ;;  %v10315_v56 = vcombine.low %v10306_v46, %v10313_v13  ;;  %v7206_v48 = vadd.f32 %v21974_v36, %v7183_v47  ;;  %v9578_v37 = vmul.f32 %v27443_v34, %v27400_v1 }
 0x2df   :  { %27460 = vst [vmem:[#allocation103_spill] sm:$0xff] %v22073_v50  ;;  %v10322_v19 = vrot.slane %v10314_v41, %v18751_v25  ;;  %v6200_v9 = vcombine.high %v6198_v63, %v6198_v63  ;;  %v22078_v4 = vrot.slane %v6199_v54, %v18751_v25  ;;  %v22084_v49 = vrot.slane %v6198_v63, %v18751_v25 }
 0x2e0   :  { %v10329_v26 = vrot.slane %v10315_v56, %v18751_v25  ;;  %v7222_v23 = vmax.f32 %v7206_v48, 0.0  ;;  %v9579_v40 = vmul.f32 %v27449_v3, %v21720_v31  ;;  %v9580_v59 = vmul.f32 %v27453_v27, %v21730_v10 }
 0x2e1   :  { %27461 = vst [vmem:[#allocation167_spill] sm:$0xff] %v22078_v4  ;;  %27462 = vst [vmem:[#allocation168_spill] sm:$0xff] %v22084_v49  ;;  %v22089_v32 = vrot.slane %v6200_v9, %v18751_v25  ;;  %v8570_v52 = vcombine.low %v22073_v50, %v22078_v4  ;;  %v18294_v61 = vcombine.high %v22073_v50, %v22078_v4  ;;  %v27465_v9 = vld [vmem:[#allocation97_spill] sm:$0xff] }
 0x2e2   :  { %v10330_v6 = vcombine.low %v10322_v19, %v10329_v26  ;;  %v9339_v46 = vsel %vm698_vm0, %v7222_v23, 0.0  ;;  %v9581_v13 = vmul.f32 %v27455_v35, %v27398_v21  ;;  %v9582_v47 = vmul.f32 %v20813_v17, %v27464_v15  ;;  %v27466_v23 = vld [vmem:[#allocation145_spill] sm:$0xff]  ;;  %v7147_v15 = vpop.permute.xlu1 %7146 }
 0x2e3   :  { %27463 = vst [vmem:[#allocation169_spill] sm:$0xff] %v22089_v32  ;;  %v8592_v41 = vrot.slane %v8570_v52, %v18751_v25  ;;  %v8599_v63 = vrot.slane %v18294_v61, %v18751_v25  ;;  %v8617_v54 = vcombine.low %v22084_v49, %v22089_v32  ;;  %v18295_v56 = vcombine.high %v22084_v49, %v22089_v32 }
 0x2e4   :  { %v11973_v48 = vsel %vm698_vm0, %v10330_v6, 0.0  ;;  %v9340_v19 = vrot.slane %v9339_v46, 4  ;;  %v9583_v26 = vmul.f32 %v20825_v2, %v27465_v9  ;;  %v9584_v10 = vmul.f32 %v21502_v16, %v27466_v23 }
 0x2e5   :  { %11974 = vadd.xlane.f32.xlu1 %v11973_v48  ;;  %v8601_v52 = vcombine.low %v8592_v41, %v8599_v63  ;;  %v8627_v61 = vrot.slane %v8617_v54, %v18751_v25  ;;  %v8634_v21 = vrot.slane %v18295_v56, %v18751_v25  ;;  %v10121_v31 = vcombine.low %v9577_v39, %v9578_v37  ;;  %v27476_v48 = vld [vmem:[#allocation34_spill] sm:$0xff] }
 0x2e6   :  { %v9341_v1 = vadd.f32 %v9340_v19, %v9339_v46  ;;  %v10122_v55 = vcombine.low %v9579_v40, %v9580_v59  ;;  %v10123_v32 = vcombine.low %v9581_v13, %v9582_v47  ;;  %v10124_v49 = vcombine.low %v9583_v26, %v9584_v10  ;;  %v27470_v10 = vld [vmem:[#allocation102_spill] sm:$0xff]  ;;  %v27471_v59 = vld [vmem:[#allocation32_spill] sm:$0xff]  ;;  %v27472_v13 = vld [vmem:[#allocation19_spill] sm:$0xff] }
 0x2e7   :  { %v22116_v6 = vrot.slane %v8601_v52, %v18751_v25  ;;  %v8649_v4 = vcombine.low %v8627_v61, %v8634_v21  ;;  %v10131_v9 = vrot.slane %v10121_v31, %v18751_v25  ;;  %v7168_v23 = vmul.f32 %v21955_v42, %v7147_v15  ;;  %v27478_v61 = vld [vmem:[#allocation58_spill] sm:$0xff] }
 0x2e8   :  { %v9342_v50 = vrot.slane %v9341_v1, 2  ;;  %v10138_v41 = vrot.slane %v10122_v55, %v18751_v25  ;;  %v10145_v63 = vrot.slane %v10123_v32, %v18751_v25  ;;  %v10152_v54 = vrot.slane %v10124_v49, %v18751_v25 }
 0x2e9   :  { %27467 = vst [vmem:[#allocation170_spill] sm:$0xff] %v22116_v6  ;;  %v22123_v39 = vadd.f32 %v9337_v33, %v9336_v7  ;;  %v22126_v37 = vrot.slane %v8649_v4, %v18751_v25  ;;  %v7184_v40 = vadd.f32 %v7168_v23, %v27470_v10  ;;  %v9594_v21 = vmul.f32 %v20710_v43, %v27471_v59  ;;  %v27474_v4 = vld [vmem:[#allocation57_spill] sm:$0xff]  ;;  %v27477_v23 = vld [vmem:[#allocation56_spill] sm:$0xff] }
 0x2ea   :  { %v22131_v31 = vadd.f32 %v9342_v50, %v9341_v1  ;;  %v10153_v42 = vcombine.low %v10131_v9, %v10138_v41  ;;  %v10154_v46 = vcombine.low %v10145_v63, %v10152_v54  ;;  %v9595_v55 = vmul.f32 %v27443_v34, %v27472_v13  ;;  %v27475_v50 = vld [vmem:[#allocation54_spill] sm:$0xff]  ;;  %v18391_v9 = vpop.f32.mrf.mxu0  ;;  %v27479_v41 = vld [vmem:[#allocation25_spill] sm:$0xff] }
 0x2eb   :  { %27468 = vst [vmem:[#allocation171_spill] sm:$0xff] %v22123_v39  ;;  %27469 = vst [vmem:[#allocation172_spill] sm:$0xff] %v22126_v37  ;;  %v7207_v33 = vadd.f32 %v21974_v36, %v7184_v40  ;;  %v9596_v15 = vmul.f32 %v27449_v3, %v27474_v4  ;;  %v9597_v56 = vmul.f32 %v27453_v27, %v27475_v50 }
 0x2ec   :  { %v10161_v47 = vrot.slane %v10153_v42, %v18751_v25  ;;  %v10168_v1 = vrot.slane %v10154_v46, %v18751_v25  ;;  %v9598_v19 = vmul.f32 %v27455_v35, %v27476_v48  ;;  %v9599_v52 = vmul.f32 %v20813_v17, %v27477_v23 }
 0x2ed   :  { %v7223_v26 = vmax.f32 %v7207_v33, 0.0  ;;  %v9600_v36 = vmul.f32 %v20825_v2, %v27478_v61  ;;  %v9601_v63 = vmul.f32 %v21502_v16, %v27479_v41  ;;  %v9344_v54 = vrot.slane %v22131_v31, 1  ;;  %v22159_v33 = vld [vmem:[%s26220_s7] ss:$0 sm:$0xff] }
 0x2ee   :  { %v10169_v10 = vcombine.low %v10161_v47, %v10168_v1  ;;  %v10233_v40 = vcombine.low %v9594_v21, %v9595_v55  ;;  %v10234_v42 = vcombine.low %v9596_v15, %v9597_v56  ;;  %v10235_v7 = vcombine.low %v9598_v19, %v9599_v52 }
 0x2ef   :  { %v9346_v46 = vsel %vm698_vm0, %v7223_v26, 0.0  ;;  %v10236_v49 = vcombine.low %v9600_v36, %v9601_v63  ;;  %v4753_v39 = vadd.f32 %v22159_v33, %v18391_v9  ;;  %v12185_v9 = vmul.f32 %v20707_v62, %v27471_v59 }
 0x2f0   :  { %v11961_v60 = vsel %vm698_vm0, %v10169_v10, 0.0  ;;  %v9347_v58 = vrot.slane %v9346_v46, 4  ;;  %v10243_v37 = vrot.slane %v10233_v40, %v18751_v25  ;;  %v10250_v47 = vrot.slane %v10234_v42, %v18751_v25 }
 0x2f1   :  { %11962 = vadd.xlane.f32.xlu0 %v11961_v60  ;;  %v10257_v21 = vrot.slane %v10235_v7, %v18751_v25  ;;  %v10264_v55 = vrot.slane %v10236_v49, %v18751_v25  ;;  %v5351_v15 = vcombine.high %v4753_v39, %v4753_v39  ;;  %v5358_v1 = vrot.slane %v4753_v39, %v18751_v25 }
 0x2f2   :  { %v9348_v56 = vadd.f32 %v9347_v58, %v9346_v46  ;;  %v10265_v19 = vcombine.low %v10243_v37, %v10250_v47  ;;  %v12186_v26 = vmul.f32 %v21753_v11, %v27472_v13  ;;  %v12187_v58 = vmul.f32 %v21745_v45, %v27474_v4 }
 0x2f3   :  { %v10266_v52 = vcombine.low %v10257_v21, %v10264_v55  ;;  %v5365_v36 = vrot.slane %v5351_v15, %v18751_v25  ;;  %v5366_v63 = vcombine.high %v5358_v1, %v5358_v1  ;;  %v22174_v60 = vrot.slane %v5358_v1, %v18751_v25 }
 0x2f4   :  { %v9349_v7 = vrot.slane %v9348_v56, 2  ;;  %v10273_v49 = vrot.slane %v10265_v19, %v18751_v25  ;;  %v12188_v39 = vmul.f32 %v21767_v18, %v27475_v50  ;;  %v12189_v47 = vmul.f32 %v21750_v28, %v27476_v48 }
 0x2f5   :  { %27480 = vst [vmem:[#allocation102_spill] sm:$0xff] %v22174_v60  ;;  %v10280_v37 = vrot.slane %v10266_v52, %v18751_v25  ;;  %v5367_v10 = vcombine.high %v5365_v36, %v5365_v36  ;;  %v22183_v40 = vrot.slane %v5365_v36, %v18751_v25  ;;  %v22186_v42 = vrot.slane %v5366_v63, %v18751_v25 }
 0x2f6   :  { %v9350_v46 = vadd.f32 %v9349_v7, %v9348_v56  ;;  %v12190_v21 = vmul.f32 %v21759_v8, %v27477_v23  ;;  %v12191_v55 = vmul.f32 %v21763_v51, %v27478_v61  ;;  %v12192_v36 = vmul.f32 %v21775_v12, %v27479_v41 }
 0x2f7   :  { %27481 = vst [vmem:[#allocation173_spill] sm:$0xff] %v22183_v40  ;;  %27482 = vst [vmem:[#allocation174_spill] sm:$0xff] %v22186_v42  ;;  %v10281_v15 = vcombine.low %v10273_v49, %v10280_v37  ;;  %v22195_v1 = vrot.slane %v5367_v10, %v18751_v25  ;;  %v7674_v19 = vcombine.low %v22174_v60, %v22186_v42 }
 0x2f8   :  { %v18278_v52 = vcombine.high %v22174_v60, %v22186_v42  ;;  %v9351_v56 = vrot.slane %v9350_v46, 1  ;;  %v12824_v63 = vcombine.low %v12185_v9, %v12186_v26  ;;  %v12825_v7 = vcombine.low %v12187_v58, %v12188_v39  ;;  %v4747_v9 = vpop.f32.mrf.mxu0 }
 0x2f9   :  { %27483 = vst [vmem:[#allocation175_spill] sm:$0xff] %v22195_v1  ;;  %v11970_v23 = vsel %vm698_vm0, %v10281_v15, 0.0  ;;  %v7696_v61 = vrot.slane %v7674_v19, %v18751_v25  ;;  %v7721_v37 = vcombine.low %v22183_v40, %v22195_v1  ;;  %v22209_v10 = vadd.f32 %v9344_v54, %v22131_v31 }
 0x2fa   :  { %v7703_v49 = vrot.slane %v18278_v52, %v18751_v25  ;;  %11971 = vadd.xlane.f32.xlu0 %v11970_v23  ;;  %v18279_v48 = vcombine.high %v22183_v40, %v22195_v1  ;;  %v12826_v50 = vcombine.low %v12189_v47, %v12190_v21  ;;  %v12827_v41 = vcombine.low %v12191_v55, %v12192_v36  ;;  %v27489_v55 = vld [vmem:[#allocation64_spill] sm:$0xff] }
 0x2fb   :  { %27484 = vst [vmem:[#allocation176_spill] sm:$0xff] %v22209_v10  ;;  %v22214_v58 = vrot.slane %v7721_v37, %v18751_v25  ;;  %v12834_v39 = vrot.slane %v12824_v63, %v18751_v25  ;;  %v12841_v15 = vrot.slane %v12825_v7, %v18751_v25  ;;  %v22225_v54 = vcombine.high %v21906_v38, %v21906_v38 }
 0x2fc   :  { %v7705_v26 = vcombine.low %v7696_v61, %v7703_v49  ;;  %v22219_v19 = vrot.slane %v18279_v48, %v18751_v25  ;;  %v12848_v31 = vrot.slane %v12826_v50, %v18751_v25  ;;  %v12855_v23 = vrot.slane %v12827_v41, %v18751_v25 }
 0x2fd   :  { %27485 = vst [vmem:[#allocation177_spill] sm:$0xff] %v22214_v58  ;;  %27487 = vst [vmem:[#allocation179_spill] sm:$0xff] %v22225_v54  ;;  %v22227_v47 = vadd.f32 %v9351_v56, %v9350_v46  ;;  %v12856_v61 = vcombine.low %v12834_v39, %v12841_v15  ;;  %v4748_v21 = vadd.f32 %v22159_v33, %v4747_v9 }
 0x2fe   :  { %27486 = vst [vmem:[#allocation178_spill] sm:$0xff] %v22219_v19  ;;  %v22232_v52 = vcombine.high %v27489_v55, %v27489_v55  ;;  %v22235_v48 = vrot.slane %v7705_v26, %v18751_v25  ;;  %v12857_v36 = vcombine.low %v12848_v31, %v12855_v23  ;;  %v9627_v50 = vmul.f32 %v20710_v43, %v22225_v54 }
 0x2ff   :  { %27488 = vst [vmem:[#allocation180_spill] sm:$0xff] %v22227_v47  ;;  %v7552_v41 = vrot.slane %v22225_v54, %v18751_v25  ;;  %v5302_v56 = vcombine.high %v4748_v21, %v4748_v21  ;;  %v5309_v63 = vrot.slane %v4748_v21, %v18751_v25  ;;  %v12864_v49 = vrot.slane %v12856_v61, %v18751_v25 }
 0x300   :  { %27490 = vst [vmem:[#allocation181_spill] sm:$0xff] %v22232_v52  ;;  %27491 = vst [vmem:[#allocation182_spill] sm:$0xff] %v22235_v48  ;;  %v9712_v7 = vmul.f32 %v20710_v43, %v22232_v52  ;;  %v12871_v37 = vrot.slane %v12857_v36, %v18751_v25  ;;  %v10449_v9 = vrot.slane %v9627_v50, %v18751_v25 }
 0x301   :  { %v7559_v26 = vrot.slane %v7552_v41, %v18751_v25  ;;  %v5316_v39 = vrot.slane %v5302_v56, %v18751_v25  ;;  %v5317_v15 = vcombine.high %v5309_v63, %v5309_v63  ;;  %v22252_v31 = vrot.slane %v5309_v63, %v18751_v25 }
 0x302   :  { %v11009_v23 = vrot.slane %v9712_v7, %v18751_v25  ;;  %v12872_v21 = vcombine.low %v12864_v49, %v12871_v37  ;;  %v10456_v46 = vrot.slane %v10449_v9, %v18751_v25  ;;  %v12193_v61 = vmul.f32 %v20707_v62, %v27440_v5 }
 0x303   :  { %27492 = vst [vmem:[#allocation183_spill] sm:$0xff] %v22252_v31  ;;  %v12194_v36 = vmul.f32 %v21753_v11, %v27442_v53  ;;  %v5318_v50 = vcombine.high %v5316_v39, %v5316_v39  ;;  %v22261_v41 = vrot.slane %v5316_v39, %v18751_v25  ;;  %v22264_v56 = vrot.slane %v5317_v15, %v18751_v25 }
 0x304   :  { %v22268_v63 = vcombine.high %v22252_v31, %v22252_v31  ;;  %v14561_v7 = vsel %vm698_vm0, %v12872_v21, 0.0  ;;  %v11985_v49 = vsel %vm9067_vm1, %v10456_v46, 0.0  ;;  %v7611_v37 = vcombine.low %v21862_v30, %v22252_v31 }
 0x305   :  { %27493 = vst [vmem:[#allocation184_spill] sm:$0xff] %v22261_v41  ;;  %27494 = vst [vmem:[#allocation185_spill] sm:$0xff] %v22264_v56  ;;  %v11016_v9 = vrot.slane %v11009_v23, %v18751_v25  ;;  %v22277_v39 = vsel %vm9067_vm1, %v22046_v24, 0.0  ;;  %14562 = vadd.xlane.f32.xlu0 %v14561_v7  ;;  %11986 = vadd.xlane.f32.xlu1 %v11985_v49  ;;  %v22280_v15 = vrot.slane %v5318_v50, %v18751_v25  ;;  %v18421_v7 = vpop.f32.mrf.mxu1 }
 0x306   :  { %27495 = vst [vmem:[#allocation186_spill] sm:$0xff] %v22268_v63  ;;  %27496 = vst [vmem:[#allocation187_spill] sm:$0xff] %v22277_v39  ;;  %v7612_v4 = vcombine.low %v22264_v56, %v22268_v63  ;;  %v12195_v46 = vmul.f32 %v21745_v45, %v27448_v0  ;;  %v7633_v21 = vrot.slane %v7611_v37, %v18751_v25 }
 0x307   :  { %27497 = vst [vmem:[#allocation188_spill] sm:$0xff] %v22280_v15  ;;  %v12030_v13 = vsel %vm9067_vm1, %v11016_v9, 0.0  ;;  %v12196_v23 = vmul.f32 %v21767_v18, %v27452_v29  ;;  %v12197_v24 = vmul.f32 %v21750_v28, %v27454_v57  ;;  %v7672_v49 = vcombine.low %v22261_v41, %v22280_v15  ;;  %v4847_v6 = vpop.f32.mrf.mxu1 }
 0x308   :  { %v7640_v50 = vrot.slane %v7612_v4, %v18751_v25  ;;  %v18277_v59 = vcombine.high %v22261_v41, %v22280_v15  ;;  %v12198_v37 = vmul.f32 %v21759_v8, %v27456_v44  ;;  %v12199_v9 = vmul.f32 %v21763_v51, %v20920_v22 }
 0x309   :  { %v12200_v29 = vmul.f32 %v21775_v12, %v21446_v14  ;;  %v12873_v0 = vcombine.low %v12193_v61, %v12194_v36  ;;  %v12874_v57 = vcombine.low %v12195_v46, %v12196_v23  ;;  %v22304_v4 = vrot.slane %v7672_v49, %v18751_v25  ;;  %12031 = vadd.xlane.f32.xlu0 %v12030_v13 }
 0x30a   :  { %v7642_v53 = vcombine.low %v7633_v21, %v7640_v50  ;;  %v22307_v5 = vrot.slane %v18277_v59, %v18751_v25  ;;  %v12875_v47 = vcombine.low %v12197_v24, %v12198_v37  ;;  %v12303_v22 = vmul.f32 %v20707_v62, %v22232_v52  ;;  %v27532_v52 = vld [vmem:[#allocation127_spill] sm:$0xff] }
 0x30b   :  { %27498 = vst [vmem:[#allocation189_spill] sm:$0xff] %v22304_v4  ;;  %v12876_v10 = vcombine.low %v12199_v9, %v12200_v29  ;;  %v12883_v44 = vrot.slane %v12873_v0, %v18751_v25  ;;  %v12890_v39 = vrot.slane %v12874_v57, %v18751_v25  ;;  %v22314_v61 = vsel %vm9067_vm1, %v7559_v26, 0.0  ;;  %v27519_v26 = vld [vmem:[#allocation166_spill] sm:$0xff] }
 0x30c   :  { %27499 = vst [vmem:[#allocation190_spill] sm:$0xff] %v22307_v5  ;;  %27500 = vst [vmem:[#allocation191_spill] sm:$0xff] %v22314_v61  ;;  %v7656_v36 = vrot.slane %v7642_v53, %v18751_v25  ;;  %v12897_v46 = vrot.slane %v12875_v47, %v18751_v25  ;;  %v12218_v59 = vmul.f32 %v20707_v62, %v22225_v54 }
 0x30d   :  { %v12904_v29 = vrot.slane %v12876_v10, %v18751_v25  ;;  %v12905_v13 = vcombine.low %v12883_v44, %v12890_v39  ;;  %v13600_v0 = vrot.slane %v12303_v22, %v18751_v25  ;;  %v4853_v57 = vadd.f32 %v22159_v33, %v18421_v7  ;;  %v27501_v10 = vld [vmem:[#allocation164_spill] sm:$0xff]  ;;  %v27502_v44 = vld [vmem:[#allocation165_spill] sm:$0xff] }
 0x30e   :  { %v7657_v21 = vcombine.low %v21982_v20, %v7656_v36  ;;  %v13040_v23 = vrot.slane %v12218_v59, %v18751_v25  ;;  %v4848_v53 = vadd.f32 %v22159_v33, %v4847_v6  ;;  %v27503_v39 = vcombine.low %v27501_v10, %v27502_v44 }
 0x30f   :  { %v12906_v47 = vcombine.low %v12897_v46, %v12904_v29  ;;  %v13607_v24 = vrot.slane %v13600_v0, %v18751_v25  ;;  %v6331_v50 = vcombine.high %v4853_v57, %v4853_v57  ;;  %v12913_v20 = vrot.slane %v12905_v13, %v18751_v25 }
 0x310   :  { %v8690_v22 = vrot.slane %v27503_v39, %v18751_v25  ;;  %v22334_v7 = vsel %vm698_vm0, %v7657_v21, 0.0  ;;  %v6338_v49 = vrot.slane %v4853_v57, %v18751_v25  ;;  %v6282_v37 = vcombine.high %v4848_v53, %v4848_v53 }
 0x311   :  { %27504 = vst [vmem:[#allocation192_spill] sm:$0xff] %v22334_v7  ;;  %v12920_v9 = vrot.slane %v12906_v47, %v18751_v25  ;;  %v14621_v6 = vsel %vm9067_vm1, %v13607_v24, 0.0  ;;  %v6345_v36 = vrot.slane %v6331_v50, %v18751_v25  ;;  %v6289_v46 = vrot.slane %v4848_v53, %v18751_v25 }
 0x312   :  { %14622 = vadd.xlane.f32.xlu0 %v14621_v6  ;;  %v13047_v59 = vrot.slane %v13040_v23, %v18751_v25  ;;  %v6346_v29 = vcombine.high %v6338_v49, %v6338_v49  ;;  %v22344_v0 = vrot.slane %v6338_v49, %v18751_v25  ;;  %v6296_v13 = vrot.slane %v6282_v37, %v18751_v25 }
 0x313   :  { %v12921_v21 = vcombine.low %v12913_v20, %v12920_v9  ;;  %v6347_v57 = vcombine.high %v6345_v36, %v6345_v36  ;;  %v22348_v39 = vrot.slane %v6345_v36, %v18751_v25  ;;  %v6297_v47 = vcombine.high %v6289_v46, %v6289_v46 }
 0x314   :  { %27505 = vst [vmem:[#allocation193_spill] sm:$0xff] %v22344_v0  ;;  %v22351_v24 = vrot.slane %v6346_v29, %v18751_v25  ;;  %v22355_v53 = vcombine.high %v22344_v0, %v22344_v0  ;;  %v6298_v23 = vcombine.high %v6296_v13, %v6296_v13  ;;  %v22358_v50 = vrot.slane %v6289_v46, %v18751_v25 }
 0x315   :  { %27506 = vst [vmem:[#allocation194_spill] sm:$0xff] %v22348_v39  ;;  %v14564_v49 = vsel %vm698_vm0, %v12921_v21, 0.0  ;;  %v22362_v20 = vrot.slane %v6347_v57, %v18751_v25  ;;  %v22365_v37 = vrot.slane %v6296_v13, %v18751_v25  ;;  %v22368_v9 = vrot.slane %v6297_v47, %v18751_v25 }
 0x316   :  { %27507 = vst [vmem:[#allocation195_spill] sm:$0xff] %v22351_v24  ;;  %27508 = vst [vmem:[#allocation196_spill] sm:$0xff] %v22355_v53  ;;  %14565 = vadd.xlane.f32.xlu1 %v14564_v49  ;;  %v22372_v6 = vcombine.high %v22351_v24, %v22351_v24  ;;  %v8731_v36 = vcombine.low %v22351_v24, %v22355_v53  ;;  %v22377_v46 = vrot.slane %v6298_v23, %v18751_v25 }
 0x317   :  { %27509 = vst [vmem:[#allocation197_spill] sm:$0xff] %v22358_v50  ;;  %27510 = vst [vmem:[#allocation198_spill] sm:$0xff] %v22362_v20  ;;  %v22381_v29 = vcombine.high %v22358_v50, %v22358_v50  ;;  %v14576_v13 = vsel %vm9067_vm1, %v13047_v59, 0.0  ;;  %v8784_v21 = vrot.slane %v22362_v20, %v18751_v25  ;;  %v22388_v57 = vcombine.high %v22365_v37, %v22365_v37 }
 0x318   :  { %27511 = vst [vmem:[#allocation199_spill] sm:$0xff] %v22365_v37  ;;  %27512 = vst [vmem:[#allocation200_spill] sm:$0xff] %v22368_v9  ;;  %v22392_v47 = vcombine.high %v22368_v9, %v22368_v9  ;;  %v8732_v23 = vcombine.low %v22372_v6, %v22348_v39  ;;  %v18297_v49 = vcombine.high %v22348_v39, %v22362_v20 }
 0x319   :  { %27513 = vst [vmem:[#allocation201_spill] sm:$0xff] %v22372_v6  ;;  %27514 = vst [vmem:[#allocation202_spill] sm:$0xff] %v22377_v46  ;;  %v22400_v59 = vcombine.high %v22377_v46, %v22377_v46  ;;  %v8681_v54 = vcombine.low %v27519_v26, %v22358_v50  ;;  %v8753_v44 = vrot.slane %v8731_v36, %v18751_v25  ;;  %v27521_v26 = vld [vmem:[#allocation10_spill] sm:$0xff] }
 0x31a   :  { %27515 = vst [vmem:[#allocation203_spill] sm:$0xff] %v22381_v29  ;;  %27516 = vst [vmem:[#allocation204_spill] sm:$0xff] %v22388_v57  ;;  %v22406_v10 = vrot.slane %v8784_v21, %v18751_v25  ;;  %v8682_v53 = vcombine.low %v22368_v9, %v22381_v29  ;;  %v8683_v6 = vcombine.low %v22392_v47, %v22365_v37  ;;  %14577 = vadd.xlane.f32.xlu1 %v14576_v13  ;;  %v27522_v9 = vld [vmem:[#allocation42_spill] sm:$0xff] }
 0x31b   :  { %27517 = vst [vmem:[#allocation205_spill] sm:$0xff] %v22392_v47  ;;  %27518 = vst [vmem:[#allocation206_spill] sm:$0xff] %v22400_v59  ;;  %v8760_v39 = vrot.slane %v8732_v23, %v18751_v25  ;;  %v8697_v24 = vrot.slane %v8681_v54, %v18751_v25  ;;  %v8729_v20 = vcombine.low %v22377_v46, %v22388_v57  ;;  %v27523_v46 = vld [vmem:[#allocation45_spill] sm:$0xff] }
 0x31c   :  { %27520 = vst [vmem:[#allocation207_spill] sm:$0xff] %v22406_v10  ;;  %v8730_v36 = vcombine.low %v22400_v59, %v22344_v0  ;;  %v8704_v21 = vrot.slane %v8682_v53, %v18751_v25  ;;  %v8711_v50 = vrot.slane %v8683_v6, %v18751_v25  ;;  %v9696_v29 = vmul.f32 %v20710_v43, %v27521_v26  ;;  %v27524_v59 = vld [vmem:[#allocation4_spill] sm:$0xff]  ;;  %v27525_v6 = vld [vmem:[#allocation3_spill] sm:$0xff] }
 0x31d   :  { %v9697_v13 = vmul.f32 %v27443_v34, %v27522_v9  ;;  %v8762_v37 = vcombine.low %v8753_v44, %v8760_v39  ;;  %v8712_v23 = vcombine.low %v8690_v22, %v8697_v24  ;;  %v8739_v54 = vrot.slane %v8729_v20, %v18751_v25  ;;  %v27526_v39 = vld [vmem:[#allocation47_spill] sm:$0xff]  ;;  %v27527_v20 = vld [vmem:[#allocation44_spill] sm:$0xff] }
 0x31e   :  { %v8746_v47 = vrot.slane %v8730_v36, %v18751_v25  ;;  %v8713_v57 = vcombine.low %v8704_v21, %v8711_v50  ;;  %v9698_v0 = vmul.f32 %v27449_v3, %v27523_v46  ;;  %v9699_v53 = vmul.f32 %v27453_v27, %v27524_v59  ;;  %v27528_v21 = vld [vmem:[#allocation46_spill] sm:$0xff] }
 0x31f   :  { %v9700_v10 = vmul.f32 %v27455_v35, %v27525_v6  ;;  %v22433_v32 = vrot.slane %v18297_v49, %v18751_v25  ;;  %v22436_v44 = vrot.slane %v8712_v23, %v18751_v25  ;;  %v9701_v24 = vmul.f32 %v20813_v17, %v27526_v39 }
 0x320   :  { %v8761_v22 = vcombine.low %v8739_v54, %v8746_v47  ;;  %v22441_v50 = vrot.slane %v8713_v57, %v18751_v25  ;;  %v9702_v36 = vmul.f32 %v20825_v2, %v27527_v20  ;;  %v9703_v1 = vmul.f32 %v21502_v16, %v27528_v21 }
 0x321   :  { %v10905_v40 = vcombine.low %v9696_v29, %v9697_v13  ;;  %v10906_v7 = vcombine.low %v9698_v0, %v9699_v53  ;;  %v10907_v23 = vcombine.low %v9700_v10, %v9701_v24  ;;  %v22452_v47 = vcombine.high %v21446_v14, %v21446_v14  ;;  %v27534_v13 = vld [vmem:[#allocation125_spill] sm:$0xff]  ;;  %v27538_v14 = vld [vmem:[#allocation120_spill] sm:$0xff] }
 0x322   :  { %v22448_v49 = vrot.slane %v8761_v22, %v18751_v25  ;;  %v22455_v54 = vrot.slane %v8762_v37, %v18751_v25  ;;  %v10908_v57 = vcombine.low %v9702_v36, %v9703_v1  ;;  %v22460_v48 = vcombine.high %v27532_v52, %v27532_v52  ;;  %v27536_v37 = vld [vmem:[#allocation126_spill] sm:$0xff] }
 0x323   :  { %27530 = vst [vmem:[#allocation209_spill] sm:$0xff] %v22452_v47  ;;  %v10915_v61 = vrot.slane %v10905_v40, %v18751_v25  ;;  %v10922_v0 = vrot.slane %v10906_v7, %v18751_v25  ;;  %v10929_v10 = vrot.slane %v10907_v23, %v18751_v25  ;;  %v22468_v53 = vcombine.high %v27534_v13, %v27534_v13 }
 0x324   :  { %27529 = vst [vmem:[#allocation208_spill] sm:$0xff] %v22448_v49  ;;  %27531 = vst [vmem:[#allocation210_spill] sm:$0xff] %v22455_v54  ;;  %v10936_v40 = vrot.slane %v10908_v57, %v18751_v25  ;;  %v22475_v22 = vcombine.high %v27536_v37, %v27536_v37  ;;  %v9611_v24 = vmul.f32 %v20710_v43, %v22452_v47 }
 0x325   :  { %27533 = vst [vmem:[#allocation211_spill] sm:$0xff] %v22460_v48  ;;  %27535 = vst [vmem:[#allocation212_spill] sm:$0xff] %v22468_v53  ;;  %v10937_v36 = vcombine.low %v10915_v61, %v10922_v0  ;;  %v9612_v7 = vmul.f32 %v27443_v34, %v22468_v53  ;;  %v9613_v23 = vmul.f32 %v27449_v3, %v27532_v52  ;;  %v27539_v0 = vld [vmem:[#allocation121_spill] sm:$0xff] }
 0x326   :  { %27537 = vst [vmem:[#allocation213_spill] sm:$0xff] %v22475_v22  ;;  %v9614_v29 = vmul.f32 %v27453_v27, %v27536_v37  ;;  %v10938_v1 = vcombine.low %v10929_v10, %v10936_v40  ;;  %v9615_v57 = vmul.f32 %v27455_v35, %v22460_v48  ;;  %v9616_v13 = vmul.f32 %v20813_v17, %v22475_v22 }
 0x327   :  { %v9617_v54 = vmul.f32 %v20825_v2, %v27538_v14  ;;  %v10945_v61 = vrot.slane %v10937_v36, %v18751_v25  ;;  %v9618_v49 = vmul.f32 %v21502_v16, %v27539_v0  ;;  %v10345_v19 = vcombine.low %v9611_v24, %v9612_v7 }
 0x328   :  { %v10346_v58 = vcombine.low %v9613_v23, %v9614_v29  ;;  %v10952_v5 = vrot.slane %v10938_v1, %v18751_v25  ;;  %v10347_v4 = vcombine.low %v9615_v57, %v9616_v13  ;;  %v12202_v10 = vmul.f32 %v20707_v62, %v22452_v47 }
 0x329   :  { %v12203_v40 = vmul.f32 %v21753_v11, %v22468_v53  ;;  %v10348_v42 = vcombine.low %v9617_v54, %v9618_v49  ;;  %v10355_v60 = vrot.slane %v10345_v19, %v18751_v25  ;;  %v12204_v36 = vmul.f32 %v21745_v45, %v27532_v52 }
 0x32a   :  { %v10362_v15 = vrot.slane %v10346_v58, %v18751_v25  ;;  %v10953_v41 = vcombine.low %v10945_v61, %v10952_v5  ;;  %v10369_v29 = vrot.slane %v10347_v4, %v18751_v25  ;;  %v12205_v13 = vmul.f32 %v21767_v18, %v27536_v37  ;;  %v27541_v37 = vld [vmem:[#allocation7_spill] sm:$0xff] }
 0x32b   :  { %v12206_v1 = vmul.f32 %v21750_v28, %v22460_v48  ;;  %v10376_v24 = vrot.slane %v10348_v42, %v18751_v25  ;;  %v12207_v19 = vmul.f32 %v21759_v8, %v22475_v22  ;;  %v12208_v58 = vmul.f32 %v21763_v51, %v27538_v14  ;;  %v27540_v42 = vld [vmem:[#allocation85_spill] sm:$0xff] }
 0x32c   :  { %v10377_v7 = vcombine.low %v10355_v60, %v10362_v15  ;;  %v12024_v49 = vsel %vm698_vm0, %v10953_v41, 0.0  ;;  %v12209_v5 = vmul.f32 %v21775_v12, %v27539_v0  ;;  %v12936_v4 = vcombine.low %v12202_v10, %v12203_v40 }
 0x32d   :  { %v12937_v54 = vcombine.low %v12204_v36, %v12205_v13  ;;  %12025 = vadd.xlane.f32.xlu0 %v12024_v49  ;;  %v10378_v23 = vcombine.low %v10369_v29, %v10376_v24  ;;  %v12938_v61 = vcombine.low %v12206_v1, %v12207_v19  ;;  %v9746_v60 = vmul.f32 %v20710_v43, %v27540_v42  ;;  %v27542_v36 = vld [vmem:[#allocation60_spill] sm:$0xff]  ;;  %v27543_v24 = vld [vmem:[#allocation62_spill] sm:$0xff]  ;;  %v27544_v19 = vld [vmem:[#allocation63_spill] sm:$0xff] }
 0x32e   :  { %v10385_v57 = vrot.slane %v10377_v7, %v18751_v25  ;;  %v12939_v15 = vcombine.low %v12208_v58, %v12209_v5  ;;  %v12946_v22 = vrot.slane %v12936_v4, %v18751_v25  ;;  %v9704_v41 = vmul.f32 %v20710_v43, %v27541_v37  ;;  %v27545_v4 = vld [vmem:[#allocation66_spill] sm:$0xff] }
 0x32f   :  { %v12953_v48 = vrot.slane %v12937_v54, %v18751_v25  ;;  %v10392_v52 = vrot.slane %v10378_v23, %v18751_v25  ;;  %v12960_v10 = vrot.slane %v12938_v61, %v18751_v25  ;;  %v11233_v40 = vrot.slane %v9746_v60, %v18751_v25  ;;  %v27546_v23 = vld [vmem:[#allocation61_spill] sm:$0xff] }
 0x330   :  { %v9705_v29 = vmul.f32 %v27443_v34, %v27542_v36  ;;  %v12967_v13 = vrot.slane %v12939_v15, %v18751_v25  ;;  %v9706_v7 = vmul.f32 %v27449_v3, %v27543_v24  ;;  %v9707_v58 = vmul.f32 %v27453_v27, %v27544_v19 }
 0x331   :  { %v12968_v1 = vcombine.low %v12946_v22, %v12953_v48  ;;  %v10393_v49 = vcombine.low %v10385_v57, %v10392_v52  ;;  %v11240_v5 = vrot.slane %v11233_v40, %v18751_v25  ;;  %v9708_v54 = vmul.f32 %v27455_v35, %v27545_v4  ;;  %v27547_v22 = vld [vmem:[#allocation65_spill] sm:$0xff] }
 0x332   :  { %v9709_v61 = vmul.f32 %v20813_v17, %v27546_v23  ;;  %v12969_v60 = vcombine.low %v12960_v10, %v12967_v13  ;;  %v9710_v48 = vmul.f32 %v20825_v2, %v27489_v55  ;;  %v9711_v15 = vmul.f32 %v21502_v16, %v27547_v22 }
 0x333   :  { %v12976_v53 = vrot.slane %v12968_v1, %v18751_v25  ;;  %v11979_v47 = vsel %vm698_vm0, %v10393_v49, 0.0  ;;  %v12048_v52 = vsel %vm9067_vm1, %v11240_v5, 0.0  ;;  %v10954_v57 = vcombine.low %v9704_v41, %v9705_v29 }
 0x334   :  { %v10955_v40 = vcombine.low %v9706_v7, %v9707_v58  ;;  %v27548_v63 = vcombine.low %v22436_v44, %v22441_v50  ;;  %11980 = vadd.xlane.f32.xlu1 %v11979_v47  ;;  %v12983_v10 = vrot.slane %v12969_v60, %v18751_v25  ;;  %12049 = vadd.xlane.f32.xlu0 %v12048_v52 }
 0x335   :  { %v10956_v13 = vcombine.low %v9708_v54, %v9709_v61  ;;  %v10957_v1 = vcombine.low %v9710_v48, %v9711_v15  ;;  %v10964_v30 = vrot.slane %v10954_v57, %v18751_v25  ;;  %v12287_v41 = vmul.f32 %v20707_v62, %v27521_v26  ;;  %v18394_v61 = vpop.f32.mrf.mxu0 }
 0x336   :  { %v22549_v31 = vsel %vm698_vm0, %v27548_v63, 0.0  ;;  %v10971_v49 = vrot.slane %v10955_v40, %v18751_v25  ;;  %v12288_v29 = vmul.f32 %v21753_v11, %v27522_v9  ;;  %v12984_v44 = vcombine.low %v12976_v53, %v12983_v10 }
 0x337   :  { %27549 = vst [vmem:[#allocation214_spill] sm:$0xff] %v22549_v31  ;;  %v10978_v63 = vrot.slane %v10956_v13, %v18751_v25  ;;  %v10985_v50 = vrot.slane %v10957_v1, %v18751_v25  ;;  %v12289_v47 = vmul.f32 %v21745_v45, %v27523_v46  ;;  %v12290_v58 = vmul.f32 %v21767_v18, %v27524_v59 }
 0x338   :  { %v10986_v7 = vcombine.low %v10964_v30, %v10971_v49  ;;  %v12291_v5 = vmul.f32 %v21750_v28, %v27525_v6  ;;  %v12292_v54 = vmul.f32 %v21759_v8, %v27526_v39  ;;  %v14570_v53 = vsel %vm698_vm0, %v12984_v44, 0.0  ;;  %v27550_v49 = vld [vmem:[#allocation31_spill] sm:$0xff] }
 0x339   :  { %v10987_v60 = vcombine.low %v10978_v63, %v10985_v50  ;;  %v12293_v48 = vmul.f32 %v21763_v51, %v27527_v20  ;;  %v12294_v15 = vmul.f32 %v21775_v12, %v27528_v21  ;;  %14571 = vadd.xlane.f32.xlu1 %v14570_v53  ;;  %v13496_v52 = vcombine.low %v12287_v41, %v12288_v29  ;;  %v27552_v21 = vld [vmem:[#allocation24_spill] sm:$0xff] }
 0x33a   :  { %v10994_v30 = vrot.slane %v10986_v7, %v18751_v25  ;;  %v13497_v57 = vcombine.low %v12289_v47, %v12290_v58  ;;  %v13498_v40 = vcombine.low %v12291_v5, %v12292_v54  ;;  %v4763_v1 = vadd.f32 %v22159_v33, %v18394_v61  ;;  %v27554_v54 = vld [vmem:[#allocation20_spill] sm:$0xff] }
 0x33b   :  { %v11001_v10 = vrot.slane %v10987_v60, %v18751_v25  ;;  %v13499_v13 = vcombine.low %v12293_v48, %v12294_v15  ;;  %v22578_v44 = vcombine.high %v27550_v49, %v27550_v49  ;;  %v13506_v63 = vrot.slane %v13496_v52, %v18751_v25  ;;  %v27556_v60 = vld [vmem:[#allocation27_spill] sm:$0xff] }
 0x33c   :  { %v13513_v50 = vrot.slane %v13497_v57, %v18751_v25  ;;  %v13520_v53 = vrot.slane %v13498_v40, %v18751_v25  ;;  %v22585_v41 = vcombine.high %v27552_v21, %v27552_v21  ;;  %v5449_v7 = vcombine.high %v4763_v1, %v4763_v1 }
 0x33d   :  { %27551 = vst [vmem:[#allocation215_spill] sm:$0xff] %v22578_v44  ;;  %v11002_v29 = vcombine.low %v10994_v30, %v11001_v10  ;;  %v13527_v47 = vrot.slane %v13499_v13, %v18751_v25  ;;  %v5456_v58 = vrot.slane %v4763_v1, %v18751_v25  ;;  %v22591_v61 = vcombine.high %v27554_v54, %v27554_v54 }
 0x33e   :  { %27553 = vst [vmem:[#allocation216_spill] sm:$0xff] %v22585_v41  ;;  %v13528_v5 = vcombine.low %v13506_v63, %v13513_v50  ;;  %v22595_v48 = vcombine.high %v27556_v60, %v27556_v60  ;;  %v9713_v15 = vmul.f32 %v20710_v43, %v27550_v49  ;;  %v5463_v57 = vrot.slane %v5449_v7, %v18751_v25 }
 0x33f   :  { %27555 = vst [vmem:[#allocation217_spill] sm:$0xff] %v22591_v61  ;;  %v12027_v52 = vsel %vm698_vm0, %v11002_v29, 0.0  ;;  %v13529_v30 = vcombine.low %v13520_v53, %v13527_v47  ;;  %v5464_v40 = vcombine.high %v5456_v58, %v5456_v58  ;;  %v22603_v13 = vrot.slane %v5456_v58, %v18751_v25 }
 0x340   :  { %27557 = vst [vmem:[#allocation218_spill] sm:$0xff] %v22595_v48  ;;  %12028 = vadd.xlane.f32.xlu1 %v12027_v52  ;;  %v13536_v10 = vrot.slane %v13528_v5, %v18751_v25  ;;  %v9714_v1 = vmul.f32 %v27443_v34, %v27554_v54  ;;  %v9715_v63 = vmul.f32 %v27449_v3, %v22578_v44 }
 0x341   :  { %27558 = vst [vmem:[#allocation219_spill] sm:$0xff] %v22603_v13  ;;  %v13543_v50 = vrot.slane %v13529_v30, %v18751_v25  ;;  %v5465_v20 = vcombine.high %v5463_v57, %v5463_v57  ;;  %v22611_v53 = vrot.slane %v5463_v57, %v18751_v25  ;;  %v22614_v29 = vrot.slane %v5464_v40, %v18751_v25 }
 0x342   :  { %v22618_v47 = vcombine.high %v22603_v13, %v22603_v13  ;;  %v9716_v7 = vmul.f32 %v27453_v27, %v22591_v61  ;;  %v9717_v58 = vmul.f32 %v27455_v35, %v27552_v21  ;;  %v9718_v5 = vmul.f32 %v20813_v17, %v27556_v60 }
 0x343   :  { %27559 = vst [vmem:[#allocation220_spill] sm:$0xff] %v22611_v53  ;;  %27560 = vst [vmem:[#allocation221_spill] sm:$0xff] %v22614_v29  ;;  %v13544_v52 = vcombine.low %v13536_v10, %v13543_v50  ;;  %v22627_v30 = vrot.slane %v5465_v20, %v18751_v25  ;;  %v22631_v57 = vcombine.high %v22611_v53, %v22611_v53  ;;  %v4757_v20 = vpop.f32.mrf.mxu0 }
 0x344   :  { %27561 = vst [vmem:[#allocation222_spill] sm:$0xff] %v22618_v47  ;;  %v22635_v40 = vcombine.high %v22614_v29, %v22614_v29  ;;  %v7786_v39 = vcombine.low %v22614_v29, %v22618_v47  ;;  %v9719_v6 = vmul.f32 %v20825_v2, %v22585_v41  ;;  %v9720_v10 = vmul.f32 %v21502_v16, %v22595_v48 }
 0x345   :  { %27562 = vst [vmem:[#allocation223_spill] sm:$0xff] %v22627_v30  ;;  %27563 = vst [vmem:[#allocation224_spill] sm:$0xff] %v22631_v57  ;;  %v11017_v50 = vcombine.low %v9713_v15, %v9714_v1  ;;  %v14615_v59 = vsel %vm698_vm0, %v13544_v52, 0.0  ;;  %v22646_v46 = vcombine.high %v22627_v30, %v22627_v30  ;;  %v11018_v9 = vcombine.low %v9715_v63, %v9716_v7 }
 0x346   :  { %27564 = vst [vmem:[#allocation225_spill] sm:$0xff] %v22635_v40  ;;  %v7787_v31 = vcombine.low %v22635_v40, %v22611_v53  ;;  %14616 = vadd.xlane.f32.xlu0 %v14615_v59  ;;  %v7808_v29 = vrot.slane %v7786_v39, %v18751_v25  ;;  %v11019_v26 = vcombine.low %v9717_v58, %v9718_v5 }
 0x347   :  { %27565 = vst [vmem:[#allocation226_spill] sm:$0xff] %v22646_v46  ;;  %v11020_v56 = vcombine.low %v9719_v6, %v9720_v10  ;;  %v11027_v1 = vrot.slane %v11017_v50, %v18751_v25  ;;  %v12337_v52 = vmul.f32 %v20707_v62, %v27540_v42  ;;  %v4758_v46 = vadd.f32 %v22159_v33, %v4757_v20 }
 0x348   :  { %v7815_v15 = vrot.slane %v7787_v31, %v18751_v25  ;;  %v11034_v53 = vrot.slane %v11018_v9, %v18751_v25  ;;  %v11041_v40 = vrot.slane %v11019_v26, %v18751_v25  ;;  %v12295_v39 = vmul.f32 %v20707_v62, %v27541_v37 }
 0x349   :  { %v11048_v59 = vrot.slane %v11020_v56, %v18751_v25  ;;  %v13824_v6 = vrot.slane %v12337_v52, %v18751_v25  ;;  %v5400_v31 = vcombine.high %v4758_v46, %v4758_v46  ;;  %v5407_v7 = vrot.slane %v4758_v46, %v18751_v25 }
 0x34a   :  { %v7817_v63 = vcombine.low %v7808_v29, %v7815_v15  ;;  %v11049_v58 = vcombine.low %v11027_v1, %v11034_v53  ;;  %v12296_v10 = vmul.f32 %v21753_v11, %v27542_v36  ;;  %v12297_v9 = vmul.f32 %v21745_v45, %v27543_v24 }
 0x34b   :  { %v11050_v5 = vcombine.low %v11041_v40, %v11048_v59  ;;  %v13831_v56 = vrot.slane %v13824_v6, %v18751_v25  ;;  %v5414_v29 = vrot.slane %v5400_v31, %v18751_v25  ;;  %v5415_v50 = vcombine.high %v5407_v7, %v5407_v7 }
 0x34c   :  { %v22670_v26 = vrot.slane %v7817_v63, %v18751_v25  ;;  %v11057_v20 = vrot.slane %v11049_v58, %v18751_v25  ;;  %v22677_v53 = vrot.slane %v5407_v7, %v18751_v25  ;;  %v12298_v40 = vmul.f32 %v21767_v18, %v27544_v19 }
 0x34d   :  { %v11064_v46 = vrot.slane %v11050_v5, %v18751_v25  ;;  %v14639_v15 = vsel %vm9067_vm1, %v13831_v56, 0.0  ;;  %v5416_v1 = vcombine.high %v5414_v29, %v5414_v29  ;;  %v22683_v52 = vrot.slane %v5414_v29, %v18751_v25 }
 0x34e   :  { %27566 = vst [vmem:[#allocation227_spill] sm:$0xff] %v22677_v53  ;;  %v22686_v59 = vrot.slane %v5415_v50, %v18751_v25  ;;  %14640 = vadd.xlane.f32.xlu0 %v14639_v15  ;;  %v12299_v6 = vmul.f32 %v21750_v28, %v27545_v4  ;;  %v12300_v31 = vmul.f32 %v21759_v8, %v27546_v23 }
 0x34f   :  { %27567 = vst [vmem:[#allocation228_spill] sm:$0xff] %v22683_v52  ;;  %v11065_v63 = vcombine.low %v11057_v20, %v11064_v46  ;;  %v12301_v7 = vmul.f32 %v21763_v51, %v27489_v55  ;;  %v22695_v58 = vrot.slane %v5416_v1, %v18751_v25  ;;  %v22699_v5 = vcombine.high %v22683_v52, %v22683_v52 }
 0x350   :  { %27568 = vst [vmem:[#allocation229_spill] sm:$0xff] %v22686_v59  ;;  %v7723_v56 = vcombine.low %v22677_v53, %v22686_v59  ;;  %v18280_v29 = vcombine.high %v22677_v53, %v22686_v59  ;;  %v7776_v20 = vrot.slane %v22683_v52, %v18751_v25  ;;  %v12302_v46 = vmul.f32 %v21775_v12, %v27547_v22  ;;  %v9388_v53 = vld [vmem:[%s26224_s10 + $0x18] sm:$0xff] }
 0x351   :  { %27569 = vst [vmem:[#allocation230_spill] sm:$0xff] %v22695_v58  ;;  %27570 = vst [vmem:[#allocation231_spill] sm:$0xff] %v22699_v5  ;;  %v12033_v50 = vsel %vm698_vm0, %v11065_v63, 0.0  ;;  %v13545_v15 = vcombine.low %v12295_v39, %v12296_v10  ;;  %v22712_v1 = vcombine.high %v22695_v58, %v22695_v58  ;;  %v7784_v23 = vcombine.low %v22695_v58, %v22699_v5 }
 0x352   :  { %12034 = vadd.xlane.f32.xlu1 %v12033_v50  ;;  %v7745_v47 = vrot.slane %v7723_v56, %v18751_v25  ;;  %v7752_v55 = vrot.slane %v18280_v29, %v18751_v25  ;;  %v7783_v63 = vrot.slane %v7776_v20, %v18751_v25  ;;  %v13546_v4 = vcombine.low %v12297_v9, %v12298_v40  ;;  %v18424_v9 = vpop.f32.mrf.mxu1 }
 0x353   :  { %27571 = vst [vmem:[#allocation232_spill] sm:$0xff] %v22712_v1  ;;  %v13547_v19 = vcombine.low %v12299_v6, %v12300_v31  ;;  %v13548_v24 = vcombine.low %v12301_v7, %v12302_v46  ;;  %v7785_v39 = vcombine.low %v22712_v1, %v22603_v13  ;;  %v7794_v10 = vrot.slane %v7784_v23, %v18751_v25 }
 0x354   :  { %v7754_v36 = vcombine.low %v7745_v47, %v7752_v55  ;;  %v13555_v50 = vrot.slane %v13545_v15, %v18751_v25  ;;  %v22724_v56 = vsel %vm9067_vm1, %v7783_v63, 0.0  ;;  %v13562_v29 = vrot.slane %v13546_v4, %v18751_v25  ;;  %v27574_v47 = vld [vmem:[#allocation122_spill] sm:$0xff]  ;;  %18428 = vmatprep.subr.mxu0 %v9388_v53 }
 0x355   :  { %27572 = vst [vmem:[#allocation233_spill] sm:$0xff] %v22724_v56  ;;  %v13569_v22 = vrot.slane %v13547_v19, %v18751_v25  ;;  %v13576_v20 = vrot.slane %v13548_v24, %v18751_v25  ;;  %v7801_v55 = vrot.slane %v7785_v39, %v18751_v25  ;;  %v22735_v23 = vcombine.high %v27538_v14, %v27538_v14  ;;  %v27577_v24 = vld [vmem:[#allocation124_spill] sm:$0xff] }
 0x356   :  { %v22730_v40 = vrot.slane %v7754_v36, %v18751_v25  ;;  %v22739_v6 = vcombine.high %v27574_v47, %v27574_v47  ;;  %v13577_v31 = vcombine.low %v13555_v50, %v13562_v29  ;;  %v22743_v19 = vcombine.high %v27539_v0, %v27539_v0  ;;  %v27579_v0 = vld [vmem:[#allocation156_spill] sm:$0xff]  ;;  %18429 = vmatpush3.msra.mxu0 %v9388_v53 }
 0x357   :  { %27573 = vst [vmem:[#allocation234_spill] sm:$0xff] %v22735_v23  ;;  %v13578_v4 = vcombine.low %v13569_v22, %v13576_v20  ;;  %v22747_v36 = vcombine.high %v27577_v24, %v27577_v24  ;;  %v7816_v7 = vcombine.low %v7794_v10, %v7801_v55  ;;  %v9619_v46 = vmul.f32 %v20710_v43, %v22735_v23  ;;  %v4857_v10 = vpop.f32.mrf.mxu1 }
 0x358   :  { %27575 = vst [vmem:[#allocation235_spill] sm:$0xff] %v22739_v6  ;;  %27576 = vst [vmem:[#allocation236_spill] sm:$0xff] %v22743_v19  ;;  %v9621_v15 = vmul.f32 %v27449_v3, %v27574_v47  ;;  %v9622_v63 = vmul.f32 %v27453_v27, %v27577_v24  ;;  %v13585_v22 = vrot.slane %v13577_v31, %v18751_v25 }
 0x359   :  { %27578 = vst [vmem:[#allocation237_spill] sm:$0xff] %v22747_v36  ;;  %v13592_v39 = vrot.slane %v13578_v4, %v18751_v25  ;;  %v9620_v50 = vmul.f32 %v27443_v34, %v22743_v19  ;;  %v9623_v29 = vmul.f32 %v27455_v35, %v22739_v6  ;;  %v22762_v20 = vrot.slane %v7816_v7, %v18751_v25 }
 0x35a   :  { %v9624_v55 = vmul.f32 %v20813_v17, %v22747_v36  ;;  %v9625_v37 = vmul.f32 %v20825_v2, %v21906_v38  ;;  %v9626_v31 = vmul.f32 %v21502_v16, %v27579_v0  ;;  %v10395_v13 = vcombine.low %v9621_v15, %v9622_v63 }
 0x35b   :  { %v13593_v4 = vcombine.low %v13585_v22, %v13592_v39  ;;  %v10394_v14 = vcombine.low %v9619_v46, %v9620_v50  ;;  %v4863_v1 = vadd.f32 %v22159_v33, %v18424_v9  ;;  %v4858_v59 = vadd.f32 %v22159_v33, %v4857_v10 }
 0x35c   :  { %v10396_v5 = vcombine.low %v9623_v29, %v9624_v55  ;;  %v10397_v58 = vcombine.low %v9625_v37, %v9626_v31  ;;  %v22774_v7 = vmul.f32 %v20707_v62, %v27550_v49  ;;  %v10411_v46 = vrot.slane %v10395_v13, %v18751_v25 }
 0x35d   :  { %v14618_v56 = vsel %vm698_vm0, %v13593_v4, 0.0  ;;  %v10404_v22 = vrot.slane %v10394_v14, %v18751_v25  ;;  %v6429_v15 = vcombine.high %v4863_v1, %v4863_v1  ;;  %v6436_v9 = vrot.slane %v4863_v1, %v18751_v25 }
 0x35e   :  { %14619 = vadd.xlane.f32.xlu1 %v14618_v56  ;;  %v10418_v37 = vrot.slane %v10396_v5, %v18751_v25  ;;  %v10425_v33 = vrot.slane %v10397_v58, %v18751_v25  ;;  %v6380_v63 = vcombine.high %v4858_v59, %v4858_v59  ;;  %v6387_v29 = vrot.slane %v4858_v59, %v18751_v25 }
 0x35f   :  { %v10426_v39 = vcombine.low %v10404_v22, %v10411_v46  ;;  %v6443_v50 = vrot.slane %v6429_v15, %v18751_v25  ;;  %v12305_v14 = vmul.f32 %v21753_v11, %v27554_v54  ;;  %v6444_v10 = vcombine.high %v6436_v9, %v6436_v9 }
 0x360   :  { %v10427_v13 = vcombine.low %v10418_v37, %v10425_v33  ;;  %v22790_v56 = vrot.slane %v6436_v9, %v18751_v25  ;;  %v6394_v5 = vrot.slane %v6380_v63, %v18751_v25  ;;  %v6395_v31 = vcombine.high %v6387_v29, %v6387_v29  ;;  %v9387_v9 = vld [vmem:[%s26224_s10 + $0x10] sm:$0xff]  ;;  %v9386_v63 = vld [vmem:[%s26224_s10 + $0x8] sm:$0xff] }
 0x361   :  { %v10434_v58 = vrot.slane %v10426_v39, %v18751_v25  ;;  %v6445_v1 = vcombine.high %v6443_v50, %v6443_v50  ;;  %v22795_v55 = vrot.slane %v6443_v50, %v18751_v25  ;;  %v22799_v4 = vrot.slane %v6444_v10, %v18751_v25  ;;  %18430 = vmatprep.subr.mxu0 %v9387_v9 }
 0x362   :  { %27580 = vst [vmem:[#allocation238_spill] sm:$0xff] %v22790_v56  ;;  %v10441_v59 = vrot.slane %v10427_v13, %v18751_v25  ;;  %v6396_v53 = vcombine.high %v6394_v5, %v6394_v5  ;;  %v22802_v22 = vrot.slane %v6387_v29, %v18751_v25  ;;  %v22812_v37 = vrot.slane %v6394_v5, %v18751_v25 }
 0x363   :  { %27581 = vst [vmem:[#allocation239_spill] sm:$0xff] %v22795_v55  ;;  %27582 = vst [vmem:[#allocation240_spill] sm:$0xff] %v22799_v4  ;;  %v22805_v46 = vrot.slane %v6445_v1, %v18751_v25  ;;  %v22809_v15 = vcombine.high %v22795_v55, %v22795_v55  ;;  %v22815_v33 = vrot.slane %v6395_v31, %v18751_v25  ;;  %18431 = vmatpush3.msra.mxu0 %v9387_v9 }
 0x364   :  { %27583 = vst [vmem:[#allocation241_spill] sm:$0xff] %v22802_v22  ;;  %27586 = vst [vmem:[#allocation244_spill] sm:$0xff] %v22812_v37  ;;  %v10442_v39 = vcombine.low %v10434_v58, %v10441_v59  ;;  %v8842_v50 = vcombine.low %v22790_v56, %v22799_v4  ;;  %v18300_v29 = vcombine.high %v22790_v56, %v22799_v4  ;;  %18432 = vmatprep.subr.mxu0 %v9386_v63 }
 0x365   :  { %27584 = vst [vmem:[#allocation242_spill] sm:$0xff] %v22805_v46  ;;  %27585 = vst [vmem:[#allocation243_spill] sm:$0xff] %v22809_v15  ;;  %v22828_v13 = vrot.slane %v6396_v53, %v18751_v25  ;;  %v22832_v10 = vcombine.high %v22805_v46, %v22805_v46  ;;  %v8844_v5 = vcombine.low %v22795_v55, %v22805_v46  ;;  %18433 = vmatpush3.msra.mxu0 %v9386_v63 }
 0x366   :  { %27587 = vst [vmem:[#allocation245_spill] sm:$0xff] %v22815_v33  ;;  %v8793_v1 = vcombine.low %v22802_v22, %v22815_v33  ;;  %v11982_v31 = vsel %vm698_vm0, %v10442_v39, 0.0  ;;  %v8858_v59 = vrot.slane %v8842_v50, %v18751_v25  ;;  %v8865_v53 = vrot.slane %v18300_v29, %v18751_v25 }
 0x367   :  { %27588 = vst [vmem:[#allocation246_spill] sm:$0xff] %v22828_v13  ;;  %27589 = vst [vmem:[#allocation247_spill] sm:$0xff] %v22832_v10  ;;  %v18298_v54 = vcombine.high %v22802_v22, %v22815_v33  ;;  %11983 = vadd.xlane.f32.xlu0 %v11982_v31  ;;  %v8872_v49 = vrot.slane %v8844_v5, %v18751_v25  ;;  %v8795_v58 = vcombine.low %v22812_v37, %v22828_v13  ;;  %v9385_v22 = vld [vmem:[%s26224_s10] sm:$0xff] }
 0x368   :  { %v8809_v46 = vrot.slane %v8793_v1, %v18751_v25  ;;  %v18299_v9 = vcombine.high %v22812_v37, %v22828_v13  ;;  %v12306_v50 = vmul.f32 %v21745_v45, %v22578_v44  ;;  %v12307_v29 = vmul.f32 %v21767_v18, %v22591_v61  ;;  %18434 = vmatprep.subr.mxu0 %v9385_v22 }
 0x369   :  { %v8816_v39 = vrot.slane %v18298_v54, %v18751_v25  ;;  %v12308_v31 = vmul.f32 %v21750_v28, %v27552_v21  ;;  %v8874_v5 = vcombine.low %v8865_v53, %v8872_v49  ;;  %v8823_v55 = vrot.slane %v8795_v58, %v18751_v25  ;;  %v18397_v21 = vpop.f32.mrf.mxu0  ;;  %18435 = vmatpush3.msra.mxu0 %v9385_v22 }
 0x36a   :  { %v8824_v1 = vcombine.low %v22433_v32, %v8809_v46  ;;  %v8851_v4 = vrot.slane %v18299_v9, %v18751_v25  ;;  %v12309_v54 = vmul.f32 %v21759_v8, %v27556_v60  ;;  %v12310_v44 = vmul.f32 %v21763_v51, %v22585_v41 }
 0x36b   :  { %v12311_v61 = vmul.f32 %v21775_v12, %v22595_v48  ;;  %v13608_v56 = vcombine.low %v22774_v7, %v12305_v14  ;;  %v22869_v49 = vrot.slane %v8874_v5, %v18751_v25  ;;  %v8825_v63 = vcombine.low %v8816_v39, %v8823_v55  ;;  %v27594_v7 = vld [vmem:[#allocation185_spill] sm:$0xff]  ;;  %v18459_v55 = vld [vmem:[%s26220_s7] ss:$0 sm:$0xff] }
 0x36c   :  { %v22872_v32 = vrot.slane %v8824_v1, %v18751_v25  ;;  %v8873_v46 = vcombine.low %v8851_v4, %v8858_v59  ;;  %v13609_v58 = vcombine.low %v12306_v50, %v12307_v29  ;;  %v13610_v53 = vcombine.low %v12308_v31, %v12309_v54 }
 0x36d   :  { %27590 = vst [vmem:[#allocation248_spill] sm:$0xff] %v22869_v49  ;;  %v13611_v9 = vcombine.low %v12310_v44, %v12311_v61  ;;  %v13618_v60 = vrot.slane %v13608_v56, %v18751_v25  ;;  %v22876_v41 = vrot.slane %v8825_v63, %v18751_v25  ;;  %v22883_v14 = vcombine.high %v27594_v7, %v27594_v7 }
 0x36e   :  { %27591 = vst [vmem:[#allocation249_spill] sm:$0xff] %v22872_v32  ;;  %v22879_v48 = vrot.slane %v8873_v46, %v18751_v25  ;;  %v4773_v4 = vadd.f32 %v18459_v55, %v18397_v21  ;;  %v13625_v59 = vrot.slane %v13609_v58, %v18751_v25  ;;  %v13632_v44 = vrot.slane %v13610_v53, %v18751_v25 }
 0x36f   :  { %27592 = vst [vmem:[#allocation250_spill] sm:$0xff] %v22876_v41  ;;  %27595 = vst [vmem:[#allocation252_spill] sm:$0xff] %v22883_v14  ;;  %v13639_v61 = vrot.slane %v13611_v9, %v18751_v25  ;;  %v12210_v56 = vmul.f32 %v20707_v62, %v22735_v23  ;;  %v7664_v39 = vrot.slane %v22883_v14, %v18751_v25  ;;  %v27651_v41 = vld [vmem:[#allocation147_spill] sm:$0xff] }
 0x370   :  { %27593 = vst [vmem:[#allocation251_spill] sm:$0xff] %v22879_v48  ;;  %v9644_v50 = vmul.f32 %v20710_v43, %v22883_v14  ;;  %v5547_v29 = vcombine.high %v4773_v4, %v4773_v4  ;;  %v5554_v31 = vrot.slane %v4773_v4, %v18751_v25  ;;  %v13640_v5 = vcombine.low %v13618_v60, %v13625_v59 }
 0x371   :  { %v13641_v21 = vcombine.low %v13632_v44, %v13639_v61  ;;  %v12211_v1 = vmul.f32 %v21753_v11, %v22743_v19  ;;  %v12212_v54 = vmul.f32 %v21745_v45, %v27574_v47  ;;  %v22903_v63 = vrot.slane %v7664_v39, %v18751_v25 }
 0x372   :  { %v10561_v46 = vrot.slane %v9644_v50, %v18751_v25  ;;  %v5561_v58 = vrot.slane %v5547_v29, %v18751_v25  ;;  %v5562_v53 = vcombine.high %v5554_v31, %v5554_v31  ;;  %v13648_v9 = vrot.slane %v13640_v5, %v18751_v25 }
 0x373   :  { %27596 = vst [vmem:[#allocation253_spill] sm:$0xff] %v22903_v63  ;;  %v13655_v4 = vrot.slane %v13641_v21, %v18751_v25  ;;  %v22910_v60 = vrot.slane %v5554_v31, %v18751_v25  ;;  %v12213_v59 = vmul.f32 %v21767_v18, %v27577_v24  ;;  %v12214_v5 = vmul.f32 %v21750_v28, %v22739_v6  ;;  %v18427_v24 = vpop.f32.mrf.mxu1  ;;  %v4767_v6 = vpop.f32.mrf.mxu0 }
 0x374   :  { %v10568_v44 = vrot.slane %v10561_v46, %v18751_v25  ;;  %v5563_v61 = vcombine.high %v5561_v58, %v5561_v58  ;;  %v22916_v39 = vrot.slane %v5561_v58, %v18751_v25  ;;  %v22919_v50 = vrot.slane %v5562_v53, %v18751_v25 }
 0x375   :  { %27597 = vst [vmem:[#allocation254_spill] sm:$0xff] %v22910_v60  ;;  %v13656_v29 = vcombine.low %v13648_v9, %v13655_v4  ;;  %v12215_v31 = vmul.f32 %v21759_v8, %v22747_v36  ;;  %v12216_v21 = vmul.f32 %v21763_v51, %v21906_v38  ;;  %v12217_v4 = vmul.f32 %v21775_v12, %v27579_v0 }
 0x376   :  { %27598 = vst [vmem:[#allocation255_spill] sm:$0xff] %v22916_v39  ;;  %27599 = vst [vmem:[#allocation256_spill] sm:$0xff] %v22919_v50  ;;  %v11994_v46 = vsel %vm9067_vm1, %v10568_v44, 0.0  ;;  %v22929_v47 = vrot.slane %v5563_v61, %v18751_v25  ;;  %v7897_v58 = vcombine.low %v22910_v60, %v22919_v50  ;;  %v18282_v53 = vcombine.high %v22910_v60, %v22919_v50 }
 0x377   :  { %v14624_v9 = vsel %vm698_vm0, %v13656_v29, 0.0  ;;  %11995 = vadd.xlane.f32.xlu0 %v11994_v46  ;;  %v12985_v36 = vcombine.low %v12210_v56, %v12211_v1  ;;  %v12986_v38 = vcombine.low %v12212_v54, %v12213_v59  ;;  %v12987_v46 = vcombine.low %v12214_v5, %v12215_v31  ;;  %v4867_v1 = vpop.f32.mrf.mxu1 }
 0x378   :  { %27600 = vst [vmem:[#allocation257_spill] sm:$0xff] %v22929_v47  ;;  %14625 = vadd.xlane.f32.xlu1 %v14624_v9  ;;  %v7899_v44 = vcombine.low %v22916_v39, %v22929_v47  ;;  %v22941_v61 = vrot.slane %v7897_v58, %v18751_v25  ;;  %v22944_v23 = vrot.slane %v18282_v53, %v18751_v25 }
 0x379   :  { %v18283_v29 = vcombine.high %v22916_v39, %v22929_v47  ;;  %v12988_v19 = vcombine.low %v12216_v21, %v12217_v4  ;;  %v12995_v0 = vrot.slane %v12985_v36, %v18751_v25  ;;  %v13002_v56 = vrot.slane %v12986_v38, %v18751_v25 }
 0x37a   :  { %v22951_v54 = vrot.slane %v7899_v44, %v18751_v25  ;;  %v4768_v58 = vadd.f32 %v18459_v55, %v4767_v6  ;;  %v27602_v53 = vcombine.low %v22627_v30, %v22631_v57  ;;  %v13009_v5 = vrot.slane %v12987_v46, %v18751_v25 }
 0x37b   :  { %v22954_v59 = vrot.slane %v18283_v29, %v18751_v25  ;;  %v13016_v31 = vrot.slane %v12988_v19, %v18751_v25  ;;  %v13017_v36 = vcombine.low %v12995_v0, %v13002_v56  ;;  %v4873_v21 = vadd.f32 %v18459_v55, %v18427_v24 }
 0x37c   :  { %v7843_v9 = vrot.slane %v27602_v53, %v18751_v25  ;;  %v5498_v4 = vcombine.high %v4768_v58, %v4768_v58  ;;  %v5505_v44 = vrot.slane %v4768_v58, %v18751_v25  ;;  %v4868_v29 = vadd.f32 %v18459_v55, %v4867_v1 }
 0x37d   :  { %27601 = vst [vmem:[#allocation258_spill] sm:$0xff] %v22954_v59  ;;  %v13018_v13 = vcombine.low %v13009_v5, %v13016_v31  ;;  %v13025_v6 = vrot.slane %v13017_v36, %v18751_v25  ;;  %v6527_v37 = vcombine.high %v4873_v21, %v4873_v21  ;;  %v6534_v33 = vrot.slane %v4873_v21, %v18751_v25 }
 0x37e   :  { %v5512_v53 = vrot.slane %v5498_v4, %v18751_v25  ;;  %v5513_v46 = vcombine.high %v5505_v44, %v5505_v44  ;;  %v22969_v19 = vrot.slane %v5505_v44, %v18751_v25  ;;  %v6478_v0 = vcombine.high %v4868_v29, %v4868_v29 }
 0x37f   :  { %v13032_v24 = vrot.slane %v13018_v13, %v18751_v25  ;;  %v6541_v56 = vrot.slane %v6527_v37, %v18751_v25  ;;  %v6542_v38 = vcombine.high %v6534_v33, %v6534_v33  ;;  %v22974_v55 = vrot.slane %v6534_v33, %v18751_v25  ;;  %v27608_v13 = vld [vmem:[#allocation226_spill] sm:$0xff] }
 0x380   :  { %27603 = vst [vmem:[#allocation259_spill] sm:$0xff] %v22969_v19  ;;  %v5514_v1 = vcombine.high %v5512_v53, %v5512_v53  ;;  %v22977_v58 = vrot.slane %v5512_v53, %v18751_v25  ;;  %v22980_v5 = vrot.slane %v5513_v46, %v18751_v25  ;;  %v22984_v31 = vcombine.high %v22969_v19, %v22969_v19 }
 0x381   :  { %27604 = vst [vmem:[#allocation260_spill] sm:$0xff] %v22974_v55  ;;  %v13033_v36 = vcombine.low %v13025_v6, %v13032_v24  ;;  %v7834_v21 = vcombine.low %v27608_v13, %v22969_v19  ;;  %v6543_v37 = vcombine.high %v6541_v56, %v6541_v56  ;;  %v22989_v4 = vrot.slane %v6541_v56, %v18751_v25  ;;  %v27636_v13 = vld [vmem:[#allocation146_spill] sm:$0xff] }
 0x382   :  { %27605 = vst [vmem:[#allocation261_spill] sm:$0xff] %v22977_v58  ;;  %27606 = vst [vmem:[#allocation262_spill] sm:$0xff] %v22980_v5  ;;  %v22992_v33 = vrot.slane %v5514_v1, %v18751_v25  ;;  %v22996_v44 = vcombine.high %v22980_v5, %v22980_v5  ;;  %v7835_v53 = vcombine.low %v22980_v5, %v22984_v31 }
 0x383   :  { %27607 = vst [vmem:[#allocation263_spill] sm:$0xff] %v22984_v31  ;;  %27609 = vst [vmem:[#allocation264_spill] sm:$0xff] %v22989_v4  ;;  %v23001_v46 = vrot.slane %v6542_v38, %v18751_v25  ;;  %v14573_v6 = vsel %vm698_vm0, %v13033_v36, 0.0  ;;  %v7850_v24 = vrot.slane %v7834_v21, %v18751_v25  ;;  %v23006_v56 = vrot.slane %v6543_v37, %v18751_v25 }
 0x384   :  { %27610 = vst [vmem:[#allocation265_spill] sm:$0xff] %v22992_v33  ;;  %27611 = vst [vmem:[#allocation266_spill] sm:$0xff] %v22996_v44  ;;  %v23010_v1 = vcombine.high %v22974_v55, %v22974_v55  ;;  %14574 = vadd.xlane.f32.xlu0 %v14573_v6  ;;  %v7836_v38 = vcombine.low %v22996_v44, %v22977_v58  ;;  %v7857_v50 = vrot.slane %v7835_v53, %v18751_v25 }
 0x385   :  { %27612 = vst [vmem:[#allocation267_spill] sm:$0xff] %v23001_v46  ;;  %27613 = vst [vmem:[#allocation268_spill] sm:$0xff] %v23006_v56  ;;  %v18281_v36 = vcombine.high %v22977_v58, %v22992_v33  ;;  %v23022_v21 = vcombine.high %v22989_v4, %v22989_v4  ;;  %v7865_v37 = vcombine.low %v7843_v9, %v7850_v24 }
 0x386   :  { %27614 = vst [vmem:[#allocation269_spill] sm:$0xff] %v23010_v1  ;;  %v23026_v60 = vcombine.high %v23001_v46, %v23001_v46  ;;  %v23030_v6 = vcombine.high %v23006_v56, %v23006_v56  ;;  %v8954_v47 = vcombine.low %v23001_v46, %v23010_v1  ;;  %v7864_v53 = vrot.slane %v7836_v38, %v18751_v25 }
 0x387   :  { %27615 = vst [vmem:[#allocation270_spill] sm:$0xff] %v23022_v21  ;;  %v23036_v39 = vrot.slane %v18281_v36, %v18751_v25  ;;  %v8956_v9 = vcombine.low %v23006_v56, %v23022_v21  ;;  %v6485_v24 = vrot.slane %v4868_v29, %v18751_v25  ;;  %v23042_v58 = vrot.slane %v7865_v37, %v18751_v25 }
 0x388   :  { %27616 = vst [vmem:[#allocation271_spill] sm:$0xff] %v23026_v60  ;;  %27617 = vst [vmem:[#allocation272_spill] sm:$0xff] %v23030_v6  ;;  %v8955_v44 = vcombine.low %v23026_v60, %v22989_v4  ;;  %v23047_v1 = vrot.slane %v8954_v47, %v18751_v25  ;;  %v6492_v38 = vrot.slane %v6478_v0, %v18751_v25  ;;  %v27632_v60 = vld [vmem:[#allocation157_spill] sm:$0xff] }
 0x389   :  { %27618 = vst [vmem:[#allocation273_spill] sm:$0xff] %v23042_v58  ;;  %v7866_v46 = vcombine.low %v7857_v50, %v7864_v53  ;;  %v8984_v36 = vrot.slane %v8956_v9, %v18751_v25  ;;  %v6493_v31 = vcombine.high %v6485_v24, %v6485_v24  ;;  %v23052_v21 = vrot.slane %v6485_v24, %v18751_v25 }
 0x38a   :  { %27619 = vst [vmem:[#allocation274_spill] sm:$0xff] %v23047_v1  ;;  %v8977_v22 = vrot.slane %v8955_v44, %v18751_v25  ;;  %v6494_v29 = vcombine.high %v6492_v38, %v6492_v38  ;;  %v23056_v37 = vrot.slane %v6492_v38, %v18751_v25  ;;  %v12235_v56 = vmul.f32 %v20707_v62, %v22883_v14 }
 0x38b   :  { %27620 = vst [vmem:[#allocation275_spill] sm:$0xff] %v23052_v21  ;;  %v23061_v47 = vrot.slane %v7866_v46, %v18751_v25  ;;  %v23064_v50 = vrot.slane %v6493_v31, %v18751_v25  ;;  %v23068_v0 = vcombine.high %v23052_v21, %v23052_v21  ;;  %v8904_v44 = vcombine.low %v22832_v10, %v23052_v21 }
 0x38c   :  { %27621 = vst [vmem:[#allocation276_spill] sm:$0xff] %v23056_v37  ;;  %v8986_v53 = vcombine.low %v8977_v22, %v8984_v36  ;;  %v23073_v9 = vrot.slane %v6494_v29, %v18751_v25  ;;  %v23077_v24 = vcombine.high %v23056_v37, %v23056_v37  ;;  %v13152_v46 = vrot.slane %v12235_v56, %v18751_v25 }
 0x38d   :  { %27622 = vst [vmem:[#allocation277_spill] sm:$0xff] %v23061_v47  ;;  %27623 = vst [vmem:[#allocation278_spill] sm:$0xff] %v23064_v50  ;;  %v23084_v38 = vcombine.high %v23064_v50, %v23064_v50  ;;  %v8905_v14 = vcombine.low %v23064_v50, %v23068_v0  ;;  %v8914_v36 = vrot.slane %v8904_v44, %v18751_v25 }
 0x38e   :  { %27624 = vst [vmem:[#allocation279_spill] sm:$0xff] %v23068_v0  ;;  %27625 = vst [vmem:[#allocation280_spill] sm:$0xff] %v23073_v9  ;;  %v23090_v22 = vrot.slane %v8986_v53, %v18751_v25  ;;  %v23094_v29 = vcombine.high %v23073_v9, %v23073_v9  ;;  %v8907_v56 = vcombine.low %v23073_v9, %v23077_v24  ;;  %v27630_v0 = vld [vmem:[#allocation159_spill] sm:$0xff]  ;;  %v27631_v9 = vld [vmem:[#allocation93_spill] sm:$0xff] }
 0x38f   :  { %27626 = vst [vmem:[#allocation281_spill] sm:$0xff] %v23077_v24  ;;  %27627 = vst [vmem:[#allocation282_spill] sm:$0xff] %v23084_v38  ;;  %v13159_v31 = vrot.slane %v13152_v46, %v18751_v25  ;;  %v8906_v21 = vcombine.low %v23084_v38, %v23056_v37  ;;  %v8921_v10 = vrot.slane %v8905_v14, %v18751_v25 }
 0x390   :  { %27628 = vst [vmem:[#allocation283_spill] sm:$0xff] %v23090_v22  ;;  %27629 = vst [vmem:[#allocation284_spill] sm:$0xff] %v23094_v29  ;;  %v9661_v44 = vmul.f32 %v20710_v43, %v22683_v52  ;;  %v9628_v53 = vmul.f32 %v20710_v43, %v27630_v0  ;;  %v8935_v50 = vrot.slane %v8907_v56, %v18751_v25  ;;  %v27634_v56 = vld [vmem:[#allocation158_spill] sm:$0xff] }
 0x391   :  { %v8953_v4 = vcombine.low %v23094_v29, %v22974_v55  ;;  %v14585_v24 = vsel %vm9067_vm1, %v13159_v31, 0.0  ;;  %v9629_v46 = vmul.f32 %v27443_v34, %v27631_v9  ;;  %v8928_v37 = vrot.slane %v8906_v21, %v18751_v25  ;;  %v27635_v29 = vld [vmem:[#allocation160_spill] sm:$0xff] }
 0x392   :  { %v8936_v38 = vcombine.low %v8914_v36, %v8921_v10  ;;  %14586 = vadd.xlane.f32.xlu0 %v14585_v24  ;;  %v10673_v14 = vrot.slane %v9661_v44, %v18751_v25  ;;  %v9630_v5 = vmul.f32 %v27449_v3, %v27632_v60  ;;  %v9631_v55 = vmul.f32 %v27453_v27, %v27634_v56  ;;  %v27638_v36 = vld [vmem:[#allocation148_spill] sm:$0xff] }
 0x393   :  { %v23117_v19 = vrot.slane %v8953_v4, %v18751_v25  ;;  %v9632_v31 = vmul.f32 %v27455_v35, %v27635_v29  ;;  %v9633_v57 = vmul.f32 %v20813_v17, %v27636_v13  ;;  %v8937_v21 = vcombine.low %v8928_v37, %v8935_v50  ;;  %v27639_v4 = vld [vmem:[#allocation149_spill] sm:$0xff] }
 0x394   :  { %v23126_v10 = vrot.slane %v8936_v38, %v18751_v25  ;;  %v10680_v24 = vrot.slane %v10673_v14, %v18751_v25  ;;  %v9634_v44 = vmul.f32 %v20825_v2, %v27638_v36  ;;  %v9635_v30 = vmul.f32 %v21502_v16, %v27639_v4 }
 0x395   :  { %27633 = vst [vmem:[#allocation285_spill] sm:$0xff] %v23117_v19  ;;  %v10457_v22 = vcombine.low %v9628_v53, %v9629_v46  ;;  %v10458_v6 = vcombine.low %v9630_v5, %v9631_v55  ;;  %v10459_v19 = vcombine.low %v9632_v31, %v9633_v57  ;;  %v23134_v1 = vrot.slane %v8937_v21, %v18751_v25 }
 0x396   :  { %27637 = vst [vmem:[#allocation286_spill] sm:$0xff] %v23126_v10  ;;  %v12003_v15 = vsel %vm9067_vm1, %v10680_v24, 0.0  ;;  %v12252_v37 = vmul.f32 %v20707_v62, %v22683_v52  ;;  %v12219_v50 = vmul.f32 %v20707_v62, %v27630_v0  ;;  %v10460_v38 = vcombine.low %v9634_v44, %v9635_v30 }
 0x397   :  { %27640 = vst [vmem:[#allocation287_spill] sm:$0xff] %v23134_v1  ;;  %12004 = vadd.xlane.f32.xlu1 %v12003_v15  ;;  %v10467_v14 = vrot.slane %v10457_v22, %v18751_v25  ;;  %v10474_v48 = vrot.slane %v10458_v6, %v18751_v25  ;;  %v10481_v55 = vrot.slane %v10459_v19, %v18751_v25 }
 0x398   :  { %v13264_v5 = vrot.slane %v12252_v37, %v18751_v25  ;;  %v12220_v53 = vmul.f32 %v21753_v11, %v27631_v9  ;;  %v12221_v46 = vmul.f32 %v21745_v45, %v27632_v60  ;;  %v10488_v15 = vrot.slane %v10460_v38, %v18751_v25 }
 0x399   :  { %v10489_v30 = vcombine.low %v10467_v14, %v10474_v48  ;;  %v12222_v22 = vmul.f32 %v21767_v18, %v27634_v56  ;;  %v12223_v19 = vmul.f32 %v21750_v28, %v27635_v29  ;;  %v12224_v31 = vmul.f32 %v21759_v8, %v27636_v13  ;;  %v27641_v29 = vld [vmem:[#allocation110_spill] sm:$0xff] }
 0x39a   :  { %v13271_v6 = vrot.slane %v13264_v5, %v18751_v25  ;;  %v12225_v21 = vmul.f32 %v21763_v51, %v27638_v36  ;;  %v12226_v24 = vmul.f32 %v21775_v12, %v27639_v4  ;;  %v10490_v44 = vcombine.low %v10481_v55, %v10488_v15  ;;  %v27642_v4 = vld [vmem:[#allocation69_spill] sm:$0xff] }
 0x39b   :  { %v10497_v48 = vrot.slane %v10489_v30, %v18751_v25  ;;  %v13048_v37 = vcombine.low %v12219_v50, %v12220_v53  ;;  %v13049_v38 = vcombine.low %v12221_v46, %v12222_v22  ;;  %v13050_v57 = vcombine.low %v12223_v19, %v12224_v31  ;;  %v27643_v15 = vld [vmem:[#allocation73_spill] sm:$0xff] }
 0x39c   :  { %v14594_v14 = vsel %vm9067_vm1, %v13271_v6, 0.0  ;;  %v13051_v52 = vcombine.low %v12225_v21, %v12226_v24  ;;  %v9763_v5 = vmul.f32 %v20710_v43, %v27641_v29  ;;  %v10504_v13 = vrot.slane %v10490_v44, %v18751_v25  ;;  %v27644_v6 = vld [vmem:[#allocation74_spill] sm:$0xff]  ;;  %v27645_v21 = vld [vmem:[#allocation68_spill] sm:$0xff] }
 0x39d   :  { %14595 = vadd.xlane.f32.xlu1 %v14594_v14  ;;  %v13058_v36 = vrot.slane %v13048_v37, %v18751_v25  ;;  %v13065_v56 = vrot.slane %v13049_v38, %v18751_v25  ;;  %v9730_v55 = vmul.f32 %v20710_v43, %v27642_v4  ;;  %v13072_v50 = vrot.slane %v13050_v57, %v18751_v25  ;;  %v27646_v38 = vld [vmem:[#allocation72_spill] sm:$0xff] }
 0x39e   :  { %v13079_v53 = vrot.slane %v13051_v52, %v18751_v25  ;;  %v11345_v46 = vrot.slane %v9763_v5, %v18751_v25  ;;  %v9731_v30 = vmul.f32 %v27443_v34, %v27643_v15  ;;  %v10505_v22 = vcombine.low %v10497_v48, %v10504_v13  ;;  %v27647_v52 = vld [vmem:[#allocation75_spill] sm:$0xff]  ;;  %v27649_v48 = vld [vmem:[#allocation89_spill] sm:$0xff] }
 0x39f   :  { %v13080_v19 = vcombine.low %v13058_v36, %v13065_v56  ;;  %v9732_v31 = vmul.f32 %v27449_v3, %v27644_v6  ;;  %v9733_v24 = vmul.f32 %v27453_v27, %v27645_v21  ;;  %v9734_v57 = vmul.f32 %v27455_v35, %v27646_v38  ;;  %v27648_v56 = vld [vmem:[#allocation76_spill] sm:$0xff] }
 0x3a0   :  { %v13081_v44 = vcombine.low %v13072_v50, %v13079_v53  ;;  %v11352_v37 = vrot.slane %v11345_v46, %v18751_v25  ;;  %v9735_v14 = vmul.f32 %v20813_v17, %v27647_v52  ;;  %v11988_v5 = vsel %vm698_vm0, %v10505_v22, 0.0 }
 0x3a1   :  { %v13088_v13 = vrot.slane %v13080_v19, %v18751_v25  ;;  %v9736_v36 = vmul.f32 %v20825_v2, %v27648_v56  ;;  %v9737_v60 = vmul.f32 %v21502_v16, %v27649_v48  ;;  %11989 = vadd.xlane.f32.xlu0 %v11988_v5  ;;  %v11129_v46 = vcombine.low %v9730_v55, %v9731_v30  ;;  %v27650_v19 = vld [vmem:[#allocation152_spill] sm:$0xff] }
 0x3a2   :  { %v13095_v50 = vrot.slane %v13081_v44, %v18751_v25  ;;  %v12057_v53 = vsel %vm9067_vm1, %v11352_v37, 0.0  ;;  %v11130_v9 = vcombine.low %v9732_v31, %v9733_v24  ;;  %v11131_v0 = vcombine.low %v9734_v57, %v9735_v14  ;;  %v27652_v31 = vld [vmem:[#allocation150_spill] sm:$0xff]  ;;  %v27653_v14 = vld [vmem:[#allocation151_spill] sm:$0xff] }
 0x3a3   :  { %12058 = vadd.xlane.f32.xlu1 %v12057_v53  ;;  %v11132_v1 = vcombine.low %v9736_v36, %v9737_v60  ;;  %v12354_v22 = vmul.f32 %v20707_v62, %v27641_v29  ;;  %v9636_v10 = vmul.f32 %v20710_v43, %v27650_v19  ;;  %v11139_v32 = vrot.slane %v11129_v46, %v18751_v25  ;;  %v27654_v36 = vld [vmem:[#allocation154_spill] sm:$0xff]  ;;  %v27655_v53 = vld [vmem:[#allocation183_spill] sm:$0xff] }
 0x3a4   :  { %v13096_v49 = vcombine.low %v13088_v13, %v13095_v50  ;;  %v11146_v5 = vrot.slane %v11130_v9, %v18751_v25  ;;  %v9637_v44 = vmul.f32 %v27443_v34, %v27651_v41  ;;  %v11153_v55 = vrot.slane %v11131_v0, %v18751_v25 }
 0x3a5   :  { %v11160_v30 = vrot.slane %v11132_v1, %v18751_v25  ;;  %v13936_v60 = vrot.slane %v12354_v22, %v18751_v25  ;;  %v9638_v24 = vmul.f32 %v27449_v3, %v27652_v31  ;;  %v9639_v13 = vmul.f32 %v27453_v27, %v27653_v14 }
 0x3a6   :  { %v14579_v37 = vsel %vm698_vm0, %v13096_v49, 0.0  ;;  %v11161_v57 = vcombine.low %v11139_v32, %v11146_v5  ;;  %v9640_v9 = vmul.f32 %v27455_v35, %v27654_v36  ;;  %v9641_v1 = vmul.f32 %v20813_v17, %v27655_v53  ;;  %v27656_v49 = vld [vmem:[#allocation186_spill] sm:$0xff] }
 0x3a7   :  { %14580 = vadd.xlane.f32.xlu0 %v14579_v37  ;;  %v11162_v50 = vcombine.low %v11153_v55, %v11160_v30  ;;  %v13943_v0 = vrot.slane %v13936_v60, %v18751_v25  ;;  %v9642_v46 = vmul.f32 %v20825_v2, %v27594_v7  ;;  %v9643_v32 = vmul.f32 %v21502_v16, %v27656_v49 }
 0x3a8   :  { %v11169_v22 = vrot.slane %v11161_v57, %v18751_v25  ;;  %v10506_v5 = vcombine.low %v9636_v10, %v9637_v44  ;;  %v10507_v29 = vcombine.low %v9638_v24, %v9639_v13  ;;  %v10508_v55 = vcombine.low %v9640_v9, %v9641_v1 }
 0x3a9   :  { %v11176_v47 = vrot.slane %v11162_v50, %v18751_v25  ;;  %v14648_v37 = vsel %vm9067_vm1, %v13943_v0, 0.0  ;;  %v12321_v30 = vmul.f32 %v20707_v62, %v27642_v4  ;;  %v10509_v60 = vcombine.low %v9642_v46, %v9643_v32 }
 0x3aa   :  { %14649 = vadd.xlane.f32.xlu1 %v14648_v37  ;;  %v10516_v58 = vrot.slane %v10506_v5, %v18751_v25  ;;  %v10523_v63 = vrot.slane %v10507_v29, %v18751_v25  ;;  %v12322_v57 = vmul.f32 %v21753_v11, %v27643_v15  ;;  %v10530_v10 = vrot.slane %v10508_v55, %v18751_v25 }
 0x3ab   :  { %v11177_v59 = vcombine.low %v11169_v22, %v11176_v47  ;;  %v12323_v44 = vmul.f32 %v21745_v45, %v27644_v6  ;;  %v12324_v24 = vmul.f32 %v21767_v18, %v27645_v21  ;;  %v10537_v13 = vrot.slane %v10509_v60, %v18751_v25 }
 0x3ac   :  { %v10538_v9 = vcombine.low %v10516_v58, %v10523_v63  ;;  %v12325_v50 = vmul.f32 %v21750_v28, %v27646_v38  ;;  %v12326_v29 = vmul.f32 %v21759_v8, %v27647_v52  ;;  %v12327_v47 = vmul.f32 %v21763_v51, %v27648_v56 }
 0x3ad   :  { %v12042_v0 = vsel %vm698_vm0, %v11177_v59, 0.0  ;;  %v12328_v1 = vmul.f32 %v21775_v12, %v27649_v48  ;;  %v13720_v46 = vcombine.low %v12321_v30, %v12322_v57  ;;  %v10539_v22 = vcombine.low %v10530_v10, %v10537_v13 }
 0x3ae   :  { %12043 = vadd.xlane.f32.xlu0 %v12042_v0  ;;  %v10546_v32 = vrot.slane %v10538_v9, %v18751_v25  ;;  %v13721_v63 = vcombine.low %v12323_v44, %v12324_v24  ;;  %v13722_v58 = vcombine.low %v12325_v50, %v12326_v29  ;;  %v12227_v55 = vmul.f32 %v20707_v62, %v27650_v19 }
 0x3af   :  { %v13723_v5 = vcombine.low %v12327_v47, %v12328_v1  ;;  %v13730_v37 = vrot.slane %v13720_v46, %v18751_v25  ;;  %v12228_v59 = vmul.f32 %v21753_v11, %v27651_v41  ;;  %v10553_v60 = vrot.slane %v10539_v22, %v18751_v25 }
 0x3b0   :  { %v13737_v48 = vrot.slane %v13721_v63, %v18751_v25  ;;  %v13744_v30 = vrot.slane %v13722_v58, %v18751_v25  ;;  %v12229_v57 = vmul.f32 %v21745_v45, %v27652_v31  ;;  %v12230_v44 = vmul.f32 %v21767_v18, %v27653_v14  ;;  %v27669_v14 = vld [vmem:[#allocation102_spill] sm:$0xff] }
 0x3b1   :  { %v13751_v10 = vrot.slane %v13723_v5, %v18751_v25  ;;  %v12231_v24 = vmul.f32 %v21750_v28, %v27654_v36  ;;  %v12232_v13 = vmul.f32 %v21759_v8, %v27655_v53  ;;  %v10554_v9 = vcombine.low %v10546_v32, %v10553_v60  ;;  %v27657_v36 = vld [vmem:[#allocation79_spill] sm:$0xff]  ;;  %v27659_v60 = vld [vmem:[#allocation81_spill] sm:$0xff] }
 0x3b2   :  { %v13752_v50 = vcombine.low %v13730_v37, %v13737_v48  ;;  %v12233_v29 = vmul.f32 %v21763_v51, %v27594_v7  ;;  %v12234_v0 = vmul.f32 %v21775_v12, %v27656_v49  ;;  %v13097_v1 = vcombine.low %v12227_v55, %v12228_v59  ;;  %v27665_v49 = vld [vmem:[#allocation184_spill] sm:$0xff] }
 0x3b3   :  { %v13753_v47 = vcombine.low %v13744_v30, %v13751_v10  ;;  %v13098_v46 = vcombine.low %v12229_v57, %v12230_v44  ;;  %v13099_v22 = vcombine.low %v12231_v24, %v12232_v13  ;;  %v11991_v63 = vsel %vm698_vm0, %v10554_v9, 0.0  ;;  %v27661_v57 = vld [vmem:[#allocation80_spill] sm:$0xff]  ;;  %v27663_v44 = vld [vmem:[#allocation82_spill] sm:$0xff] }
 0x3b4   :  { %v13760_v58 = vrot.slane %v13752_v50, %v18751_v25  ;;  %v13100_v5 = vcombine.low %v12233_v29, %v12234_v0  ;;  %v23269_v53 = vcombine.high %v27657_v36, %v27657_v36  ;;  %11992 = vadd.xlane.f32.xlu1 %v11991_v63  ;;  %v13107_v32 = vrot.slane %v13097_v1, %v18751_v25 }
 0x3b5   :  { %v13767_v48 = vrot.slane %v13753_v47, %v18751_v25  ;;  %v13114_v37 = vrot.slane %v13098_v46, %v18751_v25  ;;  %v13121_v55 = vrot.slane %v13099_v22, %v18751_v25  ;;  %v23278_v30 = vcombine.high %v27659_v60, %v27659_v60 }
 0x3b6   :  { %27658 = vst [vmem:[#allocation288_spill] sm:$0xff] %v23269_v53  ;;  %v13128_v59 = vrot.slane %v13100_v5, %v18751_v25  ;;  %v23282_v10 = vcombine.high %v27661_v57, %v27661_v57  ;;  %v23286_v24 = vcombine.high %v27663_v44, %v27663_v44  ;;  %v9721_v50 = vmul.f32 %v20710_v43, %v27657_v36 }
 0x3b7   :  { %27660 = vst [vmem:[#allocation289_spill] sm:$0xff] %v23278_v30  ;;  %v13768_v13 = vcombine.low %v13760_v58, %v13767_v48  ;;  %v13129_v9 = vcombine.low %v13107_v32, %v13114_v37  ;;  %v9722_v29 = vmul.f32 %v27443_v34, %v27661_v57  ;;  %v9723_v47 = vmul.f32 %v27449_v3, %v23269_v53 }
 0x3b8   :  { %27662 = vst [vmem:[#allocation290_spill] sm:$0xff] %v23282_v10  ;;  %27664 = vst [vmem:[#allocation291_spill] sm:$0xff] %v23286_v24  ;;  %v13130_v0 = vcombine.low %v13121_v55, %v13128_v59  ;;  %v9724_v1 = vmul.f32 %v27453_v27, %v23282_v10  ;;  %v9725_v46 = vmul.f32 %v27455_v35, %v27659_v60 }
 0x3b9   :  { %v14633_v22 = vsel %vm698_vm0, %v13768_v13, 0.0  ;;  %v13137_v63 = vrot.slane %v13129_v9, %v18751_v25  ;;  %v9726_v58 = vmul.f32 %v20813_v17, %v27663_v44  ;;  %v9727_v5 = vmul.f32 %v20825_v2, %v23278_v30  ;;  %v27667_v9 = vld [vmem:[#allocation188_spill] sm:$0xff] }
 0x3ba   :  { %14634 = vadd.xlane.f32.xlu0 %v14633_v22  ;;  %v13144_v48 = vrot.slane %v13130_v0, %v18751_v25  ;;  %v9728_v32 = vmul.f32 %v21502_v16, %v23286_v24  ;;  %v11066_v37 = vcombine.low %v9721_v50, %v9722_v29  ;;  %v11067_v55 = vcombine.low %v9723_v47, %v9724_v1  ;;  %v27671_v47 = vld [vmem:[#allocation174_spill] sm:$0xff] }
 0x3bb   :  { %v11068_v59 = vcombine.low %v9725_v46, %v9726_v58  ;;  %v23309_v13 = vcombine.high %v27665_v49, %v27665_v49  ;;  %v23313_v7 = vcombine.high %v27667_v9, %v27667_v9  ;;  %v23317_v31 = vcombine.high %v27669_v14, %v27669_v14 }
 0x3bc   :  { %v13145_v22 = vcombine.low %v13137_v63, %v13144_v48  ;;  %v11069_v0 = vcombine.low %v9727_v5, %v9728_v32  ;;  %v11076_v41 = vrot.slane %v11066_v37, %v18751_v25  ;;  %v11083_v50 = vrot.slane %v11067_v55, %v18751_v25 }
 0x3bd   :  { %27666 = vst [vmem:[#allocation292_spill] sm:$0xff] %v23309_v13  ;;  %27668 = vst [vmem:[#allocation293_spill] sm:$0xff] %v23313_v7  ;;  %v11090_v29 = vrot.slane %v11068_v59, %v18751_v25  ;;  %v23324_v1 = vcombine.high %v27671_v47, %v27671_v47  ;;  %v9645_v46 = vmul.f32 %v20710_v43, %v27665_v49 }
 0x3be   :  { %27670 = vst [vmem:[#allocation294_spill] sm:$0xff] %v23317_v31  ;;  %v9646_v58 = vmul.f32 %v27443_v34, %v27667_v9  ;;  %v14582_v19 = vsel %vm698_vm0, %v13145_v22, 0.0  ;;  %v11097_v63 = vrot.slane %v11069_v0, %v18751_v25  ;;  %v11098_v5 = vcombine.low %v11076_v41, %v11083_v50 }
 0x3bf   :  { %27672 = vst [vmem:[#allocation295_spill] sm:$0xff] %v23324_v1  ;;  %v9647_v48 = vmul.f32 %v27449_v3, %v23309_v13  ;;  %14583 = vadd.xlane.f32.xlu1 %v14582_v19  ;;  %v9648_v32 = vmul.f32 %v27453_v27, %v23313_v7  ;;  %v9649_v37 = vmul.f32 %v27455_v35, %v27669_v14 }
 0x3c0   :  { %v9650_v55 = vmul.f32 %v20813_v17, %v27671_v47  ;;  %v9651_v59 = vmul.f32 %v20825_v2, %v23317_v31  ;;  %v11099_v22 = vcombine.low %v11090_v29, %v11097_v63  ;;  %v11106_v0 = vrot.slane %v11098_v5, %v18751_v25 }
 0x3c1   :  { %v9652_v41 = vmul.f32 %v21502_v16, %v23324_v1  ;;  %v10569_v50 = vcombine.low %v9645_v46, %v9646_v58  ;;  %v10570_v19 = vcombine.low %v9647_v48, %v9648_v32  ;;  %v12312_v52 = vmul.f32 %v20707_v62, %v27657_v36  ;;  %v27690_v36 = vld [vmem:[#allocation162_spill] sm:$0xff] }
 0x3c2   :  { %v10571_v56 = vcombine.low %v9649_v37, %v9650_v55  ;;  %v12313_v38 = vmul.f32 %v21753_v11, %v27661_v57  ;;  %v11113_v21 = vrot.slane %v11099_v22, %v18751_v25  ;;  %v12314_v29 = vmul.f32 %v21745_v45, %v23269_v53 }
 0x3c3   :  { %v10572_v6 = vcombine.low %v9651_v59, %v9652_v41  ;;  %v10579_v15 = vrot.slane %v10569_v50, %v18751_v25  ;;  %v10586_v63 = vrot.slane %v10570_v19, %v18751_v25  ;;  %v12315_v58 = vmul.f32 %v21767_v18, %v23282_v10 }
 0x3c4   :  { %v10593_v46 = vrot.slane %v10571_v56, %v18751_v25  ;;  %v12316_v5 = vmul.f32 %v21750_v28, %v27659_v60  ;;  %v11114_v48 = vcombine.low %v11106_v0, %v11113_v21  ;;  %v12317_v37 = vmul.f32 %v21759_v8, %v27663_v44 }
 0x3c5   :  { %v10600_v32 = vrot.slane %v10572_v6, %v18751_v25  ;;  %v12318_v55 = vmul.f32 %v21763_v51, %v23278_v30  ;;  %v10601_v59 = vcombine.low %v10579_v15, %v10586_v63  ;;  %v12319_v22 = vmul.f32 %v21775_v12, %v23286_v24  ;;  %v27689_v24 = vld [vmem:[#allocation136_spill] sm:$0xff] }
 0x3c6   :  { %v13657_v56 = vcombine.low %v12312_v52, %v12313_v38  ;;  %v13658_v41 = vcombine.low %v12314_v29, %v12315_v58  ;;  %v12036_v50 = vsel %vm698_vm0, %v11114_v48, 0.0  ;;  %v13659_v10 = vcombine.low %v12316_v5, %v12317_v37 }
 0x3c7   :  { %v10602_v19 = vcombine.low %v10593_v46, %v10600_v32  ;;  %v12236_v21 = vmul.f32 %v20707_v62, %v27665_v49  ;;  %12037 = vadd.xlane.f32.xlu0 %v12036_v50  ;;  %v10609_v6 = vrot.slane %v10601_v59, %v18751_v25  ;;  %v13660_v0 = vcombine.low %v12318_v55, %v12319_v22  ;;  %v27682_v49 = vld [vmem:[#allocation87_spill] sm:$0xff] }
 0x3c8   :  { %v13667_v44 = vrot.slane %v13657_v56, %v18751_v25  ;;  %v13674_v15 = vrot.slane %v13658_v41, %v18751_v25  ;;  %v13681_v38 = vrot.slane %v13659_v10, %v18751_v25  ;;  %v12237_v52 = vmul.f32 %v21753_v11, %v27667_v9 }
 0x3c9   :  { %v10616_v63 = vrot.slane %v10602_v19, %v18751_v25  ;;  %v12238_v29 = vmul.f32 %v21745_v45, %v23309_v13  ;;  %v13688_v46 = vrot.slane %v13660_v0, %v18751_v25  ;;  %v12239_v5 = vmul.f32 %v21767_v18, %v23313_v7 }
 0x3ca   :  { %v13689_v58 = vcombine.low %v13667_v44, %v13674_v15  ;;  %v12240_v48 = vmul.f32 %v21750_v28, %v27669_v14  ;;  %v12241_v37 = vmul.f32 %v21759_v8, %v27671_v47  ;;  %v12242_v10 = vmul.f32 %v21763_v51, %v23317_v31 }
 0x3cb   :  { %v10617_v32 = vcombine.low %v10609_v6, %v10616_v63  ;;  %v12243_v55 = vmul.f32 %v21775_v12, %v23324_v1  ;;  %v13690_v59 = vcombine.low %v13681_v38, %v13688_v46  ;;  %v13160_v44 = vcombine.low %v12236_v21, %v12237_v52  ;;  %v27673_v1 = vld [vmem:[#allocation91_spill] sm:$0xff]  ;;  %v27674_v46 = vld [vmem:[#allocation92_spill] sm:$0xff] }
 0x3cc   :  { %v13697_v22 = vrot.slane %v13689_v58, %v18751_v25  ;;  %v13161_v56 = vcombine.low %v12238_v29, %v12239_v5  ;;  %v13162_v50 = vcombine.low %v12240_v48, %v12241_v37  ;;  %v9678_v6 = vmul.f32 %v20710_v43, %v22992_v33 }
 0x3cd   :  { %v11997_v41 = vsel %vm698_vm0, %v10617_v32, 0.0  ;;  %v13163_v19 = vcombine.low %v12242_v10, %v12243_v55  ;;  %v13704_v0 = vrot.slane %v13690_v59, %v18751_v25  ;;  %v13170_v15 = vrot.slane %v13160_v44, %v18751_v25  ;;  %v27675_v32 = vld [vmem:[#allocation96_spill] sm:$0xff]  ;;  %v27676_v10 = vld [vmem:[#allocation90_spill] sm:$0xff] }
 0x3ce   :  { %11998 = vadd.xlane.f32.xlu1 %v11997_v41  ;;  %v13177_v63 = vrot.slane %v13161_v56, %v18751_v25  ;;  %v9738_v38 = vmul.f32 %v20710_v43, %v27673_v1  ;;  %v13184_v21 = vrot.slane %v13162_v50, %v18751_v25  ;;  %v10785_v29 = vrot.slane %v9678_v6, %v18751_v25  ;;  %v27677_v56 = vld [vmem:[#allocation94_spill] sm:$0xff]  ;;  %v27678_v50 = vld [vmem:[#allocation95_spill] sm:$0xff] }
 0x3cf   :  { %v13191_v52 = vrot.slane %v13163_v19, %v18751_v25  ;;  %v9739_v58 = vmul.f32 %v27443_v34, %v27674_v46  ;;  %v13705_v5 = vcombine.low %v13697_v22, %v13704_v0  ;;  %v9740_v37 = vmul.f32 %v27449_v3, %v27675_v32  ;;  %v27679_v0 = vld [vmem:[#allocation98_spill] sm:$0xff] }
 0x3d0   :  { %v13192_v48 = vcombine.low %v13170_v15, %v13177_v63  ;;  %v9741_v55 = vmul.f32 %v27453_v27, %v27676_v10  ;;  %v10792_v44 = vrot.slane %v10785_v29, %v18751_v25  ;;  %v9742_v41 = vmul.f32 %v27455_v35, %v27677_v56  ;;  %v27680_v63 = vld [vmem:[#allocation84_spill] sm:$0xff] }
 0x3d1   :  { %v13193_v59 = vcombine.low %v13184_v21, %v13191_v52  ;;  %v9743_v19 = vmul.f32 %v20813_v17, %v27678_v50  ;;  %v14627_v6 = vsel %vm698_vm0, %v13705_v5, 0.0  ;;  %v9744_v15 = vmul.f32 %v20825_v2, %v27679_v0 }
 0x3d2   :  { %v13200_v22 = vrot.slane %v13192_v48, %v18751_v25  ;;  %v9745_v31 = vmul.f32 %v21502_v16, %v27680_v63  ;;  %14628 = vadd.xlane.f32.xlu0 %v14627_v6  ;;  %v12012_v52 = vsel %vm9067_vm1, %v10792_v44, 0.0  ;;  %v11178_v29 = vcombine.low %v9738_v38, %v9739_v58 }
 0x3d3   :  { %v13207_v21 = vrot.slane %v13193_v59, %v18751_v25  ;;  %v11179_v47 = vcombine.low %v9740_v37, %v9741_v55  ;;  %v11180_v14 = vcombine.low %v9742_v41, %v9743_v19  ;;  %v12269_v5 = vmul.f32 %v20707_v62, %v22992_v33  ;;  %v27685_v41 = vld [vmem:[#allocation88_spill] sm:$0xff] }
 0x3d4   :  { %v11181_v7 = vcombine.low %v9744_v15, %v9745_v31  ;;  %v23424_v48 = vcombine.high %v27680_v63, %v27680_v63  ;;  %v11188_v9 = vrot.slane %v11178_v29, %v18751_v25  ;;  %v23430_v59 = vcombine.high %v27682_v49, %v27682_v49 }
 0x3d5   :  { %v13208_v13 = vcombine.low %v13200_v22, %v13207_v21  ;;  %v11195_v6 = vrot.slane %v11179_v47, %v18751_v25  ;;  %v11202_v38 = vrot.slane %v11180_v14, %v18751_v25  ;;  %v13376_v58 = vrot.slane %v12269_v5, %v18751_v25 }
 0x3d6   :  { %27681 = vst [vmem:[#allocation296_spill] sm:$0xff] %v23424_v48  ;;  %27683 = vst [vmem:[#allocation297_spill] sm:$0xff] %v23430_v59  ;;  %v11209_v31 = vrot.slane %v11181_v7, %v18751_v25  ;;  %v23437_v37 = vcombine.high %v27540_v42, %v27540_v42  ;;  %12013 = vadd.xlane.f32.xlu0 %v12012_v52  ;;  %v23442_v47 = vcombine.high %v27685_v41, %v27685_v41 }
 0x3d7   :  { %v14588_v55 = vsel %vm698_vm0, %v13208_v13, 0.0  ;;  %v11210_v44 = vcombine.low %v11188_v9, %v11195_v6  ;;  %v9747_v19 = vmul.f32 %v20710_v43, %v23424_v48  ;;  %v13383_v7 = vrot.slane %v13376_v58, %v18751_v25  ;;  %v27687_v6 = vld [vmem:[#allocation112_spill] sm:$0xff] }
 0x3d8   :  { %27684 = vst [vmem:[#allocation298_spill] sm:$0xff] %v23437_v37  ;;  %27686 = vst [vmem:[#allocation299_spill] sm:$0xff] %v23442_v47  ;;  %14589 = vadd.xlane.f32.xlu1 %v14588_v55  ;;  %v11211_v14 = vcombine.low %v11202_v38, %v11209_v31  ;;  %v9748_v22 = vmul.f32 %v27443_v34, %v23437_v37  ;;  %v9749_v15 = vmul.f32 %v27449_v3, %v27682_v49  ;;  %v27688_v31 = vld [vmem:[#allocation114_spill] sm:$0xff] }
 0x3d9   :  { %v11218_v13 = vrot.slane %v11210_v44, %v18751_v25  ;;  %v9750_v9 = vmul.f32 %v27453_v27, %v27685_v41  ;;  %v9751_v21 = vmul.f32 %v27455_v35, %v23430_v59  ;;  %v9752_v52 = vmul.f32 %v20813_v17, %v23442_v47 }
 0x3da   :  { %v11225_v29 = vrot.slane %v11211_v14, %v18751_v25  ;;  %v14603_v5 = vsel %vm9067_vm1, %v13383_v7, 0.0  ;;  %v9753_v38 = vmul.f32 %v20825_v2, %v27687_v6  ;;  %v9754_v58 = vmul.f32 %v21502_v16, %v27688_v31 }
 0x3db   :  { %14604 = vadd.xlane.f32.xlu0 %v14603_v5  ;;  %v11241_v55 = vcombine.low %v9747_v19, %v9748_v22  ;;  %v11242_v44 = vcombine.low %v9749_v15, %v9750_v9  ;;  %v11243_v42 = vcombine.low %v9751_v21, %v9752_v52  ;;  %v9780_v30 = vmul.f32 %v20710_v43, %v27689_v24 }
 0x3dc   :  { %v11226_v60 = vcombine.low %v11218_v13, %v11225_v29  ;;  %v11244_v53 = vcombine.low %v9753_v38, %v9754_v58  ;;  %v9797_v14 = vmul.f32 %v20710_v43, %v27690_v36  ;;  %v12371_v7 = vmul.f32 %v20707_v62, %v27689_v24  ;;  %v27691_v29 = vld [vmem:[#allocation189_spill] sm:$0xff]  ;;  %v27692_v38 = vld [vmem:[#allocation190_spill] sm:$0xff]  ;;  %v27717_v36 = vld [vmem:[#allocation191_spill] sm:$0xff] }
 0x3dd   :  { %v11251_v57 = vrot.slane %v11241_v55, %v18751_v25  ;;  %v11258_v4 = vrot.slane %v11242_v44, %v18751_v25  ;;  %v11265_v5 = vrot.slane %v11243_v42, %v18751_v25  ;;  %v11457_v19 = vrot.slane %v9780_v30, %v18751_v25  ;;  %v27694_v42 = vld [vmem:[#allocation177_spill] sm:$0xff]  ;;  %v27695_v30 = vld [vmem:[#allocation178_spill] sm:$0xff] }
 0x3de   :  { %v12045_v22 = vsel %vm698_vm0, %v11226_v60, 0.0  ;;  %v11272_v15 = vrot.slane %v11244_v53, %v18751_v25  ;;  %v11569_v13 = vrot.slane %v9797_v14, %v18751_v25  ;;  %v14048_v9 = vrot.slane %v12371_v7, %v18751_v25 }
 0x3df   :  { %12046 = vadd.xlane.f32.xlu1 %v12045_v22  ;;  %v11273_v21 = vcombine.low %v11251_v57, %v11258_v4  ;;  %v11464_v52 = vrot.slane %v11457_v19, %v18751_v25  ;;  %v27693_v58 = vcombine.low %v27691_v29, %v27692_v38  ;;  %v27696_v44 = vcombine.low %v27694_v42, %v27695_v30  ;;  %v27697_v19 = vld [vmem:[#allocation182_spill] sm:$0xff] }
 0x3e0   :  { %v11274_v24 = vcombine.low %v11265_v5, %v11272_v15  ;;  %v11576_v53 = vrot.slane %v11569_v13, %v18751_v25  ;;  %v14055_v14 = vrot.slane %v14048_v9, %v18751_v25  ;;  %v7832_v4 = vcombine.low %v22762_v20, %v22670_v26  ;;  %v27702_v30 = vld [vmem:[#allocation10_spill] sm:$0xff] }
 0x3e1   :  { %v7712_v55 = vrot.slane %v27693_v58, %v18751_v25  ;;  %v7761_v60 = vrot.slane %v27696_v44, %v18751_v25  ;;  %v11281_v57 = vrot.slane %v11273_v21, %v18751_v25  ;;  %v12066_v7 = vsel %vm9067_vm1, %v11464_v52, 0.0  ;;  %v27699_v21 = vld [vmem:[#allocation17_spill] sm:$0xff]  ;;  %v27703_v44 = vld [vmem:[#allocation42_spill] sm:$0xff] }
 0x3e2   :  { %v11288_v38 = vrot.slane %v11274_v24, %v18751_v25  ;;  %12067 = vadd.xlane.f32.xlu0 %v12066_v7  ;;  %v12075_v5 = vsel %vm9067_vm1, %v11576_v53, 0.0  ;;  %v14657_v15 = vsel %vm9067_vm1, %v14055_v14, 0.0  ;;  %v7888_v13 = vrot.slane %v22992_v33, %v18751_v25  ;;  %v27701_v24 = vld [vmem:[#allocation134_spill] sm:$0xff]  ;;  %v27716_v33 = vld [vmem:[#allocation99_spill] sm:$0xff] }
 0x3e3   :  { %v7720_v22 = vcombine.low %v7712_v55, %v27697_v19  ;;  %v7769_v29 = vcombine.low %v7761_v60, %v22730_v40  ;;  %v7928_v26 = vcombine.low %v23036_v39, %v22941_v61  ;;  %v27698_v20 = vcombine.low %v22944_v23, %v22951_v54  ;;  %v27700_v40 = vld [vmem:[#allocation258_spill] sm:$0xff]  ;;  %v27705_v39 = vld [vmem:[#allocation5_spill] sm:$0xff]  ;;  %v27706_v61 = vld [vmem:[#allocation12_spill] sm:$0xff] }
 0x3e4   :  { %v7977_v52 = vcombine.low %v27700_v40, %v27699_v21  ;;  %v8000_v58 = vrot.slane %v27701_v24, %v18751_v25  ;;  %v11289_v55 = vcombine.low %v11281_v57, %v11288_v38  ;;  %v7895_v42 = vrot.slane %v7888_v13, %v18751_v25  ;;  %v27708_v57 = vld [vmem:[#allocation70_spill] sm:$0xff]  ;;  %v27709_v38 = vld [vmem:[#allocation71_spill] sm:$0xff] }
 0x3e5   :  { %v7943_v9 = vrot.slane %v27698_v20, %v18751_v25  ;;  %v27704_v60 = vcombine.low %v27702_v30, %v27703_v44  ;;  %v27707_v14 = vcombine.low %v27705_v39, %v27706_v61  ;;  %v7936_v54 = vrot.slane %v7928_v26, %v18751_v25  ;;  %v27711_v40 = vld [vmem:[#allocation55_spill] sm:$0xff]  ;;  %v27712_v44 = vld [vmem:[#allocation181_spill] sm:$0xff]  ;;  %v27713_v61 = vld [vmem:[#allocation130_spill] sm:$0xff] }
 0x3e6   :  { %v7985_v7 = vrot.slane %v7977_v52, %v18751_v25  ;;  %v8007_v19 = vrot.slane %v8000_v58, %v18751_v25  ;;  %v27710_v13 = vcombine.low %v27708_v57, %v27709_v38  ;;  %v12051_v21 = vsel %vm698_vm0, %v11289_v55, 0.0  ;;  %14658 = vadd.xlane.f32.xlu0 %v14657_v15  ;;  %v27714_v52 = vld [vmem:[#allocation21_spill] sm:$0xff] }
 0x3e7   :  { %v8018_v53 = vrot.slane %v27704_v60, %v18751_v25  ;;  %v8055_v23 = vrot.slane %v27707_v14, %v18751_v25  ;;  %v8112_v39 = vrot.slane %v27712_v44, %v18751_v25  ;;  %v9081_v14 = vrot.slane %v27713_v61, 4  ;;  %12052 = vadd.xlane.f32.xlu1 %v12051_v21  ;;  %v27715_v58 = vld [vmem:[#allocation77_spill] sm:$0xff] }
 0x3e8   :  { %v8104_v20 = vrot.slane %v27710_v13, %v18751_v25  ;;  %v7944_v26 = vcombine.low %v7936_v54, %v7943_v9  ;;  %v7993_v30 = vcombine.low %v7985_v7, %v27714_v52  ;;  %v9091_v57 = vadd.f32 %v27717_v36, %v27716_v33  ;;  %v27719_v13 = vld [vmem:[#allocation100_spill] sm:$0xff]  ;;  %v27722_v7 = vld [vmem:[#allocation253_spill] sm:$0xff] }
 0x3e9   :  { %v8040_v60 = vcombine.low %v8018_v53, %v27711_v40  ;;  %v8119_v15 = vrot.slane %v8112_v39, %v18751_v25  ;;  %v9082_v55 = vadd.f32 %v9081_v14, %v27713_v61  ;;  %v27718_v53 = vld [vmem:[#allocation161_spill] sm:$0xff]  ;;  %v27721_v9 = vld [vmem:[#allocation192_spill] sm:$0xff]  ;;  %v9109_v52 = vsel %vm698_vm0, %v7720_v22, 0.0 }
 0x3ea   :  { %v8105_v24 = vcombine.low %v27715_v58, %v8104_v20  ;;  %v27720_v40 = vcombine.low %v27718_v53, %v27719_v13  ;;  %v9092_v21 = vrot.slane %v9091_v57, 4  ;;  %v9101_v20 = vsel %vm9067_vm1, %v27722_v7, 0.0  ;;  %v27723_v53 = vld [vmem:[#allocation273_spill] sm:$0xff] }
 0x3eb   :  { %v8048_v38 = vrot.slane %v8040_v60, %v18751_v25  ;;  %v9083_v36 = vrot.slane %v9082_v55, 2  ;;  %v9110_v60 = vsel %vm698_vm0, %v7769_v29, 0.0  ;;  %v9120_v39 = vsel %vm698_vm0, %v7832_v4, 0.0  ;;  %12076 = vadd.xlane.f32.xlu1 %v12075_v5  ;;  %v27724_v13 = vld [vmem:[#allocation277_spill] sm:$0xff] }
 0x3ec   :  { %v9098_v44 = vsel %vm698_vm0, %v27720_v40, 0.0  ;;  %v9093_v61 = vadd.f32 %v9092_v21, %v9091_v57  ;;  %v9111_v58 = vadd.f32 %v9110_v60, %v9109_v52  ;;  %v27725_v40 = vcombine.low %v27723_v53, %v27724_v13  ;;  %v27726_v29 = vld [vmem:[#allocation233_spill] sm:$0xff] }
 0x3ed   :  { %v9100_v54 = vadd.f32 %v27721_v9, %v9098_v44  ;;  %v8056_v33 = vcombine.low %v8048_v38, %v8055_v23  ;;  %v9084_v9 = vadd.f32 %v9083_v36, %v9082_v55  ;;  %v9123_v7 = vsel %vm9067_vm1, %v7895_v42, 0.0 }
 0x3ee   :  { %v9121_v44 = vsel %vm698_vm0, %v27725_v40, 0.0  ;;  %v9131_v22 = vsel %vm698_vm0, %v7944_v26, 0.0  ;;  %v9094_v23 = vrot.slane %v9093_v61, 2  ;;  %v9113_v6 = vadd.f32 %v27726_v29, %v9111_v58  ;;  %v27729_v29 = vld [vmem:[#allocation135_spill] sm:$0xff] }
 0x3ef   :  { %v9102_v14 = vadd.f32 %v9101_v20, %v9100_v54  ;;  %v9122_v31 = vadd.f32 %v9121_v44, %v9120_v39  ;;  %v9132_v4 = vsel %vm698_vm0, %v7993_v30, 0.0  ;;  %v9085_v5 = vrot.slane %v9084_v9, 1 }
 0x3f0   :  { %v9133_v21 = vadd.f32 %v9132_v4, %v9131_v22  ;;  %v9134_v54 = vsel %vm9067_vm1, %v8007_v19, 0.0  ;;  %v9095_v20 = vadd.f32 %v9094_v23, %v9093_v61  ;;  %v9114_v60 = vrot.slane %v9113_v6, 4  ;;  %v27730_v4 = vld [vmem:[#allocation116_spill] sm:$0xff] }
 0x3f1   :  { %v9103_v38 = vrot.slane %v9102_v14, 4  ;;  %v9124_v57 = vadd.f32 %v9123_v7, %v9122_v31  ;;  %v9142_v55 = vsel %vm698_vm0, %v8056_v33, 0.0  ;;  %v9086_v36 = vadd.f32 %v9085_v5, %v9084_v9  ;;  %v27727_v7 = vld [vmem:[#allocation133_spill] sm:$0xff] }
 0x3f2   :  { %v9135_v39 = vadd.f32 %v9134_v54, %v9133_v21  ;;  %v9143_v26 = vsel %vm698_vm0, %v8105_v24, 0.0  ;;  %v9096_v53 = vrot.slane %v9095_v20, 1  ;;  %v9115_v58 = vadd.f32 %v9114_v60, %v9113_v6  ;;  %v27731_v54 = vld [vmem:[#allocation119_spill] sm:$0xff] }
 0x3f3   :  { %v9104_v52 = vadd.f32 %v9103_v38, %v9102_v14  ;;  %v9125_v42 = vrot.slane %v9124_v57, 4  ;;  %v9144_v40 = vadd.f32 %v9143_v26, %v9142_v55  ;;  %v9145_v31 = vsel %vm9067_vm1, %v8119_v15, 0.0 }
 0x3f4   :  { %v9136_v44 = vrot.slane %v9135_v39, 4  ;;  %v27728_v19 = vrot.slane %v27727_v7, 1  ;;  %v9097_v14 = vadd.f32 %v9096_v53, %v9095_v20  ;;  %v9116_v33 = vrot.slane %v9115_v58, 2 }
 0x3f5   :  { %v9105_v13 = vrot.slane %v9104_v52, 2  ;;  %v9126_v30 = vadd.f32 %v9125_v42, %v9124_v57  ;;  %v9146_v9 = vadd.f32 %v9145_v31, %v9144_v40  ;;  %v9295_v24 = vrot.slane %v27729_v29, 1 }
 0x3f6   :  { %v9289_v61 = vadd.f32 %v27728_v19, %v27727_v7  ;;  %v9137_v38 = vadd.f32 %v9136_v44, %v9135_v39  ;;  %v9354_v5 = vadd.f32 %v27730_v4, %v9086_v36  ;;  %v9117_v21 = vadd.f32 %v9116_v33, %v9115_v58  ;;  %v27732_v44 = vld [vmem:[#allocation117_spill] sm:$0xff]  ;;  %v27733_v7 = vld [vmem:[#allocation118_spill] sm:$0xff] }
 0x3f7   :  { %v9106_v22 = vadd.f32 %v9105_v13, %v9104_v52  ;;  %v9127_v23 = vrot.slane %v9126_v30, 2  ;;  %v9147_v57 = vrot.slane %v9146_v9, 4  ;;  %v9355_v60 = vadd.f32 %v27731_v54, %v9097_v14 }
 0x3f8   :  { %v9138_v55 = vrot.slane %v9137_v38, 2  ;;  %v9296_v42 = vadd.f32 %v9295_v24, %v27729_v29  ;;  %v9370_v26 = vmul.f32 0.04, %v9354_v5  ;;  %v9118_v52 = vrot.slane %v9117_v21, 1  ;;  %v27735_v24 = vld [vmem:[#allocation128_spill] sm:$0xff] }
 0x3f9   :  { %v9107_v6 = vrot.slane %v9106_v22, 1  ;;  %v9128_v15 = vadd.f32 %v9127_v23, %v9126_v30  ;;  %v9148_v53 = vadd.f32 %v9147_v57, %v9146_v9  ;;  %v9371_v13 = vmul.f32 0.04, %v9355_v60  ;;  %v27734_v23 = vld [vmem:[#allocation129_spill] sm:$0xff] }
 0x3fa   :  { %v9139_v39 = vadd.f32 %v9138_v55, %v9137_v38  ;;  %v9413_v31 = vsel %vm9412_vm2, %v9370_v26, %v27732_v44  ;;  %v9119_v36 = vadd.f32 %v9118_v52, %v9117_v21  ;;  %v12329_v57 = vmul.f32 %v20707_v62, %v27673_v1 }
 0x3fb   :  { %v9108_v20 = vadd.f32 %v9107_v6, %v9106_v22  ;;  %v9129_v40 = vrot.slane %v9128_v15, 1  ;;  %v9149_v58 = vrot.slane %v9148_v53, 2  ;;  %v9415_v30 = vsel %vm9414_vm3, %v9371_v13, %v9413_v31 }
 0x3fc   :  { %v9140_v33 = vrot.slane %v9139_v39, 1  ;;  %v9357_v9 = vadd.f32 %v27734_v23, %v9119_v36  ;;  %v12331_v55 = vmul.f32 %v21745_v45, %v27675_v32  ;;  %v12332_v52 = vmul.f32 %v21767_v18, %v27676_v10 }
 0x3fd   :  { %v9356_v19 = vadd.f32 %v27733_v7, %v9108_v20  ;;  %v9130_v14 = vadd.f32 %v9129_v40, %v9128_v15  ;;  %v9150_v22 = vadd.f32 %v9149_v58, %v9148_v53  ;;  %v12330_v15 = vmul.f32 %v21753_v11, %v27674_v46 }
 0x3fe   :  { %v9141_v38 = vadd.f32 %v9140_v33, %v9139_v39  ;;  %v9373_v6 = vmul.f32 0.04, %v9357_v9  ;;  %v12333_v53 = vmul.f32 %v21750_v28, %v27677_v56  ;;  %v12335_v39 = vmul.f32 %v21763_v51, %v27679_v0  ;;  %v27738_v33 = vld [vmem:[#allocation175_spill] sm:$0xff] }
 0x3ff   :  { %v9372_v29 = vmul.f32 0.04, %v9356_v19  ;;  %v9358_v4 = vadd.f32 %v27735_v24, %v9130_v14  ;;  %v9151_v5 = vrot.slane %v9150_v22, 1  ;;  %v12336_v31 = vmul.f32 %v21775_v12, %v27680_v63  ;;  %v27740_v24 = vld [vmem:[#allocation227_spill] sm:$0xff] }
 0x400   :  { %v9359_v54 = vadd.f32 %v9289_v61, %v9141_v38  ;;  %v12334_v61 = vmul.f32 %v21759_v8, %v27678_v50  ;;  %v13769_v36 = vcombine.low %v12329_v57, %v12330_v15  ;;  %v13770_v58 = vcombine.low %v12331_v55, %v12332_v52  ;;  %v27757_v63 = vld [vmem:[#allocation15_spill] sm:$0xff] }
 0x401   :  { %v9417_v21 = vsel %vm9416_vm4, %v9372_v29, %v9415_v30  ;;  %v9374_v60 = vmul.f32 0.04, %v9358_v4  ;;  %v9152_v26 = vadd.f32 %v9151_v5, %v9150_v22  ;;  %v27736_v30 = vld [vmem:[#allocation173_spill] sm:$0xff]  ;;  %v23599_v22 = vcombine.high %v27738_v33, %v27738_v33 }
 0x402   :  { %v9419_v20 = vsel %vm9418_vm5, %v9373_v6, %v9417_v21  ;;  %v9375_v13 = vmul.f32 0.04, %v9359_v54  ;;  %v13771_v19 = vcombine.low %v12333_v53, %v12334_v61  ;;  %v23595_v14 = vcombine.high %v27736_v30, %v27736_v30  ;;  %v27742_v5 = vld [vmem:[#allocation229_spill] sm:$0xff] }
 0x403   :  { %v9421_v40 = vsel %vm9420_vm6, %v9374_v60, %v9419_v20  ;;  %v9360_v44 = vadd.f32 %v9296_v42, %v9152_v26  ;;  %27739 = vst [vmem:[#allocation190_spill] sm:$0xff] %v23599_v22  ;;  %v13772_v9 = vcombine.low %v12335_v39, %v12336_v31  ;;  %v13779_v42 = vrot.slane %v13769_v36, %v18751_v25  ;;  %v27744_v36 = vld [vmem:[#allocation250_spill] sm:$0xff] }
 0x404   :  { %v9423_v7 = vsel %vm9422_vm7, %v9375_v13, %v9421_v40  ;;  %27737 = vst [vmem:[#allocation189_spill] sm:$0xff] %v23595_v14  ;;  %v13786_v29 = vrot.slane %v13770_v58, %v18751_v25  ;;  %v13793_v38 = vrot.slane %v13771_v19, %v18751_v25  ;;  %v23606_v4 = vcombine.high %v27740_v24, %v27740_v24  ;;  %v27745_v58 = vld [vmem:[#allocation249_spill] sm:$0xff] }
 0x405   :  { %v9376_v23 = vmul.f32 0.04, %v9360_v44  ;;  %v23610_v6 = vcombine.high %v27742_v5, %v27742_v5  ;;  %v9653_v21 = vmul.f32 %v20710_v43, %v27736_v30  ;;  %v13800_v54 = vrot.slane %v13772_v9, %v18751_v25  ;;  %v27746_v9 = vld [vmem:[#allocation248_spill] sm:$0xff] }
 0x406   :  { %27741 = vst [vmem:[#allocation177_spill] sm:$0xff] %v23606_v4  ;;  %v13801_v60 = vcombine.low %v13779_v42, %v13786_v29  ;;  %v9654_v15 = vmul.f32 %v27443_v34, %v27738_v33  ;;  %v9655_v55 = vmul.f32 %v27449_v3, %v23595_v14  ;;  %v9656_v26 = vmul.f32 %v27453_v27, %v23599_v22  ;;  %v27747_v42 = vld [vmem:[#allocation251_spill] sm:$0xff] }
 0x407   :  { %27743 = vst [vmem:[#allocation178_spill] sm:$0xff] %v23610_v6  ;;  %v9425_v57 = vsel %vm9424_vm8, %v9376_v23, %v9423_v7  ;;  %v9657_v20 = vmul.f32 %v27455_v35, %v27740_v24  ;;  %v9658_v52 = vmul.f32 %v20813_v17, %v27742_v5  ;;  %v13802_v53 = vcombine.low %v13793_v38, %v13800_v54  ;;  %v27748_v38 = vld [vmem:[#allocation243_spill] sm:$0xff] }
 0x408   :  { %18436 = vmatprep.mubr.msk.f32.mxu0 %vm698_vm0, %v9425_v57  ;;  %v13809_v13 = vrot.slane %v13801_v60, %v18751_v25  ;;  %v9659_v40 = vmul.f32 %v20825_v2, %v23606_v4  ;;  %v9660_v61 = vmul.f32 %v21502_v16, %v23610_v6  ;;  %v10618_v39 = vcombine.low %v9653_v21, %v9654_v15 }
 0x409   :  { %v10619_v44 = vcombine.low %v9655_v55, %v9656_v26  ;;  %v10620_v31 = vcombine.low %v9657_v20, %v9658_v52  ;;  %v8840_v7 = vcombine.low %v27745_v58, %v27744_v36  ;;  %v13816_v19 = vrot.slane %v13802_v53, %v18751_v25  ;;  %v27750_v55 = vld [vmem:[#allocation274_spill] sm:$0xff]  ;;  %v27751_v26 = vld [vmem:[#allocation285_spill] sm:$0xff] }
 0x40a   :  { %v10621_v23 = vcombine.low %v9659_v40, %v9660_v61  ;;  %v8889_v29 = vcombine.low %v27747_v42, %v27746_v9  ;;  %v27749_v57 = vrot.slane %v27748_v38, %v18751_v25  ;;  %v10628_v60 = vrot.slane %v10618_v39, %v18751_v25  ;;  %v27752_v40 = vld [vmem:[#allocation272_spill] sm:$0xff]  ;;  %v27753_v36 = vld [vmem:[#allocation101_spill] sm:$0xff]  ;;  %v27754_v58 = vld [vmem:[#allocation170_spill] sm:$0xff] }
 0x40b   :  { %v10635_v21 = vrot.slane %v10619_v44, %v18751_v25  ;;  %v10642_v15 = vrot.slane %v10620_v31, %v18751_v25  ;;  %v8985_v20 = vcombine.low %v27751_v26, %v27750_v55  ;;  %v13817_v52 = vcombine.low %v13809_v13, %v13816_v19  ;;  %v27756_v44 = vld [vmem:[#allocation172_spill] sm:$0xff]  ;;  %v27760_v13 = vld [vmem:[#allocation210_spill] sm:$0xff] }
 0x40c   :  { %v8903_v54 = vrot.slane %v27749_v57, %v18751_v25  ;;  %v10649_v53 = vrot.slane %v10621_v23, %v18751_v25  ;;  %v9008_v61 = vrot.slane %v27752_v40, %v18751_v25  ;;  %v27755_v9 = vcombine.low %v27753_v36, %v27754_v58  ;;  %v27759_v55 = vld [vmem:[#allocation208_spill] sm:$0xff] }
 0x40d   :  { %v10650_v57 = vcombine.low %v10628_v60, %v10635_v21  ;;  %v8993_v39 = vrot.slane %v8985_v20, %v18751_v25  ;;  %v27758_v31 = vcombine.low %v27756_v44, %v27757_v63  ;;  %v27761_v19 = vcombine.low %v27759_v55, %v27760_v13  ;;  %v27762_v21 = vld [vmem:[#allocation283_spill] sm:$0xff] }
 0x40e   :  { %v9197_v42 = vsel %vm698_vm0, %v27755_v9, 0.0  ;;  %v14636_v26 = vsel %vm698_vm0, %v13817_v52, 0.0  ;;  %v10651_v50 = vcombine.low %v10642_v15, %v10649_v53  ;;  %v9015_v36 = vrot.slane %v9008_v61, %v18751_v25  ;;  %v27763_v9 = vld [vmem:[#allocation214_spill] sm:$0xff]  ;;  %v27764_v44 = vld [vmem:[#allocation207_spill] sm:$0xff] }
 0x40f   :  { %v9198_v0 = vsel %vm698_vm0, %v27758_v31, 0.0  ;;  %v9209_v23 = vsel %vm698_vm0, %v27761_v19, 0.0  ;;  %14637 = vadd.xlane.f32.xlu1 %v14636_v26  ;;  %v10658_v60 = vrot.slane %v10650_v57, %v18751_v25  ;;  %v9001_v20 = vcombine.low %v8993_v39, %v27762_v21  ;;  %v27765_v13 = vld [vmem:[#allocation187_spill] sm:$0xff] }
 0x410   :  { %v9199_v58 = vadd.f32 %v9198_v0, %v9197_v42  ;;  %v9210_v63 = vadd.f32 %v9209_v23, %v27763_v9  ;;  %v9211_v31 = vsel %vm9067_vm1, %v27764_v44, 0.0  ;;  %v10665_v55 = vrot.slane %v10651_v50, %v18751_v25  ;;  %v27766_v42 = vld [vmem:[#allocation286_spill] sm:$0xff]  ;;  %v27767_v57 = vld [vmem:[#allocation287_spill] sm:$0xff] }
 0x411   :  { %v9219_v52 = vsel %vm698_vm0, %v8840_v7, 0.0  ;;  %v9220_v15 = vsel %vm698_vm0, %v8889_v29, 0.0  ;;  %v9222_v61 = vsel %vm9067_vm1, %v8903_v54, 0.0  ;;  %v27768_v39 = vcombine.low %v27766_v42, %v27767_v57  ;;  %v27770_v29 = vld [vmem:[#allocation153_spill] sm:$0xff] }
 0x412   :  { %v9201_v19 = vadd.f32 %v27765_v13, %v9199_v58  ;;  %v9212_v53 = vadd.f32 %v9211_v31, %v9210_v63  ;;  %v9221_v0 = vadd.f32 %v9220_v15, %v9219_v52  ;;  %v10666_v26 = vcombine.low %v10658_v60, %v10665_v55  ;;  %v27769_v13 = vld [vmem:[#allocation36_spill] sm:$0xff] }
 0x413   :  { %v9230_v23 = vsel %vm698_vm0, %v27768_v39, 0.0  ;;  %v9231_v9 = vsel %vm698_vm0, %v9001_v20, 0.0  ;;  %v9233_v50 = vsel %vm9067_vm1, %v9015_v36, 0.0  ;;  %v9427_v63 = vsel %vm9414_vm3, %v27770_v29, %v27769_v13  ;;  %v27771_v52 = vld [vmem:[#allocation8_spill] sm:$0xff] }
 0x414   :  { %v9202_v21 = vrot.slane %v9201_v19, 4  ;;  %v9213_v58 = vrot.slane %v9212_v53, 4  ;;  %v9223_v44 = vadd.f32 %v9222_v61, %v9221_v0  ;;  %v9232_v7 = vadd.f32 %v9231_v9, %v9230_v23  ;;  %v27772_v9 = vld [vmem:[#allocation112_spill] sm:$0xff] }
 0x415   :  { %v12000_v54 = vsel %vm698_vm0, %v10666_v26, 0.0  ;;  %v9428_v15 = vsel %vm9416_vm4, %v27771_v52, %v9427_v63  ;;  %v12338_v60 = vmul.f32 %v20707_v62, %v23424_v48  ;;  %v12339_v0 = vmul.f32 %v21753_v11, %v23437_v37 }
 0x416   :  { %v9203_v31 = vadd.f32 %v9202_v21, %v9201_v19  ;;  %12001 = vadd.xlane.f32.xlu0 %v12000_v54  ;;  %v9214_v20 = vadd.f32 %v9213_v58, %v9212_v53  ;;  %v9224_v55 = vrot.slane %v9223_v44, 4  ;;  %v9234_v36 = vadd.f32 %v9233_v50, %v9232_v7  ;;  %v27773_v58 = vld [vmem:[#allocation114_spill] sm:$0xff] }
 0x417   :  { %v12340_v42 = vmul.f32 %v21745_v45, %v27682_v49  ;;  %v12341_v19 = vmul.f32 %v21767_v18, %v27685_v41  ;;  %v12342_v57 = vmul.f32 %v21750_v28, %v23430_v59  ;;  %v12343_v53 = vmul.f32 %v21759_v8, %v23442_v47 }
 0x418   :  { %v9204_v61 = vrot.slane %v9203_v31, 2  ;;  %v9215_v39 = vrot.slane %v9214_v20, 2  ;;  %v9225_v23 = vadd.f32 %v9224_v55, %v9223_v44  ;;  %v9235_v26 = vrot.slane %v9234_v36, 4 }
 0x419   :  { %v12344_v50 = vmul.f32 %v21763_v51, %v27772_v9  ;;  %v12345_v7 = vmul.f32 %v21775_v12, %v27773_v58  ;;  %v13832_v13 = vcombine.low %v12338_v60, %v12339_v0  ;;  %v13833_v52 = vcombine.low %v12340_v42, %v12341_v19  ;;  %v27774_v19 = vld [vmem:[#allocation18_spill] sm:$0xff] }
 0x41a   :  { %v9205_v21 = vadd.f32 %v9204_v61, %v9203_v31  ;;  %v9216_v29 = vadd.f32 %v9215_v39, %v9214_v20  ;;  %v9226_v63 = vrot.slane %v9225_v23, 2  ;;  %v9236_v54 = vadd.f32 %v9235_v26, %v9234_v36 }
 0x41b   :  { %v13834_v10 = vcombine.low %v12342_v57, %v12343_v53  ;;  %v13835_v32 = vcombine.low %v12344_v50, %v12345_v7  ;;  %v13842_v44 = vrot.slane %v13832_v13, %v18751_v25  ;;  %v13849_v31 = vrot.slane %v13833_v52, %v18751_v25  ;;  %v27775_v53 = vld [vmem:[#allocation171_spill] sm:$0xff]  ;;  %v27776_v13 = vld [vmem:[#allocation176_spill] sm:$0xff] }
 0x41c   :  { %v9206_v56 = vrot.slane %v9205_v21, 1  ;;  %v9217_v55 = vrot.slane %v9216_v29, 1  ;;  %v9227_v46 = vadd.f32 %v9226_v63, %v9225_v23  ;;  %v9237_v1 = vrot.slane %v9236_v54, 2 }
 0x41d   :  { %v13856_v47 = vrot.slane %v13834_v10, %v18751_v25  ;;  %v13863_v59 = vrot.slane %v13835_v32, %v18751_v25  ;;  %v12244_v60 = vmul.f32 %v20707_v62, %v27736_v30  ;;  %v13864_v42 = vcombine.low %v13842_v44, %v13849_v31  ;;  %v27777_v31 = vld [vmem:[#allocation180_spill] sm:$0xff] }
 0x41e   :  { %v9207_v61 = vadd.f32 %v9206_v56, %v9205_v21  ;;  %v9218_v20 = vadd.f32 %v9217_v55, %v9216_v29  ;;  %v9228_v36 = vrot.slane %v9227_v46, 1  ;;  %v9238_v0 = vadd.f32 %v9237_v1, %v9236_v54 }
 0x41f   :  { %v13865_v39 = vcombine.low %v13856_v47, %v13863_v59  ;;  %v12245_v23 = vmul.f32 %v21753_v11, %v27738_v33  ;;  %v12246_v56 = vmul.f32 %v21745_v45, %v23595_v14  ;;  %v13872_v21 = vrot.slane %v13864_v42, %v18751_v25  ;;  %v27829_v33 = vld [vmem:[#allocation104_spill] sm:$0xff] }
 0x420   :  { %v9365_v57 = vadd.f32 %v27774_v19, %v9207_v61  ;;  %v9229_v26 = vadd.f32 %v9228_v36, %v9227_v46  ;;  %v9239_v10 = vrot.slane %v9238_v0, 1  ;;  %v9366_v32 = vadd.f32 %v27775_v53, %v9218_v20  ;;  %v27778_v53 = vld [vmem:[#allocation162_spill] sm:$0xff] }
 0x421   :  { %v13879_v7 = vrot.slane %v13865_v39, %v18751_v25  ;;  %v12247_v1 = vmul.f32 %v21767_v18, %v23599_v22  ;;  %v12248_v59 = vmul.f32 %v21750_v28, %v27740_v24  ;;  %v12249_v46 = vmul.f32 %v21759_v8, %v27742_v5 }
 0x422   :  { %v9381_v50 = vmul.f32 0.04, %v9365_v57  ;;  %v9240_v47 = vadd.f32 %v9239_v10, %v9238_v0  ;;  %v9367_v29 = vadd.f32 %v27776_v13, %v9229_v26  ;;  %v9382_v63 = vmul.f32 0.04, %v9366_v32  ;;  %v27781_v13 = vld [vmem:[#allocation232_spill] sm:$0xff] }
 0x423   :  { %v13880_v52 = vcombine.low %v13872_v21, %v13879_v7  ;;  %v12250_v44 = vmul.f32 %v21763_v51, %v23606_v4  ;;  %v12251_v55 = vmul.f32 %v21775_v12, %v23610_v6  ;;  %v13209_v0 = vcombine.low %v12244_v60, %v12245_v23  ;;  %v27779_v23 = vld [vmem:[#allocation230_spill] sm:$0xff]  ;;  %v27788_v6 = vld [vmem:[#allocation224_spill] sm:$0xff] }
 0x424   :  { %v9429_v54 = vsel %vm9418_vm5, %v9381_v50, %v9428_v15  ;;  %v9368_v61 = vadd.f32 %v27777_v31, %v9240_v47  ;;  %v9383_v20 = vmul.f32 0.04, %v9367_v29  ;;  %v13210_v19 = vcombine.low %v12246_v56, %v12247_v1 }
 0x425   :  { %v9430_v36 = vsel %vm9420_vm6, %v9382_v63, %v9429_v54  ;;  %v14642_v42 = vsel %vm698_vm0, %v13880_v52, 0.0  ;;  %v13211_v57 = vcombine.low %v12248_v59, %v12249_v46  ;;  %v13212_v39 = vcombine.low %v12250_v44, %v12251_v55  ;;  %v27780_v59 = vld [vmem:[#allocation231_spill] sm:$0xff]  ;;  %v27783_v44 = vld [vmem:[#allocation221_spill] sm:$0xff] }
 0x426   :  { %v9384_v26 = vmul.f32 0.04, %v9368_v61  ;;  %v9431_v15 = vsel %vm9422_vm7, %v9383_v20, %v9430_v36  ;;  %14643 = vadd.xlane.f32.xlu1 %v14642_v42  ;;  %v13219_v10 = vrot.slane %v13209_v0, %v18751_v25  ;;  %v12388_v32 = vmul.f32 %v20707_v62, %v27778_v53  ;;  %v27782_v54 = vld [vmem:[#allocation219_spill] sm:$0xff]  ;;  %v27784_v61 = vld [vmem:[#allocation222_spill] sm:$0xff]  ;;  %v27785_v36 = vld [vmem:[#allocation225_spill] sm:$0xff] }
 0x427   :  { %v13226_v21 = vrot.slane %v13210_v19, %v18751_v25  ;;  %v13233_v50 = vrot.slane %v13211_v57, %v18751_v25  ;;  %v13240_v60 = vrot.slane %v13212_v39, %v18751_v25  ;;  %v9662_v56 = vmul.f32 %v20710_v43, %v27779_v23  ;;  %v27786_v42 = vld [vmem:[#allocation220_spill] sm:$0xff] }
 0x428   :  { %v9432_v7 = vsel %vm9424_vm8, %v9384_v26, %v9431_v15  ;;  %v14160_v1 = vrot.slane %v12388_v32, %v18751_v25  ;;  %v9663_v47 = vmul.f32 %v27443_v34, %v27780_v59  ;;  %v9664_v29 = vmul.f32 %v27449_v3, %v27781_v13 }
 0x429   :  { %18437 = vmatmul.mubr.msk.f32.vlgmr.msra.gmra.mxu0 %vm698_vm0, %v9432_v7  ;;  %v13241_v63 = vcombine.low %v13219_v10, %v13226_v21  ;;  %v13242_v46 = vcombine.low %v13233_v50, %v13240_v60  ;;  %v9665_v52 = vmul.f32 %v27453_v27, %v27782_v54  ;;  %v9666_v55 = vmul.f32 %v27455_v35, %v27783_v44  ;;  %v27787_v50 = vld [vmem:[#allocation223_spill] sm:$0xff] }
 0x42a   :  { %v14167_v31 = vrot.slane %v14160_v1, %v18751_v25  ;;  %v9667_v20 = vmul.f32 %v20813_v17, %v27784_v61  ;;  %v9668_v0 = vmul.f32 %v20825_v2, %v27785_v36  ;;  %v9669_v19 = vmul.f32 %v21502_v16, %v27786_v42 }
 0x42b   :  { %v13249_v57 = vrot.slane %v13241_v63, %v18751_v25  ;;  %v13256_v39 = vrot.slane %v13242_v46, %v18751_v25  ;;  %v10681_v26 = vcombine.low %v9662_v56, %v9663_v47  ;;  %v10682_v15 = vcombine.low %v9664_v29, %v9665_v52  ;;  %v27789_v47 = vld [vmem:[#allocation226_spill] sm:$0xff]  ;;  %v27790_v52 = vld [vmem:[#allocation259_spill] sm:$0xff] }
 0x42c   :  { %v14666_v10 = vsel %vm9067_vm1, %v14167_v31, 0.0  ;;  %v10683_v32 = vcombine.low %v9666_v55, %v9667_v20  ;;  %v10684_v21 = vcombine.low %v9668_v0, %v9669_v19  ;;  %v9670_v60 = vmul.f32 %v20710_v43, %v27787_v50  ;;  %v27791_v0 = vld [vmem:[#allocation262_spill] sm:$0xff] }
 0x42d   :  { %v13257_v7 = vcombine.low %v13249_v57, %v13256_v39  ;;  %14667 = vadd.xlane.f32.xlu1 %v14666_v10  ;;  %v10691_v1 = vrot.slane %v10681_v26, %v18751_v25  ;;  %v10698_v53 = vrot.slane %v10682_v15, %v18751_v25  ;;  %v9671_v63 = vmul.f32 %v27443_v34, %v27788_v6  ;;  %v27792_v57 = vld [vmem:[#allocation263_spill] sm:$0xff]  ;;  %v27793_v15 = vld [vmem:[#allocation266_spill] sm:$0xff] }
 0x42e   :  { %v10705_v46 = vrot.slane %v10683_v32, %v18751_v25  ;;  %v10712_v56 = vrot.slane %v10684_v21, %v18751_v25  ;;  %v9672_v29 = vmul.f32 %v27449_v3, %v27789_v47  ;;  %v9673_v55 = vmul.f32 %v27453_v27, %v27790_v52  ;;  %v27794_v32 = vld [vmem:[#allocation261_spill] sm:$0xff] }
 0x42f   :  { %v14591_v31 = vsel %vm698_vm0, %v13257_v7, 0.0  ;;  %v10713_v20 = vcombine.low %v10691_v1, %v10698_v53  ;;  %v9674_v19 = vmul.f32 %v27455_v35, %v27791_v0  ;;  %v9675_v39 = vmul.f32 %v20813_v17, %v27792_v57 }
 0x430   :  { %14592 = vadd.xlane.f32.xlu0 %v14591_v31  ;;  %v10714_v26 = vcombine.low %v10705_v46, %v10712_v56  ;;  %v9676_v10 = vmul.f32 %v20825_v2, %v27793_v15  ;;  %v9677_v21 = vmul.f32 %v21502_v16, %v27794_v32  ;;  %v10730_v4 = vcombine.low %v9670_v60, %v9671_v63 }
 0x431   :  { %v10721_v5 = vrot.slane %v10713_v20, %v18751_v25  ;;  %v10731_v24 = vcombine.low %v9672_v29, %v9673_v55  ;;  %v10732_v7 = vcombine.low %v9674_v19, %v9675_v39  ;;  %v12253_v53 = vmul.f32 %v20707_v62, %v27779_v23 }
 0x432   :  { %v10728_v1 = vrot.slane %v10714_v26, %v18751_v25  ;;  %v10733_v22 = vcombine.low %v9676_v10, %v9677_v21  ;;  %v10740_v31 = vrot.slane %v10730_v4, %v18751_v25  ;;  %v12254_v46 = vmul.f32 %v21753_v11, %v27780_v59 }
 0x433   :  { %v10747_v56 = vrot.slane %v10731_v24, %v18751_v25  ;;  %v10754_v14 = vrot.slane %v10732_v7, %v18751_v25  ;;  %v12255_v60 = vmul.f32 %v21745_v45, %v27781_v13  ;;  %v12256_v63 = vmul.f32 %v21767_v18, %v27782_v54 }
 0x434   :  { %v10729_v29 = vcombine.low %v10721_v5, %v10728_v1  ;;  %v10761_v55 = vrot.slane %v10733_v22, %v18751_v25  ;;  %v12257_v20 = vmul.f32 %v21750_v28, %v27783_v44  ;;  %v12258_v4 = vmul.f32 %v21759_v8, %v27784_v61 }
 0x435   :  { %v10762_v19 = vcombine.low %v10740_v31, %v10747_v56  ;;  %v12259_v24 = vmul.f32 %v21763_v51, %v27785_v36  ;;  %v12260_v39 = vmul.f32 %v21775_v12, %v27786_v42  ;;  %v13272_v26 = vcombine.low %v12253_v53, %v12254_v46 }
 0x436   :  { %v12006_v10 = vsel %vm698_vm0, %v10729_v29, 0.0  ;;  %v10763_v21 = vcombine.low %v10754_v14, %v10761_v55  ;;  %v13273_v5 = vcombine.low %v12255_v60, %v12256_v63  ;;  %v13274_v7 = vcombine.low %v12257_v20, %v12258_v4 }
 0x437   :  { %12007 = vadd.xlane.f32.xlu0 %v12006_v10  ;;  %v13275_v22 = vcombine.low %v12259_v24, %v12260_v39  ;;  %v10770_v1 = vrot.slane %v10762_v19, %v18751_v25  ;;  %v13282_v31 = vrot.slane %v13272_v26, %v18751_v25  ;;  %v12261_v53 = vmul.f32 %v20707_v62, %v27787_v50 }
 0x438   :  { %v10777_v44 = vrot.slane %v10763_v21, %v18751_v25  ;;  %v13289_v56 = vrot.slane %v13273_v5, %v18751_v25  ;;  %v13296_v36 = vrot.slane %v13274_v7, %v18751_v25  ;;  %v12262_v60 = vmul.f32 %v21753_v11, %v27788_v6  ;;  %v27795_v21 = vld [vmem:[#allocation255_spill] sm:$0xff] }
 0x439   :  { %v13303_v42 = vrot.slane %v13275_v22, %v18751_v25  ;;  %v12264_v63 = vmul.f32 %v21767_v18, %v27790_v52  ;;  %v12263_v55 = vmul.f32 %v21745_v45, %v27789_v47  ;;  %v12265_v20 = vmul.f32 %v21750_v28, %v27791_v0 }
 0x43a   :  { %v10778_v14 = vcombine.low %v10770_v1, %v10777_v44  ;;  %v13304_v46 = vcombine.low %v13282_v31, %v13289_v56  ;;  %v12266_v44 = vmul.f32 %v21759_v8, %v27792_v57  ;;  %v12267_v24 = vmul.f32 %v21763_v51, %v27793_v15  ;;  %v27797_v1 = vld [vmem:[#allocation257_spill] sm:$0xff] }
 0x43b   :  { %v13305_v29 = vcombine.low %v13296_v36, %v13303_v42  ;;  %v12268_v36 = vmul.f32 %v21775_v12, %v27794_v32  ;;  %v13321_v42 = vcombine.low %v12261_v53, %v12262_v60  ;;  %v13322_v26 = vcombine.low %v12263_v55, %v12264_v63  ;;  %v27799_v56 = vld [vmem:[#allocation13_spill] sm:$0xff] }
 0x43c   :  { %v12009_v4 = vsel %vm698_vm0, %v10778_v14, 0.0  ;;  %v13312_v19 = vrot.slane %v13304_v46, %v18751_v25  ;;  %v13323_v10 = vcombine.low %v12265_v20, %v12266_v44  ;;  %v23832_v5 = vcombine.high %v27795_v21, %v27795_v21  ;;  %v27801_v63 = vld [vmem:[#allocation37_spill] sm:$0xff] }
 0x43d   :  { %12010 = vadd.xlane.f32.xlu1 %v12009_v4  ;;  %v13319_v39 = vrot.slane %v13305_v29, %v18751_v25  ;;  %v13324_v22 = vcombine.low %v12267_v24, %v12268_v36  ;;  %v23836_v31 = vcombine.high %v27797_v1, %v27797_v1  ;;  %v23840_v14 = vcombine.high %v27799_v56, %v27799_v56  ;;  %v27806_v15 = vld [vmem:[#allocation265_spill] sm:$0xff] }
 0x43e   :  { %27796 = vst [vmem:[#allocation182_spill] sm:$0xff] %v23832_v5  ;;  %v13331_v46 = vrot.slane %v13321_v42, %v18751_v25  ;;  %v13338_v53 = vrot.slane %v13322_v26, %v18751_v25  ;;  %v13345_v60 = vrot.slane %v13323_v10, %v18751_v25  ;;  %v23847_v29 = vcombine.high %v27801_v63, %v27801_v63  ;;  %v27803_v10 = vld [vmem:[#allocation6_spill] sm:$0xff] }
 0x43f   :  { %v13320_v7 = vcombine.low %v13312_v19, %v13319_v39  ;;  %27798 = vst [vmem:[#allocation17_spill] sm:$0xff] %v23836_v31  ;;  %27800 = vst [vmem:[#allocation258_spill] sm:$0xff] %v23840_v14  ;;  %v13352_v20 = vrot.slane %v13324_v22, %v18751_v25  ;;  %v9687_v4 = vmul.f32 %v20710_v43, %v23832_v5  ;;  %v27804_v22 = vld [vmem:[#allocation53_spill] sm:$0xff] }
 0x440   :  { %27802 = vst [vmem:[#allocation5_spill] sm:$0xff] %v23847_v29  ;;  %v9688_v19 = vmul.f32 %v27443_v34, %v23836_v31  ;;  %v13353_v44 = vcombine.low %v13331_v46, %v13338_v53  ;;  %v9689_v24 = vmul.f32 %v27449_v3, %v27799_v56  ;;  %v9690_v39 = vmul.f32 %v27453_v27, %v27801_v63 }
 0x441   :  { %v14597_v55 = vsel %vm698_vm0, %v13320_v7, 0.0  ;;  %v9691_v36 = vmul.f32 %v27455_v35, %v23840_v14  ;;  %v13354_v42 = vcombine.low %v13345_v60, %v13352_v20  ;;  %v9692_v26 = vmul.f32 %v20813_v17, %v23847_v29 }
 0x442   :  { %14598 = vadd.xlane.f32.xlu0 %v14597_v55  ;;  %v9693_v7 = vmul.f32 %v20825_v2, %v27803_v10  ;;  %v9694_v55 = vmul.f32 %v21502_v16, %v27804_v22  ;;  %v13361_v46 = vrot.slane %v13353_v44, %v18751_v25  ;;  %v10842_v53 = vcombine.low %v9687_v4, %v9688_v19  ;;  %v27808_v44 = vld [vmem:[#allocation254_spill] sm:$0xff] }
 0x443   :  { %v10843_v61 = vcombine.low %v9689_v24, %v9690_v39  ;;  %v13368_v54 = vrot.slane %v13354_v42, %v18751_v25  ;;  %v10844_v13 = vcombine.low %v9691_v36, %v9692_v26  ;;  %v23871_v60 = vcombine.high %v27794_v32, %v27794_v32  ;;  %v27810_v36 = vld [vmem:[#allocation256_spill] sm:$0xff] }
 0x444   :  { %v10845_v59 = vcombine.low %v9693_v7, %v9694_v55  ;;  %v10852_v20 = vrot.slane %v10842_v53, %v18751_v25  ;;  %v23877_v57 = vcombine.high %v27806_v15, %v27806_v15  ;;  %v23883_v24 = vcombine.high %v27808_v44, %v27808_v44 }
 0x445   :  { %27805 = vst [vmem:[#allocation12_spill] sm:$0xff] %v23871_v60  ;;  %v10859_v23 = vrot.slane %v10843_v61, %v18751_v25  ;;  %v13369_v0 = vcombine.low %v13361_v46, %v13368_v54  ;;  %v10866_v4 = vrot.slane %v10844_v13, %v18751_v25  ;;  %v23887_v42 = vcombine.high %v27810_v36, %v27810_v36 }
 0x446   :  { %27807 = vst [vmem:[#allocation70_spill] sm:$0xff] %v23877_v57  ;;  %v10873_v19 = vrot.slane %v10845_v59, %v18751_v25  ;;  %27809 = vst [vmem:[#allocation71_spill] sm:$0xff] %v23883_v24  ;;  %v9679_v61 = vmul.f32 %v20710_v43, %v23871_v60  ;;  %v9680_v13 = vmul.f32 %v27443_v34, %v23877_v57 }
 0x447   :  { %v10874_v39 = vcombine.low %v10852_v20, %v10859_v23  ;;  %27811 = vst [vmem:[#allocation55_spill] sm:$0xff] %v23887_v42  ;;  %v14600_v26 = vsel %vm698_vm0, %v13369_v0, 0.0  ;;  %v9681_v59 = vmul.f32 %v27449_v3, %v27808_v44  ;;  %v9682_v23 = vmul.f32 %v27453_v27, %v27810_v36 }
 0x448   :  { %v10875_v7 = vcombine.low %v10866_v4, %v10873_v19  ;;  %14601 = vadd.xlane.f32.xlu1 %v14600_v26  ;;  %v9683_v55 = vmul.f32 %v27455_v35, %v23883_v24  ;;  %v9684_v46 = vmul.f32 %v20813_v17, %v23887_v42  ;;  %v9685_v53 = vmul.f32 %v20825_v2, %v27795_v21 }
 0x449   :  { %v10882_v54 = vrot.slane %v10874_v39, %v18751_v25  ;;  %v9686_v20 = vmul.f32 %v21502_v16, %v27797_v1  ;;  %v10793_v4 = vcombine.low %v9679_v61, %v9680_v13  ;;  %v10794_v19 = vcombine.low %v9681_v59, %v9682_v23 }
 0x44a   :  { %v10889_v0 = vrot.slane %v10875_v7, %v18751_v25  ;;  %v10795_v39 = vcombine.low %v9683_v55, %v9684_v46  ;;  %v12278_v26 = vmul.f32 %v20707_v62, %v23832_v5  ;;  %v12279_v15 = vmul.f32 %v21753_v11, %v23836_v31 }
 0x44b   :  { %v10796_v52 = vcombine.low %v9685_v53, %v9686_v20  ;;  %v10803_v47 = vrot.slane %v10793_v4, %v18751_v25  ;;  %v12280_v7 = vmul.f32 %v21745_v45, %v27799_v56  ;;  %v10810_v6 = vrot.slane %v10794_v19, %v18751_v25 }
 0x44c   :  { %v10890_v32 = vcombine.low %v10882_v54, %v10889_v0  ;;  %v10817_v50 = vrot.slane %v10795_v39, %v18751_v25  ;;  %v12281_v61 = vmul.f32 %v21767_v18, %v27801_v63  ;;  %v12282_v13 = vmul.f32 %v21750_v28, %v23840_v14 }
 0x44d   :  { %v10824_v54 = vrot.slane %v10796_v52, %v18751_v25  ;;  %v12283_v23 = vmul.f32 %v21759_v8, %v23847_v29  ;;  %v12284_v55 = vmul.f32 %v21763_v51, %v27803_v10  ;;  %v10825_v46 = vcombine.low %v10803_v47, %v10810_v6 }
 0x44e   :  { %v12018_v59 = vsel %vm698_vm0, %v10890_v32, 0.0  ;;  %v12285_v0 = vmul.f32 %v21775_v12, %v27804_v22  ;;  %v13433_v53 = vcombine.low %v12278_v26, %v12279_v15  ;;  %v13434_v20 = vcombine.low %v12280_v7, %v12281_v61 }
 0x44f   :  { %12019 = vadd.xlane.f32.xlu0 %v12018_v59  ;;  %v10826_v4 = vcombine.low %v10817_v50, %v10824_v54  ;;  %v13435_v19 = vcombine.low %v12282_v13, %v12283_v23  ;;  %v12270_v32 = vmul.f32 %v20707_v62, %v23871_v60  ;;  %v10833_v52 = vrot.slane %v10825_v46, %v18751_v25  ;;  %v27822_v60 = vld [vmem:[#allocation140_spill] sm:$0xff] }
 0x450   :  { %v13436_v39 = vcombine.low %v12284_v55, %v12285_v0  ;;  %v13443_v29 = vrot.slane %v13433_v53, %v18751_v25  ;;  %v13450_v14 = vrot.slane %v13434_v20, %v18751_v25  ;;  %v12271_v47 = vmul.f32 %v21753_v11, %v23877_v57 }
 0x451   :  { %v10840_v59 = vrot.slane %v10826_v4, %v18751_v25  ;;  %v13457_v6 = vrot.slane %v13435_v19, %v18751_v25  ;;  %v12272_v50 = vmul.f32 %v21745_v45, %v27808_v44  ;;  %v12273_v7 = vmul.f32 %v21767_v18, %v27810_v36 }
 0x452   :  { %v13464_v15 = vrot.slane %v13436_v39, %v18751_v25  ;;  %v13465_v26 = vcombine.low %v13443_v29, %v13450_v14  ;;  %v12274_v61 = vmul.f32 %v21750_v28, %v23883_v24  ;;  %v12275_v54 = vmul.f32 %v21759_v8, %v23887_v42  ;;  %v27820_v42 = vld [vmem:[#allocation142_spill] sm:$0xff]  ;;  %v27821_v24 = vld [vmem:[#allocation137_spill] sm:$0xff] }
 0x453   :  { %v10841_v13 = vcombine.low %v10833_v52, %v10840_v59  ;;  %v12276_v23 = vmul.f32 %v21763_v51, %v27795_v21  ;;  %v12277_v55 = vmul.f32 %v21775_v12, %v27797_v1  ;;  %v13384_v14 = vcombine.low %v12270_v32, %v12271_v47 }
 0x454   :  { %v13466_v46 = vcombine.low %v13457_v6, %v13464_v15  ;;  %v13473_v0 = vrot.slane %v13465_v26, %v18751_v25  ;;  %v13385_v29 = vcombine.low %v12272_v50, %v12273_v7  ;;  %v13386_v20 = vcombine.low %v12274_v61, %v12275_v54  ;;  %v27813_v6 = vld [vmem:[#allocation113_spill] sm:$0xff]  ;;  %v27816_v26 = vld [vmem:[#allocation115_spill] sm:$0xff] }
 0x455   :  { %v12015_v53 = vsel %vm698_vm0, %v10841_v13, 0.0  ;;  %v13387_v4 = vcombine.low %v12276_v23, %v12277_v55  ;;  %v23955_v19 = vcombine.high %v27772_v9, %v27772_v9  ;;  %v13394_v39 = vrot.slane %v13384_v14, %v18751_v25 }
 0x456   :  { %12016 = vadd.xlane.f32.xlu1 %v12015_v53  ;;  %v13480_v52 = vrot.slane %v13466_v46, %v18751_v25  ;;  %v13401_v59 = vrot.slane %v13385_v29, %v18751_v25  ;;  %v23962_v15 = vcombine.high %v27813_v6, %v27813_v6  ;;  %v13408_v32 = vrot.slane %v13386_v20, %v18751_v25 }
 0x457   :  { %27812 = vst [vmem:[#allocation130_spill] sm:$0xff] %v23955_v19  ;;  %v13415_v47 = vrot.slane %v13387_v4, %v18751_v25  ;;  %v23968_v50 = vcombine.high %v27773_v58, %v27773_v58  ;;  %v23972_v7 = vcombine.high %v27816_v26, %v27816_v26  ;;  %v9755_v54 = vmul.f32 %v20710_v43, %v23955_v19  ;;  %v27818_v4 = vld [vmem:[#allocation106_spill] sm:$0xff] }
 0x458   :  { %27814 = vst [vmem:[#allocation21_spill] sm:$0xff] %v23962_v15  ;;  %v13481_v61 = vcombine.low %v13473_v0, %v13480_v52  ;;  %v13416_v13 = vcombine.low %v13394_v39, %v13401_v59  ;;  %v9757_v23 = vmul.f32 %v27449_v3, %v27813_v6  ;;  %v9758_v14 = vmul.f32 %v27453_v27, %v27816_v26  ;;  %v27819_v59 = vld [vmem:[#allocation105_spill] sm:$0xff] }
 0x459   :  { %27815 = vst [vmem:[#allocation77_spill] sm:$0xff] %v23968_v50  ;;  %27817 = vst [vmem:[#allocation99_spill] sm:$0xff] %v23972_v7  ;;  %v13417_v55 = vcombine.low %v13408_v32, %v13415_v47  ;;  %v9756_v46 = vmul.f32 %v27443_v34, %v23968_v50  ;;  %v9759_v29 = vmul.f32 %v27455_v35, %v23962_v15 }
 0x45a   :  { %v14609_v53 = vsel %vm698_vm0, %v13481_v61, 0.0  ;;  %v13424_v0 = vrot.slane %v13416_v13, %v18751_v25  ;;  %v9760_v20 = vmul.f32 %v20813_v17, %v23972_v7  ;;  %v9761_v52 = vmul.f32 %v20825_v2, %v27818_v4 }
 0x45b   :  { %14610 = vadd.xlane.f32.xlu0 %v14609_v53  ;;  %v13431_v39 = vrot.slane %v13417_v55, %v18751_v25  ;;  %v9762_v32 = vmul.f32 %v21502_v16, %v27819_v59  ;;  %v11290_v47 = vcombine.low %v9755_v54, %v9756_v46  ;;  %v11291_v1 = vcombine.low %v9757_v23, %v9758_v14  ;;  %v27823_v54 = vld [vmem:[#allocation141_spill] sm:$0xff]  ;;  %v27824_v46 = vld [vmem:[#allocation83_spill] sm:$0xff] }
 0x45c   :  { %v11292_v21 = vcombine.low %v9759_v29, %v9760_v20  ;;  %v9772_v61 = vmul.f32 %v20710_v43, %v27820_v42  ;;  %v9773_v13 = vmul.f32 %v27443_v34, %v27821_v24  ;;  %v9774_v22 = vmul.f32 %v27449_v3, %v27822_v60 }
 0x45d   :  { %v13432_v36 = vcombine.low %v13424_v0, %v13431_v39  ;;  %v11293_v44 = vcombine.low %v9761_v52, %v9762_v32  ;;  %v11300_v57 = vrot.slane %v11290_v47, %v18751_v25  ;;  %v11307_v53 = vrot.slane %v11291_v1, %v18751_v25  ;;  %v27825_v52 = vld [vmem:[#allocation29_spill] sm:$0xff]  ;;  %v27826_v1 = vld [vmem:[#allocation59_spill] sm:$0xff]  ;;  %v27827_v32 = vld [vmem:[#allocation86_spill] sm:$0xff] }
 0x45e   :  { %v11314_v55 = vrot.slane %v11292_v21, %v18751_v25  ;;  %v9775_v23 = vmul.f32 %v27453_v27, %v27823_v54  ;;  %v9776_v14 = vmul.f32 %v27455_v35, %v27824_v46  ;;  %v9777_v39 = vmul.f32 %v20813_v17, %v27825_v52 }
 0x45f   :  { %v14606_v29 = vsel %vm698_vm0, %v13432_v36, 0.0  ;;  %v11321_v0 = vrot.slane %v11293_v44, %v18751_v25  ;;  %v11322_v20 = vcombine.low %v11300_v57, %v11307_v53  ;;  %v9778_v21 = vmul.f32 %v20825_v2, %v27826_v1  ;;  %v27828_v36 = vld [vmem:[#allocation109_spill] sm:$0xff] }
 0x460   :  { %14607 = vadd.xlane.f32.xlu1 %v14606_v29  ;;  %v9779_v47 = vmul.f32 %v21502_v16, %v27827_v32  ;;  %v11402_v10 = vcombine.low %v9772_v61, %v9773_v13  ;;  %v11403_v63 = vcombine.low %v9774_v22, %v9775_v23  ;;  %v11404_v5 = vcombine.low %v9776_v14, %v9777_v39  ;;  %v27830_v22 = vld [vmem:[#allocation107_spill] sm:$0xff] }
 0x461   :  { %v11323_v56 = vcombine.low %v11314_v55, %v11321_v0  ;;  %v11330_v31 = vrot.slane %v11322_v20, %v18751_v25  ;;  %v9764_v44 = vmul.f32 %v20710_v43, %v27828_v36  ;;  %v9765_v30 = vmul.f32 %v27443_v34, %v27829_v33  ;;  %v27831_v55 = vld [vmem:[#allocation108_spill] sm:$0xff]  ;;  %v27832_v20 = vld [vmem:[#allocation111_spill] sm:$0xff] }
 0x462   :  { %v11405_v57 = vcombine.low %v9778_v21, %v9779_v47  ;;  %v11412_v53 = vrot.slane %v11402_v10, %v18751_v25  ;;  %v11419_v29 = vrot.slane %v11403_v63, %v18751_v25  ;;  %v11426_v61 = vrot.slane %v11404_v5, %v18751_v25  ;;  %v27833_v63 = vld [vmem:[#allocation78_spill] sm:$0xff]  ;;  %v27835_v5 = vld [vmem:[#allocation139_spill] sm:$0xff] }
 0x463   :  { %v11337_v58 = vrot.slane %v11323_v56, %v18751_v25  ;;  %v9766_v13 = vmul.f32 %v27449_v3, %v27830_v22  ;;  %v9767_v23 = vmul.f32 %v27453_v27, %v27831_v55  ;;  %v9768_v10 = vmul.f32 %v27455_v35, %v27832_v20  ;;  %v27834_v47 = vld [vmem:[#allocation138_spill] sm:$0xff] }
 0x464   :  { %v11433_v14 = vrot.slane %v11405_v57, %v18751_v25  ;;  %v11434_v0 = vcombine.low %v11412_v53, %v11419_v29  ;;  %v9769_v39 = vmul.f32 %v20813_v17, %v27833_v63  ;;  %v9770_v56 = vmul.f32 %v20825_v2, %v27834_v47 }
 0x465   :  { %v11338_v21 = vcombine.low %v11330_v31, %v11337_v58  ;;  %v9771_v9 = vmul.f32 %v21502_v16, %v27835_v5  ;;  %v11353_v41 = vcombine.low %v9764_v44, %v9765_v30  ;;  %v11354_v37 = vcombine.low %v9766_v13, %v9767_v23 }
 0x466   :  { %v11435_v49 = vcombine.low %v11426_v61, %v11433_v14  ;;  %v11355_v48 = vcombine.low %v9768_v10, %v9769_v39  ;;  %v11442_v40 = vrot.slane %v11434_v0, %v18751_v25  ;;  %v12363_v38 = vmul.f32 %v20707_v62, %v27820_v42 }
 0x467   :  { %v12054_v57 = vsel %vm698_vm0, %v11338_v21, 0.0  ;;  %v11356_v53 = vcombine.low %v9770_v56, %v9771_v9  ;;  %v11363_v29 = vrot.slane %v11353_v41, %v18751_v25  ;;  %v11370_v31 = vrot.slane %v11354_v37, %v18751_v25 }
 0x468   :  { %12055 = vadd.xlane.f32.xlu0 %v12054_v57  ;;  %v11449_v58 = vrot.slane %v11435_v49, %v18751_v25  ;;  %v11377_v30 = vrot.slane %v11355_v48, %v18751_v25  ;;  %v12364_v61 = vmul.f32 %v21753_v11, %v27821_v24  ;;  %v12365_v41 = vmul.f32 %v21745_v45, %v27822_v60 }
 0x469   :  { %v11384_v44 = vrot.slane %v11356_v53, %v18751_v25  ;;  %v11385_v13 = vcombine.low %v11363_v29, %v11370_v31  ;;  %v12366_v49 = vmul.f32 %v21767_v18, %v27823_v54  ;;  %v12367_v37 = vmul.f32 %v21750_v28, %v27824_v46 }
 0x46a   :  { %v11450_v9 = vcombine.low %v11442_v40, %v11449_v58  ;;  %v12368_v48 = vmul.f32 %v21759_v8, %v27825_v52  ;;  %v12369_v14 = vmul.f32 %v21763_v51, %v27826_v1  ;;  %v12370_v40 = vmul.f32 %v21775_v12, %v27827_v32 }
 0x46b   :  { %v11386_v23 = vcombine.low %v11377_v30, %v11384_v44  ;;  %v11393_v10 = vrot.slane %v11385_v13, %v18751_v25  ;;  %v13993_v39 = vcombine.low %v12363_v38, %v12364_v61  ;;  %v13994_v56 = vcombine.low %v12365_v41, %v12366_v49 }
 0x46c   :  { %v12063_v0 = vsel %vm698_vm0, %v11450_v9, 0.0  ;;  %v13995_v57 = vcombine.low %v12367_v37, %v12368_v48  ;;  %v12346_v53 = vmul.f32 %v20707_v62, %v23955_v19  ;;  %v13996_v29 = vcombine.low %v12369_v14, %v12370_v40 }
 0x46d   :  { %12064 = vadd.xlane.f32.xlu1 %v12063_v0  ;;  %v11400_v21 = vrot.slane %v11386_v23, %v18751_v25  ;;  %v14003_v58 = vrot.slane %v13993_v39, %v18751_v25  ;;  %v12347_v31 = vmul.f32 %v21753_v11, %v23968_v50  ;;  %v12348_v30 = vmul.f32 %v21745_v45, %v27813_v6 }
 0x46e   :  { %v14010_v38 = vrot.slane %v13994_v56, %v18751_v25  ;;  %v14017_v61 = vrot.slane %v13995_v57, %v18751_v25  ;;  %v12349_v41 = vmul.f32 %v21767_v18, %v27816_v26  ;;  %v14024_v9 = vrot.slane %v13996_v29, %v18751_v25 }
 0x46f   :  { %v11401_v44 = vcombine.low %v11393_v10, %v11400_v21  ;;  %v12350_v13 = vmul.f32 %v21750_v28, %v23962_v15  ;;  %v12351_v49 = vmul.f32 %v21759_v8, %v23972_v7  ;;  %v12352_v37 = vmul.f32 %v21763_v51, %v27818_v4 }
 0x470   :  { %v14025_v48 = vcombine.low %v14003_v58, %v14010_v38  ;;  %v12353_v14 = vmul.f32 %v21775_v12, %v27819_v59  ;;  %v13881_v0 = vcombine.low %v12346_v53, %v12347_v31  ;;  %v14026_v10 = vcombine.low %v14017_v61, %v14024_v9  ;;  %v27836_v58 = vld [vmem:[#allocation131_spill] sm:$0xff]  ;;  %v27838_v31 = vld [vmem:[#allocation132_spill] sm:$0xff] }
 0x471   :  { %v12060_v23 = vsel %vm698_vm0, %v11401_v44, 0.0  ;;  %v13882_v40 = vcombine.low %v12348_v30, %v12349_v41  ;;  %v13883_v39 = vcombine.low %v12350_v13, %v12351_v49  ;;  %v24090_v38 = vcombine.high %v27836_v58, %v27836_v58  ;;  %v27840_v61 = vld [vmem:[#allocation103_spill] sm:$0xff] }
 0x472   :  { %12061 = vadd.xlane.f32.xlu0 %v12060_v23  ;;  %v14033_v21 = vrot.slane %v14025_v48, %v18751_v25  ;;  %v13884_v56 = vcombine.low %v12352_v37, %v12353_v14  ;;  %v13891_v57 = vrot.slane %v13881_v0, %v18751_v25  ;;  %v14040_v29 = vrot.slane %v14026_v10, %v18751_v25  ;;  %v27842_v9 = vld [vmem:[#allocation167_spill] sm:$0xff] }
 0x473   :  { %v13898_v32 = vrot.slane %v13882_v40, %v18751_v25  ;;  %v13905_v44 = vrot.slane %v13883_v39, %v18751_v25  ;;  %27837 = vst [vmem:[#allocation191_spill] sm:$0xff] %v24090_v38  ;;  %v24095_v30 = vcombine.high %v27838_v31, %v27838_v31  ;;  %v24099_v41 = vcombine.high %v27840_v61, %v27840_v61  ;;  %v27844_v59 = vld [vmem:[#allocation243_spill] sm:$0xff] }
 0x474   :  { %v13912_v53 = vrot.slane %v13884_v56, %v18751_v25  ;;  %v24103_v13 = vcombine.high %v27842_v9, %v27842_v9  ;;  %v14041_v49 = vcombine.low %v14033_v21, %v14040_v29  ;;  %v9781_v23 = vmul.f32 %v20710_v43, %v27836_v58 }
 0x475   :  { %27839 = vst [vmem:[#allocation161_spill] sm:$0xff] %v24095_v30  ;;  %27841 = vst [vmem:[#allocation100_spill] sm:$0xff] %v24099_v41  ;;  %v13913_v37 = vcombine.low %v13891_v57, %v13898_v32  ;;  %v9782_v48 = vmul.f32 %v27443_v34, %v27838_v31  ;;  %v9783_v0 = vmul.f32 %v27449_v3, %v24090_v38 }
 0x476   :  { %27843 = vst [vmem:[#allocation192_spill] sm:$0xff] %v24103_v13  ;;  %v13914_v14 = vcombine.low %v13905_v44, %v13912_v53  ;;  %v9784_v10 = vmul.f32 %v27453_v27, %v24095_v30  ;;  %v9785_v40 = vmul.f32 %v27455_v35, %v27840_v61  ;;  %v14654_v39 = vsel %vm698_vm0, %v14041_v49, 0.0 }
 0x477   :  { %v13921_v32 = vrot.slane %v13913_v37, %v18751_v25  ;;  %v9786_v21 = vmul.f32 %v20813_v17, %v27842_v9  ;;  %v9787_v56 = vmul.f32 %v20825_v2, %v24099_v41  ;;  %14655 = vadd.xlane.f32.xlu1 %v14654_v39  ;;  %v9788_v29 = vmul.f32 %v21502_v16, %v24103_v13 }
 0x478   :  { %v13928_v57 = vrot.slane %v13914_v14, %v18751_v25  ;;  %v11465_v44 = vcombine.low %v9781_v23, %v9782_v48  ;;  %v11466_v53 = vcombine.low %v9783_v0, %v9784_v10  ;;  %v12355_v49 = vmul.f32 %v20707_v62, %v27828_v36 }
 0x479   :  { %v11467_v1 = vcombine.low %v9785_v40, %v9786_v21  ;;  %v12356_v37 = vmul.f32 %v21753_v11, %v27829_v33  ;;  %v12357_v52 = vmul.f32 %v21745_v45, %v27830_v22  ;;  %v11468_v54 = vcombine.low %v9787_v56, %v9788_v29 }
 0x47a   :  { %v13929_v46 = vcombine.low %v13921_v32, %v13928_v57  ;;  %v11475_v39 = vrot.slane %v11465_v44, %v18751_v25  ;;  %v11482_v14 = vrot.slane %v11466_v53, %v18751_v25  ;;  %v12358_v23 = vmul.f32 %v21767_v18, %v27831_v55 }
 0x47b   :  { %v11489_v60 = vrot.slane %v11467_v1, %v18751_v25  ;;  %v12359_v48 = vmul.f32 %v21750_v28, %v27832_v20  ;;  %v12360_v0 = vmul.f32 %v21759_v8, %v27833_v63  ;;  %v11496_v40 = vrot.slane %v11468_v54, %v18751_v25 }
 0x47c   :  { %v14645_v10 = vsel %vm698_vm0, %v13929_v46, 0.0  ;;  %v11497_v32 = vcombine.low %v11475_v39, %v11482_v14  ;;  %v12361_v21 = vmul.f32 %v21763_v51, %v27834_v47  ;;  %v12362_v1 = vmul.f32 %v21775_v12, %v27835_v5 }
 0x47d   :  { %14646 = vadd.xlane.f32.xlu0 %v14645_v10  ;;  %v13944_v56 = vcombine.low %v12355_v49, %v12356_v37  ;;  %v13945_v57 = vcombine.low %v12357_v52, %v12358_v23  ;;  %v13946_v29 = vcombine.low %v12359_v48, %v12360_v0  ;;  %v11498_v44 = vcombine.low %v11489_v60, %v11496_v40  ;;  %v27845_v52 = vld [vmem:[#allocation198_spill] sm:$0xff] }
 0x47e   :  { %v13947_v53 = vcombine.low %v12361_v21, %v12362_v1  ;;  %v11505_v46 = vrot.slane %v11497_v32, %v18751_v25  ;;  %v9831_v49 = vmul.f32 %v20710_v43, %v27844_v59  ;;  %v9814_v60 = vmul.f32 %v20710_v43, %v27845_v52 }
 0x47f   :  { %v13954_v24 = vrot.slane %v13944_v56, %v18751_v25  ;;  %v13961_v42 = vrot.slane %v13945_v57, %v18751_v25  ;;  %v11512_v54 = vrot.slane %v11498_v44, %v18751_v25  ;;  %v13968_v39 = vrot.slane %v13946_v29, %v18751_v25 }
 0x480   :  { %v13975_v14 = vrot.slane %v13947_v53, %v18751_v25  ;;  %v11793_v48 = vrot.slane %v9831_v49, %v18751_v25  ;;  %v12373_v32 = vmul.f32 %v21753_v11, %v27838_v31  ;;  %v11681_v21 = vrot.slane %v9814_v60, %v18751_v25  ;;  %v24178_v60 = vpop.xlane.xlu0 %11968  ;;  %v27859_v31 = vld [vmem:[#allocation169_spill] sm:$0xff] }
 0x481   :  { %v13976_v10 = vcombine.low %v13954_v24, %v13961_v42  ;;  %v11513_v37 = vcombine.low %v11505_v46, %v11512_v54  ;;  %v12372_v1 = vmul.f32 %v20707_v62, %v27836_v58  ;;  %v12374_v56 = vmul.f32 %v21745_v45, %v24090_v38  ;;  %27846 = vst [vmem:[#allocation253_spill] sm:$0xff] %v24178_v60  ;;  %v27854_v60 = vld [vmem:[#allocation196_spill] sm:$0xff] }
 0x482   :  { %v13977_v23 = vcombine.low %v13968_v39, %v13975_v14  ;;  %v11800_v42 = vrot.slane %v11793_v48, %v18751_v25  ;;  %v12375_v57 = vmul.f32 %v21767_v18, %v24095_v30  ;;  %v12376_v29 = vmul.f32 %v21750_v28, %v27840_v61  ;;  %v27861_v58 = vld [vmem:[#allocation48_spill] sm:$0xff] }
 0x483   :  { %v12069_v0 = vsel %vm698_vm0, %v11513_v37, 0.0  ;;  %v13984_v40 = vrot.slane %v13976_v10, %v18751_v25  ;;  %v12377_v44 = vmul.f32 %v21759_v8, %v27842_v9  ;;  %v12378_v54 = vmul.f32 %v21763_v51, %v24099_v41  ;;  %v27856_v41 = vld [vmem:[#allocation194_spill] sm:$0xff] }
 0x484   :  { %12070 = vadd.xlane.f32.xlu1 %v12069_v0  ;;  %v13991_v24 = vrot.slane %v13977_v23, %v18751_v25  ;;  %v12093_v46 = vsel %vm9067_vm1, %v11800_v42, 0.0  ;;  %v12379_v39 = vmul.f32 %v21775_v12, %v24103_v13  ;;  %v14056_v14 = vcombine.low %v12372_v1, %v12373_v32  ;;  %v27847_v1 = vld [vmem:[#allocation202_spill] sm:$0xff] }
 0x485   :  { %v14057_v10 = vcombine.low %v12374_v56, %v12375_v57  ;;  %v14058_v49 = vcombine.low %v12376_v29, %v12377_v44  ;;  %v11688_v23 = vrot.slane %v11681_v21, %v18751_v25  ;;  %v12405_v48 = vmul.f32 %v20707_v62, %v27845_v52  ;;  %v27848_v21 = vld [vmem:[#allocation204_spill] sm:$0xff] }
 0x486   :  { %v13992_v53 = vcombine.low %v13984_v40, %v13991_v24  ;;  %v14059_v0 = vcombine.low %v12378_v54, %v12379_v39  ;;  %v14066_v40 = vrot.slane %v14056_v14, %v18751_v25  ;;  %v9806_v56 = vmul.f32 %v20710_v43, %v27847_v1  ;;  %v24195_v54 = vpop.xlane.xlu1 %14559  ;;  %v24197_v39 = vpop.xlane.xlu0 %11977 }
 0x487   :  { %v14073_v24 = vrot.slane %v14057_v10, %v18751_v25  ;;  %v14080_v32 = vrot.slane %v14058_v49, %v18751_v25  ;;  %v14272_v42 = vrot.slane %v12405_v48, %v18751_v25  ;;  %v9807_v44 = vmul.f32 %v27443_v34, %v27848_v21  ;;  %27850 = vst [vmem:[#allocation273_spill] sm:$0xff] %v24195_v54  ;;  %v27852_v49 = vld [vmem:[#allocation195_spill] sm:$0xff] }
 0x488   :  { %v14651_v37 = vsel %vm698_vm0, %v13992_v53, 0.0  ;;  %12094 = vadd.xlane.f32.xlu1 %v12093_v46  ;;  %v14087_v57 = vrot.slane %v14059_v0, %v18751_v25  ;;  %v27849_v53 = vld [vmem:[#allocation206_spill] sm:$0xff]  ;;  %27851 = vst [vmem:[#allocation277_spill] sm:$0xff] %v24197_v39  ;;  %v12084_v14 = vsel %vm9067_vm1, %v11688_v23, 0.0  ;;  %v9811_v13 = vmul.f32 %v20813_v17, %v27854_v60  ;;  %v27855_v39 = vld [vmem:[#allocation201_spill] sm:$0xff] }
 0x489   :  { %14652 = vadd.xlane.f32.xlu0 %v14651_v37  ;;  %v14088_v29 = vcombine.low %v14066_v40, %v14073_v24  ;;  %v9808_v46 = vmul.f32 %v27449_v3, %v27849_v53  ;;  %v14279_v10 = vrot.slane %v14272_v42, %v18751_v25  ;;  %v9810_v37 = vmul.f32 %v27455_v35, %v27852_v49  ;;  %v27853_v40 = vld [vmem:[#allocation193_spill] sm:$0xff] }
 0x48a   :  { %v14089_v48 = vcombine.low %v14080_v32, %v14087_v57  ;;  %v9809_v24 = vmul.f32 %v27453_v27, %v27853_v40  ;;  %v9812_v23 = vmul.f32 %v20825_v2, %v27855_v39  ;;  %v9813_v42 = vmul.f32 %v21502_v16, %v27856_v41 }
 0x48b   :  { %v14096_v0 = vrot.slane %v14088_v29, %v18751_v25  ;;  %v14675_v54 = vsel %vm9067_vm1, %v14279_v10, 0.0  ;;  %v11626_v9 = vcombine.low %v9806_v56, %v9807_v44  ;;  %v11628_v57 = vcombine.low %v9810_v37, %v9811_v13  ;;  %v27857_v29 = vld [vmem:[#allocation168_spill] sm:$0xff] }
 0x48c   :  { %v11627_v32 = vcombine.low %v9808_v46, %v9809_v24  ;;  %v24216_v61 = vcombine.high %v27857_v29, %v27857_v29  ;;  %v11629_v30 = vcombine.low %v9812_v23, %v9813_v42  ;;  %v24221_v10 = vcombine.high %v27859_v31, %v27859_v31  ;;  %v27863_v46 = vld [vmem:[#allocation163_spill] sm:$0xff] }
 0x48d   :  { %12085 = vadd.xlane.f32.xlu0 %v12084_v14  ;;  %v14103_v14 = vrot.slane %v14089_v48, %v18751_v25  ;;  %v11636_v38 = vrot.slane %v11626_v9, %v18751_v25  ;;  %v24225_v4 = vcombine.high %v27861_v58, %v27861_v58  ;;  %v11650_v13 = vrot.slane %v11628_v57, %v18751_v25  ;;  %v24233_v48 = vpop.xlane.xlu1 %11965  ;;  %v24235_v9 = vpop.xlane.xlu0 %14556 }
 0x48e   :  { %27858 = vst [vmem:[#allocation233_spill] sm:$0xff] %v24216_v61  ;;  %27860 = vst [vmem:[#allocation133_spill] sm:$0xff] %v24221_v10  ;;  %v11643_v44 = vrot.slane %v11627_v32, %v18751_v25  ;;  %v24231_v37 = vcombine.high %v27863_v46, %v27863_v46  ;;  %v11657_v24 = vrot.slane %v11629_v30, %v18751_v25 }
 0x48f   :  { %27862 = vst [vmem:[#allocation135_spill] sm:$0xff] %v24225_v4  ;;  %v14104_v56 = vcombine.low %v14096_v0, %v14103_v14  ;;  %27865 = vst [vmem:[#allocation119_spill] sm:$0xff] %v24233_v48  ;;  %v9789_v23 = vmul.f32 %v20710_v43, %v27857_v29  ;;  %v9791_v0 = vmul.f32 %v27449_v3, %v24216_v61 }
 0x490   :  { %27864 = vst [vmem:[#allocation116_spill] sm:$0xff] %v24231_v37  ;;  %27866 = vst [vmem:[#allocation117_spill] sm:$0xff] %v24235_v9  ;;  %v11658_v14 = vcombine.low %v11636_v38, %v11643_v44  ;;  %v9792_v32 = vmul.f32 %v27453_v27, %v24221_v10  ;;  %v9793_v57 = vmul.f32 %v27455_v35, %v27861_v58 }
 0x491   :  { %14676 = vadd.xlane.f32.xlu0 %v14675_v54  ;;  %v9790_v54 = vmul.f32 %v27443_v34, %v27859_v31  ;;  %v14660_v42 = vsel %vm698_vm0, %v14104_v56, 0.0  ;;  %v11659_v30 = vcombine.low %v11650_v13, %v11657_v24  ;;  %v9794_v48 = vmul.f32 %v20813_v17, %v27863_v46  ;;  %v24263_v19 = vpop.xlane.xlu1 %12022  ;;  %v24265_v5 = vpop.xlane.xlu0 %14568 }
 0x492   :  { %14661 = vadd.xlane.f32.xlu1 %v14660_v42  ;;  %v9795_v9 = vmul.f32 %v20825_v2, %v24225_v4  ;;  %v9796_v7 = vmul.f32 %v21502_v16, %v24231_v37  ;;  %v11666_v56 = vrot.slane %v11658_v14, %v18751_v25  ;;  %v11515_v44 = vcombine.low %v9791_v0, %v9792_v32 }
 0x493   :  { %v11514_v38 = vcombine.low %v9789_v23, %v9790_v54  ;;  %v11673_v15 = vrot.slane %v11659_v30, %v18751_v25  ;;  %v11516_v26 = vcombine.low %v9793_v57, %v9794_v48  ;;  %v12397_v24 = vmul.f32 %v20707_v62, %v27847_v1  ;;  %27867 = vst [vmem:[#allocation118_spill] sm:$0xff] %v24263_v19 }
 0x494   :  { %v11517_v6 = vcombine.low %v9795_v9, %v9796_v7  ;;  %v11531_v13 = vrot.slane %v11515_v44, %v18751_v25  ;;  %v12398_v50 = vmul.f32 %v21753_v11, %v27848_v21  ;;  %27868 = vst [vmem:[#allocation129_spill] sm:$0xff] %v24265_v5  ;;  %v12399_v9 = vmul.f32 %v21745_v45, %v27849_v53 }
 0x495   :  { %v11524_v42 = vrot.slane %v11514_v38, %v18751_v25  ;;  %v11674_v23 = vcombine.low %v11666_v56, %v11673_v15  ;;  %v11538_v54 = vrot.slane %v11516_v26, %v18751_v25  ;;  %v12400_v0 = vmul.f32 %v21767_v18, %v27853_v40  ;;  %v24293_v5 = vpop.xlane.xlu0 %11962  ;;  %v27883_v40 = vld [vmem:[#allocation166_spill] sm:$0xff] }
 0x496   :  { %v11545_v48 = vrot.slane %v11517_v6, %v18751_v25  ;;  %v12401_v57 = vmul.f32 %v21750_v28, %v27852_v49  ;;  %v12402_v15 = vmul.f32 %v21759_v8, %v27854_v60  ;;  %v12403_v6 = vmul.f32 %v21763_v51, %v27855_v39  ;;  %27870 = vst [vmem:[#allocation250_spill] sm:$0xff] %v24293_v5  ;;  %v27882_v49 = vld [vmem:[#allocation165_spill] sm:$0xff] }
 0x497   :  { %v11546_v7 = vcombine.low %v11524_v42, %v11531_v13  ;;  %v12081_v14 = vsel %vm698_vm0, %v11674_v23, 0.0  ;;  %v12404_v30 = vmul.f32 %v21775_v12, %v27856_v41  ;;  %v14217_v56 = vcombine.low %v12397_v24, %v12398_v50 }
 0x498   :  { %v11547_v32 = vcombine.low %v11538_v54, %v11545_v48  ;;  %12082 = vadd.xlane.f32.xlu1 %v12081_v14  ;;  %v14218_v44 = vcombine.low %v12399_v9, %v12400_v0  ;;  %v14219_v42 = vcombine.low %v12401_v57, %v12402_v15  ;;  %v12380_v13 = vmul.f32 %v20707_v62, %v27857_v29  ;;  %v24291_v14 = vpop.xlane.xlu1 %14613 }
 0x499   :  { %v11554_v26 = vrot.slane %v11546_v7, %v18751_v25  ;;  %v14220_v23 = vcombine.low %v12403_v6, %v12404_v30  ;;  %v14227_v54 = vrot.slane %v14217_v56, %v18751_v25  ;;  %v12381_v48 = vmul.f32 %v21753_v11, %v27859_v31  ;;  %27869 = vst [vmem:[#allocation128_spill] sm:$0xff] %v24291_v14 }
 0x49a   :  { %v11561_v38 = vrot.slane %v11547_v32, %v18751_v25  ;;  %v12382_v7 = vmul.f32 %v21745_v45, %v24216_v61  ;;  %v14234_v24 = vrot.slane %v14218_v44, %v18751_v25  ;;  %v14241_v9 = vrot.slane %v14219_v42, %v18751_v25 }
 0x49b   :  { %v12383_v0 = vmul.f32 %v21767_v18, %v24221_v10  ;;  %v14248_v32 = vrot.slane %v14220_v23, %v18751_v25  ;;  %v12384_v57 = vmul.f32 %v21750_v28, %v27861_v58  ;;  %v12385_v15 = vmul.f32 %v21759_v8, %v27863_v46 }
 0x49c   :  { %v11562_v50 = vcombine.low %v11554_v26, %v11561_v38  ;;  %v12386_v6 = vmul.f32 %v21763_v51, %v24225_v4  ;;  %v14249_v30 = vcombine.low %v14227_v54, %v14234_v24  ;;  %v12387_v56 = vmul.f32 %v21775_v12, %v24231_v37  ;;  %v27888_v4 = vld [vmem:[#allocation203_spill] sm:$0xff] }
 0x49d   :  { %v14105_v38 = vcombine.low %v12380_v13, %v12381_v48  ;;  %v14250_v44 = vcombine.low %v14241_v9, %v14248_v32  ;;  %v14106_v42 = vcombine.low %v12382_v7, %v12383_v0  ;;  %v14107_v23 = vcombine.low %v12384_v57, %v12385_v15  ;;  %v24318_v13 = vpop.xlane.xlu1 %14553  ;;  %v24320_v48 = vpop.xlane.xlu0 %11971  ;;  %v27875_v9 = vld [vmem:[#allocation241_spill] sm:$0xff] }
 0x49e   :  { %v12072_v26 = vsel %vm698_vm0, %v11562_v50, 0.0  ;;  %v14257_v14 = vrot.slane %v14249_v30, %v18751_v25  ;;  %v14108_v19 = vcombine.low %v12386_v6, %v12387_v56  ;;  %v24316_v54 = vcombine.high %v27856_v41, %v27856_v41  ;;  %27872 = vst [vmem:[#allocation248_spill] sm:$0xff] %v24318_v13  ;;  %27873 = vst [vmem:[#allocation251_spill] sm:$0xff] %v24320_v48  ;;  %v27877_v32 = vld [vmem:[#allocation245_spill] sm:$0xff]  ;;  %v27881_v41 = vld [vmem:[#allocation164_spill] sm:$0xff] }
 0x49f   :  { %12073 = vadd.xlane.f32.xlu0 %v12072_v26  ;;  %v14115_v5 = vrot.slane %v14105_v38, %v18751_v25  ;;  %v14264_v39 = vrot.slane %v14250_v44, %v18751_v25  ;;  %v14122_v60 = vrot.slane %v14106_v42, %v18751_v25  ;;  %v14129_v50 = vrot.slane %v14107_v23, %v18751_v25 }
 0x4a0   :  { %27871 = vst [vmem:[#allocation249_spill] sm:$0xff] %v24316_v54  ;;  %v14136_v7 = vrot.slane %v14108_v19, %v18751_v25  ;;  %v24325_v24 = vcombine.high %v27845_v52, %v27845_v52  ;;  %v24329_v0 = vcombine.high %v27875_v9, %v27875_v9  ;;  %v24333_v57 = vcombine.high %v27877_v32, %v27877_v32 }
 0x4a1   :  { %v14265_v15 = vcombine.low %v14257_v14, %v14264_v39  ;;  %v14137_v6 = vcombine.low %v14115_v5, %v14122_v60  ;;  %v9815_v26 = vmul.f32 %v20710_v43, %v24316_v54  ;;  %v9817_v19 = vmul.f32 %v27449_v3, %v27875_v9  ;;  %v27879_v39 = vld [vmem:[#allocation244_spill] sm:$0xff]  ;;  %v24360_v21 = vpop.xlane.xlu1 %12040  ;;  %v24362_v1 = vpop.xlane.xlu0 %14562 }
 0x4a2   :  { %27874 = vst [vmem:[#allocation274_spill] sm:$0xff] %v24325_v24  ;;  %27876 = vst [vmem:[#allocation285_spill] sm:$0xff] %v24329_v0  ;;  %v14138_v30 = vcombine.low %v14129_v50, %v14136_v7  ;;  %v9816_v56 = vmul.f32 %v27443_v34, %v24325_v24  ;;  %v9818_v38 = vmul.f32 %v27453_v27, %v27877_v32  ;;  %v27880_v50 = vld [vmem:[#allocation246_spill] sm:$0xff] }
 0x4a3   :  { %27878 = vst [vmem:[#allocation101_spill] sm:$0xff] %v24333_v57  ;;  %v9819_v44 = vmul.f32 %v27455_v35, %v24329_v0  ;;  %v14672_v42 = vsel %vm698_vm0, %v14265_v15, 0.0  ;;  %v14145_v5 = vrot.slane %v14137_v6, %v18751_v25  ;;  %v9820_v60 = vmul.f32 %v20813_v17, %v24333_v57  ;;  %27884 = vst [vmem:[#allocation170_spill] sm:$0xff] %v24360_v21 }
 0x4a4   :  { %v9821_v14 = vmul.f32 %v20825_v2, %v27879_v39  ;;  %14673 = vadd.xlane.f32.xlu1 %v14672_v42  ;;  %v14152_v23 = vrot.slane %v14138_v30, %v18751_v25  ;;  %v9822_v7 = vmul.f32 %v21502_v16, %v27880_v50  ;;  %v11689_v13 = vcombine.low %v9815_v26, %v9816_v56  ;;  %v27886_v56 = vld [vmem:[#allocation197_spill] sm:$0xff] }
 0x4a5   :  { %v11690_v48 = vcombine.low %v9817_v19, %v9818_v38  ;;  %v11691_v52 = vcombine.low %v9819_v44, %v9820_v60  ;;  %v9798_v15 = vmul.f32 %v20710_v43, %v27881_v41  ;;  %v9799_v6 = vmul.f32 %v27443_v34, %v27882_v49  ;;  %27885 = vst [vmem:[#allocation172_spill] sm:$0xff] %v24362_v1  ;;  %v27887_v44 = vld [vmem:[#allocation200_spill] sm:$0xff] }
 0x4a6   :  { %v9800_v53 = vmul.f32 %v27449_v3, %v27883_v40  ;;  %v14153_v42 = vcombine.low %v14145_v5, %v14152_v23  ;;  %v11692_v30 = vcombine.low %v9821_v14, %v9822_v7  ;;  %v11699_v37 = vrot.slane %v11689_v13, %v18751_v25  ;;  %v27889_v7 = vld [vmem:[#allocation205_spill] sm:$0xff] }
 0x4a7   :  { %v11706_v26 = vrot.slane %v11690_v48, %v18751_v25  ;;  %v11713_v19 = vrot.slane %v11691_v52, %v18751_v25  ;;  %v9801_v38 = vmul.f32 %v27453_v27, %v27886_v56  ;;  %v9802_v60 = vmul.f32 %v27455_v35, %v27887_v44  ;;  %v27890_v48 = vld [vmem:[#allocation199_spill] sm:$0xff] }
 0x4a8   :  { %v9803_v46 = vmul.f32 %v20813_v17, %v27888_v4  ;;  %v14663_v5 = vsel %vm698_vm0, %v14153_v42, 0.0  ;;  %v11720_v23 = vrot.slane %v11692_v30, %v18751_v25  ;;  %v9804_v13 = vmul.f32 %v20825_v2, %v27889_v7  ;;  %v24381_v42 = vpop.xlane.xlu1 %14631 }
 0x4a9   :  { %v11721_v14 = vcombine.low %v11699_v37, %v11706_v26  ;;  %14664 = vadd.xlane.f32.xlu0 %v14663_v5  ;;  %v9805_v52 = vmul.f32 %v21502_v16, %v27890_v48  ;;  %v11577_v21 = vcombine.low %v9798_v15, %v9799_v6  ;;  %v11578_v1 = vcombine.low %v9800_v53, %v9801_v38  ;;  %v24385_v26 = vpop.xlane.xlu0 %12031 }
 0x4aa   :  { %v11579_v58 = vcombine.low %v9802_v60, %v9803_v46  ;;  %v11722_v10 = vcombine.low %v11713_v19, %v11720_v23  ;;  %27891 = vst [vmem:[#allocation15_spill] sm:$0xff] %v24381_v42  ;;  %27892 = vst [vmem:[#allocation208_spill] sm:$0xff] %v24385_v26  ;;  %v12407_v5 = vmul.f32 %v21753_v11, %v24325_v24 }
 0x4ab   :  { %v11580_v61 = vcombine.low %v9804_v13, %v9805_v52  ;;  %v11587_v31 = vrot.slane %v11577_v21, %v18751_v25  ;;  %v11594_v29 = vrot.slane %v11578_v1, %v18751_v25  ;;  %v11729_v37 = vrot.slane %v11721_v14, %v18751_v25 }
 0x4ac   :  { %v11736_v30 = vrot.slane %v11722_v10, %v18751_v25  ;;  %v11601_v53 = vrot.slane %v11579_v58, %v18751_v25  ;;  %v12406_v21 = vmul.f32 %v20707_v62, %v24316_v54  ;;  %v12408_v6 = vmul.f32 %v21745_v45, %v27875_v9 }
 0x4ad   :  { %v11608_v46 = vrot.slane %v11580_v61, %v18751_v25  ;;  %v11609_v15 = vcombine.low %v11587_v31, %v11594_v29  ;;  %v12409_v10 = vmul.f32 %v21767_v18, %v27877_v32  ;;  %v12410_v19 = vmul.f32 %v21750_v28, %v24329_v0  ;;  %v27904_v0 = vld [vmem:[#allocation270_spill] sm:$0xff] }
 0x4ae   :  { %v11737_v1 = vcombine.low %v11729_v37, %v11736_v30  ;;  %v12411_v58 = vmul.f32 %v21759_v8, %v24333_v57  ;;  %v12412_v31 = vmul.f32 %v21763_v51, %v27879_v39  ;;  %v12413_v29 = vmul.f32 %v21775_v12, %v27880_v50  ;;  %v27896_v57 = vld [vmem:[#allocation284_spill] sm:$0xff] }
 0x4af   :  { %v11610_v38 = vcombine.low %v11601_v53, %v11608_v46  ;;  %v11617_v60 = vrot.slane %v11609_v15, %v18751_v25  ;;  %v14280_v23 = vcombine.low %v12406_v21, %v12407_v5  ;;  %v14281_v14 = vcombine.low %v12408_v6, %v12409_v10  ;;  %v24412_v53 = vpop.xlane.xlu1 %11974  ;;  %v24418_v21 = vpop.xlane.xlu0 %14622 }
 0x4b0   :  { %v12087_v61 = vsel %vm698_vm0, %v11737_v1, 0.0  ;;  %v14282_v52 = vcombine.low %v12410_v19, %v12411_v58  ;;  %v12389_v37 = vmul.f32 %v20707_v62, %v27881_v41  ;;  %v12390_v30 = vmul.f32 %v21753_v11, %v27882_v49  ;;  %27893 = vst [vmem:[#allocation210_spill] sm:$0xff] %v24412_v53  ;;  %27894 = vst [vmem:[#allocation283_spill] sm:$0xff] %v24418_v21 }
 0x4b1   :  { %12088 = vadd.xlane.f32.xlu1 %v12087_v61  ;;  %v11624_v13 = vrot.slane %v11610_v38, %v18751_v25  ;;  %v14283_v46 = vcombine.low %v12412_v31, %v12413_v29  ;;  %v14290_v15 = vrot.slane %v14280_v23, %v18751_v25  ;;  %v14297_v1 = vrot.slane %v14281_v14, %v18751_v25 }
 0x4b2   :  { %v12391_v5 = vmul.f32 %v21745_v45, %v27883_v40  ;;  %v14304_v10 = vrot.slane %v14282_v52, %v18751_v25  ;;  %v12392_v19 = vmul.f32 %v21767_v18, %v27886_v56  ;;  %v12393_v38 = vmul.f32 %v21750_v28, %v27887_v44 }
 0x4b3   :  { %v11625_v6 = vcombine.low %v11617_v60, %v11624_v13  ;;  %v14311_v58 = vrot.slane %v14283_v46, %v18751_v25  ;;  %v14312_v31 = vcombine.low %v14290_v15, %v14297_v1  ;;  %v12394_v61 = vmul.f32 %v21759_v8, %v27888_v4  ;;  %v24433_v52 = vpop.xlane.xlu1 %11986 }
 0x4b4   :  { %v12395_v29 = vmul.f32 %v21763_v51, %v27889_v7  ;;  %v12396_v60 = vmul.f32 %v21775_v12, %v27890_v48  ;;  %v14168_v14 = vcombine.low %v12389_v37, %v12390_v30  ;;  %v14169_v13 = vcombine.low %v12391_v5, %v12392_v19  ;;  %27895 = vst [vmem:[#allocation214_spill] sm:$0xff] %v24433_v52  ;;  %v27897_v30 = vld [vmem:[#allocation260_spill] sm:$0xff]  ;;  %v24444_v19 = vpop.xlane.xlu0 %12025 }
 0x4b5   :  { %v12078_v23 = vsel %vm698_vm0, %v11625_v6, 0.0  ;;  %v14313_v21 = vcombine.low %v14304_v10, %v14311_v58  ;;  %v14170_v26 = vcombine.low %v12393_v38, %v12394_v61  ;;  %v14320_v46 = vrot.slane %v14312_v31, %v18751_v25  ;;  %27898 = vst [vmem:[#allocation207_spill] sm:$0xff] %v24444_v19  ;;  %v27899_v58 = vld [vmem:[#allocation267_spill] sm:$0xff]  ;;  %v27900_v61 = vld [vmem:[#allocation269_spill] sm:$0xff] }
 0x4b6   :  { %12079 = vadd.xlane.f32.xlu0 %v12078_v23  ;;  %v14171_v15 = vcombine.low %v12395_v29, %v12396_v60  ;;  %v14178_v1 = vrot.slane %v14168_v14, %v18751_v25  ;;  %v14185_v42 = vrot.slane %v14169_v13, %v18751_v25  ;;  %v9840_v37 = vmul.f32 %v20710_v43, %v27896_v57  ;;  %v27901_v23 = vld [vmem:[#allocation271_spill] sm:$0xff]  ;;  %v27902_v60 = vld [vmem:[#allocation264_spill] sm:$0xff] }
 0x4b7   :  { %v14327_v53 = vrot.slane %v14313_v21, %v18751_v25  ;;  %v14192_v6 = vrot.slane %v14170_v26, %v18751_v25  ;;  %v9841_v5 = vmul.f32 %v27443_v34, %v27897_v30  ;;  %v9842_v31 = vmul.f32 %v27449_v3, %v27899_v58  ;;  %v27903_v13 = vld [vmem:[#allocation268_spill] sm:$0xff] }
 0x4b8   :  { %v14199_v10 = vrot.slane %v14171_v15, %v18751_v25  ;;  %v14200_v38 = vcombine.low %v14178_v1, %v14185_v42  ;;  %v9843_v29 = vmul.f32 %v27453_v27, %v27900_v61  ;;  %v9844_v26 = vmul.f32 %v27455_v35, %v27901_v23  ;;  %v24459_v1 = vpop.xlane.xlu1 %14565 }
 0x4b9   :  { %v14328_v21 = vcombine.low %v14320_v46, %v14327_v53  ;;  %v9845_v14 = vmul.f32 %v20813_v17, %v27902_v60  ;;  %v9846_v52 = vmul.f32 %v20825_v2, %v27903_v13  ;;  %v9847_v42 = vmul.f32 %v21502_v16, %v27904_v0  ;;  %27905 = vst [vmem:[#allocation187_spill] sm:$0xff] %v24459_v1  ;;  %v27906_v46 = vld [vmem:[#allocation272_spill] sm:$0xff] }
 0x4ba   :  { %v14201_v19 = vcombine.low %v14192_v6, %v14199_v10  ;;  %v11850_v15 = vcombine.low %v9840_v37, %v9841_v5  ;;  %v11851_v9 = vcombine.low %v9842_v31, %v9843_v29  ;;  %v9848_v24 = vmul.f32 %v20710_v43, %v27906_v46 }
 0x4bb   :  { %v14678_v32 = vsel %vm698_vm0, %v14328_v21, 0.0  ;;  %v11852_v53 = vcombine.low %v9844_v26, %v9845_v14  ;;  %v14208_v54 = vrot.slane %v14200_v38, %v18751_v25  ;;  %v11853_v7 = vcombine.low %v9846_v52, %v9847_v42  ;;  %v24470_v21 = vpop.xlane.xlu0 %12049  ;;  %v27910_v14 = vld [vmem:[#allocation240_spill] sm:$0xff] }
 0x4bc   :  { %14679 = vadd.xlane.f32.xlu1 %v14678_v32  ;;  %v14215_v48 = vrot.slane %v14201_v19, %v18751_v25  ;;  %v11860_v6 = vrot.slane %v11850_v15, %v18751_v25  ;;  %v11867_v10 = vrot.slane %v11851_v9, %v18751_v25  ;;  %v11905_v5 = vrot.slane %v9848_v24, %v18751_v25  ;;  %v27908_v24 = vld [vmem:[#allocation238_spill] sm:$0xff]  ;;  %v24494_v15 = vpop.xlane.xlu1 %14577 }
 0x4bd   :  { %v11874_v37 = vrot.slane %v11852_v53, %v18751_v25  ;;  %27907 = vst [vmem:[#allocation286_spill] sm:$0xff] %v24470_v21  ;;  %v11881_v29 = vrot.slane %v11853_v7, %v18751_v25  ;;  %v12422_v32 = vmul.f32 %v20707_v62, %v27844_v59  ;;  %v24477_v19 = vcombine.high %v27879_v39, %v27879_v39 }
 0x4be   :  { %v14216_v31 = vcombine.low %v14208_v54, %v14215_v48  ;;  %v11882_v52 = vcombine.low %v11860_v6, %v11867_v10  ;;  %v11912_v38 = vrot.slane %v11905_v5, %v18751_v25  ;;  %v24482_v9 = vcombine.high %v27880_v50, %v27880_v50  ;;  %27912 = vst [vmem:[#allocation153_spill] sm:$0xff] %v24494_v15  ;;  %v27914_v15 = vld [vmem:[#allocation242_spill] sm:$0xff] }
 0x4bf   :  { %v24486_v26 = vcombine.high %v27908_v24, %v27908_v24  ;;  %v11883_v7 = vcombine.low %v11874_v37, %v11881_v29  ;;  %v14384_v48 = vrot.slane %v12422_v32, %v18751_v25  ;;  %v24492_v42 = vcombine.high %v27910_v14, %v27910_v14  ;;  %v24515_v1 = vpop.xlane.xlu0 %14616 }
 0x4c0   :  { %v14669_v54 = vsel %vm698_vm0, %v14216_v31, 0.0  ;;  %v11890_v53 = vrot.slane %v11882_v52, %v18751_v25  ;;  %v9823_v6 = vmul.f32 %v20710_v43, %v24477_v19  ;;  %v9824_v10 = vmul.f32 %v27443_v34, %v24482_v9  ;;  %27915 = vst [vmem:[#allocation8_spill] sm:$0xff] %v24515_v1 }
 0x4c1   :  { %27909 = vst [vmem:[#allocation287_spill] sm:$0xff] %v24486_v26  ;;  %27911 = vst [vmem:[#allocation36_spill] sm:$0xff] %v24492_v42  ;;  %14670 = vadd.xlane.f32.xlu0 %v14669_v54  ;;  %v11897_v5 = vrot.slane %v11883_v7, %v18751_v25  ;;  %v14391_v37 = vrot.slane %v14384_v48, %v18751_v25  ;;  %v9825_v31 = vmul.f32 %v27449_v3, %v27908_v24  ;;  %v27913_v54 = vld [vmem:[#allocation239_spill] sm:$0xff] }
 0x4c2   :  { %v9826_v29 = vmul.f32 %v27453_v27, %v27910_v14  ;;  %v9827_v32 = vmul.f32 %v27455_v35, %v24486_v26  ;;  %v9828_v52 = vmul.f32 %v20813_v17, %v24492_v42  ;;  %v9829_v21 = vmul.f32 %v20825_v2, %v27913_v54 }
 0x4c3   :  { %v9830_v7 = vmul.f32 %v21502_v16, %v27914_v15  ;;  %v11898_v48 = vcombine.low %v11890_v53, %v11897_v5  ;;  %v12102_v59 = vsel %vm9067_vm1, %v11912_v38, 0.0  ;;  %v11738_v50 = vcombine.low %v9823_v6, %v9824_v10  ;;  %v24524_v53 = vpop.xlane.xlu1 %11980 }
 0x4c4   :  { %v11739_v39 = vcombine.low %v9825_v31, %v9826_v29  ;;  %v14684_v4 = vsel %vm9067_vm1, %v14391_v37, 0.0  ;;  %v11740_v44 = vcombine.low %v9827_v32, %v9828_v52  ;;  %v12431_v47 = vmul.f32 %v20707_v62, %v27896_v57  ;;  %27916 = vst [vmem:[#allocation18_spill] sm:$0xff] %v24524_v53  ;;  %v24542_v31 = vpop.xlane.xlu0 %14640  ;;  %v27918_v32 = vld [vmem:[#allocation247_spill] sm:$0xff] }
 0x4c5   :  { %12103 = vadd.xlane.f32.xlu0 %v12102_v59  ;;  %v11741_v56 = vcombine.low %v9829_v21, %v9830_v7  ;;  %v12099_v40 = vsel %vm698_vm0, %v11898_v48, 0.0  ;;  %v11748_v49 = vrot.slane %v11738_v50, %v18751_v25  ;;  %v12432_v6 = vmul.f32 %v21753_v11, %v27897_v30  ;;  %27917 = vst [vmem:[#allocation171_spill] sm:$0xff] %v24542_v31  ;;  %v27920_v31 = vld [vmem:[#allocation278_spill] sm:$0xff]  ;;  %v27939_v30 = vld [vmem:[#allocation145_spill] sm:$0xff] }
 0x4c6   :  { %v11755_v41 = vrot.slane %v11739_v39, %v18751_v25  ;;  %12100 = vadd.xlane.f32.xlu1 %v12099_v40  ;;  %v11762_v38 = vrot.slane %v11740_v44, %v18751_v25  ;;  %v12433_v21 = vmul.f32 %v21745_v45, %v27899_v58  ;;  %v12434_v39 = vmul.f32 %v21767_v18, %v27900_v61 }
 0x4c7   :  { %v11769_v59 = vrot.slane %v11741_v56, %v18751_v25  ;;  %v12435_v50 = vmul.f32 %v21750_v28, %v27901_v23  ;;  %v12436_v40 = vmul.f32 %v21759_v8, %v27902_v60  ;;  %v12437_v56 = vmul.f32 %v21763_v51, %v27903_v13  ;;  %v27936_v13 = vld [vmem:[#allocation35_spill] sm:$0xff]  ;;  %v27937_v60 = vld [vmem:[#allocation97_spill] sm:$0xff] }
 0x4c8   :  { %v11770_v10 = vcombine.low %v11748_v49, %v11755_v41  ;;  %v12438_v44 = vmul.f32 %v21775_v12, %v27904_v0  ;;  %v14441_v37 = vcombine.low %v12431_v47, %v12432_v6  ;;  %v14442_v49 = vcombine.low %v12433_v21, %v12434_v39  ;;  %v27935_v0 = vld [vmem:[#allocation144_spill] sm:$0xff] }
 0x4c9   :  { %v11771_v5 = vcombine.low %v11762_v38, %v11769_v59  ;;  %v14443_v29 = vcombine.low %v12435_v50, %v12436_v40  ;;  %v9832_v52 = vmul.f32 %v20710_v43, %v27918_v32  ;;  %v27919_v59 = vld [vmem:[#allocation275_spill] sm:$0xff]  ;;  %v9834_v21 = vmul.f32 %v27449_v3, %v27920_v31  ;;  %v27923_v40 = vld [vmem:[#allocation282_spill] sm:$0xff] }
 0x4ca   :  { %v11778_v41 = vrot.slane %v11770_v10, %v18751_v25  ;;  %14685 = vadd.xlane.f32.xlu1 %v14684_v4  ;;  %v14444_v48 = vcombine.low %v12437_v56, %v12438_v44  ;;  %v14451_v38 = vrot.slane %v14441_v37, %v18751_v25  ;;  %v9833_v1 = vmul.f32 %v27443_v34, %v27919_v59  ;;  %v27921_v10 = vld [vmem:[#allocation279_spill] sm:$0xff]  ;;  %v24557_v4 = vpop.xlane.xlu1 %14571  ;;  %v27924_v56 = vld [vmem:[#allocation276_spill] sm:$0xff] }
 0x4cb   :  { %v11785_v7 = vrot.slane %v11771_v5, %v18751_v25  ;;  %v14458_v47 = vrot.slane %v14442_v49, %v18751_v25  ;;  %v14465_v6 = vrot.slane %v14443_v29, %v18751_v25  ;;  %v9835_v39 = vmul.f32 %v27453_v27, %v27921_v10  ;;  %27922 = vst [vmem:[#allocation176_spill] sm:$0xff] %v24557_v4  ;;  %v27925_v37 = vld [vmem:[#allocation280_spill] sm:$0xff]  ;;  %v27926_v29 = vld [vmem:[#allocation281_spill] sm:$0xff] }
 0x4cc   :  { %v14472_v50 = vrot.slane %v14444_v48, %v18751_v25  ;;  %v9836_v5 = vmul.f32 %v27455_v35, %v27923_v40  ;;  %v9837_v34 = vmul.f32 %v20813_v17, %v27924_v56  ;;  %v9838_v49 = vmul.f32 %v20825_v2, %v27925_v37  ;;  %v18306_v35 = vld [vmem:[%s26222_s12 + $0x2] ss:$0 sm:$0xff]  ;;  %v24572_v48 = vpop.xlane.xlu0 %11983 }
 0x4cd   :  { %v11786_v43 = vcombine.low %v11778_v41, %v11785_v7  ;;  %v14473_v44 = vcombine.low %v14451_v38, %v14458_v47  ;;  %v9839_v3 = vmul.f32 %v21502_v16, %v27926_v29  ;;  %v11801_v53 = vcombine.low %v9832_v52, %v9833_v1  ;;  %27927 = vst [vmem:[#allocation180_spill] sm:$0xff] %v24572_v48 }
 0x4ce   :  { %v14474_v41 = vcombine.low %v14465_v6, %v14472_v50  ;;  %v11802_v7 = vcombine.low %v9834_v21, %v9835_v39  ;;  %v11803_v4 = vcombine.low %v9836_v5, %v9837_v34  ;;  %v14702_v6 = vcombine.high %v18306_v35, %v18306_v35  ;;  %v24581_v50 = vpop.xlane.xlu1 %12028 }
 0x4cf   :  { %v12090_v27 = vsel %vm698_vm0, %v11786_v43, 0.0  ;;  %v14481_v17 = vrot.slane %v14473_v44, %v18751_v25  ;;  %v11804_v38 = vcombine.low %v9838_v49, %v9839_v3  ;;  %v11811_v16 = vrot.slane %v11801_v53, %v18751_v25  ;;  %27928 = vst [vmem:[#allocation109_spill] sm:$0xff] %v24581_v50 }
 0x4d0   :  { %12091 = vadd.xlane.f32.xlu0 %v12090_v27  ;;  %v14488_v2 = vrot.slane %v14474_v41, %v18751_v25  ;;  %v11818_v1 = vrot.slane %v11802_v7, %v18751_v25  ;;  %v11825_v52 = vrot.slane %v11803_v4, %v18751_v25  ;;  %v14709_v21 = vrot.slane %v18306_v35, %v18751_v25  ;;  %v24595_v7 = vpop.xlane.xlu0 %11995 }
 0x4d1   :  { %v11832_v47 = vrot.slane %v11804_v38, %v18751_v25  ;;  %v12414_v5 = vmul.f32 %v20707_v62, %v24477_v19  ;;  %v14716_v44 = vrot.slane %v14702_v6, %v18751_v25  ;;  %v12415_v27 = vmul.f32 %v21753_v11, %v24482_v9  ;;  %27929 = vst [vmem:[#allocation104_spill] sm:$0xff] %v24595_v7  ;;  %v27933_v7 = vld [vmem:[#allocation11_spill] sm:$0xff] }
 0x4d2   :  { %v14489_v39 = vcombine.low %v14481_v17, %v14488_v2  ;;  %v11833_v43 = vcombine.low %v11811_v16, %v11818_v1  ;;  %v14717_v53 = vcombine.high %v14709_v21, %v14709_v21  ;;  %v24587_v49 = vrot.slane %v14709_v21, %v18751_v25  ;;  %v27930_v1 = vld [vmem:[#allocation14_spill] sm:$0xff] }
 0x4d3   :  { %v11834_v34 = vcombine.low %v11825_v52, %v11832_v47  ;;  %v12416_v41 = vmul.f32 %v21745_v45, %v27908_v24  ;;  %v14718_v17 = vcombine.high %v14716_v44, %v14716_v44  ;;  %v24599_v38 = vrot.slane %v14716_v44, %v18751_v25  ;;  %v27931_v44 = vld [vmem:[#allocation39_spill] sm:$0xff] }
 0x4d4   :  { %v14690_v4 = vsel %vm698_vm0, %v14489_v39, 0.0  ;;  %v11841_v3 = vrot.slane %v11833_v43, %v18751_v25  ;;  %v24602_v2 = vrot.slane %v14717_v53, %v18751_v25  ;;  %v24606_v16 = vcombine.high %v24587_v49, %v24587_v49  ;;  %v24650_v61 = vpop.xlane.xlu0 %14574 }
 0x4d5   :  { %14691 = vadd.xlane.f32.xlu1 %v14690_v4  ;;  %v11848_v35 = vrot.slane %v11834_v34, %v18751_v25  ;;  %v14759_v52 = vmul.f32 %v24587_v49, %v27930_v1  ;;  %v12417_v47 = vmul.f32 %v21767_v18, %v27910_v14  ;;  %v12418_v6 = vmul.f32 %v21750_v28, %v24486_v26  ;;  %v27932_v4 = vld [vmem:[#allocation143_spill] sm:$0xff] }
 0x4d6   :  { %v24615_v39 = vrot.slane %v14718_v17, %v18751_v25  ;;  %v24619_v43 = vcombine.high %v24599_v38, %v24599_v38  ;;  %v24623_v34 = vcombine.high %v24602_v2, %v24602_v2  ;;  %v14760_v53 = vmul.f32 %v24602_v2, %v27931_v44  ;;  %v24633_v17 = vpop.xlane.xlu1 %12034  ;;  %27938 = vst [vmem:[#allocation108_spill] sm:$0xff] %v24650_v61 }
 0x4d7   :  { %v11849_v21 = vcombine.low %v11841_v3, %v11848_v35  ;;  %v14761_v1 = vmul.f32 %v24606_v16, %v27932_v4  ;;  %v14763_v3 = vmul.f32 %v24599_v38, %v27933_v7  ;;  %v12419_v35 = vmul.f32 %v21759_v8, %v24492_v42  ;;  %27934 = vst [vmem:[#allocation107_spill] sm:$0xff] %v24633_v17 }
 0x4d8   :  { %v24638_v50 = vcombine.high %v24615_v39, %v24615_v39  ;;  %v14762_v44 = vmul.f32 %v24623_v34, %v27935_v0  ;;  %v14764_v4 = vmul.f32 %v24615_v39, %v27936_v13  ;;  %v14765_v7 = vmul.f32 %v24619_v43, %v27937_v60 }
 0x4d9   :  { %v12096_v48 = vsel %vm698_vm0, %v11849_v21, 0.0  ;;  %v15303_v23 = vcombine.low %v14759_v52, %v14760_v53  ;;  %v12420_v17 = vmul.f32 %v21763_v51, %v27913_v54  ;;  %v12421_v21 = vmul.f32 %v21775_v12, %v27914_v15 }
 0x4da   :  { %12097 = vadd.xlane.f32.xlu0 %v12096_v48  ;;  %v14766_v58 = vmul.f32 %v24638_v50, %v27939_v30  ;;  %v15304_v0 = vcombine.low %v14761_v1, %v14762_v44  ;;  %v15305_v57 = vcombine.low %v14763_v3, %v14764_v4  ;;  %v14329_v42 = vcombine.low %v12414_v5, %v12415_v27  ;;  %v24660_v30 = vpop.xlane.xlu1 %14619  ;;  %v24668_v1 = vpop.xlane.xlu0 %14586 }
 0x4db   :  { %v14330_v13 = vcombine.low %v12416_v41, %v12417_v47  ;;  %v14331_v48 = vcombine.low %v12418_v6, %v12419_v35  ;;  %v14332_v26 = vcombine.low %v12420_v17, %v12421_v21  ;;  %v15313_v60 = vrot.slane %v15303_v23, %v18751_v25 }
 0x4dc   :  { %v15306_v14 = vcombine.low %v14765_v7, %v14766_v58  ;;  %v15320_v52 = vrot.slane %v15304_v0, %v18751_v25  ;;  %v14339_v53 = vrot.slane %v14329_v42, %v18751_v25  ;;  %v15327_v5 = vrot.slane %v15305_v57, %v18751_v25  ;;  %v27940_v58 = vld [vmem:[#allocation51_spill] sm:$0xff] }
 0x4dd   :  { %v14346_v15 = vrot.slane %v14330_v13, %v18751_v25  ;;  %v14353_v61 = vrot.slane %v14331_v48, %v18751_v25  ;;  %v14360_v54 = vrot.slane %v14332_v26, %v18751_v25  ;;  %v14775_v23 = vmul.f32 %v24587_v49, %v27940_v58  ;;  %v27941_v58 = vld [vmem:[#allocation28_spill] sm:$0xff] }
 0x4de   :  { %v15334_v27 = vrot.slane %v15306_v14, %v18751_v25  ;;  %v15335_v41 = vcombine.low %v15313_v60, %v15320_v52  ;;  %v12424_v42 = vmul.f32 %v21753_v11, %v27919_v59  ;;  %v12423_v35 = vmul.f32 %v20707_v62, %v27918_v32 }
 0x4df   :  { %v14361_v47 = vcombine.low %v14339_v53, %v14346_v15  ;;  %v14362_v6 = vcombine.low %v14353_v61, %v14360_v54  ;;  %v15407_v26 = vrot.slane %v14775_v23, %v18751_v25  ;;  %v12425_v57 = vmul.f32 %v21745_v45, %v27920_v31 }
 0x4e0   :  { %v15336_v3 = vcombine.low %v15327_v5, %v15334_v27  ;;  %v12426_v61 = vmul.f32 %v21767_v18, %v27921_v10  ;;  %v12427_v11 = vmul.f32 %v21750_v28, %v27923_v40  ;;  %v15343_v15 = vrot.slane %v15335_v41, %v18751_v25  ;;  %v24689_v18 = vpop.xlane.xlu1 %14625 }
 0x4e1   :  { %v14369_v14 = vrot.slane %v14361_v47, %v18751_v25  ;;  %v14376_v17 = vrot.slane %v14362_v6, %v18751_v25  ;;  %v12428_v44 = vmul.f32 %v21759_v8, %v27924_v56  ;;  %v12429_v45 = vmul.f32 %v21763_v51, %v27925_v37  ;;  %v24695_v51 = vpop.xlane.xlu0 %11989  ;;  %v27942_v6 = vld [vmem:[#allocation23_spill] sm:$0xff] }
 0x4e2   :  { %v15350_v54 = vrot.slane %v15336_v3, %v18751_v25  ;;  %v12430_v7 = vmul.f32 %v21775_v12, %v27926_v29  ;;  %v14392_v21 = vcombine.low %v12423_v35, %v12424_v42  ;;  %v14393_v0 = vcombine.low %v12425_v57, %v12426_v61  ;;  %v27943_v3 = vld [vmem:[#allocation33_spill] sm:$0xff]  ;;  %v27945_v61 = vld [vmem:[#allocation38_spill] sm:$0xff] }
 0x4e3   :  { %v14377_v4 = vcombine.low %v14369_v14, %v14376_v17  ;;  %v15414_v28 = vrot.slane %v15407_v26, %v18751_v25  ;;  %v14394_v48 = vcombine.low %v12427_v11, %v12428_v44  ;;  %v14784_v23 = vmul.f32 %v24587_v49, %v27941_v58  ;;  %v27944_v14 = vld [vmem:[#allocation22_spill] sm:$0xff] }
 0x4e4   :  { %v15351_v13 = vcombine.low %v15343_v15, %v15350_v54  ;;  %v14395_v52 = vcombine.low %v12429_v45, %v12430_v7  ;;  %v14402_v8 = vrot.slane %v14392_v21, %v18751_v25  ;;  %v14409_v53 = vrot.slane %v14393_v0, %v18751_v25  ;;  %v24702_v47 = vpop.xlane.xlu1 %12004  ;;  %v27946_v54 = vld [vmem:[#allocation26_spill] sm:$0xff]  ;;  %v27948_v7 = vld [vmem:[#allocation123_spill] sm:$0xff] }
 0x4e5   :  { %v14681_v60 = vsel %vm698_vm0, %v14377_v4, 0.0  ;;  %v14416_v12 = vrot.slane %v14394_v48, %v18751_v25  ;;  %v14785_v42 = vmul.f32 %v24602_v2, %v27942_v6  ;;  %v14786_v26 = vmul.f32 %v24606_v16, %v27943_v3  ;;  %v27947_v45 = vld [vmem:[#allocation30_spill] sm:$0xff]  ;;  %v27950_v6 = vld [vmem:[#allocation31_spill] sm:$0xff] }
 0x4e6   :  { %v17143_v5 = vsel %vm698_vm0, %v15351_v13, 0.0  ;;  %14682 = vadd.xlane.f32.xlu0 %v14681_v60  ;;  %v14423_v27 = vrot.slane %v14395_v52, %v18751_v25  ;;  %v14424_v41 = vcombine.low %v14402_v8, %v14409_v53  ;;  %v17149_v35 = vsel %vm9067_vm1, %v15414_v28, 0.0  ;;  %v24723_v60 = vpop.xlane.xlu0 %14580 }
 0x4e7   :  { %17144 = vadd.xlane.f32.xlu1 %v17143_v5  ;;  %v14787_v17 = vmul.f32 %v24623_v34, %v27944_v14  ;;  %v14788_v11 = vmul.f32 %v24599_v38, %v27945_v61  ;;  %v14789_v44 = vmul.f32 %v24615_v39, %v27946_v54  ;;  %v14790_v4 = vmul.f32 %v24619_v43, %v27947_v45  ;;  %v27952_v14 = vld [vmem:[#allocation215_spill] sm:$0xff]  ;;  %v27954_v54 = vld [vmem:[#allocation24_spill] sm:$0xff] }
 0x4e8   :  { %v14425_v57 = vcombine.low %v14416_v12, %v14423_v27  ;;  %v14432_v15 = vrot.slane %v14424_v41, %v18751_v25  ;;  %v14791_v21 = vmul.f32 %v24638_v50, %v27948_v7  ;;  %v15464_v13 = vcombine.low %v14784_v23, %v14785_v42  ;;  %v24728_v41 = vpop.xlane.xlu1 %14595  ;;  %v27951_v42 = vld [vmem:[#allocation20_spill] sm:$0xff]  ;;  %v27955_v45 = vld [vmem:[#allocation27_spill] sm:$0xff] }
 0x4e9   :  { %v15465_v28 = vcombine.low %v14786_v26, %v14787_v17  ;;  %v12439_v48 = vmul.f32 %v20707_v62, %v27906_v46  ;;  %v15466_v52 = vcombine.low %v14788_v11, %v14789_v44  ;;  %27949 = vst [vmem:[#allocation111_spill] sm:$0xff] %v24728_v41  ;;  %v14895_v62 = vmul.f32 %v24587_v49, %v27950_v6  ;;  %v27953_v11 = vld [vmem:[#allocation217_spill] sm:$0xff] }
 0x4ea   :  { %v14439_v0 = vrot.slane %v14425_v57, %v18751_v25  ;;  %v15467_v8 = vcombine.low %v14790_v4, %v14791_v21  ;;  %v15474_v5 = vrot.slane %v15464_v13, %v18751_v25  ;;  %v14896_v3 = vmul.f32 %v24602_v2, %v27951_v42  ;;  %v27959_v6 = vld [vmem:[#allocation41_spill] sm:$0xff] }
 0x4eb   :  { %17150 = vadd.xlane.f32.xlu1 %v17149_v35  ;;  %v15481_v12 = vrot.slane %v15465_v28, %v18751_v25  ;;  %v14496_v27 = vrot.slane %v12439_v48, %v18751_v25  ;;  %v15488_v58 = vrot.slane %v15466_v52, %v18751_v25  ;;  %v14897_v17 = vmul.f32 %v24606_v16, %v27952_v14  ;;  %v27957_v28 = vld [vmem:[#allocation218_spill] sm:$0xff]  ;;  %v24752_v52 = vpop.xlane.xlu0 %12043 }
 0x4ec   :  { %v14440_v53 = vcombine.low %v14432_v15, %v14439_v0  ;;  %v15495_v23 = vrot.slane %v15467_v8, %v18751_v25  ;;  %v14898_v15 = vmul.f32 %v24623_v34, %v27953_v11  ;;  %v14899_v44 = vmul.f32 %v24599_v38, %v27954_v54  ;;  %v27956_v0 = vld [vmem:[#allocation216_spill] sm:$0xff]  ;;  %v27963_v54 = vld [vmem:[#allocation43_spill] sm:$0xff] }
 0x4ed   :  { %v15496_v35 = vcombine.low %v15474_v5, %v15481_v12  ;;  %v14503_v57 = vrot.slane %v14496_v27, %v18751_v25  ;;  %v14900_v4 = vmul.f32 %v24615_v39, %v27955_v45  ;;  %v14901_v13 = vmul.f32 %v24619_v43, %v27956_v0  ;;  %v27964_v45 = vld [vmem:[#allocation16_spill] sm:$0xff]  ;;  %v27965_v0 = vld [vmem:[#allocation9_spill] sm:$0xff] }
 0x4ee   :  { %v14687_v26 = vsel %vm698_vm0, %v14440_v53, 0.0  ;;  %v15497_v61 = vcombine.low %v15488_v58, %v15495_v23  ;;  %v14902_v48 = vmul.f32 %v24638_v50, %v27957_v28  ;;  %v16199_v53 = vcombine.low %v14895_v62, %v14896_v3  ;;  %v27958_v58 = vld [vmem:[#allocation40_spill] sm:$0xff]  ;;  %v27966_v28 = vld [vmem:[#allocation50_spill] sm:$0xff] }
 0x4ef   :  { %14688 = vadd.xlane.f32.xlu0 %v14687_v26  ;;  %v15504_v7 = vrot.slane %v15496_v35, %v18751_v25  ;;  %v14693_v21 = vsel %vm9067_vm1, %v14503_v57, 0.0  ;;  %v16200_v5 = vcombine.low %v14897_v17, %v14898_v15  ;;  %v16201_v12 = vcombine.low %v14899_v44, %v14900_v4  ;;  %v27960_v26 = vld [vmem:[#allocation52_spill] sm:$0xff]  ;;  %v24761_v57 = vpop.xlane.xlu1 %12058 }
 0x4f0   :  { %v15511_v8 = vrot.slane %v15497_v61, %v18751_v25  ;;  %v16202_v27 = vcombine.low %v14901_v13, %v14902_v48  ;;  %v14767_v23 = vmul.f32 %v24587_v49, %v27958_v58  ;;  %v14768_v42 = vmul.f32 %v24602_v2, %v27959_v6  ;;  %27961 = vst [vmem:[#allocation78_spill] sm:$0xff] %v24761_v57  ;;  %v27962_v61 = vld [vmem:[#allocation49_spill] sm:$0xff]  ;;  %v28017_v57 = vld [vmem:[#allocation92_spill] sm:$0xff] }
 0x4f1   :  { %v14769_v35 = vmul.f32 %v24606_v16, %v27960_v26  ;;  %v16209_v11 = vrot.slane %v16199_v53, %v18751_v25  ;;  %v16216_v62 = vrot.slane %v16200_v5, %v18751_v25  ;;  %v16223_v3 = vrot.slane %v16201_v12, %v18751_v25 }
 0x4f2   :  { %v15512_v14 = vcombine.low %v15504_v7, %v15511_v8  ;;  %v16230_v17 = vrot.slane %v16202_v27, %v18751_v25  ;;  %v14770_v15 = vmul.f32 %v24623_v34, %v27962_v61  ;;  %v14771_v44 = vmul.f32 %v24599_v38, %v27963_v54  ;;  %v24778_v27 = vpop.xlane.xlu0 %14634 }
 0x4f3   :  { %14694 = vadd.xlane.f32.xlu0 %v14693_v21  ;;  %v14772_v4 = vmul.f32 %v24615_v39, %v27964_v45  ;;  %v16231_v21 = vcombine.low %v16209_v11, %v16216_v62  ;;  %v14773_v13 = vmul.f32 %v24619_v43, %v27965_v0  ;;  %v14774_v48 = vmul.f32 %v24638_v50, %v27966_v28  ;;  %v27968_v62 = vld [vmem:[#allocation69_spill] sm:$0xff]  ;;  %v24786_v54 = vpop.xlane.xlu1 %14649  ;;  %v27973_v0 = vld [vmem:[#allocation72_spill] sm:$0xff]  ;;  %v27974_v28 = vld [vmem:[#allocation75_spill] sm:$0xff] }
 0x4f4   :  { %v17155_v7 = vsel %vm698_vm0, %v15512_v14, 0.0  ;;  %v16232_v8 = vcombine.low %v16223_v3, %v16230_v17  ;;  %v15352_v53 = vcombine.low %v14767_v23, %v14768_v42  ;;  %v15353_v5 = vcombine.low %v14769_v35, %v14770_v15  ;;  %27967 = vst [vmem:[#allocation272_spill] sm:$0xff] %v24778_v27  ;;  %27969 = vst [vmem:[#allocation238_spill] sm:$0xff] %v24786_v54  ;;  %v27970_v35 = vld [vmem:[#allocation73_spill] sm:$0xff]  ;;  %v27971_v17 = vld [vmem:[#allocation74_spill] sm:$0xff] }
 0x4f5   :  { %17156 = vadd.xlane.f32.xlu1 %v17155_v7  ;;  %v15354_v12 = vcombine.low %v14771_v44, %v14772_v4  ;;  %v16239_v58 = vrot.slane %v16231_v21, %v18751_v25  ;;  %v15355_v6 = vcombine.low %v14773_v13, %v14774_v48  ;;  %v14912_v61 = vmul.f32 %v24587_v49, %v27968_v62  ;;  %v27972_v7 = vld [vmem:[#allocation68_spill] sm:$0xff] }
 0x4f6   :  { %v16246_v26 = vrot.slane %v16232_v8, %v18751_v25  ;;  %v15362_v14 = vrot.slane %v15352_v53, %v18751_v25  ;;  %v15369_v11 = vrot.slane %v15353_v5, %v18751_v25  ;;  %v14913_v3 = vmul.f32 %v24602_v2, %v27970_v35  ;;  %v27975_v5 = vld [vmem:[#allocation76_spill] sm:$0xff] }
 0x4f7   :  { %v15376_v23 = vrot.slane %v15354_v12, %v18751_v25  ;;  %v15383_v42 = vrot.slane %v15355_v6, %v18751_v25  ;;  %v14914_v15 = vmul.f32 %v24606_v16, %v27971_v17  ;;  %v14915_v21 = vmul.f32 %v24623_v34, %v27972_v7  ;;  %v27976_v6 = vld [vmem:[#allocation89_spill] sm:$0xff]  ;;  %v27977_v35 = vld [vmem:[#allocation32_spill] sm:$0xff] }
 0x4f8   :  { %v16247_v44 = vcombine.low %v16239_v58, %v16246_v26  ;;  %v15384_v45 = vcombine.low %v15362_v14, %v15369_v11  ;;  %v14916_v13 = vmul.f32 %v24599_v38, %v27973_v0  ;;  %v14917_v48 = vmul.f32 %v24615_v39, %v27974_v28  ;;  %v24806_v26 = vpop.xlane.xlu0 %12037  ;;  %v27979_v7 = vld [vmem:[#allocation57_spill] sm:$0xff]  ;;  %v24815_v28 = vpop.xlane.xlu1 %11992 }
 0x4f9   :  { %v15385_v4 = vcombine.low %v15376_v23, %v15383_v42  ;;  %v14918_v12 = vmul.f32 %v24619_v43, %v27975_v5  ;;  %v14919_v58 = vmul.f32 %v24638_v50, %v27976_v6  ;;  %v16311_v11 = vcombine.low %v14912_v61, %v14913_v3 }
 0x4fa   :  { %v17215_v8 = vsel %vm698_vm0, %v16247_v44, 0.0  ;;  %v15392_v53 = vrot.slane %v15384_v45, %v18751_v25  ;;  %v16312_v62 = vcombine.low %v14914_v15, %v14915_v21  ;;  %v16313_v23 = vcombine.low %v14916_v13, %v14917_v48  ;;  %v27978_v44 = vld [vmem:[#allocation19_spill] sm:$0xff]  ;;  %v27980_v15 = vld [vmem:[#allocation54_spill] sm:$0xff] }
 0x4fb   :  { %17216 = vadd.xlane.f32.xlu1 %v17215_v8  ;;  %v15399_v14 = vrot.slane %v15385_v4, %v18751_v25  ;;  %v16314_v42 = vcombine.low %v14918_v12, %v14919_v58  ;;  %v14776_v17 = vmul.f32 %v24587_v49, %v27977_v35  ;;  %v14777_v45 = vmul.f32 %v24602_v2, %v27978_v44  ;;  %v27981_v13 = vld [vmem:[#allocation34_spill] sm:$0xff]  ;;  %v27982_v12 = vld [vmem:[#allocation56_spill] sm:$0xff] }
 0x4fc   :  { %v14778_v0 = vmul.f32 %v24606_v16, %v27979_v7  ;;  %v16321_v8 = vrot.slane %v16311_v11, %v18751_v25  ;;  %v16328_v4 = vrot.slane %v16312_v62, %v18751_v25  ;;  %v16335_v61 = vrot.slane %v16313_v23, %v18751_v25  ;;  %v27984_v62 = vld [vmem:[#allocation25_spill] sm:$0xff] }
 0x4fd   :  { %v15400_v5 = vcombine.low %v15392_v53, %v15399_v14  ;;  %v16342_v3 = vrot.slane %v16314_v42, %v18751_v25  ;;  %v14779_v21 = vmul.f32 %v24623_v34, %v27980_v15  ;;  %v14780_v48 = vmul.f32 %v24599_v38, %v27981_v13  ;;  %v27983_v14 = vld [vmem:[#allocation58_spill] sm:$0xff]  ;;  %v24832_v15 = vpop.xlane.xlu0 %14628 }
 0x4fe   :  { %v14781_v6 = vmul.f32 %v24615_v39, %v27982_v12  ;;  %v16343_v53 = vcombine.low %v16321_v8, %v16328_v4  ;;  %v14782_v11 = vmul.f32 %v24619_v43, %v27983_v14  ;;  %v14783_v23 = vmul.f32 %v24638_v50, %v27984_v62  ;;  %v24839_v14 = vpop.xlane.xlu1 %14583  ;;  %v27989_v62 = vld [vmem:[#allocation211_spill] sm:$0xff] }
 0x4ff   :  { %v17146_v58 = vsel %vm698_vm0, %v15400_v5, 0.0  ;;  %v16344_v42 = vcombine.low %v16335_v61, %v16342_v3  ;;  %v15415_v35 = vcombine.low %v14776_v17, %v14777_v45  ;;  %v15416_v44 = vcombine.low %v14778_v0, %v14779_v21  ;;  %v27985_v17 = vld [vmem:[#allocation209_spill] sm:$0xff]  ;;  %v27986_v0 = vld [vmem:[#allocation212_spill] sm:$0xff]  ;;  %v27987_v21 = vld [vmem:[#allocation127_spill] sm:$0xff] }
 0x500   :  { %17147 = vadd.xlane.f32.xlu0 %v17146_v58  ;;  %v15417_v7 = vcombine.low %v14780_v48, %v14781_v6  ;;  %v16351_v13 = vrot.slane %v16343_v53, %v18751_v25  ;;  %v15418_v27 = vcombine.low %v14782_v11, %v14783_v23  ;;  %v14793_v45 = vmul.f32 %v24587_v49, %v27985_v17  ;;  %v27988_v53 = vld [vmem:[#allocation126_spill] sm:$0xff]  ;;  %v27992_v17 = vld [vmem:[#allocation121_spill] sm:$0xff] }
 0x501   :  { %v16358_v12 = vrot.slane %v16344_v42, %v18751_v25  ;;  %v15425_v5 = vrot.slane %v15415_v35, %v18751_v25  ;;  %v15432_v8 = vrot.slane %v15416_v44, %v18751_v25  ;;  %v14794_v3 = vmul.f32 %v24602_v2, %v27986_v0  ;;  %v27990_v35 = vld [vmem:[#allocation213_spill] sm:$0xff]  ;;  %v27991_v44 = vld [vmem:[#allocation120_spill] sm:$0xff] }
 0x502   :  { %v15439_v4 = vrot.slane %v15417_v7, %v18751_v25  ;;  %v15446_v61 = vrot.slane %v15418_v27, %v18751_v25  ;;  %v14795_v48 = vmul.f32 %v24606_v16, %v27987_v21  ;;  %v14796_v11 = vmul.f32 %v24623_v34, %v27988_v53  ;;  %v24867_v54 = vpop.xlane.xlu1 %11998 }
 0x503   :  { %v16359_v6 = vcombine.low %v16351_v13, %v16358_v12  ;;  %v15447_v58 = vcombine.low %v15425_v5, %v15432_v8  ;;  %v14797_v23 = vmul.f32 %v24599_v38, %v27989_v62  ;;  %v14798_v27 = vmul.f32 %v24615_v39, %v27990_v35  ;;  %v24860_v8 = vpop.xlane.xlu0 %12013  ;;  %v27994_v62 = vld [vmem:[#allocation125_spill] sm:$0xff]  ;;  %27995 = vst [vmem:[#allocation275_spill] sm:$0xff] %v24867_v54 }
 0x504   :  { %v15448_v42 = vcombine.low %v15439_v4, %v15446_v61  ;;  %v14799_v7 = vmul.f32 %v24619_v43, %v27991_v44  ;;  %v14800_v0 = vmul.f32 %v24638_v50, %v27992_v17  ;;  %v15527_v12 = vcombine.low %v14793_v45, %v14794_v3  ;;  %27993 = vst [vmem:[#allocation247_spill] sm:$0xff] %v24860_v8 }
 0x505   :  { %v17224_v21 = vsel %vm698_vm0, %v16359_v6, 0.0  ;;  %v15455_v13 = vrot.slane %v15447_v58, %v18751_v25  ;;  %v15528_v5 = vcombine.low %v14795_v48, %v14796_v11  ;;  %v15529_v61 = vcombine.low %v14797_v23, %v14798_v27  ;;  %v27996_v11 = vld [vmem:[#allocation67_spill] sm:$0xff] }
 0x506   :  { %17225 = vadd.xlane.f32.xlu1 %v17224_v21  ;;  %v15462_v4 = vrot.slane %v15448_v42, %v18751_v25  ;;  %v15530_v53 = vcombine.low %v14799_v7, %v14800_v0  ;;  %v14792_v35 = vmul.f32 %v24587_v49, %v27994_v62  ;;  %v15537_v44 = vrot.slane %v15527_v12, %v18751_v25  ;;  %v27997_v42 = vld [vmem:[#allocation80_spill] sm:$0xff]  ;;  %v27998_v12 = vld [vmem:[#allocation79_spill] sm:$0xff]  ;;  %v28000_v62 = vld [vmem:[#allocation290_spill] sm:$0xff] }
 0x507   :  { %v15544_v17 = vrot.slane %v15528_v5, %v18751_v25  ;;  %v15551_v45 = vrot.slane %v15529_v61, %v18751_v25  ;;  %v14911_v23 = vmul.f32 %v24587_v49, %v27996_v11  ;;  %v14904_v27 = vmul.f32 %v24602_v2, %v27997_v42  ;;  %v27999_v61 = vld [vmem:[#allocation288_spill] sm:$0xff]  ;;  %v28004_v11 = vld [vmem:[#allocation289_spill] sm:$0xff]  ;;  %v28005_v42 = vld [vmem:[#allocation291_spill] sm:$0xff] }
 0x508   :  { %v15463_v6 = vcombine.low %v15455_v13, %v15462_v4  ;;  %v15558_v3 = vrot.slane %v15530_v53, %v18751_v25  ;;  %v15519_v48 = vrot.slane %v14792_v35, %v18751_v25  ;;  %v14903_v13 = vmul.f32 %v24587_v49, %v27998_v12 }
 0x509   :  { %v15559_v58 = vcombine.low %v15537_v44, %v15544_v17  ;;  %v16303_v4 = vrot.slane %v14911_v23, %v18751_v25  ;;  %v14905_v53 = vmul.f32 %v24606_v16, %v27999_v61  ;;  %v14906_v35 = vmul.f32 %v24623_v34, %v28000_v62  ;;  %v24886_v44 = vpop.xlane.xlu0 %14604  ;;  %v24898_v62 = vpop.xlane.xlu1 %14589 }
 0x50a   :  { %v17152_v7 = vsel %vm698_vm0, %v15463_v6, 0.0  ;;  %v15560_v0 = vcombine.low %v15551_v45, %v15558_v3  ;;  %v15526_v21 = vrot.slane %v15519_v48, %v18751_v25  ;;  %28001 = vst [vmem:[#allocation278_spill] sm:$0xff] %v24886_v44  ;;  %v28002_v6 = vld [vmem:[#allocation81_spill] sm:$0xff]  ;;  %v28003_v3 = vld [vmem:[#allocation82_spill] sm:$0xff]  ;;  %v16248_v12 = vcombine.low %v14903_v13, %v14904_v27  ;;  %28006 = vst [vmem:[#allocation279_spill] sm:$0xff] %v24898_v62 }
 0x50b   :  { %17153 = vadd.xlane.f32.xlu0 %v17152_v7  ;;  %v15567_v5 = vrot.slane %v15559_v58, %v18751_v25  ;;  %v14907_v45 = vmul.f32 %v24599_v38, %v28002_v6  ;;  %v14908_v48 = vmul.f32 %v24615_v39, %v28003_v3  ;;  %v14909_v58 = vmul.f32 %v24619_v43, %v28004_v11  ;;  %v28007_v27 = vld [vmem:[#allocation296_spill] sm:$0xff]  ;;  %v28016_v62 = vld [vmem:[#allocation91_spill] sm:$0xff] }
 0x50c   :  { %v15574_v17 = vrot.slane %v15560_v0, %v18751_v25  ;;  %v16310_v23 = vrot.slane %v16303_v4, %v18751_v25  ;;  %v14910_v7 = vmul.f32 %v24638_v50, %v28005_v42  ;;  %v16249_v61 = vcombine.low %v14905_v53, %v14906_v35  ;;  %v28008_v53 = vld [vmem:[#allocation298_spill] sm:$0xff] }
 0x50d   :  { %v17158_v0 = vsel %vm9067_vm1, %v15526_v21, 0.0  ;;  %v16250_v8 = vcombine.low %v14907_v45, %v14908_v48  ;;  %v16258_v54 = vrot.slane %v16248_v12, %v18751_v25  ;;  %v14929_v13 = vmul.f32 %v24587_v49, %v28007_v27  ;;  %v28010_v48 = vld [vmem:[#allocation88_spill] sm:$0xff] }
 0x50e   :  { %v15575_v44 = vcombine.low %v15567_v5, %v15574_v17  ;;  %v17221_v6 = vsel %vm9067_vm1, %v16310_v23, 0.0  ;;  %v16251_v3 = vcombine.low %v14909_v58, %v14910_v7  ;;  %v16265_v11 = vrot.slane %v16249_v61, %v18751_v25  ;;  %v28009_v17 = vld [vmem:[#allocation87_spill] sm:$0xff]  ;;  %v24915_v23 = vpop.xlane.xlu0 %12067  ;;  %v28014_v61 = vld [vmem:[#allocation112_spill] sm:$0xff] }
 0x50f   :  { %17159 = vadd.xlane.f32.xlu0 %v17158_v0  ;;  %v16272_v42 = vrot.slane %v16250_v8, %v18751_v25  ;;  %v14930_v5 = vmul.f32 %v24602_v2, %v28008_v53  ;;  %v14931_v45 = vmul.f32 %v24606_v16, %v28009_v17  ;;  %v14932_v58 = vmul.f32 %v24623_v34, %v28010_v48  ;;  %v28013_v7 = vld [vmem:[#allocation299_spill] sm:$0xff]  ;;  %v24926_v17 = vpop.xlane.xlu1 %12046 }
 0x510   :  { %v17161_v4 = vsel %vm698_vm0, %v15575_v44, 0.0  ;;  %v16279_v21 = vrot.slane %v16251_v3, %v18751_v25  ;;  %v16280_v35 = vcombine.low %v16258_v54, %v16265_v11  ;;  %28011 = vst [vmem:[#allocation282_spill] sm:$0xff] %v24915_v23  ;;  %v28012_v44 = vld [vmem:[#allocation297_spill] sm:$0xff]  ;;  %v14934_v12 = vmul.f32 %v24615_v39, %v28013_v7 }
 0x511   :  { %17162 = vadd.xlane.f32.xlu1 %v17161_v4  ;;  %v14933_v8 = vmul.f32 %v24599_v38, %v28012_v44  ;;  %v14935_v0 = vmul.f32 %v24619_v43, %v28014_v61  ;;  %v28015_v4 = vld [vmem:[#allocation114_spill] sm:$0xff]  ;;  %v16423_v27 = vcombine.low %v14929_v13, %v14930_v5  ;;  %v16424_v53 = vcombine.low %v14931_v45, %v14932_v58 }
 0x512   :  { %v14936_v54 = vmul.f32 %v24638_v50, %v28015_v4  ;;  %v16281_v3 = vcombine.low %v16272_v42, %v16279_v21  ;;  %v16288_v11 = vrot.slane %v16280_v35, %v18751_v25  ;;  %v14920_v44 = vmul.f32 %v24587_v49, %v28016_v62  ;;  %v28018_v21 = vld [vmem:[#allocation96_spill] sm:$0xff]  ;;  %v28019_v45 = vld [vmem:[#allocation90_spill] sm:$0xff] }
 0x513   :  { %v16425_v48 = vcombine.low %v14933_v8, %v14934_v12  ;;  %v14921_v7 = vmul.f32 %v24602_v2, %v28017_v57  ;;  %v16433_v4 = vrot.slane %v16423_v27, %v18751_v25  ;;  %v16440_v42 = vrot.slane %v16424_v53, %v18751_v25  ;;  %v28020_v58 = vld [vmem:[#allocation94_spill] sm:$0xff]  ;;  %v28021_v12 = vld [vmem:[#allocation95_spill] sm:$0xff]  ;;  %v24947_v27 = vpop.xlane.xlu0 %14658 }
 0x514   :  { %v16426_v23 = vcombine.low %v14935_v0, %v14936_v54  ;;  %v16295_v61 = vrot.slane %v16281_v3, %v18751_v25  ;;  %v14922_v13 = vmul.f32 %v24606_v16, %v28018_v21  ;;  %v14923_v62 = vmul.f32 %v24623_v34, %v28019_v45  ;;  %v28022_v54 = vld [vmem:[#allocation98_spill] sm:$0xff]  ;;  %28023 = vst [vmem:[#allocation276_spill] sm:$0xff] %v24947_v27 }
 0x515   :  { %17222 = vadd.xlane.f32.xlu1 %v17221_v6  ;;  %v16447_v5 = vrot.slane %v16425_v48, %v18751_v25  ;;  %v14924_v57 = vmul.f32 %v24599_v38, %v28020_v58  ;;  %v16455_v8 = vcombine.low %v16433_v4, %v16440_v42  ;;  %v14925_v0 = vmul.f32 %v24615_v39, %v28021_v12  ;;  %v28024_v48 = vld [vmem:[#allocation84_spill] sm:$0xff] }
 0x516   :  { %v16454_v35 = vrot.slane %v16426_v23, %v18751_v25  ;;  %v16296_v6 = vcombine.low %v16288_v11, %v16295_v61  ;;  %v14926_v3 = vmul.f32 %v24619_v43, %v28022_v54  ;;  %v14927_v23 = vmul.f32 %v24638_v50, %v28024_v48  ;;  %v24953_v61 = vpop.xlane.xlu1 %12052  ;;  %v28026_v54 = vld [vmem:[#allocation179_spill] sm:$0xff]  ;;  %v28030_v48 = vld [vmem:[#allocation124_spill] sm:$0xff] }
 0x517   :  { %v16360_v21 = vcombine.low %v14920_v44, %v14921_v7  ;;  %v16361_v41 = vcombine.low %v14922_v13, %v14923_v62  ;;  %v16463_v58 = vrot.slane %v16455_v8, %v18751_v25  ;;  %v16362_v11 = vcombine.low %v14924_v57, %v14925_v0  ;;  %28025 = vst [vmem:[#allocation280_spill] sm:$0xff] %v24953_v61  ;;  %v28027_v57 = vld [vmem:[#allocation236_spill] sm:$0xff]  ;;  %v28028_v0 = vld [vmem:[#allocation234_spill] sm:$0xff] }
 0x518   :  { %v16456_v53 = vcombine.low %v16447_v5, %v16454_v35  ;;  %v17218_v45 = vsel %vm698_vm0, %v16296_v6, 0.0  ;;  %v16363_v42 = vcombine.low %v14926_v3, %v14927_v23  ;;  %v14809_v44 = vmul.f32 %v24587_v49, %v28026_v54  ;;  %v28033_v54 = vld [vmem:[#allocation155_spill] sm:$0xff] }
 0x519   :  { %17219 = vadd.xlane.f32.xlu0 %v17218_v45  ;;  %v16370_v12 = vrot.slane %v16360_v21, %v18751_v25  ;;  %v16377_v5 = vrot.slane %v16361_v41, %v18751_v25  ;;  %v16384_v35 = vrot.slane %v16362_v11, %v18751_v25  ;;  %v14802_v6 = vmul.f32 %v24602_v2, %v28027_v57  ;;  %v24971_v21 = vpop.xlane.xlu0 %12001  ;;  %v28031_v11 = vld [vmem:[#allocation235_spill] sm:$0xff]  ;;  %v28034_v57 = vld [vmem:[#allocation156_spill] sm:$0xff] }
 0x51a   :  { %v16470_v4 = vrot.slane %v16456_v53, %v18751_v25  ;;  %v16391_v13 = vrot.slane %v16363_v42, %v18751_v25  ;;  %v15631_v8 = vrot.slane %v14809_v44, %v18751_v25  ;;  %v14801_v3 = vmul.f32 %v24587_v49, %v28028_v0  ;;  %v28029_v53 = vld [vmem:[#allocation122_spill] sm:$0xff]  ;;  %v28032_v42 = vld [vmem:[#allocation237_spill] sm:$0xff] }
 0x51b   :  { %v16392_v62 = vcombine.low %v16370_v12, %v16377_v5  ;;  %v14803_v41 = vmul.f32 %v24606_v16, %v28029_v53  ;;  %v14804_v23 = vmul.f32 %v24623_v34, %v28030_v48  ;;  %v14806_v12 = vmul.f32 %v24615_v39, %v28032_v42  ;;  %v24983_v48 = vpop.xlane.xlu1 %12076 }
 0x51c   :  { %v16471_v7 = vcombine.low %v16463_v58, %v16470_v4  ;;  %v16393_v58 = vcombine.low %v16384_v35, %v16391_v13  ;;  %v14805_v4 = vmul.f32 %v24599_v38, %v28031_v11  ;;  %v15638_v5 = vrot.slane %v15631_v8, %v18751_v25  ;;  %28035 = vst [vmem:[#allocation281_spill] sm:$0xff] %v24983_v48 }
 0x51d   :  { %v14807_v44 = vmul.f32 %v24619_v43, %v28033_v54  ;;  %v14808_v0 = vmul.f32 %v24638_v50, %v28034_v57  ;;  %v15576_v53 = vcombine.low %v14801_v3, %v14802_v6  ;;  %v16400_v35 = vrot.slane %v16392_v62, %v18751_v25  ;;  %v28036_v3 = vld [vmem:[#allocation152_spill] sm:$0xff]  ;;  %v24994_v48 = vpop.xlane.xlu0 %14592 }
 0x51e   :  { %v17233_v45 = vsel %vm698_vm0, %v16471_v7, 0.0  ;;  %v16407_v7 = vrot.slane %v16393_v58, %v18751_v25  ;;  %v15577_v13 = vcombine.low %v14803_v41, %v14804_v23  ;;  %v15578_v11 = vcombine.low %v14805_v4, %v14806_v12  ;;  %v28037_v58 = vld [vmem:[#allocation147_spill] sm:$0xff]  ;;  %v28038_v12 = vld [vmem:[#allocation150_spill] sm:$0xff] }
 0x51f   :  { %17234 = vadd.xlane.f32.xlu1 %v17233_v45  ;;  %v15579_v27 = vcombine.low %v14807_v44, %v14808_v0  ;;  %v15586_v45 = vrot.slane %v15576_v53, %v18751_v25  ;;  %v17167_v8 = vsel %vm9067_vm1, %v15638_v5, 0.0  ;;  %v14818_v62 = vmul.f32 %v24587_v49, %v28036_v3  ;;  %v28039_v0 = vld [vmem:[#allocation151_spill] sm:$0xff] }
 0x520   :  { %v16408_v42 = vcombine.low %v16400_v35, %v16407_v7  ;;  %v15593_v54 = vrot.slane %v15577_v13, %v18751_v25  ;;  %v15600_v57 = vrot.slane %v15578_v11, %v18751_v25  ;;  %v14819_v4 = vmul.f32 %v24602_v2, %v28037_v58  ;;  %v28041_v7 = vld [vmem:[#allocation183_spill] sm:$0xff]  ;;  %v25007_v11 = vpop.xlane.xlu1 %14637 }
 0x521   :  { %v15607_v6 = vrot.slane %v15579_v27, %v18751_v25  ;;  %v14820_v5 = vmul.f32 %v24606_v16, %v28038_v12  ;;  %v14821_v53 = vmul.f32 %v24623_v34, %v28039_v0  ;;  %v28040_v27 = vld [vmem:[#allocation154_spill] sm:$0xff]  ;;  %v14823_v13 = vmul.f32 %v24615_v39, %v28041_v7  ;;  %28042 = vst [vmem:[#allocation14_spill] sm:$0xff] %v25007_v11  ;;  %v28045_v12 = vld [vmem:[#allocation85_spill] sm:$0xff] }
 0x522   :  { %v17227_v41 = vsel %vm698_vm0, %v16408_v42, 0.0  ;;  %v15608_v23 = vcombine.low %v15586_v45, %v15593_v54  ;;  %v14822_v35 = vmul.f32 %v24599_v38, %v28040_v27  ;;  %v28043_v42 = vld [vmem:[#allocation185_spill] sm:$0xff]  ;;  %v28044_v54 = vld [vmem:[#allocation186_spill] sm:$0xff]  ;;  %v14928_v0 = vmul.f32 %v24587_v49, %v28045_v12 }
 0x523   :  { %17168 = vadd.xlane.f32.xlu1 %v17167_v8  ;;  %17228 = vadd.xlane.f32.xlu0 %v17227_v41  ;;  %v15609_v44 = vcombine.low %v15600_v57, %v15607_v6  ;;  %v14824_v8 = vmul.f32 %v24619_v43, %v28043_v42  ;;  %v14825_v3 = vmul.f32 %v24638_v50, %v28044_v54  ;;  %v25020_v42 = vpop.xlane.xlu0 %12007 }
 0x524   :  { %v15616_v45 = vrot.slane %v15608_v23, %v18751_v25  ;;  %v15688_v57 = vcombine.low %v14818_v62, %v14819_v4  ;;  %v15689_v41 = vcombine.low %v14820_v5, %v14821_v53  ;;  %v15690_v58 = vcombine.low %v14822_v35, %v14823_v13  ;;  %v25028_v35 = vpop.xlane.xlu1 %14643 }
 0x525   :  { %v15623_v6 = vrot.slane %v15609_v44, %v18751_v25  ;;  %v15691_v27 = vcombine.low %v14824_v8, %v14825_v3  ;;  %v16415_v11 = vrot.slane %v14928_v0, %v18751_v25  ;;  %v14946_v53 = vmul.f32 %v24587_v49, %v27828_v36  ;;  %28046 = vst [vmem:[#allocation39_spill] sm:$0xff] %v25028_v35  ;;  %v28070_v35 = vld [vmem:[#allocation173_spill] sm:$0xff] }
 0x526   :  { %v15698_v7 = vrot.slane %v15688_v57, %v18751_v25  ;;  %v15705_v23 = vrot.slane %v15689_v41, %v18751_v25  ;;  %v15712_v54 = vrot.slane %v15690_v58, %v18751_v25  ;;  %v14950_v36 = vmul.f32 %v24599_v38, %v27832_v20  ;;  %v28047_v41 = vld [vmem:[#allocation138_spill] sm:$0xff]  ;;  %v28048_v58 = vld [vmem:[#allocation139_spill] sm:$0xff]  ;;  %v28051_v20 = vld [vmem:[#allocation77_spill] sm:$0xff] }
 0x527   :  { %v15624_v61 = vcombine.low %v15616_v45, %v15623_v6  ;;  %v15719_v62 = vrot.slane %v15691_v27, %v18751_v25  ;;  %v16422_v44 = vrot.slane %v16415_v11, %v18751_v25  ;;  %v14947_v45 = vmul.f32 %v24602_v2, %v27829_v33 }
 0x528   :  { %v15720_v5 = vcombine.low %v15698_v7, %v15705_v23  ;;  %v14949_v11 = vmul.f32 %v24623_v34, %v27831_v55  ;;  %v14951_v6 = vmul.f32 %v24615_v39, %v27833_v63  ;;  %v14952_v33 = vmul.f32 %v24619_v43, %v28047_v41  ;;  %v25049_v55 = vpop.xlane.xlu0 %14598  ;;  %v28052_v63 = vld [vmem:[#allocation113_spill] sm:$0xff] }
 0x529   :  { %v17164_v4 = vsel %vm698_vm0, %v15624_v61, 0.0  ;;  %v15721_v13 = vcombine.low %v15712_v54, %v15719_v62  ;;  %v17230_v3 = vsel %vm9067_vm1, %v16422_v44, 0.0  ;;  %v14948_v61 = vmul.f32 %v24606_v16, %v27830_v22  ;;  %v28049_v22 = vld [vmem:[#allocation130_spill] sm:$0xff]  ;;  %28050 = vst [vmem:[#allocation143_spill] sm:$0xff] %v25049_v55 }
 0x52a   :  { %17165 = vadd.xlane.f32.xlu0 %v17164_v4  ;;  %v15728_v8 = vrot.slane %v15720_v5, %v18751_v25  ;;  %v14953_v12 = vmul.f32 %v24638_v50, %v28048_v58  ;;  %v16535_v0 = vcombine.low %v14946_v53, %v14947_v45  ;;  %v14937_v7 = vmul.f32 %v24587_v49, %v28049_v22  ;;  %v28057_v58 = vld [vmem:[#allocation106_spill] sm:$0xff] }
 0x52b   :  { %v15735_v57 = vrot.slane %v15721_v13, %v18751_v25  ;;  %v16536_v27 = vcombine.low %v14948_v61, %v14949_v11  ;;  %v16537_v54 = vcombine.low %v14950_v36, %v14951_v6  ;;  %v14938_v62 = vmul.f32 %v24602_v2, %v28051_v20  ;;  %v28053_v13 = vld [vmem:[#allocation115_spill] sm:$0xff]  ;;  %v25059_v61 = vpop.xlane.xlu1 %14667  ;;  %v28055_v11 = vld [vmem:[#allocation21_spill] sm:$0xff] }
 0x52c   :  { %v14939_v4 = vmul.f32 %v24606_v16, %v28052_v63  ;;  %v16538_v5 = vcombine.low %v14952_v33, %v14953_v12  ;;  %v16545_v44 = vrot.slane %v16535_v0, %v18751_v25  ;;  %v14940_v45 = vmul.f32 %v24623_v34, %v28053_v13  ;;  %28054 = vst [vmem:[#allocation11_spill] sm:$0xff] %v25059_v61  ;;  %v28056_v36 = vld [vmem:[#allocation99_spill] sm:$0xff]  ;;  %v28058_v0 = vld [vmem:[#allocation105_spill] sm:$0xff]  ;;  %v25072_v13 = vpop.xlane.xlu0 %12019 }
 0x52d   :  { %v15736_v23 = vcombine.low %v15728_v8, %v15735_v57  ;;  %v16552_v53 = vrot.slane %v16536_v27, %v18751_v25  ;;  %v14941_v57 = vmul.f32 %v24599_v38, %v28055_v11  ;;  %v14942_v6 = vmul.f32 %v24615_v39, %v28056_v36  ;;  %28059 = vst [vmem:[#allocation144_spill] sm:$0xff] %v25072_v13  ;;  %v28093_v13 = vld [vmem:[#allocation140_spill] sm:$0xff] }
 0x52e   :  { %17231 = vadd.xlane.f32.xlu0 %v17230_v3  ;;  %v16559_v3 = vrot.slane %v16537_v54, %v18751_v25  ;;  %v16566_v41 = vrot.slane %v16538_v5, %v18751_v25  ;;  %v14943_v12 = vmul.f32 %v24619_v43, %v28057_v58  ;;  %v14944_v27 = vmul.f32 %v24638_v50, %v28058_v0 }
 0x52f   :  { %v17173_v8 = vsel %vm698_vm0, %v15736_v23, 0.0  ;;  %v16567_v33 = vcombine.low %v16545_v44, %v16552_v53  ;;  %v16472_v22 = vcombine.low %v14937_v7, %v14938_v62  ;;  %v16473_v23 = vcombine.low %v14939_v4, %v14940_v45  ;;  %v28060_v44 = vld [vmem:[#allocation252_spill] sm:$0xff]  ;;  %v25082_v62 = vpop.xlane.xlu1 %12010 }
 0x530   :  { %17174 = vadd.xlane.f32.xlu1 %v17173_v8  ;;  %v16474_v20 = vcombine.low %v14941_v57, %v14942_v6  ;;  %v16568_v54 = vcombine.low %v16559_v3, %v16566_v41  ;;  %v16475_v63 = vcombine.low %v14943_v12, %v14944_v27  ;;  %v14826_v53 = vmul.f32 %v24587_v49, %v28060_v44  ;;  %v28061_v3 = vld [vmem:[#allocation159_spill] sm:$0xff]  ;;  %v28062_v6 = vld [vmem:[#allocation93_spill] sm:$0xff] }
 0x531   :  { %v16482_v11 = vrot.slane %v16472_v22, %v18751_v25  ;;  %v16489_v8 = vrot.slane %v16473_v23, %v18751_v25  ;;  %v16575_v36 = vrot.slane %v16567_v33, %v18751_v25  ;;  %v14810_v57 = vmul.f32 %v24587_v49, %v28061_v3  ;;  %v28063_v27 = vld [vmem:[#allocation157_spill] sm:$0xff]  ;;  %v28064_v22 = vld [vmem:[#allocation158_spill] sm:$0xff] }
 0x532   :  { %v16496_v5 = vrot.slane %v16474_v20, %v18751_v25  ;;  %v16582_v58 = vrot.slane %v16568_v54, %v18751_v25  ;;  %v16503_v7 = vrot.slane %v16475_v63, %v18751_v25  ;;  %v15743_v45 = vrot.slane %v14826_v53, %v18751_v25  ;;  %v28065_v63 = vld [vmem:[#allocation160_spill] sm:$0xff] }
 0x533   :  { %v16504_v4 = vcombine.low %v16482_v11, %v16489_v8  ;;  %v14811_v41 = vmul.f32 %v24602_v2, %v28062_v6  ;;  %v14812_v33 = vmul.f32 %v24606_v16, %v28063_v27  ;;  %v14813_v23 = vmul.f32 %v24623_v34, %v28064_v22  ;;  %v28066_v8 = vld [vmem:[#allocation146_spill] sm:$0xff]  ;;  %v25105_v6 = vpop.xlane.xlu0 %14610  ;;  %v25108_v61 = vpop.xlane.xlu1 %14601 }
 0x534   :  { %v16583_v12 = vcombine.low %v16575_v36, %v16582_v58  ;;  %v16505_v0 = vcombine.low %v16496_v5, %v16503_v7  ;;  %v15750_v54 = vrot.slane %v15743_v45, %v18751_v25  ;;  %v14814_v11 = vmul.f32 %v24599_v38, %v28065_v63  ;;  %v28067_v36 = vld [vmem:[#allocation148_spill] sm:$0xff]  ;;  %v28068_v7 = vld [vmem:[#allocation149_spill] sm:$0xff]  ;;  %28069 = vst [vmem:[#allocation35_spill] sm:$0xff] %v25105_v6 }
 0x535   :  { %v16512_v20 = vrot.slane %v16504_v4, %v18751_v25  ;;  %v14815_v44 = vmul.f32 %v24615_v39, %v28066_v8  ;;  %v14816_v58 = vmul.f32 %v24619_v43, %v28067_v36  ;;  %v14817_v3 = vmul.f32 %v24638_v50, %v28068_v7  ;;  %v28092_v6 = vld [vmem:[#allocation137_spill] sm:$0xff] }
 0x536   :  { %v17242_v53 = vsel %vm698_vm0, %v16583_v12, 0.0  ;;  %v16519_v5 = vrot.slane %v16505_v0, %v18751_v25  ;;  %v15639_v4 = vcombine.low %v14810_v57, %v14811_v41  ;;  %v15640_v45 = vcombine.low %v14812_v33, %v14813_v23  ;;  %v28071_v41 = vld [vmem:[#allocation175_spill] sm:$0xff]  ;;  %v28072_v23 = vld [vmem:[#allocation189_spill] sm:$0xff] }
 0x537   :  { %17243 = vadd.xlane.f32.xlu1 %v17242_v53  ;;  %v15641_v27 = vcombine.low %v14814_v11, %v14815_v44  ;;  %v17176_v63 = vsel %vm9067_vm1, %v15750_v54, 0.0  ;;  %v15642_v8 = vcombine.low %v14816_v58, %v14817_v3  ;;  %v14835_v7 = vmul.f32 %v24587_v49, %v28070_v35  ;;  %v28073_v11 = vld [vmem:[#allocation190_spill] sm:$0xff]  ;;  %v28075_v3 = vld [vmem:[#allocation229_spill] sm:$0xff] }
 0x538   :  { %v16520_v22 = vcombine.low %v16512_v20, %v16519_v5  ;;  %v15649_v12 = vrot.slane %v15639_v4, %v18751_v25  ;;  %v15656_v0 = vrot.slane %v15640_v45, %v18751_v25  ;;  %v14836_v33 = vmul.f32 %v24602_v2, %v28071_v41  ;;  %v28074_v5 = vld [vmem:[#allocation227_spill] sm:$0xff]  ;;  %v28076_v45 = vld [vmem:[#allocation177_spill] sm:$0xff]  ;;  %v25131_v41 = vpop.xlane.xlu0 %12055 }
 0x539   :  { %v15663_v36 = vrot.slane %v15641_v27, %v18751_v25  ;;  %v15670_v57 = vrot.slane %v15642_v8, %v18751_v25  ;;  %v14837_v20 = vmul.f32 %v24606_v16, %v28072_v23  ;;  %v14838_v44 = vmul.f32 %v24623_v34, %v28073_v11  ;;  %28078 = vst [vmem:[#allocation97_spill] sm:$0xff] %v25131_v41 }
 0x53a   :  { %v17236_v53 = vsel %vm698_vm0, %v16520_v22, 0.0  ;;  %v15671_v54 = vcombine.low %v15649_v12, %v15656_v0  ;;  %v14839_v58 = vmul.f32 %v24599_v38, %v28074_v5  ;;  %v14840_v4 = vmul.f32 %v24615_v39, %v28075_v3  ;;  %v28077_v22 = vld [vmem:[#allocation178_spill] sm:$0xff]  ;;  %v25137_v5 = vpop.xlane.xlu1 %12016 }
 0x53b   :  { %17237 = vadd.xlane.f32.xlu0 %v17236_v53  ;;  %17177 = vadd.xlane.f32.xlu1 %v17176_v63  ;;  %v15672_v35 = vcombine.low %v15663_v36, %v15670_v57  ;;  %v14841_v27 = vmul.f32 %v24619_v43, %v28076_v45  ;;  %v14842_v8 = vmul.f32 %v24638_v50, %v28077_v22  ;;  %v28079_v0 = vld [vmem:[#allocation110_spill] sm:$0xff] }
 0x53c   :  { %v15800_v63 = vcombine.low %v14835_v7, %v14836_v33  ;;  %v15801_v12 = vcombine.low %v14837_v20, %v14838_v44  ;;  %v14945_v53 = vmul.f32 %v24587_v49, %v28079_v0  ;;  %v15679_v23 = vrot.slane %v15671_v54, %v18751_v25  ;;  %28080 = vst [vmem:[#allocation145_spill] sm:$0xff] %v25137_v5 }
 0x53d   :  { %v15686_v36 = vrot.slane %v15672_v35, %v18751_v25  ;;  %v15802_v57 = vcombine.low %v14839_v58, %v14840_v4  ;;  %v15803_v11 = vcombine.low %v14841_v27, %v14842_v8  ;;  %v28081_v35 = vld [vmem:[#allocation131_spill] sm:$0xff]  ;;  %v28082_v27 = vld [vmem:[#allocation132_spill] sm:$0xff] }
 0x53e   :  { %v15810_v3 = vrot.slane %v15800_v63, %v18751_v25  ;;  %v15817_v45 = vrot.slane %v15801_v12, %v18751_v25  ;;  %v16527_v22 = vrot.slane %v14945_v53, %v18751_v25  ;;  %v14963_v4 = vmul.f32 %v24587_v49, %v28081_v35  ;;  %v25150_v63 = vpop.xlane.xlu0 %12061  ;;  %v28084_v53 = vld [vmem:[#allocation191_spill] sm:$0xff] }
 0x53f   :  { %v15687_v41 = vcombine.low %v15679_v23, %v15686_v36  ;;  %v15824_v7 = vrot.slane %v15802_v57, %v18751_v25  ;;  %v15831_v33 = vrot.slane %v15803_v11, %v18751_v25  ;;  %v14964_v8 = vmul.f32 %v24602_v2, %v28082_v27  ;;  %28083 = vst [vmem:[#allocation51_spill] sm:$0xff] %v25150_v63  ;;  %v28085_v36 = vld [vmem:[#allocation161_spill] sm:$0xff]  ;;  %v28086_v11 = vld [vmem:[#allocation103_spill] sm:$0xff] }
 0x540   :  { %v15832_v20 = vcombine.low %v15810_v3, %v15817_v45  ;;  %v16534_v54 = vrot.slane %v16527_v22, %v18751_v25  ;;  %v14965_v23 = vmul.f32 %v24606_v16, %v28084_v53  ;;  %v14967_v3 = vmul.f32 %v24599_v38, %v28086_v11  ;;  %v28087_v45 = vld [vmem:[#allocation167_spill] sm:$0xff]  ;;  %v28091_v53 = vld [vmem:[#allocation142_spill] sm:$0xff] }
 0x541   :  { %v17170_v44 = vsel %vm698_vm0, %v15687_v41, 0.0  ;;  %v15833_v58 = vcombine.low %v15824_v7, %v15831_v33  ;;  %v14966_v41 = vmul.f32 %v24623_v34, %v28085_v36  ;;  %v14968_v22 = vmul.f32 %v24615_v39, %v28087_v45  ;;  %v28088_v7 = vld [vmem:[#allocation100_spill] sm:$0xff] }
 0x542   :  { %17171 = vadd.xlane.f32.xlu0 %v17170_v44  ;;  %v15840_v12 = vrot.slane %v15832_v20, %v18751_v25  ;;  %v17239_v0 = vsel %vm9067_vm1, %v16534_v54, 0.0  ;;  %v14969_v33 = vmul.f32 %v24619_v43, %v28088_v7  ;;  %v25165_v20 = vpop.xlane.xlu1 %14607  ;;  %v28090_v54 = vld [vmem:[#allocation192_spill] sm:$0xff]  ;;  %v16647_v35 = vcombine.low %v14963_v4, %v14964_v8 }
 0x543   :  { %v15847_v57 = vrot.slane %v15833_v58, %v18751_v25  ;;  %28089 = vst [vmem:[#allocation28_spill] sm:$0xff] %v25165_v20  ;;  %v14970_v44 = vmul.f32 %v24638_v50, %v28090_v54  ;;  %v16648_v27 = vcombine.low %v14965_v23, %v14966_v41  ;;  %v14954_v36 = vmul.f32 %v24587_v49, %v28091_v53  ;;  %v28094_v54 = vld [vmem:[#allocation141_spill] sm:$0xff]  ;;  %v28095_v23 = vld [vmem:[#allocation83_spill] sm:$0xff] }
 0x544   :  { %v16649_v63 = vcombine.low %v14967_v3, %v14968_v22  ;;  %v14955_v11 = vmul.f32 %v24602_v2, %v28092_v6  ;;  %v14956_v45 = vmul.f32 %v24606_v16, %v28093_v13  ;;  %v16657_v55 = vrot.slane %v16647_v35, %v18751_v25  ;;  %v28096_v6 = vld [vmem:[#allocation29_spill] sm:$0xff]  ;;  %v25185_v13 = vpop.xlane.xlu0 %14646  ;;  %v28098_v22 = vld [vmem:[#allocation59_spill] sm:$0xff] }
 0x545   :  { %v15848_v58 = vcombine.low %v15840_v12, %v15847_v57  ;;  %v16650_v7 = vcombine.low %v14969_v33, %v14970_v44  ;;  %v16664_v20 = vrot.slane %v16648_v27, %v18751_v25  ;;  %v14957_v4 = vmul.f32 %v24623_v34, %v28094_v54  ;;  %28097 = vst [vmem:[#allocation23_spill] sm:$0xff] %v25185_v13  ;;  %v28099_v44 = vld [vmem:[#allocation86_spill] sm:$0xff]  ;;  %v28112_v13 = vld [vmem:[#allocation223_spill] sm:$0xff] }
 0x546   :  { %17240 = vadd.xlane.f32.xlu0 %v17239_v0  ;;  %v16671_v12 = vrot.slane %v16649_v63, %v18751_v25  ;;  %v14958_v41 = vmul.f32 %v24599_v38, %v28095_v23  ;;  %v14959_v57 = vmul.f32 %v24615_v39, %v28096_v6  ;;  %v14960_v33 = vmul.f32 %v24619_v43, %v28098_v22 }
 0x547   :  { %v17182_v8 = vsel %vm698_vm0, %v15848_v58, 0.0  ;;  %v16678_v0 = vrot.slane %v16650_v7, %v18751_v25  ;;  %v16679_v3 = vcombine.low %v16657_v55, %v16664_v20  ;;  %v14961_v35 = vmul.f32 %v24638_v50, %v28099_v44  ;;  %v25192_v58 = vpop.xlane.xlu1 %12064  ;;  %v28101_v20 = vld [vmem:[#allocation228_spill] sm:$0xff] }
 0x548   :  { %17183 = vadd.xlane.f32.xlu1 %v17182_v8  ;;  %v16584_v27 = vcombine.low %v14954_v36, %v14955_v11  ;;  %v16585_v63 = vcombine.low %v14956_v45, %v14957_v4  ;;  %v16586_v53 = vcombine.low %v14958_v41, %v14959_v57  ;;  %28100 = vst [vmem:[#allocation33_spill] sm:$0xff] %v25192_v58  ;;  %v28102_v11 = vld [vmem:[#allocation184_spill] sm:$0xff] }
 0x549   :  { %v16680_v54 = vcombine.low %v16671_v12, %v16678_v0  ;;  %v16687_v23 = vrot.slane %v16679_v3, %v18751_v25  ;;  %v16587_v6 = vcombine.low %v14960_v33, %v14961_v35  ;;  %v14843_v22 = vmul.f32 %v24587_v49, %v28101_v20  ;;  %v28103_v4 = vld [vmem:[#allocation188_spill] sm:$0xff]  ;;  %v28105_v33 = vld [vmem:[#allocation293_spill] sm:$0xff]  ;;  %v28108_v20 = vld [vmem:[#allocation174_spill] sm:$0xff] }
 0x54a   :  { %v16594_v8 = vrot.slane %v16584_v27, %v18751_v25  ;;  %v16601_v7 = vrot.slane %v16585_v63, %v18751_v25  ;;  %v16608_v55 = vrot.slane %v16586_v53, %v18751_v25  ;;  %v14827_v45 = vmul.f32 %v24587_v49, %v28102_v11  ;;  %v28104_v0 = vld [vmem:[#allocation292_spill] sm:$0xff]  ;;  %v25211_v27 = vpop.xlane.xlu0 %14652 }
 0x54b   :  { %v16694_v44 = vrot.slane %v16680_v54, %v18751_v25  ;;  %v16615_v36 = vrot.slane %v16587_v6, %v18751_v25  ;;  %v14828_v12 = vmul.f32 %v24602_v2, %v28103_v4  ;;  %v15855_v57 = vrot.slane %v14843_v22, %v18751_v25  ;;  %28106 = vst [vmem:[#allocation22_spill] sm:$0xff] %v25211_v27  ;;  %v28107_v54 = vld [vmem:[#allocation102_spill] sm:$0xff]  ;;  %v25223_v58 = vpop.xlane.xlu1 %14655 }
 0x54c   :  { %v16616_v41 = vcombine.low %v16594_v8, %v16601_v7  ;;  %v14829_v3 = vmul.f32 %v24606_v16, %v28104_v0  ;;  %v14830_v35 = vmul.f32 %v24623_v34, %v28105_v33  ;;  %v14831_v6 = vmul.f32 %v24599_v38, %v28107_v54  ;;  %v28109_v22 = vld [vmem:[#allocation294_spill] sm:$0xff]  ;;  %v28110_v0 = vld [vmem:[#allocation295_spill] sm:$0xff]  ;;  %28111 = vst [vmem:[#allocation38_spill] sm:$0xff] %v25223_v58 }
 0x54d   :  { %v16695_v63 = vcombine.low %v16687_v23, %v16694_v44  ;;  %v16617_v53 = vcombine.low %v16608_v55, %v16615_v36  ;;  %v14832_v11 = vmul.f32 %v24615_v39, %v28108_v20  ;;  %v15862_v7 = vrot.slane %v15855_v57, %v18751_v25 }
 0x54e   :  { %v16624_v8 = vrot.slane %v16616_v41, %v18751_v25  ;;  %v14833_v4 = vmul.f32 %v24619_v43, %v28109_v22  ;;  %v14834_v33 = vmul.f32 %v24638_v50, %v28110_v0  ;;  %v15751_v44 = vcombine.low %v14827_v45, %v14828_v12  ;;  %v25236_v12 = vpop.xlane.xlu0 %12085 }
 0x54f   :  { %v17251_v23 = vsel %vm698_vm0, %v16695_v63, 0.0  ;;  %v16631_v55 = vrot.slane %v16617_v53, %v18751_v25  ;;  %v15752_v36 = vcombine.low %v14829_v3, %v14830_v35  ;;  %v15753_v54 = vcombine.low %v14831_v6, %v14832_v11  ;;  %v28113_v53 = vld [vmem:[#allocation224_spill] sm:$0xff]  ;;  %28114 = vst [vmem:[#allocation26_spill] sm:$0xff] %v25236_v12  ;;  %v28115_v6 = vld [vmem:[#allocation226_spill] sm:$0xff] }
 0x550   :  { %17252 = vadd.xlane.f32.xlu1 %v17251_v23  ;;  %v15754_v20 = vcombine.low %v14833_v4, %v14834_v33  ;;  %v17185_v57 = vsel %vm9067_vm1, %v15862_v7, 0.0  ;;  %v15761_v27 = vrot.slane %v15751_v44, %v18751_v25  ;;  %v14852_v63 = vmul.f32 %v24587_v49, %v28112_v13  ;;  %v28117_v33 = vld [vmem:[#allocation262_spill] sm:$0xff]  ;;  %v28118_v23 = vld [vmem:[#allocation263_spill] sm:$0xff]  ;;  %v25247_v44 = vpop.xlane.xlu1 %12070 }
 0x551   :  { %v16632_v41 = vcombine.low %v16624_v8, %v16631_v55  ;;  %v15768_v22 = vrot.slane %v15752_v36, %v18751_v25  ;;  %v15775_v0 = vrot.slane %v15753_v54, %v18751_v25  ;;  %v14853_v45 = vmul.f32 %v24602_v2, %v28113_v53  ;;  %v28116_v8 = vld [vmem:[#allocation259_spill] sm:$0xff]  ;;  %28119 = vst [vmem:[#allocation30_spill] sm:$0xff] %v25247_v44  ;;  %v28122_v53 = vld [vmem:[#allocation136_spill] sm:$0xff] }
 0x552   :  { %v15782_v58 = vrot.slane %v15754_v20, %v18751_v25  ;;  %v14854_v11 = vmul.f32 %v24606_v16, %v28115_v6  ;;  %v14855_v7 = vmul.f32 %v24623_v34, %v28116_v8  ;;  %v14856_v13 = vmul.f32 %v24599_v38, %v28117_v33  ;;  %v28121_v20 = vld [vmem:[#allocation261_spill] sm:$0xff] }
 0x553   :  { %v17245_v3 = vsel %vm698_vm0, %v16632_v41, 0.0  ;;  %v15783_v35 = vcombine.low %v15761_v27, %v15768_v22  ;;  %v14857_v55 = vmul.f32 %v24615_v39, %v28118_v23  ;;  %v28120_v27 = vld [vmem:[#allocation266_spill] sm:$0xff]  ;;  %v14859_v41 = vmul.f32 %v24638_v50, %v28121_v20 }
 0x554   :  { %17246 = vadd.xlane.f32.xlu0 %v17245_v3  ;;  %17186 = vadd.xlane.f32.xlu1 %v17185_v57  ;;  %v15784_v4 = vcombine.low %v15775_v0, %v15782_v58  ;;  %v14858_v54 = vmul.f32 %v24619_v43, %v28120_v27  ;;  %v15912_v22 = vcombine.low %v14852_v63, %v14853_v45  ;;  %v25260_v27 = vpop.xlane.xlu0 %14676 }
 0x555   :  { %v15791_v36 = vrot.slane %v15783_v35, %v18751_v25  ;;  %v15913_v58 = vcombine.low %v14854_v11, %v14855_v7  ;;  %v15914_v0 = vcombine.low %v14856_v13, %v14857_v55  ;;  %v14962_v3 = vmul.f32 %v24587_v49, %v28122_v53  ;;  %28123 = vst [vmem:[#allocation123_spill] sm:$0xff] %v25260_v27  ;;  %v25268_v55 = vpop.xlane.xlu1 %12094 }
 0x556   :  { %v15798_v57 = vrot.slane %v15784_v4, %v18751_v25  ;;  %v15915_v6 = vcombine.low %v14858_v54, %v14859_v41  ;;  %v15922_v33 = vrot.slane %v15912_v22, %v18751_v25  ;;  %v28124_v4 = vld [vmem:[#allocation164_spill] sm:$0xff]  ;;  %28125 = vst [vmem:[#allocation31_spill] sm:$0xff] %v25268_v55  ;;  %v28126_v54 = vld [vmem:[#allocation165_spill] sm:$0xff] }
 0x557   :  { %v15929_v35 = vrot.slane %v15913_v58, %v18751_v25  ;;  %v16639_v23 = vrot.slane %v14962_v3, %v18751_v25  ;;  %v15936_v20 = vrot.slane %v15914_v0, %v18751_v25  ;;  %v14980_v13 = vmul.f32 %v24587_v49, %v28124_v4  ;;  %v28127_v58 = vld [vmem:[#allocation166_spill] sm:$0xff]  ;;  %v28128_v3 = vld [vmem:[#allocation197_spill] sm:$0xff]  ;;  %v28133_v4 = vld [vmem:[#allocation168_spill] sm:$0xff] }
 0x558   :  { %v15799_v8 = vcombine.low %v15791_v36, %v15798_v57  ;;  %v15943_v63 = vrot.slane %v15915_v6, %v18751_v25  ;;  %v14981_v41 = vmul.f32 %v24602_v2, %v28126_v54  ;;  %v14982_v0 = vmul.f32 %v24606_v16, %v28127_v58 }
 0x559   :  { %v15944_v11 = vcombine.low %v15922_v33, %v15929_v35  ;;  %v16646_v7 = vrot.slane %v16639_v23, %v18751_v25  ;;  %v14983_v6 = vmul.f32 %v24623_v34, %v28128_v3  ;;  %v28130_v35 = vld [vmem:[#allocation203_spill] sm:$0xff]  ;;  %v14971_v54 = vmul.f32 %v24587_v49, %v28133_v4 }
 0x55a   :  { %v17179_v45 = vsel %vm698_vm0, %v15799_v8, 0.0  ;;  %v15945_v36 = vcombine.low %v15936_v20, %v15943_v63  ;;  %v28129_v8 = vld [vmem:[#allocation200_spill] sm:$0xff]  ;;  %v14985_v23 = vmul.f32 %v24615_v39, %v28130_v35  ;;  %v28131_v20 = vld [vmem:[#allocation205_spill] sm:$0xff] }
 0x55b   :  { %17180 = vadd.xlane.f32.xlu0 %v17179_v45  ;;  %v15952_v22 = vrot.slane %v15944_v11, %v18751_v25  ;;  %v17248_v57 = vsel %vm9067_vm1, %v16646_v7, 0.0  ;;  %v14984_v33 = vmul.f32 %v24599_v38, %v28129_v8  ;;  %v14986_v63 = vmul.f32 %v24619_v43, %v28131_v20  ;;  %v28132_v45 = vld [vmem:[#allocation199_spill] sm:$0xff]  ;;  %v28135_v8 = vld [vmem:[#allocation169_spill] sm:$0xff] }
 0x55c   :  { %v15959_v53 = vrot.slane %v15945_v36, %v18751_v25  ;;  %v14987_v11 = vmul.f32 %v24638_v50, %v28132_v45  ;;  %v16759_v7 = vcombine.low %v14980_v13, %v14981_v41  ;;  %v25289_v36 = vpop.xlane.xlu0 %12073  ;;  %v16760_v3 = vcombine.low %v14982_v0, %v14983_v6  ;;  %v28136_v20 = vld [vmem:[#allocation233_spill] sm:$0xff]  ;;  %v25298_v41 = vpop.xlane.xlu1 %14661  ;;  %v28139_v0 = vld [vmem:[#allocation48_spill] sm:$0xff] }
 0x55d   :  { %28134 = vst [vmem:[#allocation20_spill] sm:$0xff] %v25289_v36  ;;  %v16761_v27 = vcombine.low %v14984_v33, %v14985_v23  ;;  %v14972_v12 = vmul.f32 %v24602_v2, %v28135_v8  ;;  %v14973_v44 = vmul.f32 %v24606_v16, %v28136_v20  ;;  %v28137_v45 = vld [vmem:[#allocation133_spill] sm:$0xff]  ;;  %28138 = vst [vmem:[#allocation215_spill] sm:$0xff] %v25298_v41  ;;  %v28140_v33 = vld [vmem:[#allocation163_spill] sm:$0xff] }
 0x55e   :  { %v15960_v58 = vcombine.low %v15952_v22, %v15959_v53  ;;  %v16762_v35 = vcombine.low %v14986_v63, %v14987_v11  ;;  %v16769_v55 = vrot.slane %v16759_v7, %v18751_v25  ;;  %v14974_v13 = vmul.f32 %v24623_v34, %v28137_v45  ;;  %v28141_v63 = vld [vmem:[#allocation135_spill] sm:$0xff]  ;;  %v28142_v7 = vld [vmem:[#allocation116_spill] sm:$0xff] }
 0x55f   :  { %17249 = vadd.xlane.f32.xlu0 %v17248_v57  ;;  %v16776_v22 = vrot.slane %v16760_v3, %v18751_v25  ;;  %v16783_v57 = vrot.slane %v16761_v27, %v18751_v25  ;;  %v14975_v53 = vmul.f32 %v24599_v38, %v28139_v0  ;;  %v14976_v23 = vmul.f32 %v24615_v39, %v28140_v33  ;;  %v28143_v0 = vld [vmem:[#allocation265_spill] sm:$0xff] }
 0x560   :  { %v17191_v4 = vsel %vm698_vm0, %v15960_v58, 0.0  ;;  %v16790_v6 = vrot.slane %v16762_v35, %v18751_v25  ;;  %v14977_v11 = vmul.f32 %v24619_v43, %v28141_v63  ;;  %v14978_v8 = vmul.f32 %v24638_v50, %v28142_v7  ;;  %v25312_v36 = vpop.xlane.xlu0 %14664 }
 0x561   :  { %17192 = vadd.xlane.f32.xlu1 %v17191_v4  ;;  %v16791_v58 = vcombine.low %v16769_v55, %v16776_v22  ;;  %v16696_v20 = vcombine.low %v14971_v54, %v14972_v12  ;;  %v16697_v3 = vcombine.low %v14973_v44, %v14974_v13  ;;  %v16698_v27 = vcombine.low %v14975_v53, %v14976_v23  ;;  %v25322_v44 = vpop.xlane.xlu1 %12082  ;;  %v28145_v22 = vld [vmem:[#allocation230_spill] sm:$0xff]  ;;  %v28146_v23 = vld [vmem:[#allocation231_spill] sm:$0xff] }
 0x562   :  { %v16792_v45 = vcombine.low %v16783_v57, %v16790_v6  ;;  %v16699_v41 = vcombine.low %v14977_v11, %v14978_v8  ;;  %v14860_v33 = vmul.f32 %v24587_v49, %v28143_v0  ;;  %28144 = vst [vmem:[#allocation217_spill] sm:$0xff] %v25322_v44  ;;  %v14844_v57 = vmul.f32 %v24587_v49, %v28145_v22 }
 0x563   :  { %v16706_v4 = vrot.slane %v16696_v20, %v18751_v25  ;;  %v16713_v35 = vrot.slane %v16697_v3, %v18751_v25  ;;  %v16799_v63 = vrot.slane %v16791_v58, %v18751_v25  ;;  %v16720_v55 = vrot.slane %v16698_v27, %v18751_v25  ;;  %v28147_v58 = vld [vmem:[#allocation232_spill] sm:$0xff]  ;;  %v28148_v20 = vld [vmem:[#allocation219_spill] sm:$0xff] }
 0x564   :  { %v16806_v5 = vrot.slane %v16792_v45, %v18751_v25  ;;  %v16727_v12 = vrot.slane %v16699_v41, %v18751_v25  ;;  %v15967_v13 = vrot.slane %v14860_v33, %v18751_v25  ;;  %v14845_v11 = vmul.f32 %v24602_v2, %v28146_v23  ;;  %v25341_v33 = vpop.xlane.xlu0 %12079 }
 0x565   :  { %v16728_v54 = vcombine.low %v16706_v4, %v16713_v35  ;;  %v14846_v41 = vmul.f32 %v24606_v16, %v28147_v58  ;;  %v14847_v3 = vmul.f32 %v24623_v34, %v28148_v20  ;;  %v28149_v4 = vld [vmem:[#allocation221_spill] sm:$0xff]  ;;  %v28150_v35 = vld [vmem:[#allocation222_spill] sm:$0xff]  ;;  %28151 = vst [vmem:[#allocation24_spill] sm:$0xff] %v25341_v33 }
 0x566   :  { %v16807_v53 = vcombine.low %v16799_v63, %v16806_v5  ;;  %v16729_v6 = vcombine.low %v16720_v55, %v16727_v12  ;;  %v15974_v8 = vrot.slane %v15967_v13, %v18751_v25  ;;  %v14848_v5 = vmul.f32 %v24599_v38, %v28149_v4  ;;  %v28152_v63 = vld [vmem:[#allocation225_spill] sm:$0xff]  ;;  %v28153_v12 = vld [vmem:[#allocation220_spill] sm:$0xff] }
 0x567   :  { %v16736_v7 = vrot.slane %v16728_v54, %v18751_v25  ;;  %v14849_v0 = vmul.f32 %v24615_v39, %v28150_v35  ;;  %v14850_v55 = vmul.f32 %v24619_v43, %v28152_v63  ;;  %v14851_v54 = vmul.f32 %v24638_v50, %v28153_v12  ;;  %v28155_v35 = vld [vmem:[#allocation182_spill] sm:$0xff] }
 0x568   :  { %v17260_v45 = vsel %vm698_vm0, %v16807_v53, 0.0  ;;  %v16743_v27 = vrot.slane %v16729_v6, %v18751_v25  ;;  %v15863_v13 = vcombine.low %v14844_v57, %v14845_v11  ;;  %v15864_v53 = vcombine.low %v14846_v41, %v14847_v3  ;;  %v25347_v6 = vpop.xlane.xlu1 %14673  ;;  %v28156_v57 = vld [vmem:[#allocation17_spill] sm:$0xff] }
 0x569   :  { %17261 = vadd.xlane.f32.xlu1 %v17260_v45  ;;  %v15865_v23 = vcombine.low %v14848_v5, %v14849_v0  ;;  %28154 = vst [vmem:[#allocation27_spill] sm:$0xff] %v25347_v6  ;;  %v17194_v58 = vsel %vm9067_vm1, %v15974_v8, 0.0  ;;  %v15866_v20 = vcombine.low %v14850_v55, %v14851_v54  ;;  %v14869_v45 = vmul.f32 %v24587_v49, %v28155_v35  ;;  %v28157_v8 = vld [vmem:[#allocation13_spill] sm:$0xff]  ;;  %v28159_v0 = vld [vmem:[#allocation258_spill] sm:$0xff] }
 0x56a   :  { %v16744_v22 = vcombine.low %v16736_v7, %v16743_v27  ;;  %v15873_v4 = vrot.slane %v15863_v13, %v18751_v25  ;;  %v15880_v63 = vrot.slane %v15864_v53, %v18751_v25  ;;  %v14870_v11 = vmul.f32 %v24602_v2, %v28156_v57  ;;  %v28158_v3 = vld [vmem:[#allocation37_spill] sm:$0xff] }
 0x56b   :  { %v15887_v12 = vrot.slane %v15865_v23, %v18751_v25  ;;  %v15894_v7 = vrot.slane %v15866_v20, %v18751_v25  ;;  %v14871_v41 = vmul.f32 %v24606_v16, %v28157_v8  ;;  %v14872_v27 = vmul.f32 %v24623_v34, %v28158_v3  ;;  %v28160_v54 = vld [vmem:[#allocation5_spill] sm:$0xff] }
 0x56c   :  { %v17254_v44 = vsel %vm698_vm0, %v16744_v22, 0.0  ;;  %v15895_v5 = vcombine.low %v15873_v4, %v15880_v63  ;;  %v14873_v55 = vmul.f32 %v24599_v38, %v28159_v0  ;;  %v14874_v13 = vmul.f32 %v24615_v39, %v28160_v54  ;;  %v28161_v22 = vld [vmem:[#allocation6_spill] sm:$0xff]  ;;  %v25376_v0 = vpop.xlane.xlu1 %12088 }
 0x56d   :  { %17255 = vadd.xlane.f32.xlu0 %v17254_v44  ;;  %17195 = vadd.xlane.f32.xlu1 %v17194_v58  ;;  %v14875_v53 = vmul.f32 %v24619_v43, %v28161_v22  ;;  %v25369_v44 = vpop.xlane.xlu0 %14670  ;;  %v15896_v23 = vcombine.low %v15887_v12, %v15894_v7  ;;  %v28163_v58 = vld [vmem:[#allocation53_spill] sm:$0xff]  ;;  %v16024_v35 = vcombine.low %v14869_v45, %v14870_v11  ;;  %v28164_v63 = vld [vmem:[#allocation162_spill] sm:$0xff] }
 0x56e   :  { %28162 = vst [vmem:[#allocation216_spill] sm:$0xff] %v25369_v44  ;;  %v14876_v20 = vmul.f32 %v24638_v50, %v28163_v58  ;;  %v16025_v57 = vcombine.low %v14871_v41, %v14872_v27  ;;  %v15903_v8 = vrot.slane %v15895_v5, %v18751_v25  ;;  %v16026_v4 = vcombine.low %v14873_v55, %v14874_v13  ;;  %v28166_v55 = vld [vmem:[#allocation249_spill] sm:$0xff]  ;;  %v28167_v58 = vld [vmem:[#allocation274_spill] sm:$0xff] }
 0x56f   :  { %v14979_v3 = vmul.f32 %v24587_v49, %v28164_v63  ;;  %28165 = vst [vmem:[#allocation218_spill] sm:$0xff] %v25376_v0  ;;  %v15910_v54 = vrot.slane %v15896_v23, %v18751_v25  ;;  %v16034_v22 = vrot.slane %v16024_v35, %v18751_v25  ;;  %v14997_v13 = vmul.f32 %v24587_v49, %v28166_v55  ;;  %v28170_v63 = vld [vmem:[#allocation245_spill] sm:$0xff] }
 0x570   :  { %v16027_v6 = vcombine.low %v14875_v53, %v14876_v20  ;;  %v16041_v12 = vrot.slane %v16025_v57, %v18751_v25  ;;  %v16048_v7 = vrot.slane %v16026_v4, %v18751_v25  ;;  %v14998_v53 = vmul.f32 %v24602_v2, %v28167_v58  ;;  %v28169_v4 = vld [vmem:[#allocation241_spill] sm:$0xff]  ;;  %v25402_v55 = vpop.xlane.xlu1 %14679 }
 0x571   :  { %v16751_v45 = vrot.slane %v14979_v3, %v18751_v25  ;;  %v15911_v11 = vcombine.low %v15903_v8, %v15910_v54  ;;  %v25389_v23 = vpop.xlane.xlu0 %12103  ;;  %v14999_v8 = vmul.f32 %v24606_v16, %v28169_v4  ;;  %v15000_v3 = vmul.f32 %v24623_v34, %v28170_v63  ;;  %v28171_v54 = vld [vmem:[#allocation285_spill] sm:$0xff]  ;;  %28173 = vst [vmem:[#allocation41_spill] sm:$0xff] %v25402_v55  ;;  %v28176_v63 = vld [vmem:[#allocation202_spill] sm:$0xff] }
 0x572   :  { %v16055_v41 = vrot.slane %v16027_v6, %v18751_v25  ;;  %v16056_v27 = vcombine.low %v16034_v22, %v16041_v12  ;;  %28168 = vst [vmem:[#allocation40_spill] sm:$0xff] %v25389_v23  ;;  %v15001_v22 = vmul.f32 %v24599_v38, %v28171_v54  ;;  %v28172_v12 = vld [vmem:[#allocation101_spill] sm:$0xff]  ;;  %v14988_v23 = vmul.f32 %v24587_v49, %v28176_v63  ;;  %v28177_v54 = vld [vmem:[#allocation204_spill] sm:$0xff] }
 0x573   :  { %v16758_v5 = vrot.slane %v16751_v45, %v18751_v25  ;;  %v17188_v20 = vsel %vm698_vm0, %v15911_v11, 0.0  ;;  %v15002_v45 = vmul.f32 %v24615_v39, %v28172_v12  ;;  %v28174_v11 = vld [vmem:[#allocation244_spill] sm:$0xff]  ;;  %v14989_v44 = vmul.f32 %v24602_v2, %v28177_v54 }
 0x574   :  { %v16057_v35 = vcombine.low %v16048_v7, %v16055_v41  ;;  %v16064_v57 = vrot.slane %v16056_v27, %v18751_v25  ;;  %17189 = vadd.xlane.f32.xlu0 %v17188_v20  ;;  %v15003_v41 = vmul.f32 %v24619_v43, %v28174_v11  ;;  %v28175_v27 = vld [vmem:[#allocation246_spill] sm:$0xff]  ;;  %v16872_v20 = vcombine.low %v14999_v8, %v15000_v3  ;;  %v28180_v3 = vld [vmem:[#allocation195_spill] sm:$0xff] }
 0x575   :  { %v17257_v6 = vsel %vm9067_vm1, %v16758_v5, 0.0  ;;  %v15004_v58 = vmul.f32 %v24638_v50, %v28175_v27  ;;  %v16871_v5 = vcombine.low %v14997_v13, %v14998_v53  ;;  %v16873_v4 = vcombine.low %v15001_v22, %v15002_v45  ;;  %v28179_v53 = vld [vmem:[#allocation193_spill] sm:$0xff]  ;;  %v25422_v45 = vpop.xlane.xlu0 %12091 }
 0x576   :  { %v16071_v7 = vrot.slane %v16057_v35, %v18751_v25  ;;  %v28178_v35 = vld [vmem:[#allocation206_spill] sm:$0xff]  ;;  %v16888_v11 = vrot.slane %v16872_v20, %v18751_v25  ;;  %v14991_v8 = vmul.f32 %v24623_v34, %v28179_v53  ;;  %v14992_v22 = vmul.f32 %v24599_v38, %v28180_v3  ;;  %28181 = vst [vmem:[#allocation52_spill] sm:$0xff] %v25422_v45 }
 0x577   :  { %v16874_v0 = vcombine.low %v15003_v41, %v15004_v58  ;;  %v16881_v55 = vrot.slane %v16871_v5, %v18751_v25  ;;  %v14990_v33 = vmul.f32 %v24606_v16, %v28178_v35  ;;  %v16895_v13 = vrot.slane %v16873_v4, %v18751_v25  ;;  %v28182_v41 = vld [vmem:[#allocation196_spill] sm:$0xff]  ;;  %v28184_v20 = vld [vmem:[#allocation194_spill] sm:$0xff]  ;;  %v25432_v35 = vpop.xlane.xlu1 %12100 }
 0x578   :  { %v16072_v12 = vcombine.low %v16064_v57, %v16071_v7  ;;  %17258 = vadd.xlane.f32.xlu0 %v17257_v6  ;;  %v14993_v27 = vmul.f32 %v24615_v39, %v28182_v41  ;;  %v28183_v6 = vld [vmem:[#allocation201_spill] sm:$0xff]  ;;  %v14995_v4 = vmul.f32 %v24638_v50, %v28184_v20  ;;  %v16808_v63 = vcombine.low %v14988_v23, %v14989_v44 }
 0x579   :  { %v16902_v7 = vrot.slane %v16874_v0, %v18751_v25  ;;  %v14994_v58 = vmul.f32 %v24619_v43, %v28183_v6  ;;  %v16903_v5 = vcombine.low %v16881_v55, %v16888_v11  ;;  %v16809_v54 = vcombine.low %v14990_v33, %v14991_v8  ;;  %v25442_v23 = vpop.xlane.xlu0 %12097 }
 0x57a   :  { %v17200_v57 = vsel %vm698_vm0, %v16072_v12, 0.0  ;;  %v16810_v3 = vcombine.low %v14992_v22, %v14993_v27  ;;  %v16818_v0 = vrot.slane %v16808_v63, %v18751_v25  ;;  %28186 = vst [vmem:[#allocation49_spill] sm:$0xff] %v25442_v23  ;;  %v28187_v22 = vld [vmem:[#allocation12_spill] sm:$0xff]  ;;  %v28188_v27 = vld [vmem:[#allocation70_spill] sm:$0xff] }
 0x57b   :  { %17201 = vadd.xlane.f32.xlu1 %v17200_v57  ;;  %v16904_v53 = vcombine.low %v16895_v13, %v16902_v7  ;;  %v16811_v12 = vcombine.low %v14994_v58, %v14995_v4  ;;  %v16825_v45 = vrot.slane %v16809_v54, %v18751_v25  ;;  %v16911_v41 = vrot.slane %v16903_v5, %v18751_v25  ;;  %v28185_v57 = vld [vmem:[#allocation134_spill] sm:$0xff]  ;;  %v28190_v54 = vld [vmem:[#allocation256_spill] sm:$0xff] }
 0x57c   :  { %v14877_v55 = vmul.f32 %v24587_v49, %v28185_v57  ;;  %v16832_v11 = vrot.slane %v16810_v3, %v18751_v25  ;;  %v14861_v7 = vmul.f32 %v24587_v49, %v28187_v22  ;;  %v14862_v58 = vmul.f32 %v24602_v2, %v28188_v27  ;;  %v28189_v4 = vld [vmem:[#allocation254_spill] sm:$0xff] }
 0x57d   :  { %v16918_v6 = vrot.slane %v16904_v53, %v18751_v25  ;;  %v16839_v33 = vrot.slane %v16811_v12, %v18751_v25  ;;  %v16840_v44 = vcombine.low %v16818_v0, %v16825_v45  ;;  %v14863_v63 = vmul.f32 %v24606_v16, %v28189_v4  ;;  %v25454_v53 = vpop.xlane.xlu1 %14685  ;;  %v28192_v0 = vld [vmem:[#allocation71_spill] sm:$0xff] }
 0x57e   :  { %v16079_v8 = vrot.slane %v14877_v55, %v18751_v25  ;;  %v14864_v45 = vmul.f32 %v24623_v34, %v28190_v54  ;;  %28191 = vst [vmem:[#allocation43_spill] sm:$0xff] %v25454_v53  ;;  %v15975_v27 = vcombine.low %v14861_v7, %v14862_v58  ;;  %v28197_v53 = vld [vmem:[#allocation7_spill] sm:$0xff]  ;;  %v28198_v58 = vld [vmem:[#allocation60_spill] sm:$0xff] }
 0x57f   :  { %v16919_v13 = vcombine.low %v16911_v41, %v16918_v6  ;;  %v16841_v5 = vcombine.low %v16832_v11, %v16839_v33  ;;  %v16848_v20 = vrot.slane %v16840_v44, %v18751_v25  ;;  %v14865_v41 = vmul.f32 %v24599_v38, %v28192_v0  ;;  %v28193_v6 = vld [vmem:[#allocation55_spill] sm:$0xff]  ;;  %v28195_v44 = vld [vmem:[#allocation257_spill] sm:$0xff]  ;;  %v25468_v0 = vpop.xlane.xlu0 %14682 }
 0x580   :  { %v16086_v12 = vrot.slane %v16079_v8, %v18751_v25  ;;  %v14866_v57 = vmul.f32 %v24615_v39, %v28193_v6  ;;  %v28194_v11 = vld [vmem:[#allocation255_spill] sm:$0xff]  ;;  %v14868_v22 = vmul.f32 %v24638_v50, %v28195_v44  ;;  %v15976_v4 = vcombine.low %v14863_v63, %v14864_v45  ;;  %28196 = vst [vmem:[#allocation16_spill] sm:$0xff] %v25468_v0 }
 0x581   :  { %v17269_v3 = vsel %vm698_vm0, %v16919_v13, 0.0  ;;  %v16855_v55 = vrot.slane %v16841_v5, %v18751_v25  ;;  %v14867_v33 = vmul.f32 %v24619_v43, %v28194_v11  ;;  %v15985_v23 = vrot.slane %v15975_v27, %v18751_v25  ;;  %v25479_v63 = vpop.xlane.xlu1 %14691  ;;  %v28202_v27 = vld [vmem:[#allocation61_spill] sm:$0xff] }
 0x582   :  { %17270 = vadd.xlane.f32.xlu1 %v17269_v3  ;;  %v15977_v13 = vcombine.low %v14865_v41, %v14866_v57  ;;  %v17203_v6 = vsel %vm9067_vm1, %v16086_v12, 0.0  ;;  %v15992_v3 = vrot.slane %v15976_v4, %v18751_v25  ;;  %v14886_v11 = vmul.f32 %v24587_v49, %v28197_v53  ;;  %v28199_v12 = vld [vmem:[#allocation62_spill] sm:$0xff]  ;;  %v28200_v57 = vld [vmem:[#allocation63_spill] sm:$0xff] }
 0x583   :  { %v16856_v54 = vcombine.low %v16848_v20, %v16855_v55  ;;  %v15978_v8 = vcombine.low %v14867_v33, %v14868_v22  ;;  %v14887_v20 = vmul.f32 %v24602_v2, %v28198_v58  ;;  %v14888_v41 = vmul.f32 %v24606_v16, %v28199_v12  ;;  %v28201_v53 = vld [vmem:[#allocation66_spill] sm:$0xff] }
 0x584   :  { %v15999_v5 = vrot.slane %v15977_v13, %v18751_v25  ;;  %v16007_v45 = vcombine.low %v15985_v23, %v15992_v3  ;;  %v14889_v55 = vmul.f32 %v24623_v34, %v28200_v57  ;;  %v14890_v22 = vmul.f32 %v24599_v38, %v28201_v53  ;;  %v25497_v57 = vpop.xlane.xlu0 %14688 }
 0x585   :  { %v17263_v44 = vsel %vm698_vm0, %v16856_v54, 0.0  ;;  %v16006_v7 = vrot.slane %v15978_v8, %v18751_v25  ;;  %v14891_v4 = vmul.f32 %v24615_v39, %v28202_v27  ;;  %v28203_v54 = vld [vmem:[#allocation64_spill] sm:$0xff]  ;;  %v16136_v3 = vcombine.low %v14886_v11, %v14887_v20  ;;  %28206 = vst [vmem:[#allocation9_spill] sm:$0xff] %v25497_v57  ;;  %v25503_v11 = vpop.xlane.xlu1 %17144 }
 0x586   :  { %17204 = vadd.xlane.f32.xlu1 %v17203_v6  ;;  %17264 = vadd.xlane.f32.xlu0 %v17263_v44  ;;  %v16015_v13 = vrot.slane %v16007_v45, %v18751_v25  ;;  %v14892_v8 = vmul.f32 %v24619_v43, %v28203_v54  ;;  %v28204_v6 = vld [vmem:[#allocation65_spill] sm:$0xff]  ;;  %v16137_v58 = vcombine.low %v14888_v41, %v14889_v55 }
 0x587   :  { %v16008_v33 = vcombine.low %v15999_v5, %v16006_v7  ;;  %v14893_v23 = vmul.f32 %v24638_v50, %v28204_v6  ;;  %v16138_v12 = vcombine.low %v14890_v22, %v14891_v4  ;;  %v28205_v5 = vld [vmem:[#allocation198_spill] sm:$0xff]  ;;  %v16146_v27 = vrot.slane %v16136_v3, %v18751_v25 }
 0x588   :  { %v14996_v7 = vmul.f32 %v24587_v49, %v28205_v5  ;;  %v16153_v0 = vrot.slane %v16137_v58, %v18751_v25  ;;  %v15015_v4 = vmul.f32 %v24602_v2, %v27919_v59  ;;  %v25514_v3 = vpop.xlane.xlu0 %14694  ;;  %v15017_v58 = vmul.f32 %v24623_v34, %v27921_v10 }
 0x589   :  { %v16022_v44 = vrot.slane %v16008_v33, %v18751_v25  ;;  %v16139_v53 = vcombine.low %v14892_v8, %v14893_v23  ;;  %v16160_v54 = vrot.slane %v16138_v12, %v18751_v25  ;;  %v15014_v23 = vmul.f32 %v24587_v49, %v27918_v32  ;;  %28207 = vst [vmem:[#allocation50_spill] sm:$0xff] %v25514_v3 }
 0x58a   :  { %v16863_v6 = vrot.slane %v14996_v7, %v18751_v25  ;;  %v16168_v55 = vcombine.low %v16146_v27, %v16153_v0  ;;  %v15016_v0 = vmul.f32 %v24606_v16, %v27920_v31  ;;  %v15018_v59 = vmul.f32 %v24599_v38, %v27923_v40 }
 0x58b   :  { %v16023_v45 = vcombine.low %v16015_v13, %v16022_v44  ;;  %v16167_v20 = vrot.slane %v16139_v53, %v18751_v25  ;;  %v15019_v12 = vmul.f32 %v24615_v39, %v27924_v56  ;;  %v15020_v5 = vmul.f32 %v24619_v43, %v27925_v37  ;;  %v25529_v53 = vpop.xlane.xlu1 %17150 }
 0x58c   :  { %v16870_v33 = vrot.slane %v16863_v6, %v18751_v25  ;;  %v16176_v13 = vrot.slane %v16168_v55, %v18751_v25  ;;  %v15021_v32 = vmul.f32 %v24638_v50, %v27926_v29  ;;  %v16983_v7 = vcombine.low %v15014_v23, %v15015_v4  ;;  %v28209_v55 = vld [vmem:[#allocation287_spill] sm:$0xff] }
 0x58d   :  { %v17197_v41 = vsel %vm698_vm0, %v16023_v45, 0.0  ;;  %v16169_v22 = vcombine.low %v16160_v54, %v16167_v20  ;;  %v16984_v31 = vcombine.low %v15016_v0, %v15017_v58  ;;  %v15005_v10 = vmul.f32 %v24587_v49, %v24477_v19  ;;  %v28208_v20 = vld [vmem:[#allocation240_spill] sm:$0xff] }
 0x58e   :  { %17198 = vadd.xlane.f32.xlu0 %v17197_v41  ;;  %v17266_v8 = vsel %vm9067_vm1, %v16870_v33, 0.0  ;;  %v15006_v40 = vmul.f32 %v24602_v2, %v24482_v9  ;;  %v16985_v45 = vcombine.low %v15018_v59, %v15019_v12  ;;  %v16986_v56 = vcombine.low %v15020_v5, %v15021_v32 }
 0x58f   :  { %v16183_v44 = vrot.slane %v16169_v22, %v18751_v25  ;;  %v16993_v54 = vrot.slane %v16983_v7, %v18751_v25  ;;  %v15007_v37 = vmul.f32 %v24606_v16, %v27908_v24  ;;  %v17000_v6 = vrot.slane %v16984_v31, %v18751_v25  ;;  %v28210_v22 = vld [vmem:[#allocation36_spill] sm:$0xff]  ;;  %v25554_v32 = vpop.xlane.xlu1 %17156 }
 0x590   :  { %v15008_v41 = vmul.f32 %v24623_v34, %v28208_v20  ;;  %v15009_v19 = vmul.f32 %v24599_v38, %v28209_v55  ;;  %v17007_v9 = vrot.slane %v16985_v45, %v18751_v25  ;;  %v17014_v33 = vrot.slane %v16986_v56, %v18751_v25 }
 0x591   :  { %v16184_v27 = vcombine.low %v16176_v13, %v16183_v44  ;;  %v15010_v4 = vmul.f32 %v24615_v39, %v28210_v22  ;;  %v28211_v13 = vld [vmem:[#allocation239_spill] sm:$0xff]  ;;  %v17015_v23 = vcombine.low %v16993_v54, %v17000_v6  ;;  %v28212_v44 = vld [vmem:[#allocation242_spill] sm:$0xff]  ;;  %v16920_v58 = vcombine.low %v15005_v10, %v15006_v40 }
 0x592   :  { %17267 = vadd.xlane.f32.xlu0 %v17266_v8  ;;  %v15011_v24 = vmul.f32 %v24619_v43, %v28211_v13  ;;  %v25550_v8 = vpop.xlane.xlu0 %17147  ;;  %v15012_v0 = vmul.f32 %v24638_v50, %v28212_v44  ;;  %v16921_v59 = vcombine.low %v15007_v37, %v15008_v41  ;;  %v17016_v12 = vcombine.low %v17007_v9, %v17014_v33  ;;  %v28214_v37 = vld [vmem:[#allocation10_spill] sm:$0xff]  ;;  %v28216_v13 = vld [vmem:[#allocation45_spill] sm:$0xff] }
 0x593   :  { %v17209_v29 = vsel %vm698_vm0, %v16184_v27, 0.0  ;;  %v16922_v5 = vcombine.low %v15009_v19, %v15010_v4  ;;  %v16930_v27 = vrot.slane %v16920_v58, %v18751_v25  ;;  %v17023_v45 = vrot.slane %v17015_v23, %v18751_v25  ;;  %v28215_v19 = vld [vmem:[#allocation42_spill] sm:$0xff]  ;;  %v28217_v23 = vld [vmem:[#allocation4_spill] sm:$0xff] }
 0x594   :  { %17210 = vadd.xlane.f32.xlu1 %v17209_v29  ;;  %v16923_v7 = vcombine.low %v15011_v24, %v15012_v0  ;;  %v16937_v31 = vrot.slane %v16921_v59, %v18751_v25  ;;  %v17030_v56 = vrot.slane %v17016_v12, %v18751_v25  ;;  %v28213_v29 = vld [vmem:[#allocation181_spill] sm:$0xff]  ;;  %v14878_v20 = vmul.f32 %v24587_v49, %v28214_v37  ;;  %v28218_v59 = vld [vmem:[#allocation3_spill] sm:$0xff] }
 0x595   :  { %v16944_v54 = vrot.slane %v16922_v5, %v18751_v25  ;;  %v14894_v6 = vmul.f32 %v24587_v49, %v28213_v29  ;;  %v14879_v9 = vmul.f32 %v24602_v2, %v28215_v19  ;;  %v14880_v24 = vmul.f32 %v24606_v16, %v28216_v13  ;;  %v28219_v5 = vld [vmem:[#allocation47_spill] sm:$0xff] }
 0x596   :  { %v16951_v10 = vrot.slane %v16923_v7, %v18751_v25  ;;  %v16952_v40 = vcombine.low %v16930_v27, %v16937_v31  ;;  %v17031_v41 = vcombine.low %v17023_v45, %v17030_v56  ;;  %v25569_v33 = vpop.xlane.xlu0 %17153  ;;  %v14881_v44 = vmul.f32 %v24623_v34, %v28217_v23  ;;  %v25582_v27 = vpop.xlane.xlu1 %17216  ;;  %v28220_v45 = vld [vmem:[#allocation44_spill] sm:$0xff] }
 0x597   :  { %v16191_v55 = vrot.slane %v14894_v6, %v18751_v25  ;;  %v14882_v12 = vmul.f32 %v24599_v38, %v28218_v59  ;;  %v14883_v7 = vmul.f32 %v24615_v39, %v28219_v5  ;;  %v14884_v56 = vmul.f32 %v24619_v43, %v28220_v45 }
 0x598   :  { %v16953_v22 = vcombine.low %v16944_v54, %v16951_v10  ;;  %v16960_v4 = vrot.slane %v16952_v40, %v18751_v25  ;;  %v17278_v0 = vsel %vm698_vm0, %v17031_v41, 0.0  ;;  %v28221_v54 = vld [vmem:[#allocation46_spill] sm:$0xff]  ;;  %v16087_v6 = vcombine.low %v14878_v20, %v14879_v9 }
 0x599   :  { %v16198_v58 = vrot.slane %v16191_v55, %v18751_v25  ;;  %17279 = vadd.xlane.f32.xlu1 %v17278_v0  ;;  %v14885_v29 = vmul.f32 %v24638_v50, %v28221_v54  ;;  %v16088_v10 = vcombine.low %v14880_v24, %v14881_v44  ;;  %v16089_v40 = vcombine.low %v14882_v12, %v14883_v7  ;;  %v28223_v44 = vld [vmem:[#allocation284_spill] sm:$0xff] }
 0x59a   :  { %v16967_v31 = vrot.slane %v16953_v22, %v18751_v25  ;;  %v16097_v55 = vrot.slane %v16087_v6, %v18751_v25  ;;  %v28222_v22 = vld [vmem:[#allocation243_spill] sm:$0xff]  ;;  %v25595_v59 = vpop.xlane.xlu0 %17159  ;;  %v28225_v54 = vld [vmem:[#allocation260_spill] sm:$0xff]  ;;  %v28226_v6 = vld [vmem:[#allocation269_spill] sm:$0xff] }
 0x59b   :  { %v16090_v41 = vcombine.low %v14884_v56, %v14885_v29  ;;  %v17212_v19 = vsel %vm9067_vm1, %v16198_v58, 0.0  ;;  %v16104_v13 = vrot.slane %v16088_v10, %v18751_v25  ;;  %v16111_v23 = vrot.slane %v16089_v40, %v18751_v25  ;;  %v28227_v40 = vld [vmem:[#allocation271_spill] sm:$0xff] }
 0x59c   :  { %v16968_v37 = vcombine.low %v16960_v4, %v16967_v31  ;;  %v15013_v0 = vmul.f32 %v24587_v49, %v28222_v22  ;;  %v25599_v4 = vpop.xlane.xlu1 %17225  ;;  %v15022_v58 = vmul.f32 %v24587_v49, %v28223_v44  ;;  %v28224_v31 = vld [vmem:[#allocation267_spill] sm:$0xff]  ;;  %v15023_v29 = vmul.f32 %v24602_v2, %v28225_v54 }
 0x59d   :  { %17213 = vadd.xlane.f32.xlu1 %v17212_v19  ;;  %v16118_v20 = vrot.slane %v16090_v41, %v18751_v25  ;;  %v16119_v9 = vcombine.low %v16097_v55, %v16104_v13  ;;  %v15024_v45 = vmul.f32 %v24606_v16, %v28224_v31  ;;  %v15025_v10 = vmul.f32 %v24623_v34, %v28226_v6  ;;  %v28228_v41 = vld [vmem:[#allocation264_spill] sm:$0xff]  ;;  %v18438_v34 = vpop.f32.mrf.mxu0 }
 0x59e   :  { %v17272_v5 = vsel %vm698_vm0, %v16968_v37, 0.0  ;;  %v16975_v7 = vrot.slane %v15013_v0, %v18751_v25  ;;  %v15026_v37 = vmul.f32 %v24599_v38, %v28227_v40  ;;  %v15027_v55 = vmul.f32 %v24615_v39, %v28228_v41  ;;  %v28229_v19 = vld [vmem:[#allocation268_spill] sm:$0xff] }
 0x59f   :  { %17273 = vadd.xlane.f32.xlu0 %v17272_v5  ;;  %v16120_v24 = vcombine.low %v16111_v23, %v16118_v20  ;;  %v16127_v12 = vrot.slane %v16119_v9, %v18751_v25  ;;  %v15028_v13 = vmul.f32 %v24619_v43, %v28229_v19  ;;  %v28230_v23 = vld [vmem:[#allocation270_spill] sm:$0xff]  ;;  %v17032_v5 = vcombine.low %v15022_v58, %v15023_v29 }
 0x5a0   :  { %v15029_v16 = vmul.f32 %v24638_v50, %v28230_v23  ;;  %v17033_v2 = vcombine.low %v15024_v45, %v15025_v10  ;;  %v17034_v20 = vcombine.low %v15026_v37, %v15027_v55  ;;  %v16982_v39 = vrot.slane %v16975_v7, %v18751_v25  ;;  %v18301_v50 = vld [vmem:[%s26225_s11] ss:$0 sm:$0xff]  ;;  %v9503_v7 = vpop.f32.mrf.mxu0 }
 0x5a1   :  { %v16134_v56 = vrot.slane %v16120_v24, %v18751_v25  ;;  %v25622_v24 = vpop.xlane.xlu1 %17162  ;;  %v17042_v44 = vrot.slane %v17032_v5, %v18751_v25  ;;  %v15030_v31 = vmul.f32 %v24587_v49, %v27906_v46  ;;  %v9509_v54 = vadd.f32 %v18438_v34, %v18301_v50 }
 0x5a2   :  { %v25620_v22 = vpop.xlane.xlu0 %17219  ;;  %v17035_v9 = vcombine.low %v15028_v13, %v15029_v16  ;;  %v17049_v43 = vrot.slane %v17033_v2, %v18751_v25  ;;  %v17056_v58 = vrot.slane %v17034_v20, %v18751_v25  ;;  %v17275_v6 = vsel %vm9067_vm1, %v16982_v39, 0.0  ;;  %v28232_v20 = vld [vmem:[#allocation2_spill] sm:$0xff] }
 0x5a3   :  { %v16135_v0 = vcombine.low %v16127_v12, %v16134_v56  ;;  %v17087_v37 = vrot.slane %v15030_v31, %v18751_v25  ;;  %9513 = vst [vmem:[%s26226_s14 + $0x8] sm:$0xff] %v9509_v54  ;;  %v28231_v46 = vlaneseq  ;;  %v9504_v55 = vadd.f32 %v18301_v50, %v9503_v7 }
 0x5a4   :  { %v17063_v12 = vrot.slane %v17035_v9, %v18751_v25  ;;  %v17064_v45 = vcombine.low %v17042_v44, %v17049_v43 }
 0x5a5   :  { %v17206_v38 = vsel %vm698_vm0, %v16135_v0, 0.0  ;;  %v17223_v41 = vpop.xlane.xlu1 %17222  ;;  %v25643_v49 = vand.u32 127, %v28231_v46  ;;  %9512 = vst [vmem:[%s26226_s14] sm:$0xff] %v9504_v55  ;;  %v17094_v0 = vrot.slane %v17087_v37, %v18751_v25 }
 0x5a6   :  { %17207 = vadd.xlane.f32.xlu0 %v17206_v38  ;;  %v17065_v56 = vcombine.low %v17056_v58, %v17063_v12  ;;  %v17072_v10 = vrot.slane %v17064_v45, %v18751_v25 }
 0x5a7   :  { %v17922_v13 = vadd.s32 4294967262, %v25643_v49  ;;  %v17934_v23 = vadd.s32 4294967246, %v25643_v49  ;;  %v17284_v38 = vsel %vm9067_vm1, %v17094_v0, 0.0  ;;  %v17927_v39 = vadd.s32 4294967254, %v25643_v49 }
 0x5a8   :  { %v17079_v40 = vrot.slane %v17065_v56, %v18751_v25  ;;  %vm18182_vm1 = vcmask 416768  }
 0x5a9   :  { %v17235_v2 = vpop.xlane.xlu1 %17234  ;;  %v25653_v9 = vsub.s32 %v17922_v13, %v28232_v20  ;;  %v25656_v34 = vsub.s32 %v17934_v23, %v28232_v20  ;;  %v25665_v50 = vsub.s32 %v17927_v39, %v28232_v20 }
 0x5aa   :  { %17276 = vadd.xlane.f32.xlu0 %v17275_v6  ;;  %v17080_v19 = vcombine.low %v17072_v10, %v17079_v40 }
 0x5ab   :  { %v17926_v43 = vrot.slane %v25503_v11, %v25653_v9  ;;  %v17938_v25 = vrot.slane %v25529_v53, %v25656_v34  ;;  %v18042_v58 = vrot.slane %v25582_v27, %v25653_v9  ;;  %v17944_v12 = vrot.slane %v25569_v33, %v25653_v9 }
 0x5ac   :  { %v17229_v29 = vpop.xlane.xlu0 %17228  ;;  %v17281_v16 = vsel %vm698_vm0, %v17080_v19, 0.0  ;;  %v17953_v31 = vrot.slane %v25595_v59, %v25656_v34  ;;  %v17948_v11 = vrot.slane %v25554_v32, %v25665_v50  ;;  %v17931_v53 = vrot.slane %v25550_v8, %v25665_v50 }
 0x5ad   :  { %v17169_v45 = vpop.xlane.xlu1 %17168  ;;  %v18051_v56 = vrot.slane %v17223_v41, %v25656_v34  ;;  %v18056_v27 = vrot.slane %v25599_v4, %v25653_v9  ;;  %v17958_v54 = vrot.slane %v25622_v24, %v25653_v9  ;;  %v18046_v33 = vrot.slane %v25620_v22, %v25665_v50 }
 0x5ae   :  { %17282 = vadd.xlane.f32.xlu0 %v17281_v16  ;;  %v18060_v59 = vrot.slane %v17229_v29, %v25665_v50  ;;  %v17933_v7 = vsel %vm17932_vm9, %v17931_v53, %v17926_v43  ;;  %v17949_v32 = vsel %vm17932_vm9, %v17948_v11, %v17944_v12  ;;  %v17967_v6 = vrot.slane %v17169_v45, %v25656_v34 }
 0x5af   :  { %v17940_v10 = vsel %vm17939_vm10, %v17938_v25, %v17933_v7  ;;  %v17954_v4 = vsel %vm17939_vm10, %v17953_v31, %v17949_v32  ;;  %v18047_v40 = vsel %vm17932_vm9, %v18046_v33, %v18042_v58  ;;  %v17629_v33 = vadd.s32 4294967279, %v25643_v49 }
 0x5b0   :  { %v18061_v24 = vsel %vm17932_vm9, %v18060_v59, %v18056_v27  ;;  %v18151_v22 = vsel %vm9412_vm2, %v17954_v4, %v17940_v10  ;;  %v18052_v29 = vsel %vm17939_vm10, %v18051_v56, %v18047_v40  ;;  %v17634_v56 = vadd.s32 4294967271, %v25643_v49 }
 0x5b1   :  { %v17641_v27 = vadd.s32 4294967263, %v25643_v49  ;;  %v17348_v7 = vadd.s32 4294967280, %v25643_v49  ;;  %v25750_v40 = vsub.s32 %v17629_v33, %v28232_v20  ;;  %vm18170_vm0 = vcmask 277504  }
 0x5b2   :  { %17285 = vadd.xlane.f32.xlu0 %v17284_v38  ;;  %v25735_v32 = vsub.s32 %v17634_v56, %v28232_v20 }
 0x5b3   :  { %v17166_v5 = vpop.xlane.xlu0 %17165  ;;  %v25744_v10 = vsub.s32 %v17641_v27, %v28232_v20 }
 0x5b4   :  { %v17962_v8 = vrot.slane %v17166_v5, %v25665_v50  ;;  %v18070_v5 = vrot.slane %v17235_v2, %v25653_v9 }
 0x5b6   :  { %v17963_v41 = vsel %vm17932_vm9, %v17962_v8, %v17958_v54  ;;  %v17341_v54 = vadd.s32 4294967288, %v25643_v49 }
 0x5b7   :  { %v17232_v44 = vpop.xlane.xlu0 %17231  ;;  %v17968_v46 = vsel %vm17939_vm10, %v17967_v6, %v17963_v41  ;;  %v25739_v6 = vsub.s32 %v25643_v49, %v28232_v20  ;;  %v28238_v49 = vld [vmem:[#allocation117_spill] sm:$0xff]  ;;  %v28239_v41 = vld [vmem:[#allocation210_spill] sm:$0xff] }
 0x5b8   :  { %v18065_v55 = vrot.slane %v17232_v44, %v25656_v34  ;;  %v25699_v19 = vsel %vm9414_vm3, %v17968_v46, %v18151_v22  ;;  %v25747_v4 = vsub.s32 %v17341_v54, %v28232_v20  ;;  %v25755_v22 = vsub.s32 %v17348_v7, %v28232_v20  ;;  %v28246_v54 = vld [vmem:[#allocation253_spill] sm:$0xff]  ;;  %v28247_v7 = vld [vmem:[#allocation118_spill] sm:$0xff] }
 0x5b9   :  { %v25713_v58 = vpop.xlane.xlu1 %17174 }
 0x5ba   :  { %v18066_v13 = vsel %vm17939_vm10, %v18065_v55, %v18061_v24  ;;  %v28237_v24 = vld [vmem:[#allocation251_spill] sm:$0xff]  ;;  %v17362_v46 = vrot.slane %v28239_v41, %v25747_v4  ;;  %v28240_v55 = vld [vmem:[#allocation250_spill] sm:$0xff]  ;;  %v17352_v33 = vrot.slane %v28246_v54, %v25755_v22 }
 0x5bb   :  { %v18158_v23 = vsel %vm9412_vm2, %v18066_v13, %v18052_v29  ;;  %v17638_v29 = vrot.slane %v28238_v49, %v25735_v32  ;;  %v17340_v13 = vrot.slane %v28240_v55, %v25739_v6  ;;  %v28248_v49 = vld [vmem:[#allocation277_spill] sm:$0xff]  ;;  %v28249_v55 = vld [vmem:[#allocation172_spill] sm:$0xff] }
 0x5bc   :  { %v17367_v41 = vrot.slane %v28248_v49, %v25755_v22  ;;  %v28252_v49 = vld [vmem:[#allocation109_spill] sm:$0xff] }
 0x5c0   :  { %v25715_v12 = vpop.xlane.xlu1 %17243 }
 0x5c1   :  { %28234 = vst [vmem:[#allocation73_spill] sm:$0xff] %v25715_v12 }
 0x5c4   :  { %v17238_v37 = vpop.xlane.xlu0 %17237  ;;  %v25717_v31 = vpop.xlane.xlu1 %17177 }
 0x5c5   :  { %v18074_v0 = vrot.slane %v17238_v37, %v25665_v50  ;;  %v17358_v37 = vrot.slane %v28237_v24, %v25739_v6 }
 0x5c7   :  { %v18075_v43 = vsel %vm17932_vm9, %v18074_v0, %v18070_v5  ;;  %v28242_v0 = vld [vmem:[#allocation187_spill] sm:$0xff]  ;;  %v17363_v27 = vsel %vm17346_vm12, %v17362_v46, %v17358_v37  ;;  %v28251_v46 = vld [vmem:[#allocation128_spill] sm:$0xff] }
 0x5c8   :  { %v17655_v5 = vrot.slane %v28242_v0, %v25735_v32  ;;  %v17651_v0 = vrot.slane %v28249_v55, %v25750_v40  ;;  %v17368_v54 = vsel %vm17353_vm14, %v17367_v41, %v17363_v27  ;;  %v28253_v55 = vld [vmem:[#allocation170_spill] sm:$0xff]  ;;  %v28263_v41 = vld [vmem:[#allocation208_spill] sm:$0xff] }
 0x5c9   :  { %v17451_v3 = vrot.slane %v28263_v41, %v25755_v22  ;;  %v28264_v41 = vld [vmem:[#allocation153_spill] sm:$0xff] }
 0x5ca   :  { %v17656_v24 = vsel %vm17639_vm11, %v17655_v5, %v17651_v0  ;;  %v28258_v5 = vld [vmem:[#allocation15_spill] sm:$0xff] }
 0x5cb   :  { %v25703_v16 = vpop.xlane.xlu0 %17171 }
 0x5cf   :  { %v17241_v38 = vpop.xlane.xlu0 %17240 }
 0x5d0   :  { %v18079_v39 = vrot.slane %v17241_v38, %v25656_v34  ;;  %v28243_v38 = vld [vmem:[#allocation273_spill] sm:$0xff] }
 0x5d1   :  { %v25719_v45 = vpop.xlane.xlu1 %17183  ;;  %v17645_v20 = vrot.slane %v28243_v38, %v25744_v10 }
 0x5d2   :  { %v18080_v44 = vsel %vm17939_vm10, %v18079_v39, %v18075_v43  ;;  %v28244_v39 = vld [vmem:[#allocation119_spill] sm:$0xff] }
 0x5d3   :  { %v25711_v25 = vsel %vm9414_vm3, %v18080_v44, %v18158_v23  ;;  %v17345_v43 = vrot.slane %v28244_v39, %v25747_v4  ;;  %v28245_v44 = vld [vmem:[#allocation248_spill] sm:$0xff] }
 0x5d4   :  { %28233 = vst [vmem:[#allocation69_spill] sm:$0xff] %v25711_v25  ;;  %v17633_v56 = vrot.slane %v28245_v44, %v25750_v40  ;;  %v17446_v25 = vrot.slane %v28252_v49, %v25747_v4  ;;  %v28259_v49 = vld [vmem:[#allocation207_spill] sm:$0xff] }
 0x5d5   :  { %v17347_v37 = vsel %vm17346_vm12, %v17345_v43, %v17340_v13  ;;  %v28256_v13 = vld [vmem:[#allocation108_spill] sm:$0xff] }
 0x5d6   :  { %v17640_v39 = vsel %vm17639_vm11, %v17638_v29, %v17633_v56  ;;  %v28255_v29 = vld [vmem:[#allocation180_spill] sm:$0xff]  ;;  %v17669_v43 = vrot.slane %v28256_v13, %v25735_v32  ;;  %v17354_v0 = vsel %vm17353_vm14, %v17352_v33, %v17347_v37  ;;  %v17739_v37 = vrot.slane %v24660_v30, %v25735_v32 }
 0x5d7   :  { %v17376_v56 = vrot.slane %v28255_v29, %v25747_v4  ;;  %v17647_v27 = vsel %vm17646_vm13, %v17645_v20, %v17640_v39  ;;  %v28260_v29 = vld [vmem:[#allocation18_spill] sm:$0xff]  ;;  %v28261_v13 = vld [vmem:[#allocation176_spill] sm:$0xff] }
 0x5d8   :  { %v28262_v20 = vld [vmem:[#allocation214_spill] sm:$0xff] }
 0x5d9   :  { %v25721_v11 = vpop.xlane.xlu1 %17252  ;;  %v17381_v39 = vrot.slane %v28262_v20, %v25755_v22 }
 0x5da   :  { %28235 = vst [vmem:[#allocation74_spill] sm:$0xff] %v25721_v11  ;;  %v17442_v11 = vrot.slane %v28259_v49, %v25739_v6  ;;  %v17683_v49 = vrot.slane %v24839_v14, %v25735_v32  ;;  %v17679_v14 = vrot.slane %v24723_v60, %v25750_v40  ;;  %v17474_v60 = vrot.slane %v24926_v17, %v25747_v4 }
 0x5db   :  { %v17749_v17 = vrot.slane %v24689_v18, %v25750_v40  ;;  %v17404_v18 = vrot.slane %v24971_v21, %v25747_v4 }
 0x5dc   :  { %v17447_v33 = vsel %vm17346_vm12, %v17446_v25, %v17442_v11  ;;  %v17674_v25 = vrot.slane %v28264_v41, %v25744_v10  ;;  %v28265_v11 = vld [vmem:[#allocation283_spill] sm:$0xff] }
 0x5dd   :  { %v25723_v2 = vpop.xlane.xlu0 %17246  ;;  %v25725_v53 = vpop.xlane.xlu1 %17186  ;;  %v17744_v30 = vrot.slane %v28265_v11, %v25744_v10 }
 0x5de   :  { %28236 = vst [vmem:[#allocation68_spill] sm:$0xff] %v25723_v2  ;;  %v17372_v2 = vrot.slane %v28260_v29, %v25739_v6 }
 0x5e4   :  { %v25731_v59 = vpop.xlane.xlu0 %17180 }
 0x5e8   :  { %v25763_v23 = vpop.xlane.xlu0 %17249 }
 0x5e9   :  { %28241 = vst [vmem:[#allocation72_spill] sm:$0xff] %v25763_v23 }
 0x5ea   :  { %v25741_v8 = vpop.xlane.xlu1 %17192 }
 0x5f2   :  { %v25782_v38 = vpop.xlane.xlu1 %17261 }
 0x5f3   :  { %28250 = vst [vmem:[#allocation75_spill] sm:$0xff] %v25782_v38  ;;  %v28254_v38 = vld [vmem:[#allocation129_spill] sm:$0xff] }
 0x5f4   :  { %v17660_v12 = vrot.slane %v28254_v38, %v25744_v10  ;;  %v17565_v38 = vsel %vm9412_vm2, %v17368_v54, %v17354_v0  ;;  %v17390_v0 = vrot.slane %v24815_v28, %v25747_v4  ;;  %v17386_v28 = vrot.slane %v24695_v51, %v25739_v6 }
 0x5f5   :  { %v17460_v51 = vrot.slane %v24806_v26, %v25747_v4 }
 0x5f6   :  { %v25800_v44 = vpop.xlane.xlu0 %17255  ;;  %v17661_v23 = vsel %vm17646_vm13, %v17660_v12, %v17656_v24  ;;  %v25821_v54 = vpop.xlane.xlu1 %17195  ;;  %v17377_v12 = vsel %vm17346_vm12, %v17376_v56, %v17372_v2  ;;  %v28267_v2 = vld [vmem:[#allocation286_spill] sm:$0xff]  ;;  %v25839_v56 = vsel %vm17353_vm14, %v17451_v3, %v17447_v33  ;;  %v17391_v3 = vsel %vm17346_vm12, %v17390_v0, %v17386_v28 }
 0x5f7   :  { %28257 = vst [vmem:[#allocation76_spill] sm:$0xff] %v25800_v44  ;;  %v17665_v44 = vrot.slane %v28261_v13, %v25750_v40  ;;  %v17858_v29 = vsel %vm9412_vm2, %v17661_v23, %v17647_v27  ;;  %v28266_v13 = vld [vmem:[#allocation8_spill] sm:$0xff]  ;;  %v17382_v11 = vsel %vm17353_vm14, %v17381_v39, %v17377_v12  ;;  %v17684_v33 = vsel %vm17639_vm11, %v17683_v49, %v17679_v14 }
 0x5f8   :  { %v17735_v20 = vrot.slane %v28266_v13, %v25750_v40  ;;  %v17688_v39 = vrot.slane %v24668_v1, %v25744_v10  ;;  %v17753_v12 = vrot.slane %v24832_v15, %v25735_v32  ;;  %v17566_v26 = vsel %vm9414_vm3, %v17382_v11, %v17565_v38 }
 0x5f9   :  { %v17670_v24 = vsel %vm17639_vm11, %v17669_v43, %v17665_v44  ;;  %v17479_v44 = vrot.slane %v28267_v2, %v25755_v22  ;;  %v28268_v43 = vld [vmem:[#allocation107_spill] sm:$0xff]  ;;  %v17470_v49 = vrot.slane %v24752_v52, %v25739_v6  ;;  %v17409_v1 = vrot.slane %v24702_v47, %v25755_v22  ;;  %v28273_v47 = vld [vmem:[#allocation238_spill] sm:$0xff] }
 0x5fa   :  { %v17456_v27 = vrot.slane %v28268_v43, %v25739_v6  ;;  %v17740_v41 = vsel %vm17639_vm11, %v17739_v37, %v17735_v20  ;;  %v17675_v13 = vsel %vm17646_vm13, %v17674_v25, %v17670_v24  ;;  %v28269_v2 = vld [vmem:[#allocation171_spill] sm:$0xff]  ;;  %v28270_v43 = vld [vmem:[#allocation104_spill] sm:$0xff]  ;;  %v17689_v20 = vsel %vm17646_vm13, %v17688_v39, %v17684_v33 }
 0x5fb   :  { %v17395_v37 = vrot.slane %v28270_v43, %v25755_v22  ;;  %v25869_v0 = vsel %vm17646_vm13, %v17744_v30, %v17740_v41  ;;  %v17859_v25 = vsel %vm9414_vm3, %v17675_v13, %v17858_v29  ;;  %v28271_v30 = vld [vmem:[#allocation111_spill] sm:$0xff]  ;;  %v17475_v14 = vsel %vm17346_vm12, %v17474_v60, %v17470_v49  ;;  %v28272_v29 = vld [vmem:[#allocation78_spill] sm:$0xff]  ;;  %v28274_v33 = vld [vmem:[#allocation272_spill] sm:$0xff] }
 0x5fc   :  { %v17702_v28 = vrot.slane %v28271_v30, %v25744_v10  ;;  %v17461_v38 = vsel %vm17346_vm12, %v17460_v51, %v17456_v27  ;;  %v17754_v13 = vsel %vm17639_vm11, %v17753_v12, %v17749_v17  ;;  %v17763_v51 = vrot.slane %v28274_v33, %v25750_v40  ;;  %v28275_v60 = vld [vmem:[#allocation275_spill] sm:$0xff] }
 0x5fd   :  { %v25845_v23 = vpop.xlane.xlu0 %17189  ;;  %v17396_v15 = vsel %vm17353_vm14, %v17395_v37, %v17391_v3  ;;  %v17697_v3 = vrot.slane %v24994_v48, %v25735_v32  ;;  %v17860_v21 = vsel %vm9416_vm4, %v17689_v20, %v17859_v25  ;;  %v17400_v43 = vrot.slane %v28275_v60, %v25739_v6  ;;  %v28277_v12 = vld [vmem:[#allocation279_spill] sm:$0xff]  ;;  %v28280_v20 = vld [vmem:[#allocation14_spill] sm:$0xff] }
 0x5fe   :  { %v17567_v27 = vsel %vm9416_vm4, %v17396_v15, %v17566_v26  ;;  %v28276_v37 = vrot.slane %v28253_v55, %v25755_v22  ;;  %v17693_v17 = vrot.slane %v28277_v12, %v25750_v40  ;;  %v17480_v48 = vsel %vm17353_vm14, %v17479_v44, %v17475_v14  ;;  %v28281_v14 = vld [vmem:[#allocation145_spill] sm:$0xff] }
 0x5ff   :  { %v17418_v26 = vrot.slane %v25082_v62, %v25747_v4  ;;  %v28279_v25 = vrot.slane %v28258_v5, %v25744_v10  ;;  %v17767_v55 = vrot.slane %v28280_v20, %v25735_v32  ;;  %v17405_v30 = vsel %vm17346_vm12, %v17404_v18, %v17400_v43  ;;  %v28282_v5 = vld [vmem:[#allocation28_spill] sm:$0xff]  ;;  %v28284_v18 = vld [vmem:[#allocation278_spill] sm:$0xff] }
 0x600   :  { %v17466_v39 = vsel %vm17353_vm14, %v28276_v37, %v17461_v38  ;;  %v17711_v38 = vrot.slane %v25108_v61, %v25735_v32  ;;  %v17698_v44 = vsel %vm17639_vm11, %v17697_v3, %v17693_v17  ;;  %v17414_v62 = vrot.slane %v25020_v42, %v25739_v6  ;;  %v28285_v61 = vld [vmem:[#allocation143_spill] sm:$0xff]  ;;  %v28286_v42 = vld [vmem:[#allocation280_spill] sm:$0xff] }
 0x601   :  { %v25887_v52 = vpop.xlane.xlu0 %17258  ;;  %v17759_v15 = vsel %vm17646_vm13, %v28279_v25, %v17754_v13  ;;  %v17428_v33 = vrot.slane %v28281_v14, %v25739_v6  ;;  %v17721_v60 = vrot.slane %v28282_v5, %v25750_v40  ;;  %v28283_v13 = vld [vmem:[#allocation247_spill] sm:$0xff]  ;;  %v17572_v12 = vsel %vm9412_vm2, %v17480_v48, %v17466_v39  ;;  %v28287_v14 = vld [vmem:[#allocation144_spill] sm:$0xff] }
 0x602   :  { %v17423_v37 = vrot.slane %v28283_v13, %v25755_v22  ;;  %v17716_v43 = vrot.slane %v28284_v18, %v25744_v10  ;;  %v17707_v3 = vrot.slane %v28285_v61, %v25750_v40  ;;  %v17484_v25 = vrot.slane %v28286_v42, %v25739_v6  ;;  %v28288_v13 = vld [vmem:[#allocation35_spill] sm:$0xff] }
 0x603   :  { %v17419_v20 = vsel %vm17346_vm12, %v17418_v26, %v17414_v62  ;;  %v17432_v5 = vrot.slane %v28287_v14, %v25747_v4  ;;  %v17725_v11 = vrot.slane %v28288_v13, %v25735_v32  ;;  %v17768_v39 = vsel %vm17639_vm11, %v17767_v55, %v17763_v51  ;;  %v28289_v26 = vld [vmem:[#allocation97_spill] sm:$0xff]  ;;  %v28290_v14 = vld [vmem:[#allocation23_spill] sm:$0xff] }
 0x604   :  { %v25866_v24 = vpop.xlane.xlu1 %17201  ;;  %v17410_v48 = vsel %vm17353_vm14, %v17409_v1, %v17405_v30  ;;  %v17703_v18 = vsel %vm17646_vm13, %v17702_v28, %v17698_v44  ;;  %v17712_v61 = vsel %vm17639_vm11, %v17711_v38, %v17707_v3  ;;  %v17488_v62 = vrot.slane %v28289_v26, %v25747_v4  ;;  %v28291_v1 = vld [vmem:[#allocation33_spill] sm:$0xff]  ;;  %v28292_v28 = vld [vmem:[#allocation51_spill] sm:$0xff]  ;;  %v28293_v38 = vld [vmem:[#allocation22_spill] sm:$0xff] }
 0x605   :  { %v17433_v41 = vsel %vm17346_vm12, %v17432_v5, %v17428_v33  ;;  %v17726_v42 = vsel %vm17639_vm11, %v17725_v11, %v17721_v60  ;;  %v17781_v57 = vrot.slane %v28290_v14, %v25735_v32  ;;  %v17424_v51 = vsel %vm17353_vm14, %v17423_v37, %v17419_v20  ;;  %v28294_v11 = vld [vmem:[#allocation282_spill] sm:$0xff]  ;;  %v28296_v5 = vld [vmem:[#allocation39_spill] sm:$0xff] }
 0x606   :  { %v17502_v55 = vrot.slane %v28291_v1, %v25747_v4  ;;  %v17498_v30 = vrot.slane %v28292_v28, %v25739_v6  ;;  %v17791_v44 = vrot.slane %v28293_v38, %v25750_v40  ;;  %v17507_v33 = vrot.slane %v28294_v11, %v25755_v22 }
 0x607   :  { %v28295_v60 = vrot.slane %v28269_v2, %v25744_v10  ;;  %v17777_v37 = vrot.slane %v28296_v5, %v25750_v40  ;;  %v17717_v20 = vsel %vm17646_vm13, %v17716_v43, %v17712_v61  ;;  %v17568_v13 = vsel %vm9418_vm5, %v17410_v48, %v17567_v27  ;;  %v28299_v2 = vld [vmem:[#allocation38_spill] sm:$0xff]  ;;  %v28300_v61 = vld [vmem:[#allocation20_spill] sm:$0xff] }
 0x608   :  { %v28297_v26 = vrot.slane %v28247_v7, %v25755_v22  ;;  %v28298_v1 = vrot.slane %v28251_v46, %v25744_v10  ;;  %v17861_v11 = vsel %vm9418_vm5, %v17703_v18, %v17860_v21  ;;  %v17569_v43 = vsel %vm9420_vm6, %v17424_v51, %v17568_v13 }
 0x609   :  { %v17773_v3 = vsel %vm17646_vm13, %v28295_v60, %v17768_v39  ;;  %v17795_v39 = vrot.slane %v28299_v2, %v25735_v32  ;;  %v17489_v27 = vsel %vm17346_vm12, %v17488_v62, %v17484_v25  ;;  %v17782_v7 = vsel %vm17639_vm11, %v17781_v57, %v17777_v37  ;;  %v28301_v60 = vld [vmem:[#allocation276_spill] sm:$0xff]  ;;  %v28302_v62 = vld [vmem:[#allocation281_spill] sm:$0xff] }
 0x60a   :  { %v17438_v14 = vsel %vm17353_vm14, %v28297_v26, %v17433_v41  ;;  %v17731_v28 = vsel %vm17646_vm13, %v28298_v1, %v17726_v42  ;;  %v17862_v41 = vsel %vm9420_vm6, %v17717_v20, %v17861_v11  ;;  %v17503_v48 = vsel %vm17346_vm12, %v17502_v55, %v17498_v30  ;;  %v28305_v20 = vld [vmem:[#allocation30_spill] sm:$0xff]  ;;  %v28306_v1 = vld [vmem:[#allocation215_spill] sm:$0xff] }
 0x60b   :  { %v25911_v49 = vpop.xlane.xlu1 %17270  ;;  %v17796_v46 = vsel %vm17639_vm11, %v17795_v39, %v17791_v44  ;;  %v17516_v42 = vrot.slane %v28300_v61, %v25747_v4  ;;  %v17800_v5 = vrot.slane %v28301_v60, %v25744_v10  ;;  %v17570_v21 = vsel %vm9422_vm7, %v17438_v14, %v17569_v43  ;;  %v28312_v60 = vld [vmem:[#allocation217_spill] sm:$0xff] }
 0x60c   :  { %28278 = vst [vmem:[#allocation89_spill] sm:$0xff] %v25911_v49  ;;  %v17863_v18 = vsel %vm9422_vm7, %v17731_v28, %v17862_v41  ;;  %v17809_v25 = vrot.slane %v25312_v36, %v25735_v32  ;;  %v17521_v51 = vrot.slane %v28302_v62, %v25755_v22  ;;  %v28303_v55 = vrot.slane %v28272_v29, %v25755_v22  ;;  %v28307_v29 = vld [vmem:[#allocation11_spill] sm:$0xff] }
 0x60d   :  { %v28304_v44 = vrot.slane %v28273_v47, %v25744_v10  ;;  %v17512_v13 = vrot.slane %v28305_v20, %v25739_v6  ;;  %v17865_v36 = vsel %vm9412_vm2, %v17773_v3, %v17759_v15  ;;  %v17508_v26 = vsel %vm17353_vm14, %v17507_v33, %v17503_v48  ;;  %v28313_v62 = vld [vmem:[#allocation27_spill] sm:$0xff] }
 0x60e   :  { %v17494_v30 = vsel %vm17353_vm14, %v28303_v55, %v17489_v27  ;;  %v17801_v14 = vsel %vm17646_vm13, %v17800_v5, %v17796_v46  ;;  %v17805_v28 = vrot.slane %v28306_v1, %v25750_v40  ;;  %v17814_v2 = vrot.slane %v28307_v29, %v25744_v10  ;;  %v28308_v27 = vld [vmem:[#allocation24_spill] sm:$0xff]  ;;  %v28310_v46 = vld [vmem:[#allocation26_spill] sm:$0xff] }
 0x60f   :  { %v25936_v17 = vpop.xlane.xlu0 %17264  ;;  %v25955_v49 = vpop.xlane.xlu1 %17204  ;;  %v17787_v37 = vsel %vm17646_vm13, %v28304_v44, %v17782_v7  ;;  %v26024_v47 = vsel %vm9424_vm8, %v25839_v56, %v17570_v21  ;;  %v26028_v39 = vsel %vm9424_vm8, %v25869_v0, %v17863_v18  ;;  %v17517_v15 = vsel %vm17346_vm12, %v17516_v42, %v17512_v13  ;;  %v28309_v0 = vld [vmem:[#allocation31_spill] sm:$0xff]  ;;  %v28314_v44 = vld [vmem:[#allocation218_spill] sm:$0xff] }
 0x610   :  { %v17573_v33 = vsel %vm9414_vm3, %v17494_v30, %v17572_v12  ;;  %v17866_v11 = vsel %vm9414_vm3, %v17787_v37, %v17865_v36  ;;  %v17810_v43 = vsel %vm17639_vm11, %v17809_v25, %v17805_v28  ;;  %v17526_v7 = vrot.slane %v28308_v27, %v25739_v6  ;;  %v28311_v42 = vld [vmem:[#allocation123_spill] sm:$0xff] }
 0x611   :  { %v17574_v56 = vsel %vm9416_vm4, %v17508_v26, %v17573_v33  ;;  %v17867_v41 = vsel %vm9416_vm4, %v17801_v14, %v17866_v11  ;;  %v17549_v48 = vrot.slane %v28309_v0, %v25755_v22  ;;  %v17535_v61 = vrot.slane %v28310_v46, %v25755_v22  ;;  %v28316_v11 = vld [vmem:[#allocation41_spill] sm:$0xff] }
 0x612   :  { %v17828_v12 = vrot.slane %v28311_v42, %v25744_v10  ;;  %v17530_v5 = vrot.slane %v28312_v60, %v25747_v4  ;;  %v17522_v21 = vsel %vm17353_vm14, %v17521_v51, %v17517_v15  ;;  %v17972_v18 = vrot.slane %v25703_v16, %v25653_v9  ;;  %v28315_v51 = vld [vmem:[#allocation216_spill] sm:$0xff]  ;;  %v28319_v60 = vld [vmem:[#allocation43_spill] sm:$0xff] }
 0x613   :  { %v17823_v55 = vrot.slane %v28313_v62, %v25735_v32  ;;  %v17815_v30 = vsel %vm17646_vm13, %v17814_v2, %v17810_v43  ;;  %v17540_v37 = vrot.slane %v28314_v44, %v25739_v6  ;;  %v17986_v20 = vrot.slane %v25731_v59, %v25653_v9 }
 0x614   :  { %v17531_v13 = vsel %vm17346_vm12, %v17530_v5, %v17526_v7  ;;  %v17819_v36 = vrot.slane %v28315_v51, %v25750_v40  ;;  %v17976_v16 = vrot.slane %v25713_v58, %v25665_v50  ;;  %v18000_v26 = vrot.slane %v25845_v23, %v25653_v9  ;;  %v28321_v51 = vld [vmem:[#allocation49_spill] sm:$0xff] }
 0x615   :  { %v26068_v14 = vsel %vm9418_vm5, %v17522_v21, %v17574_v56  ;;  %v17981_v1 = vrot.slane %v25717_v31, %v25656_v34  ;;  %v17990_v59 = vrot.slane %v25719_v45, %v25665_v50  ;;  %v17868_v2 = vsel %vm9418_vm5, %v17815_v30, %v17867_v41  ;;  %v28317_v41 = vld [vmem:[#allocation52_spill] sm:$0xff] }
 0x616   :  { %v17977_v58 = vsel %vm17932_vm9, %v17976_v16, %v17972_v18  ;;  %v17995_v23 = vrot.slane %v25725_v53, %v25656_v34  ;;  %v18004_v15 = vrot.slane %v25741_v8, %v25665_v50  ;;  %v26085_v31 = vsel %vm17353_vm14, %v17535_v61, %v17531_v13  ;;  %v28318_v61 = vld [vmem:[#allocation40_spill] sm:$0xff]  ;;  %v28322_v16 = vld [vmem:[#allocation9_spill] sm:$0xff] }
 0x617   :  { %v25984_v38 = vpop.xlane.xlu0 %17198  ;;  %v17991_v45 = vsel %vm17932_vm9, %v17990_v59, %v17986_v20  ;;  %v18018_v33 = vrot.slane %v25866_v24, %v25665_v50  ;;  %v17833_v43 = vrot.slane %v28316_v11, %v25750_v40  ;;  %v17824_v27 = vsel %vm17639_vm11, %v17823_v55, %v17819_v36  ;;  %v28320_v18 = vld [vmem:[#allocation16_spill] sm:$0xff] }
 0x618   :  { %v18014_v28 = vrot.slane %v25984_v38, %v25653_v9  ;;  %v18009_v38 = vrot.slane %v25821_v54, %v25656_v34  ;;  %v18005_v53 = vsel %vm17932_vm9, %v18004_v15, %v18000_v26  ;;  %v18023_v8 = vrot.slane %v25955_v49, %v25656_v34  ;;  %v28324_v15 = vld [vmem:[#allocation68_spill] sm:$0xff] }
 0x619   :  { %v17558_v56 = vrot.slane %v25432_v35, %v25747_v4  ;;  %v17544_v54 = vrot.slane %v28317_v41, %v25747_v4  ;;  %v17982_v46 = vsel %vm17939_vm10, %v17981_v1, %v17977_v58  ;;  %v17563_v42 = vrot.slane %v28318_v61, %v25755_v22  ;;  %v18307_v58 = vld [vmem:[%s26227_s13] ss:$0 sm:$0xff] }
 0x61a   :  { %v18019_v24 = vsel %vm17932_vm9, %v18018_v33, %v18014_v28  ;;  %v17842_v5 = vrot.slane %v28319_v60, %v25744_v10  ;;  %v17851_v49 = vrot.slane %v25479_v63, %v25735_v32  ;;  %v17996_v21 = vsel %vm17939_vm10, %v17995_v23, %v17991_v45  ;;  %v28325_v33 = vld [vmem:[#allocation72_spill] sm:$0xff] }
 0x61b   :  { %v26031_v3 = vpop.xlane.xlu0 %17267  ;;  %v17829_v35 = vsel %vm17646_vm13, %v17828_v12, %v17824_v27  ;;  %v17837_v4 = vrot.slane %v28320_v18, %v25735_v32  ;;  %v18010_v62 = vsel %vm17939_vm10, %v18009_v38, %v18005_v53  ;;  %v18153_v44 = vsel %vm9416_vm4, %v17982_v46, %v25699_v19 }
 0x61c   :  { %v18024_v20 = vsel %vm17939_vm10, %v18023_v8, %v18019_v24  ;;  %v17545_v12 = vsel %vm17346_vm12, %v17544_v54, %v17540_v37  ;;  %v17554_v32 = vrot.slane %v28321_v51, %v25739_v6  ;;  %v18154_v36 = vsel %vm9418_vm5, %v17996_v21, %v18153_v44  ;;  %v28328_v54 = vld [vmem:[#allocation74_spill] sm:$0xff] }
 0x61d   :  { %v26001_v57 = vpop.xlane.xlu1 %17210  ;;  %v17847_v26 = vrot.slane %v28322_v16, %v25750_v40  ;;  %v18155_v19 = vsel %vm9420_vm6, %v18010_v62, %v18154_v36  ;;  %v17838_v59 = vsel %vm17639_vm11, %v17837_v4, %v17833_v43  ;;  %v28323_v40 = vld [vmem:[#allocation50_spill] sm:$0xff]  ;;  %v18088_v45 = vrot.slane %v28324_v15, %v25665_v50  ;;  %v28326_v43 = vld [vmem:[#allocation76_spill] sm:$0xff] }
 0x61e   :  { %v18032_v63 = vrot.slane %v26001_v57, %v25665_v50  ;;  %v17869_v57 = vsel %vm9420_vm6, %v17829_v35, %v17868_v2  ;;  %v18156_v37 = vsel %vm9422_vm7, %v18024_v20, %v18155_v19  ;;  %v17856_v23 = vrot.slane %v28323_v40, %v25744_v10  ;;  %v28327_v10 = vld [vmem:[#allocation73_spill] sm:$0xff] }
 0x61f   :  { %v18168_v2 = vsel %vm18167_vm15, %v26024_v47, %v26028_v39  ;;  %v18093_v11 = vrot.slane %v28325_v33, %v25656_v34  ;;  %v18102_v27 = vrot.slane %v28326_v43, %v25665_v50  ;;  %v18084_v8 = vrot.slane %v28327_v10, %v25653_v9 }
 0x620   :  { %v18116_v47 = vrot.slane %v25936_v17, %v25665_v50  ;;  %v17559_v41 = vsel %vm17346_vm12, %v17558_v56, %v17554_v32  ;;  %v18098_v46 = vrot.slane %v28328_v54, %v25653_v9  ;;  %v18121_v24 = vrot.slane %v26031_v3, %v25656_v34  ;;  %v28331_v32 = vld [vmem:[#allocation69_spill] sm:$0xff] }
 0x621   :  { %v17843_v60 = vsel %vm17646_vm13, %v17842_v5, %v17838_v59  ;;  %v18089_v21 = vsel %vm17932_vm9, %v18088_v45, %v18084_v8  ;;  %v17852_v3 = vsel %vm17639_vm11, %v17851_v49, %v17847_v26  ;;  %v28330_v5 = vld [vmem:[#allocation89_spill] sm:$0xff]  ;;  %v17550_v49 = vsel %vm17353_vm14, %v17549_v48, %v17545_v12 }
 0x622   :  { %v26051_v25 = vpop.xlane.xlu1 %17279  ;;  %v18094_v56 = vsel %vm17939_vm10, %v18093_v11, %v18089_v21  ;;  %v18126_v4 = vrot.slane %v28330_v5, %v25653_v9  ;;  %v17857_v62 = vsel %vm17646_vm13, %v17856_v23, %v17852_v3  ;;  %v17564_v20 = vsel %vm17353_vm14, %v17563_v42, %v17559_v41 }
 0x623   :  { %v17870_v51 = vsel %vm9422_vm7, %v17843_v60, %v17869_v57  ;;  %v18160_v36 = vsel %vm9416_vm4, %v18094_v56, %v28331_v32  ;;  %v18140_v16 = vrot.slane %v26051_v25, %v25653_v9  ;;  %v17576_v22 = vsel %vm9420_vm6, %v26085_v31, %v26068_v14 }
 0x624   :  { %v17871_v0 = vsel %vm9424_vm8, %v17857_v62, %v17870_v51  ;;  %v17577_v12 = vsel %vm9422_vm7, %v17550_v49, %v17576_v22 }
 0x626   :  { %v17214_v7 = vpop.xlane.xlu1 %17213 }
 0x627   :  { %v18037_v55 = vrot.slane %v17214_v7, %v25656_v34  ;;  %v18107_v7 = vrot.slane %v25887_v52, %v25656_v34  ;;  %v28329_v52 = vld [vmem:[#allocation75_spill] sm:$0xff] }
 0x628   :  { %v26076_v29 = vpop.xlane.xlu0 %17273  ;;  %v18112_v35 = vrot.slane %v28329_v52, %v25653_v9 }
 0x629   :  { %v18130_v61 = vrot.slane %v26076_v29, %v25665_v50  ;;  %v18103_v29 = vsel %vm17932_vm9, %v18102_v27, %v18098_v46 }
 0x62f   :  { %v17208_v30 = vpop.xlane.xlu0 %17207 }
 0x630   :  { %v18028_v13 = vrot.slane %v17208_v30, %v25653_v9  ;;  %v18117_v30 = vsel %vm17932_vm9, %v18116_v47, %v18112_v35  ;;  %v17578_v9 = vsel %vm9424_vm8, %v17564_v20, %v17577_v12 }
 0x631   :  { %v18169_v14 = vsel %vm18167_vm15, %v17578_v9, %v17871_v0 }
 0x632   :  { %v18033_v1 = vsel %vm17932_vm9, %v18032_v63, %v18028_v13  ;;  %v18122_v63 = vsel %vm17939_vm10, %v18121_v24, %v18117_v30  ;;  %v18131_v13 = vsel %vm17932_vm9, %v18130_v61, %v18126_v4 }
 0x633   :  { %v18038_v28 = vsel %vm17939_vm10, %v18037_v55, %v18033_v1  ;;  %v17277_v6 = vpop.xlane.xlu0 %17276  ;;  %v18108_v55 = vsel %vm17939_vm10, %v18107_v7, %v18103_v29 }
 0x634   :  { %v18157_v38 = vsel %vm9424_vm8, %v18038_v28, %v18156_v37  ;;  %v18135_v17 = vrot.slane %v17277_v6, %v25656_v34  ;;  %v18161_v48 = vsel %vm9418_vm5, %v18108_v55, %v18160_v36 }
 0x635   :  { %v18171_v53 = vsel %vm18170_vm0, %v18168_v2, %v18157_v38  ;;  %v18162_v19 = vsel %vm9420_vm6, %v18122_v63, %v18161_v48 }
 0x636   :  { %v18180_v39 = vadd.f32 %v18307_v58, %v18171_v53 }
 0x637   :  { %v17283_v18 = vpop.xlane.xlu0 %17282 }
 0x638   :  { %18183 = vst.msk [vmem:[%s26228_s15] sm:$0xff] %vm18182_vm1, %v18180_v39  ;;  %v18144_v44 = vrot.slane %v17283_v18, %v25665_v50  ;;  %v18136_v50 = vsel %vm17939_vm10, %v18135_v17, %v18131_v13 }
 0x639   :  { %v18163_v25 = vsel %vm9422_vm7, %v18136_v50, %v18162_v19 }
 0x63a   :  { %v18145_v1 = vsel %vm17932_vm9, %v18144_v44, %v18140_v16 }
 0x63b   :  { %v17286_v26 = vpop.xlane.xlu0 %17285 }
 0x63c   :  { %v18149_v42 = vrot.slane %v17286_v26, %v25656_v34 }
 0x63e   :  { %v18150_v57 = vsel %vm17939_vm10, %v18149_v42, %v18145_v1 }
 0x63f   :  { %v18164_v31 = vsel %vm9424_vm8, %v18150_v57, %v18163_v25 }
 0x640   :  { %v18172_v59 = vsel %vm18170_vm0, %v18169_v14, %v18164_v31 }
 0x641   :  { %v18181_v37 = vadd.f32 %v18307_v58, %v18172_v59 }
 0x643   :  { %18184 = vst.msk [vmem:[%s26228_s15 + $0x8] sm:$0xff] %vm18182_vm1, %v18181_v37 }

</bundles_post_ra>
